<compile_context>
chip_gen: v7x
topology: tpu7x:2x2x1
jax: 0.10.0
libtpu: 0.0.40
codegen_flags: <defaults>
</compile_context>

<pallas_src>
import functools

import jax
import jax.numpy as jnp
from jax.experimental import pallas as pl
from jax.experimental.pallas import tpu as pltpu

EPS = 1e-5                  # PyTorch BatchNorm1d default eps
_VMEM_LIMIT = 48 << 20      # < 64 MiB (v7x physical), > 16/32 MiB scoped defaults
_ALIGN = 16                 # sublane alignment good for both f32 and bf16 tiles
_TILE_TARGET = 512          # target rows per tile for the per-point kernels


def _round_up(x, m):
    return ((x + m - 1) // m) * m


def _pick_tile(total, target=_TILE_TARGET, align=_ALIGN):
    """Largest multiple of `align` <= target that divides `total`."""
    t = min(total, target)
    t = max(align, (t // align) * align)
    while total % t:
        t -= align
    return t


# ----------------------------- Pallas kernels -----------------------------

def _pointwise_mlp2_kernel(x_ref, w1_ref, b1_ref, w2_ref, b2_ref, o_ref):
    """relu(relu(x@W1+b1)@W2+b2) on one (TILE_M, Cin) tile. bf16 MXU, f32 acc."""
    x = x_ref[...].astype(jnp.bfloat16)
    h = jnp.dot(x, w1_ref[...], preferred_element_type=jnp.float32)
    h = jnp.maximum(h + b1_ref[...], 0.0)
    h = jnp.dot(h.astype(jnp.bfloat16), w2_ref[...],
                preferred_element_type=jnp.float32)
    h = jnp.maximum(h + b2_ref[...], 0.0)
    o_ref[...] = h.astype(o_ref.dtype)


def pointwise_mlp2(x, w1, b1, w2, b2):
    """Fused conv1+bn+relu, conv2+bn+relu.  x: (M, Cin) -> (M, C2) bf16."""
    M, Cin = x.shape
    C1 = w1.shape[1]
    C2 = w2.shape[1]
    tm = _pick_tile(M)
    return pl.pallas_call(
        _pointwise_mlp2_kernel,
        out_shape=jax.ShapeDtypeStruct((M, C2), jnp.bfloat16),
        grid=(M // tm,),
        in_specs=[pl.BlockSpec((tm, Cin), lambda i: (i, 0)),
                  pl.BlockSpec((Cin, C1), lambda i: (0, 0)),
                  pl.BlockSpec((1, C1), lambda i: (0, 0)),
                  pl.BlockSpec((C1, C2), lambda i: (0, 0)),
                  pl.BlockSpec((1, C2), lambda i: (0, 0))],
        out_specs=pl.BlockSpec((tm, C2), lambda i: (i, 0)),
        compiler_params=pltpu.CompilerParams(
            dimension_semantics=("parallel",),
            vmem_limit_bytes=_VMEM_LIMIT),
    )(x, w1, b1, w2, b2)


def _matmul_maxpool_kernel(x_ref, w_ref, b_ref, o_ref, *, relu, n_valid, tile_n):
    """conv3(+bn)(+relu) on one point-tile, reduced into a running max."""
    n_idx = pl.program_id(1)
    x = x_ref[0].astype(jnp.bfloat16)                     # (tile_n, Cin)
    y = jnp.dot(x, w_ref[...], preferred_element_type=jnp.float32) + b_ref[...]
    if relu:
        y = jnp.maximum(y, 0.0)
    # mask padded rows (point index >= n_valid) with -inf before the max
    row = n_idx * tile_n + jax.lax.broadcasted_iota(jnp.int32, y.shape, 0)
    y = jnp.where(row < n_valid, y, -jnp.inf)
    tile_max = jnp.max(y, axis=0, keepdims=True)          # (1, Cout)

    @pl.when(n_idx == 0)
    def _():
        o_ref[0] = tile_max

    @pl.when(n_idx > 0)
    def _():
        o_ref[0] = jnp.maximum(o_ref[0], tile_max)


def matmul_maxpool(x, w, b, *, relu, n_valid):
    """x: (B, N_pad, Cin) -> max over points of (x@W+b [relu]) : (B, Cout) f32."""
    B, N_pad, Cin = x.shape
    Cout = w.shape[1]
    tn = _pick_tile(N_pad)
    out = pl.pallas_call(
        functools.partial(_matmul_maxpool_kernel, relu=relu,
                          n_valid=n_valid, tile_n=tn),
        out_shape=jax.ShapeDtypeStruct((B, 1, Cout), jnp.float32),
        grid=(B, N_pad // tn),
        in_specs=[pl.BlockSpec((1, tn, Cin), lambda bb, nn: (bb, nn, 0)),
                  pl.BlockSpec((Cin, Cout), lambda bb, nn: (0, 0)),
                  pl.BlockSpec((1, Cout), lambda bb, nn: (0, 0))],
        out_specs=pl.BlockSpec((1, 1, Cout), lambda bb, nn: (bb, 0, 0)),
        compiler_params=pltpu.CompilerParams(
            dimension_semantics=("parallel", "arbitrary"),
            vmem_limit_bytes=_VMEM_LIMIT),
    )(x, w, b)
    return out.reshape(B, Cout)


def _bmm_linear_kernel(x_ref, w_ref, b_ref, o_ref, *, relu):
    """Per-batch x @ W_b + bias (+ relu) on one point-tile."""
    x = x_ref[0].astype(jnp.bfloat16)                     # (tile_n, Cin)
    y = jnp.dot(x, w_ref[0], preferred_element_type=jnp.float32) + b_ref[...]
    if relu:
        y = jnp.maximum(y, 0.0)
    o_ref[0] = y.astype(o_ref.dtype)


def bmm_linear(x, wb, b, *, relu):
    """x: (B, N_pad, Cin), wb: (B, Cin, Cout), b: (1, Cout) -> (B, N_pad, Cout) bf16."""
    B, N_pad, Cin = x.shape
    Cout = wb.shape[2]
    tn = _pick_tile(N_pad)
    return pl.pallas_call(
        functools.partial(_bmm_linear_kernel, relu=relu),
        out_shape=jax.ShapeDtypeStruct((B, N_pad, Cout), jnp.bfloat16),
        grid=(B, N_pad // tn),
        in_specs=[pl.BlockSpec((1, tn, Cin), lambda bb, nn: (bb, nn, 0)),
                  pl.BlockSpec((1, Cin, Cout), lambda bb, nn: (bb, 0, 0)),
                  pl.BlockSpec((1, Cout), lambda bb, nn: (0, 0))],
        out_specs=pl.BlockSpec((1, tn, Cout), lambda bb, nn: (bb, nn, 0)),
        compiler_params=pltpu.CompilerParams(
            dimension_semantics=("parallel", "parallel"),
            vmem_limit_bytes=_VMEM_LIMIT),
    )(x, wb, b)


def _head_mlp_kernel(x_ref, w1_ref, b1_ref, w2_ref, b2_ref, w3_ref, b3_ref,
                     o_ref, *, logsoftmax):
    """Fused fc1+relu, fc2+relu, fc3 (+ logsoftmax).  Tiny, latency-bound."""
    h = x_ref[...].astype(jnp.bfloat16)
    h = jnp.dot(h, w1_ref[...], preferred_element_type=jnp.float32) + b1_ref[...]
    h = jnp.maximum(h, 0.0)
    h = jnp.dot(h.astype(jnp.bfloat16), w2_ref[...],
                preferred_element_type=jnp.float32) + b2_ref[...]
    h = jnp.maximum(h, 0.0)
    y = jnp.dot(h.astype(jnp.bfloat16), w3_ref[...],
                preferred_element_type=jnp.float32) + b3_ref[...]
    if logsoftmax:
        m = jnp.max(y, axis=-1, keepdims=True)
        s = y - m
        y = s - jnp.log(jnp.sum(jnp.exp(s), axis=-1, keepdims=True))
    o_ref[...] = y.astype(o_ref.dtype)


def head_mlp(x, w1, b1, w2, b2, w3, b3, *, logsoftmax):
    """x: (B, D0) -> (B, D3) f32.  One fused kernel instead of 3-4 launches."""
    B, D0 = x.shape
    D1, D2, D3 = w1.shape[1], w2.shape[1], w3.shape[1]
    return pl.pallas_call(
        functools.partial(_head_mlp_kernel, logsoftmax=logsoftmax),
        out_shape=jax.ShapeDtypeStruct((B, D3), jnp.float32),
        grid=(1,),
        in_specs=[pl.BlockSpec((B, D0), lambda i: (0, 0)),
                  pl.BlockSpec((D0, D1), lambda i: (0, 0)),
                  pl.BlockSpec((1, D1), lambda i: (0, 0)),
                  pl.BlockSpec((D1, D2), lambda i: (0, 0)),
                  pl.BlockSpec((1, D2), lambda i: (0, 0)),
                  pl.BlockSpec((D2, D3), lambda i: (0, 0)),
                  pl.BlockSpec((1, D3), lambda i: (0, 0))],
        out_specs=pl.BlockSpec((B, D3), lambda i: (0, 0)),
        compiler_params=pltpu.CompilerParams(
            dimension_semantics=("arbitrary",),
            vmem_limit_bytes=_VMEM_LIMIT),
    )(x, w1, b1, w2, b2, w3, b3)


# --------------------- deterministic parameter init -----------------------

def init_linear_params(key, in_f, out_f):
    kw, kb = jax.random.split(key)
    bound = 1.0 / (in_f ** 0.5)
    w = jax.random.uniform(kw, (out_f, in_f), jnp.float32, -bound, bound)
    b = jax.random.uniform(kb, (out_f,), jnp.float32, -bound, bound)
    return {"w": w, "b": b}


def init_bn_params(key, c):
    k1, k2, k3, k4 = jax.random.split(key, 4)
    return {
        "gamma": 1.0 + 0.1 * jax.random.normal(k1, (c,), jnp.float32),
        "beta": 0.1 * jax.random.normal(k2, (c,), jnp.float32),
        "mean": 0.1 * jax.random.normal(k3, (c,), jnp.float32),
        "var": jax.random.uniform(k4, (c,), jnp.float32, 0.5, 1.5),
    }


def fold_bn(lin, bn):
    """Fold eval-mode BatchNorm1d into (weight.T, bias) of the preceding layer."""
    s = bn["gamma"] / jnp.sqrt(bn["var"] + EPS)
    wt = lin["w"].T * s[None, :]
    bf = (lin["b"] - bn["mean"]) * s + bn["beta"]
    return wt, bf.reshape(1, -1)


def plain(lin):
    return lin["w"].T, lin["b"].reshape(1, -1)


def init_tnet_params(key, k):
    ks = jax.random.split(key, 11)
    return {
        "conv1": init_linear_params(ks[0], k, 64),
        "conv2": init_linear_params(ks[1], 64, 128),
        "conv3": init_linear_params(ks[2], 128, 1024),
        "fc1": init_linear_params(ks[3], 1024, 512),
        "fc2": init_linear_params(ks[4], 512, 256),
        "fc3": init_linear_params(ks[5], 256, k * k),
        "bn1": init_bn_params(ks[6], 64),
        "bn2": init_bn_params(ks[7], 128),
        "bn3": init_bn_params(ks[8], 1024),
        "bn4": init_bn_params(ks[9], 512),
        "bn5": init_bn_params(ks[10], 256),
    }


def init_transform_params(key):
    ks = jax.random.split(key, 8)
    return {
        "t3": init_tnet_params(ks[0], 3),
        "t64": init_tnet_params(ks[1], 64),
        "conv1": init_linear_params(ks[2], 3, 64),
        "conv2": init_linear_params(ks[3], 64, 128),
        "conv3": init_linear_params(ks[4], 128, 1024),
        "bn1": init_bn_params(ks[5], 64),
        "bn2": init_bn_params(ks[6], 128),
        "bn3": init_bn_params(ks[7], 1024),
    }


def init_pointnet_params(key, classes=2):
    ks = jax.random.split(key, 6)
    return {
        "transform": init_transform_params(ks[0]),
        "fc1": init_linear_params(ks[1], 1024, 512),
        "fc2": init_linear_params(ks[2], 512, 256),
        "fc3": init_linear_params(ks[3], 256, classes),
        "bn1": init_bn_params(ks[4], 512),
        "bn2": init_bn_params(ks[5], 256),
    }


# --------------- one-time BN folding / weight preparation ------------------
# (hoisted out of the forward path: folded + transposed + bf16 once)

def prepare_tnet_params(p):
    bf = jnp.bfloat16
    w1, b1 = fold_bn(p["conv1"], p["bn1"])
    w2, b2 = fold_bn(p["conv2"], p["bn2"])
    w3, b3 = fold_bn(p["conv3"], p["bn3"])
    fw1, fb1 = fold_bn(p["fc1"], p["bn4"])
    fw2, fb2 = fold_bn(p["fc2"], p["bn5"])
    fw3, fb3 = plain(p["fc3"])
    return {"w1": w1.astype(bf), "b1": b1, "w2": w2.astype(bf), "b2": b2,
            "w3": w3.astype(bf), "b3": b3,
            "fw1": fw1.astype(bf), "fb1": fb1,
            "fw2": fw2.astype(bf), "fb2": fb2,
            "fw3": fw3.astype(bf), "fb3": fb3}


def prepare_transform_params(p):
    bf = jnp.bfloat16
    w1, b1 = fold_bn(p["conv1"], p["bn1"])   # kept f32: runtime einsum with m3
    w2, b2 = fold_bn(p["conv2"], p["bn2"])   # kept f32: runtime einsum with m64
    w3, b3 = fold_bn(p["conv3"], p["bn3"])
    return {"t3": prepare_tnet_params(p["t3"]),
            "t64": prepare_tnet_params(p["t64"]),
            "w1": w1, "b1": b1, "w2": w2, "b2": b2,
            "w3": w3.astype(bf), "b3": b3}


def prepare_pointnet_params(p):
    bf = jnp.bfloat16
    hw1, hb1 = fold_bn(p["fc1"], p["bn1"])
    hw2, hb2 = fold_bn(p["fc2"], p["bn2"])
    hw3, hb3 = plain(p["fc3"])
    return {"transform": prepare_transform_params(p["transform"]),
            "hw1": hw1.astype(bf), "hb1": hb1,
            "hw2": hw2.astype(bf), "hb2": hb2,
            "hw3": hw3.astype(bf), "hb3": hb3}


# ------------------------------ forward pass -------------------------------

def tnet_forward(fp, x_bnc, n_valid, k):
    """x_bnc: (B, N_pad, k) channels-last.  Returns (B, k, k) transform."""
    B, N_pad, _ = x_bnc.shape
    # conv1+bn+relu, conv2+bn+relu fused
    h = pointwise_mlp2(x_bnc.reshape(B * N_pad, k),
                       fp["w1"], fp["b1"], fp["w2"], fp["b2"])
    # conv3+bn+relu fused with global max-pool (padded rows masked with -inf)
    pooled = matmul_maxpool(h.reshape(B, N_pad, 128), fp["w3"], fp["b3"],
                            relu=True, n_valid=n_valid)          # (B, 1024)
    # fc1+fc2+fc3 fused
    m = head_mlp(pooled, fp["fw1"], fp["fb1"], fp["fw2"], fp["fb2"],
                 fp["fw3"], fp["fb3"], logsoftmax=False)          # (B, k*k)
    return m.reshape(B, k, k) + jnp.eye(k, dtype=jnp.float32)[None]


def transform_forward(fp, x, n_valid):
    """x: (B, N_pad, 3) channels-last (zero-padded beyond n_valid points)."""
    m3 = tnet_forward(fp["t3"], x, n_valid, 3)                    # (B, 3, 3)
    # (x @ m3) @ W1 == x @ (m3 @ W1): premultiply the per-batch transform
    w1p = jnp.einsum("bij,jk->bik", m3, fp["w1"]).astype(jnp.bfloat16)
    xb64 = bmm_linear(x, w1p, fp["b1"], relu=True)                # (B,N_pad,64)
    m64 = tnet_forward(fp["t64"], xb64, n_valid, 64)              # (B, 64, 64)
    w2p = jnp.einsum("bij,jk->bik", m64, fp["w2"]).astype(jnp.bfloat16)
    xb128 = bmm_linear(xb64, w2p, fp["b2"], relu=True)            # (B,N_pad,128)
    # conv3+bn3 (no relu) fused with global max-pool
    feat = matmul_maxpool(xb128, fp["w3"], fp["b3"],
                          relu=False, n_valid=n_valid)            # (B, 1024)
    return feat, m3, m64


def pointnet_forward(fp, x_ncl):
    """x_ncl: (B, 3, N) -- PyTorch Conv1d (N, C, L) layout."""
    B, _, N = x_ncl.shape
    x = jnp.transpose(x_ncl, (0, 2, 1))                           # (B, N, 3)
    N_pad = _round_up(N, _ALIGN)
    if N_pad != N:
        x = jnp.pad(x, ((0, 0), (0, N_pad - N), (0, 0)))
    feat, m3, m64 = transform_forward(fp["transform"], x, N)
    # TODO(synk): nn.Dropout(p=0.3) train-mode masking not implemented;
    # eval/inference semantics (identity) are used here.
    out = head_mlp(feat, fp["hw1"], fp["hb1"], fp["hw2"], fp["hb2"],
                   fp["hw3"], fp["hb3"], logsoftmax=True)         # (B, classes)
    return out, m3, m64


# ---------------------------------- main -----------------------------------

if __name__ == "__main__":
    key = jax.random.PRNGKey(0)
    kp, kx = jax.random.split(key)

    B, N, classes = 2, 16, 2
    raw_params = init_pointnet_params(kp, classes=classes)
    params = prepare_pointnet_params(raw_params)      # fold BN once, bf16 weights
    x = jax.random.normal(kx, (B, 3, N), jnp.float32)  # PyTorch layout

    fwd = jax.jit(pointnet_forward)
    out, m3, m64 = fwd(params, x)
    (out, m3, m64) = jax.block_until_ready((out, m3, m64))

    assert out.shape == (B, classes)
    assert m3.shape == (B, 3, 3)
    assert m64.shape == (B, 64, 64)
    assert bool(jnp.all(jnp.isfinite(out)))
    # log-softmax rows must sum to ~1 in prob space
    assert bool(jnp.allclose(jnp.sum(jnp.exp(out), axis=1), 1.0, atol=1e-5))

    print("KERNEL_OK")
</pallas_src>

<mosaic_0001>
module attributes {stable_mosaic.version = 11 : i64} {
  func.func @_matmul_maxpool_kernel(%arg0: i32, %arg1: i32, %arg2: memref<1x16x128xbf16, #tpu.memory_space<vmem>>, %arg3: memref<128x1024xbf16, #tpu.memory_space<vmem>>, %arg4: memref<1x1024xf32, #tpu.memory_space<vmem>>, %arg5: memref<1x1x1024xf32, #tpu.memory_space<vmem>>) attributes {dimension_semantics = [#tpu.dimension_semantics<parallel>, #tpu.dimension_semantics<arbitrary>], iteration_bounds = array<i64: 2, 1>, scalar_prefetch = 0 : i64, scratch_operands = 0 : i64, tpu.core_type = #tpu.core_type<tc>, window_params = [{transform_indices = @transform_0, window_bounds = array<i64: 1, 16, 128>}, {pipeline_mode = #tpu.pipeline_mode<synchronous>, transform_indices = @transform_1, window_bounds = array<i64: 128, 1024>}, {pipeline_mode = #tpu.pipeline_mode<synchronous>, transform_indices = @transform_2, window_bounds = array<i64: 1, 1024>}, {transform_indices = @transform_3, window_bounds = array<i64: 1, 1, 1024>}]} {
    %c0 = arith.constant 0 : index
    %c0_0 = arith.constant 0 : index
    %c0_1 = arith.constant 0 : index
    %0 = vector.load %arg2[%c0, %c0_0, %c0_1] : memref<1x16x128xbf16, #tpu.memory_space<vmem>>, vector<1x16x128xbf16>
    %1 = vector.shape_cast %0 : vector<1x16x128xbf16> to vector<16x128xbf16>
    %c0_2 = arith.constant 0 : index
    %c0_3 = arith.constant 0 : index
    %2 = vector.load %arg3[%c0_2, %c0_3] : memref<128x1024xbf16, #tpu.memory_space<vmem>>, vector<128x1024xbf16>
    %cst = arith.constant dense<0.000000e+00> : vector<16x1024xf32>
    %3 = tpu.matmul %1, %2, %cst {dimension_numbers = #tpu.dot_dimension_numbers<[1], [0], [0], [1], [0, 0, 1, 1], [], []>} : vector<16x128xbf16>, vector<128x1024xbf16>, vector<16x1024xf32> -> vector<16x1024xf32>
    %c0_4 = arith.constant 0 : index
    %c0_5 = arith.constant 0 : index
    %4 = vector.load %arg4[%c0_4, %c0_5] : memref<1x1024xf32, #tpu.memory_space<vmem>>, vector<1x1024xf32>
    %5 = vector.broadcast %4 : vector<1x1024xf32> to vector<16x1024xf32>
    %6 = arith.addf %3, %5 : vector<16x1024xf32>
    %cst_6 = arith.constant 0.000000e+00 : f32
    %7 = vector.broadcast %cst_6 : f32 to vector<16x1024xf32>
    %8 = arith.maximumf %6, %7 : vector<16x1024xf32>
    %c16_i32 = arith.constant 16 : i32
    %9 = arith.muli %arg1, %c16_i32 : i32
    %10 = tpu.iota {dimensions = array<i32: 0>} : vector<16x1024xi32>
    %11 = vector.broadcast %9 : i32 to vector<16x1024xi32>
    %12 = arith.addi %11, %10 : vector<16x1024xi32>
    %c16_i32_7 = arith.constant 16 : i32
    %13 = vector.broadcast %c16_i32_7 : i32 to vector<16x1024xi32>
    %14 = arith.cmpi slt, %12, %13 : vector<16x1024xi32>
    %cst_8 = arith.constant 0xFF800000 : f32
    %15 = vector.broadcast %cst_8 : f32 to vector<16x1024xf32>
    %16 = arith.select %14, %8, %15 : vector<16x1024xi1>, vector<16x1024xf32>
    %cst_9 = arith.constant dense<0xFF800000> : vector<1024xf32>
    %17 = vector.multi_reduction <maximumf>, %16, %cst_9 [0] : vector<16x1024xf32> to vector<1024xf32>
    %18 = vector.shape_cast %17 : vector<1024xf32> to vector<1x1024xf32>
    %c0_i32 = arith.constant 0 : i32
    %19 = arith.cmpi eq, %arg1, %c0_i32 : i32
    %20 = arith.extui %19 : i1 to i32
    %c0_i32_10 = arith.constant 0 : i32
    %21 = arith.cmpi ne, %20, %c0_i32_10 : i32
    scf.if %21 {
      %c0_13 = arith.constant 0 : index
      %c0_14 = arith.constant 0 : index
      %c0_15 = arith.constant 0 : index
      %25 = vector.load %arg5[%c0_13, %c0_14, %c0_15] : memref<1x1x1024xf32, #tpu.memory_space<vmem>>, vector<1x1x1024xf32>
      %26 = vector.shape_cast %25 : vector<1x1x1024xf32> to vector<1x1024xf32>
      %27 = vector.shape_cast %18 : vector<1x1024xf32> to vector<1x1x1024xf32>
      tpu.vector_store %arg5[%c0_13, %c0_14, %c0_15], %27 {strides = array<i32>} : memref<1x1x1024xf32, #tpu.memory_space<vmem>>, vector<1x1x1024xf32>,
    } else {
    }
    %c0_i32_11 = arith.constant 0 : i32
    %22 = arith.cmpi sgt, %arg1, %c0_i32_11 : i32
    %23 = arith.extui %22 : i1 to i32
    %c0_i32_12 = arith.constant 0 : i32
    %24 = arith.cmpi ne, %23, %c0_i32_12 : i32
    scf.if %24 {
      %c0_13 = arith.constant 0 : index
      %c0_14 = arith.constant 0 : index
      %c0_15 = arith.constant 0 : index
      %25 = vector.load %arg5[%c0_13, %c0_14, %c0_15] : memref<1x1x1024xf32, #tpu.memory_space<vmem>>, vector<1x1x1024xf32>
      %26 = vector.shape_cast %25 : vector<1x1x1024xf32> to vector<1x1024xf32>
      %27 = arith.maximumf %26, %18 : vector<1x1024xf32>
      %c0_16 = arith.constant 0 : index
      %c0_17 = arith.constant 0 : index
      %c0_18 = arith.constant 0 : index
      %28 = vector.load %arg5[%c0_16, %c0_17, %c0_18] : memref<1x1x1024xf32, #tpu.memory_space<vmem>>, vector<1x1x1024xf32>
      %29 = vector.shape_cast %28 : vector<1x1x1024xf32> to vector<1x1024xf32>
      %30 = vector.shape_cast %27 : vector<1x1024xf32> to vector<1x1x1024xf32>
      tpu.vector_store %arg5[%c0_16, %c0_17, %c0_18], %30 {strides = array<i32>} : memref<1x1x1024xf32, #tpu.memory_space<vmem>>, vector<1x1x1024xf32>,
    } else {
    }
    return
  }
  func.func @transform_0(%arg0: i32, %arg1: i32) -> (i32, i32, i32) {
    %c0_i32 = arith.constant 0 : i32
    %c0_i32_0 = arith.constant 0 : i32
    return %arg0, %arg1, %c0_i32 : i32, i32, i32
  }
  func.func @transform_1(%arg0: i32, %arg1: i32) -> (i32, i32) {
    %c0_i32 = arith.constant 0 : i32
    %c0_i32_0 = arith.constant 0 : i32
    %c0_i32_1 = arith.constant 0 : i32
    return %c0_i32, %c0_i32_0 : i32, i32
  }
  func.func @transform_2(%arg0: i32, %arg1: i32) -> (i32, i32) {
    %c0_i32 = arith.constant 0 : i32
    %c0_i32_0 = arith.constant 0 : i32
    %c0_i32_1 = arith.constant 0 : i32
    return %c0_i32, %c0_i32_0 : i32, i32
  }
  func.func @transform_3(%arg0: i32, %arg1: i32) -> (i32, i32, i32) {
    %c0_i32 = arith.constant 0 : i32
    %c0_i32_0 = arith.constant 0 : i32
    %c0_i32_1 = arith.constant 0 : i32
    return %arg0, %c0_i32, %c0_i32_0 : i32, i32, i32
  }
}

module attributes {stable_mosaic.version = 11 : i64} {
  func.func @_head_mlp_kernel(%arg0: i32, %arg1: memref<2x1024xf32, #tpu.memory_space<vmem>>, %arg2: memref<1024x512xbf16, #tpu.memory_space<vmem>>, %arg3: memref<1x512xf32, #tpu.memory_space<vmem>>, %arg4: memref<512x256xbf16, #tpu.memory_space<vmem>>, %arg5: memref<1x256xf32, #tpu.memory_space<vmem>>, %arg6: memref<256x9xbf16, #tpu.memory_space<vmem>>, %arg7: memref<1x9xf32, #tpu.memory_space<vmem>>, %arg8: memref<2x9xf32, #tpu.memory_space<vmem>>) attributes {dimension_semantics = [#tpu.dimension_semantics<arbitrary>], iteration_bounds = array<i64: 1>, scalar_prefetch = 0 : i64, scratch_operands = 0 : i64, tpu.core_type = #tpu.core_type<tc>, window_params = [{pipeline_mode = #tpu.pipeline_mode<synchronous>, transform_indices = @transform_0, window_bounds = array<i64: 2, 1024>}, {pipeline_mode = #tpu.pipeline_mode<synchronous>, transform_indices = @transform_1, window_bounds = array<i64: 1024, 512>}, {pipeline_mode = #tpu.pipeline_mode<synchronous>, transform_indices = @transform_2, window_bounds = array<i64: 1, 512>}, {pipeline_mode = #tpu.pipeline_mode<synchronous>, transform_indices = @transform_3, window_bounds = array<i64: 512, 256>}, {pipeline_mode = #tpu.pipeline_mode<synchronous>, transform_indices = @transform_4, window_bounds = array<i64: 1, 256>}, {pipeline_mode = #tpu.pipeline_mode<synchronous>, transform_indices = @transform_5, window_bounds = array<i64: 256, 9>}, {pipeline_mode = #tpu.pipeline_mode<synchronous>, transform_indices = @transform_6, window_bounds = array<i64: 1, 9>}, {pipeline_mode = #tpu.pipeline_mode<synchronous>, transform_indices = @transform_7, window_bounds = array<i64: 2, 9>}]} {
    %c0 = arith.constant 0 : index
    %c0_0 = arith.constant 0 : index
    %0 = vector.load %arg1[%c0, %c0_0] : memref<2x1024xf32, #tpu.memory_space<vmem>>, vector<2x1024xf32>
    %1 = arith.truncf %0 : vector<2x1024xf32> to vector<2x1024xbf16>
    %c0_1 = arith.constant 0 : index
    %c0_2 = arith.constant 0 : index
    %2 = vector.load %arg2[%c0_1, %c0_2] : memref<1024x512xbf16, #tpu.memory_space<vmem>>, vector<1024x512xbf16>
    %cst = arith.constant dense<0.000000e+00> : vector<2x512xf32>
    %3 = tpu.matmul %1, %2, %cst {dimension_numbers = #tpu.dot_dimension_numbers<[1], [0], [0], [1], [0, 0, 1, 1], [], []>} : vector<2x1024xbf16>, vector<1024x512xbf16>, vector<2x512xf32> -> vector<2x512xf32>
    %c0_3 = arith.constant 0 : index
    %c0_4 = arith.constant 0 : index
    %4 = vector.load %arg3[%c0_3, %c0_4] : memref<1x512xf32, #tpu.memory_space<vmem>>, vector<1x512xf32>
    %5 = vector.broadcast %4 : vector<1x512xf32> to vector<2x512xf32>
    %6 = arith.addf %3, %5 : vector<2x512xf32>
    %cst_5 = arith.constant 0.000000e+00 : f32
    %7 = vector.broadcast %cst_5 : f32 to vector<2x512xf32>
    %8 = arith.maximumf %6, %7 : vector<2x512xf32>
    %9 = arith.truncf %8 : vector<2x512xf32> to vector<2x512xbf16>
    %c0_6 = arith.constant 0 : index
    %c0_7 = arith.constant 0 : index
    %10 = vector.load %arg4[%c0_6, %c0_7] : memref<512x256xbf16, #tpu.memory_space<vmem>>, vector<512x256xbf16>
    %cst_8 = arith.constant dense<0.000000e+00> : vector<2x256xf32>
    %11 = tpu.matmul %9, %10, %cst_8 {dimension_numbers = #tpu.dot_dimension_numbers<[1], [0], [0], [1], [0, 0, 1, 1], [], []>} : vector<2x512xbf16>, vector<512x256xbf16>, vector<2x256xf32> -> vector<2x256xf32>
    %c0_9 = arith.constant 0 : index
    %c0_10 = arith.constant 0 : index
    %12 = vector.load %arg5[%c0_9, %c0_10] : memref<1x256xf32, #tpu.memory_space<vmem>>, vector<1x256xf32>
    %13 = vector.broadcast %12 : vector<1x256xf32> to vector<2x256xf32>
    %14 = arith.addf %11, %13 : vector<2x256xf32>
    %cst_11 = arith.constant 0.000000e+00 : f32
    %15 = vector.broadcast %cst_11 : f32 to vector<2x256xf32>
    %16 = arith.maximumf %14, %15 : vector<2x256xf32>
    %17 = arith.truncf %16 : vector<2x256xf32> to vector<2x256xbf16>
    %c0_12 = arith.constant 0 : index
    %c0_13 = arith.constant 0 : index
    %18 = vector.load %arg6[%c0_12, %c0_13] : memref<256x9xbf16, #tpu.memory_space<vmem>>, vector<256x9xbf16>
    %cst_14 = arith.constant dense<0.000000e+00> : vector<2x9xf32>
    %19 = tpu.matmul %17, %18, %cst_14 {dimension_numbers = #tpu.dot_dimension_numbers<[1], [0], [0], [1], [0, 0, 1, 1], [], []>} : vector<2x256xbf16>, vector<256x9xbf16>, vector<2x9xf32> -> vector<2x9xf32>
    %c0_15 = arith.constant 0 : index
    %c0_16 = arith.constant 0 : index
    %20 = vector.load %arg7[%c0_15, %c0_16] : memref<1x9xf32, #tpu.memory_space<vmem>>, vector<1x9xf32>
    %21 = vector.broadcast %20 : vector<1x9xf32> to vector<2x9xf32>
    %22 = arith.addf %19, %21 : vector<2x9xf32>
    %c0_17 = arith.constant 0 : index
    %c0_18 = arith.constant 0 : index
    %23 = vector.load %arg8[%c0_17, %c0_18] : memref<2x9xf32, #tpu.memory_space<vmem>>, vector<2x9xf32>
    tpu.vector_store %arg8[%c0_17, %c0_18], %22 {strides = array<i32>} : memref<2x9xf32, #tpu.memory_space<vmem>>, vector<2x9xf32>,
    return
  }
  func.func @transform_0(%arg0: i32) -> (i32, i32) {
    %c0_i32 = arith.constant 0 : i32
    %c0_i32_0 = arith.constant 0 : i32
    %c0_i32_1 = arith.constant 0 : i32
    return %c0_i32, %c0_i32_0 : i32, i32
  }
  func.func @transform_1(%arg0: i32) -> (i32, i32) {
    %c0_i32 = arith.constant 0 : i32
    %c0_i32_0 = arith.constant 0 : i32
    %c0_i32_1 = arith.constant 0 : i32
    return %c0_i32, %c0_i32_0 : i32, i32
  }
  func.func @transform_2(%arg0: i32) -> (i32, i32) {
    %c0_i32 = arith.constant 0 : i32
    %c0_i32_0 = arith.constant 0 : i32
    %c0_i32_1 = arith.constant 0 : i32
    return %c0_i32, %c0_i32_0 : i32, i32
  }
  func.func @transform_3(%arg0: i32) -> (i32, i32) {
    %c0_i32 = arith.constant 0 : i32
    %c0_i32_0 = arith.constant 0 : i32
    %c0_i32_1 = arith.constant 0 : i32
    return %c0_i32, %c0_i32_0 : i32, i32
  }
  func.func @transform_4(%arg0: i32) -> (i32, i32) {
    %c0_i32 = arith.constant 0 : i32
    %c0_i32_0 = arith.constant 0 : i32
    %c0_i32_1 = arith.constant 0 : i32
    return %c0_i32, %c0_i32_0 : i32, i32
  }
  func.func @transform_5(%arg0: i32) -> (i32, i32) {
    %c0_i32 = arith.constant 0 : i32
    %c0_i32_0 = arith.constant 0 : i32
    %c0_i32_1 = arith.constant 0 : i32
    return %c0_i32, %c0_i32_0 : i32, i32
  }
  func.func @transform_6(%arg0: i32) -> (i32, i32) {
    %c0_i32 = arith.constant 0 : i32
    %c0_i32_0 = arith.constant 0 : i32
    %c0_i32_1 = arith.constant 0 : i32
    return %c0_i32, %c0_i32_0 : i32, i32
  }
  func.func @transform_7(%arg0: i32) -> (i32, i32) {
    %c0_i32 = arith.constant 0 : i32
    %c0_i32_0 = arith.constant 0 : i32
    %c0_i32_1 = arith.constant 0 : i32
    return %c0_i32, %c0_i32_0 : i32, i32
  }
}

module attributes {stable_mosaic.version = 11 : i64} {
  func.func @_pointwise_mlp2_kernel(%arg0: i32, %arg1: memref<32x3xf32, #tpu.memory_space<vmem>>, %arg2: memref<3x64xbf16, #tpu.memory_space<vmem>>, %arg3: memref<1x64xf32, #tpu.memory_space<vmem>>, %arg4: memref<64x128xbf16, #tpu.memory_space<vmem>>, %arg5: memref<1x128xf32, #tpu.memory_space<vmem>>, %arg6: memref<32x128xbf16, #tpu.memory_space<vmem>>) attributes {dimension_semantics = [#tpu.dimension_semantics<parallel>], iteration_bounds = array<i64: 1>, scalar_prefetch = 0 : i64, scratch_operands = 0 : i64, tpu.core_type = #tpu.core_type<tc>, window_params = [{transform_indices = @transform_0, window_bounds = array<i64: 32, 3>}, {pipeline_mode = #tpu.pipeline_mode<synchronous>, transform_indices = @transform_1, window_bounds = array<i64: 3, 64>}, {pipeline_mode = #tpu.pipeline_mode<synchronous>, transform_indices = @transform_2, window_bounds = array<i64: 1, 64>}, {pipeline_mode = #tpu.pipeline_mode<synchronous>, transform_indices = @transform_3, window_bounds = array<i64: 64, 128>}, {pipeline_mode = #tpu.pipeline_mode<synchronous>, transform_indices = @transform_4, window_bounds = array<i64: 1, 128>}, {transform_indices = @transform_5, window_bounds = array<i64: 32, 128>}]} {
    %c0 = arith.constant 0 : index
    %c0_0 = arith.constant 0 : index
    %0 = vector.load %arg1[%c0, %c0_0] : memref<32x3xf32, #tpu.memory_space<vmem>>, vector<32x3xf32>
    %1 = arith.truncf %0 : vector<32x3xf32> to vector<32x3xbf16>
    %c0_1 = arith.constant 0 : index
    %c0_2 = arith.constant 0 : index
    %2 = vector.load %arg2[%c0_1, %c0_2] : memref<3x64xbf16, #tpu.memory_space<vmem>>, vector<3x64xbf16>
    %cst = arith.constant dense<0.000000e+00> : vector<32x64xf32>
    %3 = tpu.matmul %1, %2, %cst {dimension_numbers = #tpu.dot_dimension_numbers<[1], [0], [0], [1], [0, 0, 1, 1], [], []>} : vector<32x3xbf16>, vector<3x64xbf16>, vector<32x64xf32> -> vector<32x64xf32>
    %c0_3 = arith.constant 0 : index
    %c0_4 = arith.constant 0 : index
    %4 = vector.load %arg3[%c0_3, %c0_4] : memref<1x64xf32, #tpu.memory_space<vmem>>, vector<1x64xf32>
    %5 = vector.broadcast %4 : vector<1x64xf32> to vector<32x64xf32>
    %6 = arith.addf %3, %5 : vector<32x64xf32>
    %cst_5 = arith.constant 0.000000e+00 : f32
    %7 = vector.broadcast %cst_5 : f32 to vector<32x64xf32>
    %8 = arith.maximumf %6, %7 : vector<32x64xf32>
    %9 = arith.truncf %8 : vector<32x64xf32> to vector<32x64xbf16>
    %c0_6 = arith.constant 0 : index
    %c0_7 = arith.constant 0 : index
    %10 = vector.load %arg4[%c0_6, %c0_7] : memref<64x128xbf16, #tpu.memory_space<vmem>>, vector<64x128xbf16>
    %cst_8 = arith.constant dense<0.000000e+00> : vector<32x128xf32>
    %11 = tpu.matmul %9, %10, %cst_8 {dimension_numbers = #tpu.dot_dimension_numbers<[1], [0], [0], [1], [0, 0, 1, 1], [], []>} : vector<32x64xbf16>, vector<64x128xbf16>, vector<32x128xf32> -> vector<32x128xf32>
    %c0_9 = arith.constant 0 : index
    %c0_10 = arith.constant 0 : index
    %12 = vector.load %arg5[%c0_9, %c0_10] : memref<1x128xf32, #tpu.memory_space<vmem>>, vector<1x128xf32>
    %13 = vector.broadcast %12 : vector<1x128xf32> to vector<32x128xf32>
    %14 = arith.addf %11, %13 : vector<32x128xf32>
    %cst_11 = arith.constant 0.000000e+00 : f32
    %15 = vector.broadcast %cst_11 : f32 to vector<32x128xf32>
    %16 = arith.maximumf %14, %15 : vector<32x128xf32>
    %17 = arith.truncf %16 : vector<32x128xf32> to vector<32x128xbf16>
    %c0_12 = arith.constant 0 : index
    %c0_13 = arith.constant 0 : index
    %18 = vector.load %arg6[%c0_12, %c0_13] : memref<32x128xbf16, #tpu.memory_space<vmem>>, vector<32x128xbf16>
    tpu.vector_store %arg6[%c0_12, %c0_13], %17 {strides = array<i32>} : memref<32x128xbf16, #tpu.memory_space<vmem>>, vector<32x128xbf16>,
    return
  }
  func.func @transform_0(%arg0: i32) -> (i32, i32) {
    %c0_i32 = arith.constant 0 : i32
    %c0_i32_0 = arith.constant 0 : i32
    return %arg0, %c0_i32 : i32, i32
  }
  func.func @transform_1(%arg0: i32) -> (i32, i32) {
    %c0_i32 = arith.constant 0 : i32
    %c0_i32_0 = arith.constant 0 : i32
    %c0_i32_1 = arith.constant 0 : i32
    return %c0_i32, %c0_i32_0 : i32, i32
  }
  func.func @transform_2(%arg0: i32) -> (i32, i32) {
    %c0_i32 = arith.constant 0 : i32
    %c0_i32_0 = arith.constant 0 : i32
    %c0_i32_1 = arith.constant 0 : i32
    return %c0_i32, %c0_i32_0 : i32, i32
  }
  func.func @transform_3(%arg0: i32) -> (i32, i32) {
    %c0_i32 = arith.constant 0 : i32
    %c0_i32_0 = arith.constant 0 : i32
    %c0_i32_1 = arith.constant 0 : i32
    return %c0_i32, %c0_i32_0 : i32, i32
  }
  func.func @transform_4(%arg0: i32) -> (i32, i32) {
    %c0_i32 = arith.constant 0 : i32
    %c0_i32_0 = arith.constant 0 : i32
    %c0_i32_1 = arith.constant 0 : i32
    return %c0_i32, %c0_i32_0 : i32, i32
  }
  func.func @transform_5(%arg0: i32) -> (i32, i32) {
    %c0_i32 = arith.constant 0 : i32
    %c0_i32_0 = arith.constant 0 : i32
    return %arg0, %c0_i32 : i32, i32
  }
}

module attributes {stable_mosaic.version = 11 : i64} {
  func.func @_pointwise_mlp2_kernel(%arg0: i32, %arg1: memref<32x64xbf16, #tpu.memory_space<vmem>>, %arg2: memref<64x64xbf16, #tpu.memory_space<vmem>>, %arg3: memref<1x64xf32, #tpu.memory_space<vmem>>, %arg4: memref<64x128xbf16, #tpu.memory_space<vmem>>, %arg5: memref<1x128xf32, #tpu.memory_space<vmem>>, %arg6: memref<32x128xbf16, #tpu.memory_space<vmem>>) attributes {dimension_semantics = [#tpu.dimension_semantics<parallel>], iteration_bounds = array<i64: 1>, scalar_prefetch = 0 : i64, scratch_operands = 0 : i64, tpu.core_type = #tpu.core_type<tc>, window_params = [{transform_indices = @transform_0, window_bounds = array<i64: 32, 64>}, {pipeline_mode = #tpu.pipeline_mode<synchronous>, transform_indices = @transform_1, window_bounds = array<i64: 64, 64>}, {pipeline_mode = #tpu.pipeline_mode<synchronous>, transform_indices = @transform_2, window_bounds = array<i64: 1, 64>}, {pipeline_mode = #tpu.pipeline_mode<synchronous>, transform_indices = @transform_3, window_bounds = array<i64: 64, 128>}, {pipeline_mode = #tpu.pipeline_mode<synchronous>, transform_indices = @transform_4, window_bounds = array<i64: 1, 128>}, {transform_indices = @transform_5, window_bounds = array<i64: 32, 128>}]} {
    %c0 = arith.constant 0 : index
    %c0_0 = arith.constant 0 : index
    %0 = vector.load %arg1[%c0, %c0_0] : memref<32x64xbf16, #tpu.memory_space<vmem>>, vector<32x64xbf16>
    %c0_1 = arith.constant 0 : index
    %c0_2 = arith.constant 0 : index
    %1 = vector.load %arg2[%c0_1, %c0_2] : memref<64x64xbf16, #tpu.memory_space<vmem>>, vector<64x64xbf16>
    %cst = arith.constant dense<0.000000e+00> : vector<32x64xf32>
    %2 = tpu.matmul %0, %1, %cst {dimension_numbers = #tpu.dot_dimension_numbers<[1], [0], [0], [1], [0, 0, 1, 1], [], []>} : vector<32x64xbf16>, vector<64x64xbf16>, vector<32x64xf32> -> vector<32x64xf32>
    %c0_3 = arith.constant 0 : index
    %c0_4 = arith.constant 0 : index
    %3 = vector.load %arg3[%c0_3, %c0_4] : memref<1x64xf32, #tpu.memory_space<vmem>>, vector<1x64xf32>
    %4 = vector.broadcast %3 : vector<1x64xf32> to vector<32x64xf32>
    %5 = arith.addf %2, %4 : vector<32x64xf32>
    %cst_5 = arith.constant 0.000000e+00 : f32
    %6 = vector.broadcast %cst_5 : f32 to vector<32x64xf32>
    %7 = arith.maximumf %5, %6 : vector<32x64xf32>
    %8 = arith.truncf %7 : vector<32x64xf32> to vector<32x64xbf16>
    %c0_6 = arith.constant 0 : index
    %c0_7 = arith.constant 0 : index
    %9 = vector.load %arg4[%c0_6, %c0_7] : memref<64x128xbf16, #tpu.memory_space<vmem>>, vector<64x128xbf16>
    %cst_8 = arith.constant dense<0.000000e+00> : vector<32x128xf32>
    %10 = tpu.matmul %8, %9, %cst_8 {dimension_numbers = #tpu.dot_dimension_numbers<[1], [0], [0], [1], [0, 0, 1, 1], [], []>} : vector<32x64xbf16>, vector<64x128xbf16>, vector<32x128xf32> -> vector<32x128xf32>
    %c0_9 = arith.constant 0 : index
    %c0_10 = arith.constant 0 : index
    %11 = vector.load %arg5[%c0_9, %c0_10] : memref<1x128xf32, #tpu.memory_space<vmem>>, vector<1x128xf32>
    %12 = vector.broadcast %11 : vector<1x128xf32> to vector<32x128xf32>
    %13 = arith.addf %10, %12 : vector<32x128xf32>
    %cst_11 = arith.constant 0.000000e+00 : f32
    %14 = vector.broadcast %cst_11 : f32 to vector<32x128xf32>
    %15 = arith.maximumf %13, %14 : vector<32x128xf32>
    %16 = arith.truncf %15 : vector<32x128xf32> to vector<32x128xbf16>
    %c0_12 = arith.constant 0 : index
    %c0_13 = arith.constant 0 : index
    %17 = vector.load %arg6[%c0_12, %c0_13] : memref<32x128xbf16, #tpu.memory_space<vmem>>, vector<32x128xbf16>
    tpu.vector_store %arg6[%c0_12, %c0_13], %16 {strides = array<i32>} : memref<32x128xbf16, #tpu.memory_space<vmem>>, vector<32x128xbf16>,
    return
  }
  func.func @transform_0(%arg0: i32) -> (i32, i32) {
    %c0_i32 = arith.constant 0 : i32
    %c0_i32_0 = arith.constant 0 : i32
    return %arg0, %c0_i32 : i32, i32
  }
  func.func @transform_1(%arg0: i32) -> (i32, i32) {
    %c0_i32 = arith.constant 0 : i32
    %c0_i32_0 = arith.constant 0 : i32
    %c0_i32_1 = arith.constant 0 : i32
    return %c0_i32, %c0_i32_0 : i32, i32
  }
  func.func @transform_2(%arg0: i32) -> (i32, i32) {
    %c0_i32 = arith.constant 0 : i32
    %c0_i32_0 = arith.constant 0 : i32
    %c0_i32_1 = arith.constant 0 : i32
    return %c0_i32, %c0_i32_0 : i32, i32
  }
  func.func @transform_3(%arg0: i32) -> (i32, i32) {
    %c0_i32 = arith.constant 0 : i32
    %c0_i32_0 = arith.constant 0 : i32
    %c0_i32_1 = arith.constant 0 : i32
    return %c0_i32, %c0_i32_0 : i32, i32
  }
  func.func @transform_4(%arg0: i32) -> (i32, i32) {
    %c0_i32 = arith.constant 0 : i32
    %c0_i32_0 = arith.constant 0 : i32
    %c0_i32_1 = arith.constant 0 : i32
    return %c0_i32, %c0_i32_0 : i32, i32
  }
  func.func @transform_5(%arg0: i32) -> (i32, i32) {
    %c0_i32 = arith.constant 0 : i32
    %c0_i32_0 = arith.constant 0 : i32
    return %arg0, %c0_i32 : i32, i32
  }
}

module attributes {stable_mosaic.version = 11 : i64} {
  func.func @_bmm_linear_kernel(%arg0: i32, %arg1: i32, %arg2: memref<1x16x3xf32, #tpu.memory_space<vmem>>, %arg3: memref<1x3x64xbf16, #tpu.memory_space<vmem>>, %arg4: memref<1x64xf32, #tpu.memory_space<vmem>>, %arg5: memref<1x16x64xbf16, #tpu.memory_space<vmem>>) attributes {dimension_semantics = [#tpu.dimension_semantics<parallel>, #tpu.dimension_semantics<parallel>], iteration_bounds = array<i64: 2, 1>, scalar_prefetch = 0 : i64, scratch_operands = 0 : i64, tpu.core_type = #tpu.core_type<tc>, window_params = [{transform_indices = @transform_0, window_bounds = array<i64: 1, 16, 3>}, {transform_indices = @transform_1, window_bounds = array<i64: 1, 3, 64>}, {pipeline_mode = #tpu.pipeline_mode<synchronous>, transform_indices = @transform_2, window_bounds = array<i64: 1, 64>}, {transform_indices = @transform_3, window_bounds = array<i64: 1, 16, 64>}]} {
    %c0 = arith.constant 0 : index
    %c0_0 = arith.constant 0 : index
    %c0_1 = arith.constant 0 : index
    %0 = vector.load %arg2[%c0, %c0_0, %c0_1] : memref<1x16x3xf32, #tpu.memory_space<vmem>>, vector<1x16x3xf32>
    %1 = vector.shape_cast %0 : vector<1x16x3xf32> to vector<16x3xf32>
    %2 = arith.truncf %1 : vector<16x3xf32> to vector<16x3xbf16>
    %c0_2 = arith.constant 0 : index
    %c0_3 = arith.constant 0 : index
    %c0_4 = arith.constant 0 : index
    %3 = vector.load %arg3[%c0_2, %c0_3, %c0_4] : memref<1x3x64xbf16, #tpu.memory_space<vmem>>, vector<1x3x64xbf16>
    %4 = vector.shape_cast %3 : vector<1x3x64xbf16> to vector<3x64xbf16>
    %cst = arith.constant dense<0.000000e+00> : vector<16x64xf32>
    %5 = tpu.matmul %2, %4, %cst {dimension_numbers = #tpu.dot_dimension_numbers<[1], [0], [0], [1], [0, 0, 1, 1], [], []>} : vector<16x3xbf16>, vector<3x64xbf16>, vector<16x64xf32> -> vector<16x64xf32>
    %c0_5 = arith.constant 0 : index
    %c0_6 = arith.constant 0 : index
    %6 = vector.load %arg4[%c0_5, %c0_6] : memref<1x64xf32, #tpu.memory_space<vmem>>, vector<1x64xf32>
    %7 = vector.broadcast %6 : vector<1x64xf32> to vector<16x64xf32>
    %8 = arith.addf %5, %7 : vector<16x64xf32>
    %cst_7 = arith.constant 0.000000e+00 : f32
    %9 = vector.broadcast %cst_7 : f32 to vector<16x64xf32>
    %10 = arith.maximumf %8, %9 : vector<16x64xf32>
    %11 = arith.truncf %10 : vector<16x64xf32> to vector<16x64xbf16>
    %c0_8 = arith.constant 0 : index
    %c0_9 = arith.constant 0 : index
    %c0_10 = arith.constant 0 : index
    %12 = vector.load %arg5[%c0_8, %c0_9, %c0_10] : memref<1x16x64xbf16, #tpu.memory_space<vmem>>, vector<1x16x64xbf16>
    %13 = vector.shape_cast %12 : vector<1x16x64xbf16> to vector<16x64xbf16>
    %14 = vector.shape_cast %11 : vector<16x64xbf16> to vector<1x16x64xbf16>
    tpu.vector_store %arg5[%c0_8, %c0_9, %c0_10], %14 {strides = array<i32>} : memref<1x16x64xbf16, #tpu.memory_space<vmem>>, vector<1x16x64xbf16>,
    return
  }
  func.func @transform_0(%arg0: i32, %arg1: i32) -> (i32, i32, i32) {
    %c0_i32 = arith.constant 0 : i32
    %c0_i32_0 = arith.constant 0 : i32
    return %arg0, %arg1, %c0_i32 : i32, i32, i32
  }
  func.func @transform_1(%arg0: i32, %arg1: i32) -> (i32, i32, i32) {
    %c0_i32 = arith.constant 0 : i32
    %c0_i32_0 = arith.constant 0 : i32
    %c0_i32_1 = arith.constant 0 : i32
    return %arg0, %c0_i32, %c0_i32_0 : i32, i32, i32
  }
  func.func @transform_2(%arg0: i32, %arg1: i32) -> (i32, i32) {
    %c0_i32 = arith.constant 0 : i32
    %c0_i32_0 = arith.constant 0 : i32
    %c0_i32_1 = arith.constant 0 : i32
    return %c0_i32, %c0_i32_0 : i32, i32
  }
  func.func @transform_3(%arg0: i32, %arg1: i32) -> (i32, i32, i32) {
    %c0_i32 = arith.constant 0 : i32
    %c0_i32_0 = arith.constant 0 : i32
    return %arg0, %arg1, %c0_i32 : i32, i32, i32
  }
}

module attributes {stable_mosaic.version = 11 : i64} {
  func.func @_head_mlp_kernel(%arg0: i32, %arg1: memref<2x1024xf32, #tpu.memory_space<vmem>>, %arg2: memref<1024x512xbf16, #tpu.memory_space<vmem>>, %arg3: memref<1x512xf32, #tpu.memory_space<vmem>>, %arg4: memref<512x256xbf16, #tpu.memory_space<vmem>>, %arg5: memref<1x256xf32, #tpu.memory_space<vmem>>, %arg6: memref<256x4096xbf16, #tpu.memory_space<vmem>>, %arg7: memref<1x4096xf32, #tpu.memory_space<vmem>>, %arg8: memref<2x4096xf32, #tpu.memory_space<vmem>>) attributes {dimension_semantics = [#tpu.dimension_semantics<arbitrary>], iteration_bounds = array<i64: 1>, scalar_prefetch = 0 : i64, scratch_operands = 0 : i64, tpu.core_type = #tpu.core_type<tc>, window_params = [{pipeline_mode = #tpu.pipeline_mode<synchronous>, transform_indices = @transform_0, window_bounds = array<i64: 2, 1024>}, {pipeline_mode = #tpu.pipeline_mode<synchronous>, transform_indices = @transform_1, window_bounds = array<i64: 1024, 512>}, {pipeline_mode = #tpu.pipeline_mode<synchronous>, transform_indices = @transform_2, window_bounds = array<i64: 1, 512>}, {pipeline_mode = #tpu.pipeline_mode<synchronous>, transform_indices = @transform_3, window_bounds = array<i64: 512, 256>}, {pipeline_mode = #tpu.pipeline_mode<synchronous>, transform_indices = @transform_4, window_bounds = array<i64: 1, 256>}, {pipeline_mode = #tpu.pipeline_mode<synchronous>, transform_indices = @transform_5, window_bounds = array<i64: 256, 4096>}, {pipeline_mode = #tpu.pipeline_mode<synchronous>, transform_indices = @transform_6, window_bounds = array<i64: 1, 4096>}, {pipeline_mode = #tpu.pipeline_mode<synchronous>, transform_indices = @transform_7, window_bounds = array<i64: 2, 4096>}]} {
    %c0 = arith.constant 0 : index
    %c0_0 = arith.constant 0 : index
    %0 = vector.load %arg1[%c0, %c0_0] : memref<2x1024xf32, #tpu.memory_space<vmem>>, vector<2x1024xf32>
    %1 = arith.truncf %0 : vector<2x1024xf32> to vector<2x1024xbf16>
    %c0_1 = arith.constant 0 : index
    %c0_2 = arith.constant 0 : index
    %2 = vector.load %arg2[%c0_1, %c0_2] : memref<1024x512xbf16, #tpu.memory_space<vmem>>, vector<1024x512xbf16>
    %cst = arith.constant dense<0.000000e+00> : vector<2x512xf32>
    %3 = tpu.matmul %1, %2, %cst {dimension_numbers = #tpu.dot_dimension_numbers<[1], [0], [0], [1], [0, 0, 1, 1], [], []>} : vector<2x1024xbf16>, vector<1024x512xbf16>, vector<2x512xf32> -> vector<2x512xf32>
    %c0_3 = arith.constant 0 : index
    %c0_4 = arith.constant 0 : index
    %4 = vector.load %arg3[%c0_3, %c0_4] : memref<1x512xf32, #tpu.memory_space<vmem>>, vector<1x512xf32>
    %5 = vector.broadcast %4 : vector<1x512xf32> to vector<2x512xf32>
    %6 = arith.addf %3, %5 : vector<2x512xf32>
    %cst_5 = arith.constant 0.000000e+00 : f32
    %7 = vector.broadcast %cst_5 : f32 to vector<2x512xf32>
    %8 = arith.maximumf %6, %7 : vector<2x512xf32>
    %9 = arith.truncf %8 : vector<2x512xf32> to vector<2x512xbf16>
    %c0_6 = arith.constant 0 : index
    %c0_7 = arith.constant 0 : index
    %10 = vector.load %arg4[%c0_6, %c0_7] : memref<512x256xbf16, #tpu.memory_space<vmem>>, vector<512x256xbf16>
    %cst_8 = arith.constant dense<0.000000e+00> : vector<2x256xf32>
    %11 = tpu.matmul %9, %10, %cst_8 {dimension_numbers = #tpu.dot_dimension_numbers<[1], [0], [0], [1], [0, 0, 1, 1], [], []>} : vector<2x512xbf16>, vector<512x256xbf16>, vector<2x256xf32> -> vector<2x256xf32>
    %c0_9 = arith.constant 0 : index
    %c0_10 = arith.constant 0 : index
    %12 = vector.load %arg5[%c0_9, %c0_10] : memref<1x256xf32, #tpu.memory_space<vmem>>, vector<1x256xf32>
    %13 = vector.broadcast %12 : vector<1x256xf32> to vector<2x256xf32>
    %14 = arith.addf %11, %13 : vector<2x256xf32>
    %cst_11 = arith.constant 0.000000e+00 : f32
    %15 = vector.broadcast %cst_11 : f32 to vector<2x256xf32>
    %16 = arith.maximumf %14, %15 : vector<2x256xf32>
    %17 = arith.truncf %16 : vector<2x256xf32> to vector<2x256xbf16>
    %c0_12 = arith.constant 0 : index
    %c0_13 = arith.constant 0 : index
    %18 = vector.load %arg6[%c0_12, %c0_13] : memref<256x4096xbf16, #tpu.memory_space<vmem>>, vector<256x4096xbf16>
    %cst_14 = arith.constant dense<0.000000e+00> : vector<2x4096xf32>
    %19 = tpu.matmul %17, %18, %cst_14 {dimension_numbers = #tpu.dot_dimension_numbers<[1], [0], [0], [1], [0, 0, 1, 1], [], []>} : vector<2x256xbf16>, vector<256x4096xbf16>, vector<2x4096xf32> -> vector<2x4096xf32>
    %c0_15 = arith.constant 0 : index
    %c0_16 = arith.constant 0 : index
    %20 = vector.load %arg7[%c0_15, %c0_16] : memref<1x4096xf32, #tpu.memory_space<vmem>>, vector<1x4096xf32>
    %21 = vector.broadcast %20 : vector<1x4096xf32> to vector<2x4096xf32>
    %22 = arith.addf %19, %21 : vector<2x4096xf32>
    %c0_17 = arith.constant 0 : index
    %c0_18 = arith.constant 0 : index
    %23 = vector.load %arg8[%c0_17, %c0_18] : memref<2x4096xf32, #tpu.memory_space<vmem>>, vector<2x4096xf32>
    tpu.vector_store %arg8[%c0_17, %c0_18], %22 {strides = array<i32>} : memref<2x4096xf32, #tpu.memory_space<vmem>>, vector<2x4096xf32>,
    return
  }
  func.func @transform_0(%arg0: i32) -> (i32, i32) {
    %c0_i32 = arith.constant 0 : i32
    %c0_i32_0 = arith.constant 0 : i32
    %c0_i32_1 = arith.constant 0 : i32
    return %c0_i32, %c0_i32_0 : i32, i32
  }
  func.func @transform_1(%arg0: i32) -> (i32, i32) {
    %c0_i32 = arith.constant 0 : i32
    %c0_i32_0 = arith.constant 0 : i32
    %c0_i32_1 = arith.constant 0 : i32
    return %c0_i32, %c0_i32_0 : i32, i32
  }
  func.func @transform_2(%arg0: i32) -> (i32, i32) {
    %c0_i32 = arith.constant 0 : i32
    %c0_i32_0 = arith.constant 0 : i32
    %c0_i32_1 = arith.constant 0 : i32
    return %c0_i32, %c0_i32_0 : i32, i32
  }
  func.func @transform_3(%arg0: i32) -> (i32, i32) {
    %c0_i32 = arith.constant 0 : i32
    %c0_i32_0 = arith.constant 0 : i32
    %c0_i32_1 = arith.constant 0 : i32
    return %c0_i32, %c0_i32_0 : i32, i32
  }
  func.func @transform_4(%arg0: i32) -> (i32, i32) {
    %c0_i32 = arith.constant 0 : i32
    %c0_i32_0 = arith.constant 0 : i32
    %c0_i32_1 = arith.constant 0 : i32
    return %c0_i32, %c0_i32_0 : i32, i32
  }
  func.func @transform_5(%arg0: i32) -> (i32, i32) {
    %c0_i32 = arith.constant 0 : i32
    %c0_i32_0 = arith.constant 0 : i32
    %c0_i32_1 = arith.constant 0 : i32
    return %c0_i32, %c0_i32_0 : i32, i32
  }
  func.func @transform_6(%arg0: i32) -> (i32, i32) {
    %c0_i32 = arith.constant 0 : i32
    %c0_i32_0 = arith.constant 0 : i32
    %c0_i32_1 = arith.constant 0 : i32
    return %c0_i32, %c0_i32_0 : i32, i32
  }
  func.func @transform_7(%arg0: i32) -> (i32, i32) {
    %c0_i32 = arith.constant 0 : i32
    %c0_i32_0 = arith.constant 0 : i32
    %c0_i32_1 = arith.constant 0 : i32
    return %c0_i32, %c0_i32_0 : i32, i32
  }
}

module attributes {stable_mosaic.version = 11 : i64} {
  func.func @_bmm_linear_kernel(%arg0: i32, %arg1: i32, %arg2: memref<1x16x64xbf16, #tpu.memory_space<vmem>>, %arg3: memref<1x64x128xbf16, #tpu.memory_space<vmem>>, %arg4: memref<1x128xf32, #tpu.memory_space<vmem>>, %arg5: memref<1x16x128xbf16, #tpu.memory_space<vmem>>) attributes {dimension_semantics = [#tpu.dimension_semantics<parallel>, #tpu.dimension_semantics<parallel>], iteration_bounds = array<i64: 2, 1>, scalar_prefetch = 0 : i64, scratch_operands = 0 : i64, tpu.core_type = #tpu.core_type<tc>, window_params = [{transform_indices = @transform_0, window_bounds = array<i64: 1, 16, 64>}, {transform_indices = @transform_1, window_bounds = array<i64: 1, 64, 128>}, {pipeline_mode = #tpu.pipeline_mode<synchronous>, transform_indices = @transform_2, window_bounds = array<i64: 1, 128>}, {transform_indices = @transform_3, window_bounds = array<i64: 1, 16, 128>}]} {
    %c0 = arith.constant 0 : index
    %c0_0 = arith.constant 0 : index
    %c0_1 = arith.constant 0 : index
    %0 = vector.load %arg2[%c0, %c0_0, %c0_1] : memref<1x16x64xbf16, #tpu.memory_space<vmem>>, vector<1x16x64xbf16>
    %1 = vector.shape_cast %0 : vector<1x16x64xbf16> to vector<16x64xbf16>
    %c0_2 = arith.constant 0 : index
    %c0_3 = arith.constant 0 : index
    %c0_4 = arith.constant 0 : index
    %2 = vector.load %arg3[%c0_2, %c0_3, %c0_4] : memref<1x64x128xbf16, #tpu.memory_space<vmem>>, vector<1x64x128xbf16>
    %3 = vector.shape_cast %2 : vector<1x64x128xbf16> to vector<64x128xbf16>
    %cst = arith.constant dense<0.000000e+00> : vector<16x128xf32>
    %4 = tpu.matmul %1, %3, %cst {dimension_numbers = #tpu.dot_dimension_numbers<[1], [0], [0], [1], [0, 0, 1, 1], [], []>} : vector<16x64xbf16>, vector<64x128xbf16>, vector<16x128xf32> -> vector<16x128xf32>
    %c0_5 = arith.constant 0 : index
    %c0_6 = arith.constant 0 : index
    %5 = vector.load %arg4[%c0_5, %c0_6] : memref<1x128xf32, #tpu.memory_space<vmem>>, vector<1x128xf32>
    %6 = vector.broadcast %5 : vector<1x128xf32> to vector<16x128xf32>
    %7 = arith.addf %4, %6 : vector<16x128xf32>
    %cst_7 = arith.constant 0.000000e+00 : f32
    %8 = vector.broadcast %cst_7 : f32 to vector<16x128xf32>
    %9 = arith.maximumf %7, %8 : vector<16x128xf32>
    %10 = arith.truncf %9 : vector<16x128xf32> to vector<16x128xbf16>
    %c0_8 = arith.constant 0 : index
    %c0_9 = arith.constant 0 : index
    %c0_10 = arith.constant 0 : index
    %11 = vector.load %arg5[%c0_8, %c0_9, %c0_10] : memref<1x16x128xbf16, #tpu.memory_space<vmem>>, vector<1x16x128xbf16>
    %12 = vector.shape_cast %11 : vector<1x16x128xbf16> to vector<16x128xbf16>
    %13 = vector.shape_cast %10 : vector<16x128xbf16> to vector<1x16x128xbf16>
    tpu.vector_store %arg5[%c0_8, %c0_9, %c0_10], %13 {strides = array<i32>} : memref<1x16x128xbf16, #tpu.memory_space<vmem>>, vector<1x16x128xbf16>,
    return
  }
  func.func @transform_0(%arg0: i32, %arg1: i32) -> (i32, i32, i32) {
    %c0_i32 = arith.constant 0 : i32
    %c0_i32_0 = arith.constant 0 : i32
    return %arg0, %arg1, %c0_i32 : i32, i32, i32
  }
  func.func @transform_1(%arg0: i32, %arg1: i32) -> (i32, i32, i32) {
    %c0_i32 = arith.constant 0 : i32
    %c0_i32_0 = arith.constant 0 : i32
    %c0_i32_1 = arith.constant 0 : i32
    return %arg0, %c0_i32, %c0_i32_0 : i32, i32, i32
  }
  func.func @transform_2(%arg0: i32, %arg1: i32) -> (i32, i32) {
    %c0_i32 = arith.constant 0 : i32
    %c0_i32_0 = arith.constant 0 : i32
    %c0_i32_1 = arith.constant 0 : i32
    return %c0_i32, %c0_i32_0 : i32, i32
  }
  func.func @transform_3(%arg0: i32, %arg1: i32) -> (i32, i32, i32) {
    %c0_i32 = arith.constant 0 : i32
    %c0_i32_0 = arith.constant 0 : i32
    return %arg0, %arg1, %c0_i32 : i32, i32, i32
  }
}

module attributes {stable_mosaic.version = 11 : i64} {
  func.func @_head_mlp_kernel(%arg0: i32, %arg1: memref<2x1024xf32, #tpu.memory_space<vmem>>, %arg2: memref<1024x512xbf16, #tpu.memory_space<vmem>>, %arg3: memref<1x512xf32, #tpu.memory_space<vmem>>, %arg4: memref<512x256xbf16, #tpu.memory_space<vmem>>, %arg5: memref<1x256xf32, #tpu.memory_space<vmem>>, %arg6: memref<256x2xbf16, #tpu.memory_space<vmem>>, %arg7: memref<1x2xf32, #tpu.memory_space<vmem>>, %arg8: memref<2x2xf32, #tpu.memory_space<vmem>>) attributes {dimension_semantics = [#tpu.dimension_semantics<arbitrary>], iteration_bounds = array<i64: 1>, scalar_prefetch = 0 : i64, scratch_operands = 0 : i64, tpu.core_type = #tpu.core_type<tc>, window_params = [{pipeline_mode = #tpu.pipeline_mode<synchronous>, transform_indices = @transform_0, window_bounds = array<i64: 2, 1024>}, {pipeline_mode = #tpu.pipeline_mode<synchronous>, transform_indices = @transform_1, window_bounds = array<i64: 1024, 512>}, {pipeline_mode = #tpu.pipeline_mode<synchronous>, transform_indices = @transform_2, window_bounds = array<i64: 1, 512>}, {pipeline_mode = #tpu.pipeline_mode<synchronous>, transform_indices = @transform_3, window_bounds = array<i64: 512, 256>}, {pipeline_mode = #tpu.pipeline_mode<synchronous>, transform_indices = @transform_4, window_bounds = array<i64: 1, 256>}, {pipeline_mode = #tpu.pipeline_mode<synchronous>, transform_indices = @transform_5, window_bounds = array<i64: 256, 2>}, {pipeline_mode = #tpu.pipeline_mode<synchronous>, transform_indices = @transform_6, window_bounds = array<i64: 1, 2>}, {pipeline_mode = #tpu.pipeline_mode<synchronous>, transform_indices = @transform_7, window_bounds = array<i64: 2, 2>}]} {
    %c0 = arith.constant 0 : index
    %c0_0 = arith.constant 0 : index
    %0 = vector.load %arg1[%c0, %c0_0] : memref<2x1024xf32, #tpu.memory_space<vmem>>, vector<2x1024xf32>
    %1 = arith.truncf %0 : vector<2x1024xf32> to vector<2x1024xbf16>
    %c0_1 = arith.constant 0 : index
    %c0_2 = arith.constant 0 : index
    %2 = vector.load %arg2[%c0_1, %c0_2] : memref<1024x512xbf16, #tpu.memory_space<vmem>>, vector<1024x512xbf16>
    %cst = arith.constant dense<0.000000e+00> : vector<2x512xf32>
    %3 = tpu.matmul %1, %2, %cst {dimension_numbers = #tpu.dot_dimension_numbers<[1], [0], [0], [1], [0, 0, 1, 1], [], []>} : vector<2x1024xbf16>, vector<1024x512xbf16>, vector<2x512xf32> -> vector<2x512xf32>
    %c0_3 = arith.constant 0 : index
    %c0_4 = arith.constant 0 : index
    %4 = vector.load %arg3[%c0_3, %c0_4] : memref<1x512xf32, #tpu.memory_space<vmem>>, vector<1x512xf32>
    %5 = vector.broadcast %4 : vector<1x512xf32> to vector<2x512xf32>
    %6 = arith.addf %3, %5 : vector<2x512xf32>
    %cst_5 = arith.constant 0.000000e+00 : f32
    %7 = vector.broadcast %cst_5 : f32 to vector<2x512xf32>
    %8 = arith.maximumf %6, %7 : vector<2x512xf32>
    %9 = arith.truncf %8 : vector<2x512xf32> to vector<2x512xbf16>
    %c0_6 = arith.constant 0 : index
    %c0_7 = arith.constant 0 : index
    %10 = vector.load %arg4[%c0_6, %c0_7] : memref<512x256xbf16, #tpu.memory_space<vmem>>, vector<512x256xbf16>
    %cst_8 = arith.constant dense<0.000000e+00> : vector<2x256xf32>
    %11 = tpu.matmul %9, %10, %cst_8 {dimension_numbers = #tpu.dot_dimension_numbers<[1], [0], [0], [1], [0, 0, 1, 1], [], []>} : vector<2x512xbf16>, vector<512x256xbf16>, vector<2x256xf32> -> vector<2x256xf32>
    %c0_9 = arith.constant 0 : index
    %c0_10 = arith.constant 0 : index
    %12 = vector.load %arg5[%c0_9, %c0_10] : memref<1x256xf32, #tpu.memory_space<vmem>>, vector<1x256xf32>
    %13 = vector.broadcast %12 : vector<1x256xf32> to vector<2x256xf32>
    %14 = arith.addf %11, %13 : vector<2x256xf32>
    %cst_11 = arith.constant 0.000000e+00 : f32
    %15 = vector.broadcast %cst_11 : f32 to vector<2x256xf32>
    %16 = arith.maximumf %14, %15 : vector<2x256xf32>
    %17 = arith.truncf %16 : vector<2x256xf32> to vector<2x256xbf16>
    %c0_12 = arith.constant 0 : index
    %c0_13 = arith.constant 0 : index
    %18 = vector.load %arg6[%c0_12, %c0_13] : memref<256x2xbf16, #tpu.memory_space<vmem>>, vector<256x2xbf16>
    %cst_14 = arith.constant dense<0.000000e+00> : vector<2x2xf32>
    %19 = tpu.matmul %17, %18, %cst_14 {dimension_numbers = #tpu.dot_dimension_numbers<[1], [0], [0], [1], [0, 0, 1, 1], [], []>} : vector<2x256xbf16>, vector<256x2xbf16>, vector<2x2xf32> -> vector<2x2xf32>
    %c0_15 = arith.constant 0 : index
    %c0_16 = arith.constant 0 : index
    %20 = vector.load %arg7[%c0_15, %c0_16] : memref<1x2xf32, #tpu.memory_space<vmem>>, vector<1x2xf32>
    %21 = vector.broadcast %20 : vector<1x2xf32> to vector<2x2xf32>
    %22 = arith.addf %19, %21 : vector<2x2xf32>
    %cst_17 = arith.constant dense<0xFF800000> : vector<2xf32>
    %23 = vector.multi_reduction <maximumf>, %22, %cst_17 [1] : vector<2x2xf32> to vector<2xf32>
    %24 = vector.shape_cast %23 : vector<2xf32> to vector<2x1xf32>
    %25 = vector.broadcast %24 : vector<2x1xf32> to vector<2x2xf32>
    %26 = arith.subf %22, %25 : vector<2x2xf32>
    %27 = math.exp %26 : vector<2x2xf32>
    %cst_18 = arith.constant dense<0.000000e+00> : vector<2xf32>
    %28 = vector.multi_reduction <add>, %27, %cst_18 [1] : vector<2x2xf32> to vector<2xf32>
    %29 = vector.shape_cast %28 : vector<2xf32> to vector<2x1xf32>
    %30 = math.log %29 : vector<2x1xf32>
    %31 = vector.broadcast %30 : vector<2x1xf32> to vector<2x2xf32>
    %32 = arith.subf %26, %31 : vector<2x2xf32>
    %c0_19 = arith.constant 0 : index
    %c0_20 = arith.constant 0 : index
    %33 = vector.load %arg8[%c0_19, %c0_20] : memref<2x2xf32, #tpu.memory_space<vmem>>, vector<2x2xf32>
    tpu.vector_store %arg8[%c0_19, %c0_20], %32 {strides = array<i32>} : memref<2x2xf32, #tpu.memory_space<vmem>>, vector<2x2xf32>,
    return
  }
  func.func @transform_0(%arg0: i32) -> (i32, i32) {
    %c0_i32 = arith.constant 0 : i32
    %c0_i32_0 = arith.constant 0 : i32
    %c0_i32_1 = arith.constant 0 : i32
    return %c0_i32, %c0_i32_0 : i32, i32
  }
  func.func @transform_1(%arg0: i32) -> (i32, i32) {
    %c0_i32 = arith.constant 0 : i32
    %c0_i32_0 = arith.constant 0 : i32
    %c0_i32_1 = arith.constant 0 : i32
    return %c0_i32, %c0_i32_0 : i32, i32
  }
  func.func @transform_2(%arg0: i32) -> (i32, i32) {
    %c0_i32 = arith.constant 0 : i32
    %c0_i32_0 = arith.constant 0 : i32
    %c0_i32_1 = arith.constant 0 : i32
    return %c0_i32, %c0_i32_0 : i32, i32
  }
  func.func @transform_3(%arg0: i32) -> (i32, i32) {
    %c0_i32 = arith.constant 0 : i32
    %c0_i32_0 = arith.constant 0 : i32
    %c0_i32_1 = arith.constant 0 : i32
    return %c0_i32, %c0_i32_0 : i32, i32
  }
  func.func @transform_4(%arg0: i32) -> (i32, i32) {
    %c0_i32 = arith.constant 0 : i32
    %c0_i32_0 = arith.constant 0 : i32
    %c0_i32_1 = arith.constant 0 : i32
    return %c0_i32, %c0_i32_0 : i32, i32
  }
  func.func @transform_5(%arg0: i32) -> (i32, i32) {
    %c0_i32 = arith.constant 0 : i32
    %c0_i32_0 = arith.constant 0 : i32
    %c0_i32_1 = arith.constant 0 : i32
    return %c0_i32, %c0_i32_0 : i32, i32
  }
  func.func @transform_6(%arg0: i32) -> (i32, i32) {
    %c0_i32 = arith.constant 0 : i32
    %c0_i32_0 = arith.constant 0 : i32
    %c0_i32_1 = arith.constant 0 : i32
    return %c0_i32, %c0_i32_0 : i32, i32
  }
  func.func @transform_7(%arg0: i32) -> (i32, i32) {
    %c0_i32 = arith.constant 0 : i32
    %c0_i32_0 = arith.constant 0 : i32
    %c0_i32_1 = arith.constant 0 : i32
    return %c0_i32, %c0_i32_0 : i32, i32
  }
}

module attributes {stable_mosaic.version = 11 : i64} {
  func.func @_matmul_maxpool_kernel(%arg0: i32, %arg1: i32, %arg2: memref<1x16x128xbf16, #tpu.memory_space<vmem>>, %arg3: memref<128x1024xbf16, #tpu.memory_space<vmem>>, %arg4: memref<1x1024xf32, #tpu.memory_space<vmem>>, %arg5: memref<1x1x1024xf32, #tpu.memory_space<vmem>>) attributes {dimension_semantics = [#tpu.dimension_semantics<parallel>, #tpu.dimension_semantics<arbitrary>], iteration_bounds = array<i64: 2, 1>, scalar_prefetch = 0 : i64, scratch_operands = 0 : i64, tpu.core_type = #tpu.core_type<tc>, window_params = [{transform_indices = @transform_0, window_bounds = array<i64: 1, 16, 128>}, {pipeline_mode = #tpu.pipeline_mode<synchronous>, transform_indices = @transform_1, window_bounds = array<i64: 128, 1024>}, {pipeline_mode = #tpu.pipeline_mode<synchronous>, transform_indices = @transform_2, window_bounds = array<i64: 1, 1024>}, {transform_indices = @transform_3, window_bounds = array<i64: 1, 1, 1024>}]} {
    %c0 = arith.constant 0 : index
    %c0_0 = arith.constant 0 : index
    %c0_1 = arith.constant 0 : index
    %0 = vector.load %arg2[%c0, %c0_0, %c0_1] : memref<1x16x128xbf16, #tpu.memory_space<vmem>>, vector<1x16x128xbf16>
    %1 = vector.shape_cast %0 : vector<1x16x128xbf16> to vector<16x128xbf16>
    %c0_2 = arith.constant 0 : index
    %c0_3 = arith.constant 0 : index
    %2 = vector.load %arg3[%c0_2, %c0_3] : memref<128x1024xbf16, #tpu.memory_space<vmem>>, vector<128x1024xbf16>
    %cst = arith.constant dense<0.000000e+00> : vector<16x1024xf32>
    %3 = tpu.matmul %1, %2, %cst {dimension_numbers = #tpu.dot_dimension_numbers<[1], [0], [0], [1], [0, 0, 1, 1], [], []>} : vector<16x128xbf16>, vector<128x1024xbf16>, vector<16x1024xf32> -> vector<16x1024xf32>
    %c0_4 = arith.constant 0 : index
    %c0_5 = arith.constant 0 : index
    %4 = vector.load %arg4[%c0_4, %c0_5] : memref<1x1024xf32, #tpu.memory_space<vmem>>, vector<1x1024xf32>
    %5 = vector.broadcast %4 : vector<1x1024xf32> to vector<16x1024xf32>
    %6 = arith.addf %3, %5 : vector<16x1024xf32>
    %c16_i32 = arith.constant 16 : i32
    %7 = arith.muli %arg1, %c16_i32 : i32
    %8 = tpu.iota {dimensions = array<i32: 0>} : vector<16x1024xi32>
    %9 = vector.broadcast %7 : i32 to vector<16x1024xi32>
    %10 = arith.addi %9, %8 : vector<16x1024xi32>
    %c16_i32_6 = arith.constant 16 : i32
    %11 = vector.broadcast %c16_i32_6 : i32 to vector<16x1024xi32>
    %12 = arith.cmpi slt, %10, %11 : vector<16x1024xi32>
    %cst_7 = arith.constant 0xFF800000 : f32
    %13 = vector.broadcast %cst_7 : f32 to vector<16x1024xf32>
    %14 = arith.select %12, %6, %13 : vector<16x1024xi1>, vector<16x1024xf32>
    %cst_8 = arith.constant dense<0xFF800000> : vector<1024xf32>
    %15 = vector.multi_reduction <maximumf>, %14, %cst_8 [0] : vector<16x1024xf32> to vector<1024xf32>
    %16 = vector.shape_cast %15 : vector<1024xf32> to vector<1x1024xf32>
    %c0_i32 = arith.constant 0 : i32
    %17 = arith.cmpi eq, %arg1, %c0_i32 : i32
    %18 = arith.extui %17 : i1 to i32
    %c0_i32_9 = arith.constant 0 : i32
    %19 = arith.cmpi ne, %18, %c0_i32_9 : i32
    scf.if %19 {
      %c0_12 = arith.constant 0 : index
      %c0_13 = arith.constant 0 : index
      %c0_14 = arith.constant 0 : index
      %23 = vector.load %arg5[%c0_12, %c0_13, %c0_14] : memref<1x1x1024xf32, #tpu.memory_space<vmem>>, vector<1x1x1024xf32>
      %24 = vector.shape_cast %23 : vector<1x1x1024xf32> to vector<1x1024xf32>
      %25 = vector.shape_cast %16 : vector<1x1024xf32> to vector<1x1x1024xf32>
      tpu.vector_store %arg5[%c0_12, %c0_13, %c0_14], %25 {strides = array<i32>} : memref<1x1x1024xf32, #tpu.memory_space<vmem>>, vector<1x1x1024xf32>,
    } else {
    }
    %c0_i32_10 = arith.constant 0 : i32
    %20 = arith.cmpi sgt, %arg1, %c0_i32_10 : i32
    %21 = arith.extui %20 : i1 to i32
    %c0_i32_11 = arith.constant 0 : i32
    %22 = arith.cmpi ne, %21, %c0_i32_11 : i32
    scf.if %22 {
      %c0_12 = arith.constant 0 : index
      %c0_13 = arith.constant 0 : index
      %c0_14 = arith.constant 0 : index
      %23 = vector.load %arg5[%c0_12, %c0_13, %c0_14] : memref<1x1x1024xf32, #tpu.memory_space<vmem>>, vector<1x1x1024xf32>
      %24 = vector.shape_cast %23 : vector<1x1x1024xf32> to vector<1x1024xf32>
      %25 = arith.maximumf %24, %16 : vector<1x1024xf32>
      %c0_15 = arith.constant 0 : index
      %c0_16 = arith.constant 0 : index
      %c0_17 = arith.constant 0 : index
      %26 = vector.load %arg5[%c0_15, %c0_16, %c0_17] : memref<1x1x1024xf32, #tpu.memory_space<vmem>>, vector<1x1x1024xf32>
      %27 = vector.shape_cast %26 : vector<1x1x1024xf32> to vector<1x1024xf32>
      %28 = vector.shape_cast %25 : vector<1x1024xf32> to vector<1x1x1024xf32>
      tpu.vector_store %arg5[%c0_15, %c0_16, %c0_17], %28 {strides = array<i32>} : memref<1x1x1024xf32, #tpu.memory_space<vmem>>, vector<1x1x1024xf32>,
    } else {
    }
    return
  }
  func.func @transform_0(%arg0: i32, %arg1: i32) -> (i32, i32, i32) {
    %c0_i32 = arith.constant 0 : i32
    %c0_i32_0 = arith.constant 0 : i32
    return %arg0, %arg1, %c0_i32 : i32, i32, i32
  }
  func.func @transform_1(%arg0: i32, %arg1: i32) -> (i32, i32) {
    %c0_i32 = arith.constant 0 : i32
    %c0_i32_0 = arith.constant 0 : i32
    %c0_i32_1 = arith.constant 0 : i32
    return %c0_i32, %c0_i32_0 : i32, i32
  }
  func.func @transform_2(%arg0: i32, %arg1: i32) -> (i32, i32) {
    %c0_i32 = arith.constant 0 : i32
    %c0_i32_0 = arith.constant 0 : i32
    %c0_i32_1 = arith.constant 0 : i32
    return %c0_i32, %c0_i32_0 : i32, i32
  }
  func.func @transform_3(%arg0: i32, %arg1: i32) -> (i32, i32, i32) {
    %c0_i32 = arith.constant 0 : i32
    %c0_i32_0 = arith.constant 0 : i32
    %c0_i32_1 = arith.constant 0 : i32
    return %arg0, %c0_i32, %c0_i32_0 : i32, i32, i32
  }
}

</mosaic_0001>

<bundles_post_ra>
// kernel: pointnet_forward.10
= control target key start
LH: loop header
LB: loop body
LE: loop exit
PB: predicated region body
PF: predicated region fallthrough
CT: control target
= control target key end

     0   :  { %10 = vsyncpa [#allocation3], 0  ;;  %s543_s0 = inlined_call_operand.vmem [shape: f32[32,3], index: 0, kind: input, shape index: {}]   ;;  %s544_s1 = inlined_call_operand.hbm [shape: bf16[3,64], index: 1, kind: input, shape index: {}]   ;;  %s545_s2 = inlined_call_operand.hbm [shape: f32[1,64], index: 2, kind: input, shape index: {}]   ;;  %s546_s3 = inlined_call_operand.hbm [shape: bf16[64,128], index: 3, kind: input, shape index: {}]   ;;  %s547_s4 = inlined_call_operand.hbm [shape: f32[1,128], index: 4, kind: input, shape index: {}]   ;;  %s548_s5 = inlined_call_operand.vmem [shape: bf16[32,128], index: 5, kind: output, shape index: {}]  }
   0x1   :  { %11 = vsyncpa [#allocation5], 0 }
   0x2   :  { %12 = vsyncpa [#allocation8], 0  ;;  %s440_s18 = smov [#allocation4]   ;;  %s441_s20 = smov [#allocation2]  }
   0x3   :  { %s31_s19 = sshll.u32 %s440_s18, 4  ;;  %s21_s21 = sshll.u32 %s441_s20, 4  ;;  %s32_s19 = int_to_ptr.vmem [resolvable:$true] %s31_s19  ;;  %s22_s21 = int_to_ptr.vmem [resolvable:$true] %s21_s21 }
   0x4   :  { %s346_s24 = scalar_lea.hbm %s545_s2, 16 }
   0x5   :  { %p347_p0 = scmp.ne.s32.totalorder %s545_s2, %s346_s24  ;;  %p350_p1 = scmp.lt.u32.totalorder %s346_s24, %s545_s2 }
   0x7   :  { %p352_p2 = pnand %p350_p1, %p347_p0 }
   0x9   :  { %355 = shalt.err (!%p352_p2)
}
   0xa   :  { %s356_s29 = scalar_lea.vmem %s32_s19, 16  ;;  %s360_s30 = scalar_lea.vmem %s32_s19, 32 }
   0xb   :  { %p357_p3 = scmp.ne.s32.totalorder %s32_s19, %s356_s29  ;;  %p361_p4 = scmp.lt.s32.totalorder %s32_s19, %s32_s19 }
   0xc   :  { %p362_p5 = scmp.lt.s32.totalorder %s360_s30, %s356_s29 }
   0xe   :  { %p363_p6 = por %p362_p5, %p361_p4 }
  0x10   :  { %p364_p7 = pnand %p363_p6, %p357_p3 }
  0x12   :  { %367 = shalt.err (!%p364_p7)
}
  0x13   :  { %34 = dma.hbm_to_vmem [thread:$0]  %s545_s2, 16, %s32_s19, [#allocation5]  }
  0x14   :  { %s368_s10 = scalar_lea.hbm %s544_s1, 32 }
  0x15   :  { %p369_p8 = scmp.ne.s32.totalorder %s544_s1, %s368_s10  ;;  %p372_p9 = scmp.lt.u32.totalorder %s368_s10, %s544_s1 }
  0x17   :  { %p374_p10 = pnand %p372_p9, %p369_p8 }
  0x19   :  { %377 = shalt.err (!%p374_p10)
}
  0x1a   :  { %s378_s15 = scalar_lea.vmem %s22_s21, 32  ;;  %p383_p12 = scmp.lt.s32.totalorder %s22_s21, %s22_s21 }
  0x1b   :  { %p379_p11 = scmp.ne.s32.totalorder %s22_s21, %s378_s15  ;;  %p384_p13 = scmp.lt.s32.totalorder %s378_s15, %s378_s15 }
  0x1d   :  { %p385_p0 = por %p384_p13, %p383_p12 }
  0x1f   :  { %p386_p1 = pnand %p385_p0, %p379_p11 }
  0x21   :  { %389 = shalt.err (!%p386_p1)
}
  0x22   :  { %24 = dma.hbm_to_vmem [thread:$0]  %s544_s1, 32, %s22_s21, [#allocation3]  }
  0x23   :  { %s442_s17 = smov [#allocation6]   ;;  %s390_s22 = scalar_lea.hbm %s546_s3, 512 }
  0x24   :  { %s40_s18 = sshll.u32 %s442_s17, 4  ;;  %p391_p2 = scmp.ne.s32.totalorder %s546_s3, %s390_s22  ;;  %s41_s18 = int_to_ptr.vmem [resolvable:$true] %s40_s18 }
  0x25   :  { %p394_p3 = scmp.lt.u32.totalorder %s390_s22, %s546_s3 }
  0x27   :  { %p396_p4 = pnand %p394_p3, %p391_p2 }
  0x29   :  { %399 = shalt.err (!%p396_p4)
}
  0x2a   :  { %s400_s27 = scalar_lea.vmem %s41_s18, 512  ;;  %p405_p6 = scmp.lt.s32.totalorder %s41_s18, %s41_s18 }
  0x2b   :  { %p401_p5 = scmp.ne.s32.totalorder %s41_s18, %s400_s27  ;;  %p406_p7 = scmp.lt.s32.totalorder %s400_s27, %s400_s27 }
  0x2d   :  { %p407_p8 = por %p406_p7, %p405_p6 }
  0x2f   :  { %p408_p9 = pnand %p407_p8, %p401_p5 }
  0x31   :  { %411 = shalt.err (!%p408_p9)
}
  0x32   :  { %s443_s1 = smov 64   ;;  %s444_s21 = smov 4  }
  0x33   :  { %46 = dma.hbm_to_vmem [thread:$0]  %s546_s3, 512, %s41_s18, [#allocation5], %s443_s1, %s443_s1, %s444_s21  }
  0x34   :  { %s445_s30 = smov [#allocation7]   ;;  %s412_s9 = scalar_lea.hbm %s547_s4, 16 }
  0x35   :  { %s53_s6 = sshll.u32 %s445_s30, 4  ;;  %p413_p10 = scmp.ne.s32.totalorder %s547_s4, %s412_s9  ;;  %s54_s6 = int_to_ptr.vmem [resolvable:$true] %s53_s6 }
  0x36   :  { %p416_p11 = scmp.lt.u32.totalorder %s412_s9, %s547_s4 }
  0x38   :  { %p418_p12 = pnand %p416_p11, %p413_p10 }
  0x3a   :  { %421 = shalt.err (!%p418_p12)
}
  0x3b   :  { %s422_s14 = scalar_lea.vmem %s54_s6, 16  ;;  %s426_s3 = scalar_lea.vmem %s54_s6, 32 }
  0x3c   :  { %p423_p13 = scmp.ne.s32.totalorder %s54_s6, %s422_s14  ;;  %p427_p0 = scmp.lt.s32.totalorder %s54_s6, %s54_s6 }
  0x3d   :  { %p428_p1 = scmp.lt.s32.totalorder %s426_s3, %s422_s14 }
  0x3f   :  { %p429_p2 = por %p428_p1, %p427_p0 }
  0x41   :  { %p430_p3 = pnand %p429_p2, %p423_p13 }
  0x43   :  { %433 = shalt.err (!%p430_p3)
}
  0x44   :  { %56 = dma.hbm_to_vmem [thread:$0]  %s547_s4, 16, %s54_s6, [#allocation8]  }
  0x45   :  { %434 = dma.done.wait [#allocation3], 32  }
  0x46   :  { %435 = vsyncadd [#allocation3], 4294967264 }
  0x47   :  { %436 = dma.done.wait [#allocation5], 528  }
  0x48   :  { %437 = vsyncadd [#allocation5], 4294966768 }
  0x49   :  { %438 = dma.done.wait [#allocation8], 16  }
  0x4a   :  { %439 = vsyncadd [#allocation8], 4294967280  ;;  %vm91_vm0 = vcmask 1040384   ;;  %vm92_vm1 = vcmask 1041408   ;;  %v446_v0 = vmov 65535   ;;  %v70_v4 = vld [vmem:[%s543_s0] sm:$0xff] }
  0x4b   :  { %v93_v1 = vsel %vm91_vm0, 4294967295, %v446_v0  ;;  %v76_v3 = vld [vmem:[#allocation2] sm:$0x3]  ;;  %v71_v5 = vld [vmem:[%s543_s0 + $0x8] sm:$0xff]  ;;  %vm84_vm2 = vcmask 23552   ;;  %v72_v8 = vld [vmem:[%s543_s0 + $0x10] sm:$0xff] }
  0x4c   :  { %v94_v2 = vsel %vm92_vm1, %v93_v1, 0  ;;  %v74_v7 = vpack.c.bf16 %v71_v5, %v70_v4  ;;  %v73_v9 = vld [vmem:[%s543_s0 + $0x18] sm:$0xff]  ;;  %v342_v10 = vld [vmem:[#allocation6] sm:$0xff]   ;;  %v343_v12 = vld [vmem:[#allocation6 + $0x8] sm:$0xff]   ;;  %vm192_vm3 = vcmask 523264  }
  0x4d   :  { %v96_v6 = vand.u32 %v94_v2, %v76_v3  ;;  %v75_v11 = vpack.c.bf16 %v73_v9, %v72_v8  ;;  %323 = vmatprep.subr.bf16.mxu1 %v342_v10  ;;  %v344_v13 = vld [vmem:[#allocation6 + $0x10] sm:$0xff]   ;;  %v345_v14 = vld [vmem:[#allocation6 + $0x18] sm:$0xff]   ;;  %v282_v30 = vld [vmem:[#allocation7] ss:$0 sm:$0xff] }
  0x4e   :  { %319 = vmatprep.mubr.msk.bf16.mxu0 %vm84_vm2, %v74_v7  ;;  %324 = vmatpush3.bf16.msra.mxu1 %v342_v10  ;;  %v279_v15 = vld [vmem:[#allocation4] ss:$0 sm:$0xff] }
  0x4f   :  { %317 = vmatprep.subr.bf16.mxu0 %v96_v6  ;;  %325 = vmatprep.subr.bf16.mxu1 %v343_v12 }
  0x50   :  { %318 = vmatpush3.bf16.msra.mxu0 %v96_v6 }
  0x52   :  { %326 = vmatpush3.bf16.msra.mxu1 %v343_v12 }
  0x53   :  { %320 = vmatmul.mubr.msk.bf16.vlgmr.msra.gmra.mrb[0].mxu0 %vm84_vm2, %v75_v11  ;;  %327 = vmatprep.subr.bf16.mxu1 %v344_v13 }
  0x56   :  { %328 = vmatpush3.bf16.msra.mxu1 %v344_v13 }
  0x57   :  { %329 = vmatprep.subr.bf16.mxu1 %v345_v14 }
  0x5a   :  { %330 = vmatpush3.bf16.msra.mxu1 %v345_v14 }
 0x126   :  { %v321_v16 = vpop.f32.mrb[0].mxu0 }
 0x127   :  { %v141_v17 = vadd.f32 %v321_v16, %v279_v15  ;;  %v132_v18 = vpop.f32.mrb[1].mxu0 }
 0x128   :  { %v133_v19 = vadd.f32 %v279_v15, %v132_v18  ;;  %v322_v20 = vpop.f32.mrb[2].mxu0 }
 0x129   :  { %v144_v21 = vadd.f32 %v322_v20, %v279_v15  ;;  %v135_v22 = vpop.f32.mrb[3].mxu0  ;;  %v149_v24 = vmax.f32 %v141_v17, 0.0 }
 0x12a   :  { %v136_v23 = vadd.f32 %v279_v15, %v135_v22  ;;  %v147_v26 = vmax.f32 %v133_v19, 0.0 }
 0x12b   :  { %v150_v25 = vmax.f32 %v144_v21, 0.0 }
 0x12c   :  { %v148_v27 = vmax.f32 %v136_v23, 0.0 }
 0x12d   :  { %v152_v28 = vpack.c.bf16 %v150_v25, %v149_v24 }
 0x12e   :  { %v151_v29 = vpack.c.bf16 %v148_v27, %v147_v26 }
 0x130   :  { %331 = vmatprep.mubr.msk.bf16.mxu1 %vm192_vm3, %v151_v29 }
 0x131   :  { %332 = vmatmul.mubr.msk.bf16.vlgmr.msra.gmra.mrb[0].mxu1 %vm192_vm3, %v152_v28 }
 0x204   :  { %v333_v31 = vpop.f32.mrb[0].mxu1 }
 0x205   :  { %v242_v32 = vadd.f32 %v333_v31, %v282_v30  ;;  %v233_v33 = vpop.f32.mrb[1].mxu1 }
 0x206   :  { %v234_v34 = vadd.f32 %v282_v30, %v233_v33  ;;  %v334_v35 = vpop.f32.mrb[2].mxu1 }
 0x207   :  { %v245_v36 = vadd.f32 %v334_v35, %v282_v30  ;;  %v236_v37 = vpop.f32.mrb[3].mxu1  ;;  %v250_v39 = vmax.f32 %v242_v32, 0.0 }
 0x208   :  { %v237_v38 = vadd.f32 %v282_v30, %v236_v37  ;;  %v248_v41 = vmax.f32 %v234_v34, 0.0 }
 0x209   :  { %v251_v40 = vmax.f32 %v245_v36, 0.0 }
 0x20a   :  { %v249_v42 = vmax.f32 %v237_v38, 0.0 }
 0x20b   :  { %v305_v43 = vpack.c.bf16 %v251_v40, %v250_v39 }
 0x20c   :  { %v300_v44 = vpack.c.bf16 %v249_v42, %v248_v41 }
 0x20d   :  { %307 = vst [vmem:[%s548_s5 + $0x8] sm:$0xff] %v305_v43  }
 0x20e   :  { %301 = vst [vmem:[%s548_s5] sm:$0xff] %v300_v44  }
 0x20f   :  { %276 = vsyncpa [#allocation3], 1 }
 0x210   :  { %277 = vsyncpa [#allocation5], 1 }
 0x211   :  { %278 = vsyncpa [#allocation8], 1 }

// kernel: pointnet_forward.11
= control target key start
LH: loop header
LB: loop body
LE: loop exit
PB: predicated region body
PF: predicated region fallthrough
CT: control target
= control target key end

     0   :  { %8 = vsyncpa [#allocation3], 0  ;;  %s1564_s0 = inlined_call_operand.vmem [shape: bf16[2,16,128], index: 0, kind: input, shape index: {}]   ;;  %s1565_s1 = inlined_call_operand.hbm [shape: bf16[128,1024], index: 1, kind: input, shape index: {}]   ;;  %s1566_s2 = inlined_call_operand.hbm [shape: f32[1,1024], index: 2, kind: input, shape index: {}]   ;;  %s1567_s3 = inlined_call_operand.vmem [shape: f32[2,1,1024], index: 3, kind: output, shape index: {}]  }
   0x1   :  { %9 = vsyncpa [#allocation5], 0  ;;  %s1391_s12 = smov 0   ;;  %s1393_s13 = smov 0  }
   0x2   :  { %s1395_s14 = smov 0  }
   0x3 LB: > { %s1147_s15 = sadd.s32 4294967295, %s1363_s14   ;;  %s27_s16 = sadd.s32 1, %s1359_s13  ;;  %s1363_s14 = sphi %s1395_s14, %s15_s14   ;;  %s1359_s13 = sphi %s1393_s13, %s1577_s13   ;;  %s1355_s12 = sphi %s1391_s12, %s1576_s12  }
   0x4   : > { %p29_p0 = scmp.ge.s32.totalorder %s27_s16, 2  ;;  %p1149_p1 = scmp.ge.s32.totalorder %s1363_s14, 1 }
   0x5   : > { %p128_p2 = scmp.lt.s32.totalorder %s1363_s14, 3  ;;  %p1416_p4 = scmp.eq.s32.totalorder %s1147_s15, 0 }
   0x6   : > { %s1579_s16 = smov (%p29_p0, %s27_s16), 0  ;;  %s1365_s19 = smov [#allocation2]  }
   0x7   : > { %p1412_p3 = pnand %p1149_p1, %p128_p2  ;;  %s140_s20 = sshll.u32 %s1365_s19, 4  ;;  %s141_s20 = int_to_ptr.vmem [resolvable:$true] %s140_s20 }
   0x8   : > { %s1572_s18 = scalar_select %p1416_p4, 1, 0 }
   0x9   : > { %s1571_s17 = scalar_select %p1412_p3, 1, 0 }
   0xa   : > { %p1235_p5 = pneg %p1412_p3  ;;  %s1366_s22 = smov [#allocation4]  }
   0xb   : > { %s154_s23 = sshll.u32 %s1366_s22, 4  ;;  %s1277_s26 = scalar_lea.hbm %s1565_s1, 8192  ;;  %s1428_s23 = int_to_ptr.vmem [resolvable:$true] %s154_s23 }
   0xc   : > { %p1424_p6 = pnand %p1416_p4, %p1235_p5  ;;  %p1278_p7 = scmp.ne.s32.totalorder %s1565_s1, %s1277_s26 }
   0xd   : > { %p1284_p11 = scmp.lt.u32.totalorder %s1277_s26, %s1565_s1 }
   0xe   : > { %p1279_p8 = pneg %p1424_p6 }
  0x10   : > { %p1280_p9 = pnand %p1279_p8, %p1278_p7 }
  0x12   : > { %p1281_p10 = pneg %p1280_p9 }
  0x14   : > { %p1286_p12 = pnand %p1284_p11, %p1281_p10 }
  0x16   : > { %1289 = shalt.err (!%p1286_p12)
}
  0x17   : > { %s1290_s4 = scalar_lea.vmem %s141_s20, 8192  ;;  %p1298_p2 = scmp.lt.s32.totalorder %s141_s20, %s141_s20 }
  0x18   : > { %p1291_p13 = scmp.ne.s32.totalorder %s141_s20, %s1290_s4  ;;  %p1299_p5 = scmp.lt.s32.totalorder %s1290_s4, %s1290_s4 }
  0x1a   : > { %p1293_p0 = pnand %p1291_p13, %p1279_p8  ;;  %p1300_p4 = por %p1299_p5, %p1298_p2 }
  0x1c   : > { %p1294_p1 = pneg %p1293_p0 }
  0x1e   : > { %p1301_p3 = pnand %p1300_p4, %p1294_p1 }
  0x20   : > { %1304 = shalt.err (!%p1301_p3)
}
  0x21   : > { %s1367_s5 = smov 512   ;;  %s1368_s6 = smov 32  }
  0x22   : > { %1238 = dma.hbm_to_vmem [thread:$0]  (!%p1424_p6), %s1565_s1, 8192, %s141_s20, [#allocation3], %s1367_s5, %s1367_s5, %s1368_s6  }
  0x23   : > { %s1305_s11 = scalar_lea.hbm %s1566_s2, 128 }
  0x24   : > { %p1306_p7 = scmp.ne.s32.totalorder %s1566_s2, %s1305_s11  ;;  %p1312_p9 = scmp.lt.u32.totalorder %s1305_s11, %s1566_s2 }
  0x26   : > { %p1308_p3 = pnand %p1306_p7, %p1279_p8 }
  0x28   : > { %p1309_p4 = pneg %p1308_p3 }
  0x2a   : > { %p1314_p10 = pnand %p1312_p9, %p1309_p4 }
  0x2c   : > { %1317 = shalt.err (!%p1314_p10)
}
  0x2d   : > { %s1318_s20 = scalar_lea.vmem %s1428_s23, 128  ;;  %p1326_p0 = scmp.lt.s32.totalorder %s1428_s23, %s1428_s23 }
  0x2e   : > { %p1319_p11 = scmp.ne.s32.totalorder %s1428_s23, %s1318_s20  ;;  %p1327_p1 = scmp.lt.s32.totalorder %s1318_s20, %s1318_s20 }
  0x30   : > { %p1321_p12 = pnand %p1319_p11, %p1279_p8  ;;  %p1328_p2 = por %p1327_p1, %p1326_p0 }
  0x32   : > { %p1322_p13 = pneg %p1321_p12 }
  0x34   : > { %p1329_p5 = pnand %p1328_p2, %p1322_p13 }
  0x36   : > { %1332 = shalt.err (!%p1329_p5)
}
  0x37   : > { %1241 = dma.hbm_to_vmem [thread:$0]  (!%p1424_p6), %s1566_s2, 128, %s1428_s23, [#allocation5]  }
  0x38   : > { %p1574_p7 = scmp.ne.s32.totalorder %s1571_s17, 0 }
  0x39   : > { %p1575_p3 = scmp.ne.s32.totalorder (!%p1574_p7), %s1572_s18, 0 }
  0x3a   : > { %180 = sbr.rel (%p1574_p7) target bundleno = 380 (0x17c), region = 32 }
  0x41   : > { %1346 = dma.done.wait (%p1575_p3), [#allocation3], 8192  }
  0x42   : > { %1348 = vsyncadd (%p1575_p3), [#allocation3], 4294959104 }
  0x43   : > { %1350 = dma.done.wait (%p1575_p3), [#allocation5], 128  }
  0x44   : > { %1352 = vsyncadd (%p1575_p3), [#allocation5], 4294967168  ;;  %v1369_v0 = vmov 0   ;;  %p212_p6 = scmp.lt.s32.totalorder %s1355_s12, 1  ;;  %v228_v1 = vld [vmem:[#allocation2] sm:$0xff]  ;;  %v229_v3 = vld [vmem:[#allocation2 + $0x8] sm:$0xff] }
  0x45   : > { %692 = vmatprep.mubr.bf16.mxu0 %v1369_v0  ;;  %735 = vmatprep.mubr.bf16.mxu1 %v1369_v0  ;;  %v232_v2 = vld [vmem:[#allocation2 + $0x20] sm:$0xff]  ;;  %v233_v5 = vld [vmem:[#allocation2 + $0x28] sm:$0xff]  ;;  %v230_v63 = vld [vmem:[#allocation2 + $0x10] sm:$0xff] }
  0x46   : > { %v1161_v4 = vcombine.high %v228_v1, %v232_v2  ;;  %v1160_v6 = vcombine.low %v228_v1, %v232_v2  ;;  %v236_v7 = vld [vmem:[#allocation2 + $0x40] sm:$0xff]  ;;  %v1163_v9 = vcombine.high %v229_v3, %v233_v5  ;;  %v1162_v10 = vcombine.low %v229_v3, %v233_v5  ;;  %v237_v12 = vld [vmem:[#allocation2 + $0x48] sm:$0xff]  ;;  %s1581_s12 = smov (!%p212_p6, %s1355_s12), 1  ;;  %v234_v1 = vld [vmem:[#allocation2 + $0x30] sm:$0xff] }
  0x47   : > { %v240_v8 = vld [vmem:[#allocation2 + $0x60] sm:$0xff]  ;;  %v241_v13 = vld [vmem:[#allocation2 + $0x68] sm:$0xff]  ;;  %s1226_s17 = sshll.u32 %s1581_s12, 3  ;;  %v231_v2 = vld [vmem:[#allocation2 + $0x18] sm:$0xff] }
  0x48   : > { %v1169_v11 = vcombine.high %v236_v7, %v240_v8  ;;  %v244_v14 = vld [vmem:[#allocation2 + $0x80] sm:$0xff]  ;;  %660 = vmatprep.subr.bf16.mxu0 %v1161_v4  ;;  %v1171_v15 = vcombine.high %v237_v12, %v241_v13  ;;  %v245_v17 = vld [vmem:[#allocation2 + $0x88] sm:$0xff]  ;;  %703 = vmatprep.subr.bf16.mxu1 %v1163_v9  ;;  %v1168_v19 = vcombine.low %v236_v7, %v240_v8  ;;  %s1501_s23 = scalar_lea.vmem %s1564_s0, %s1226_s17  ;;  %v235_v3 = vld [vmem:[#allocation2 + $0x38] sm:$0xff]  ;;  %s224_s29 = scalar_lea.vmem %s1567_s3, %s1226_s17 }
  0x49   : > { %v248_v16 = vld [vmem:[#allocation2 + $0xa0] sm:$0xff]  ;;  %v249_v18 = vld [vmem:[#allocation2 + $0xa8] sm:$0xff]  ;;  %661 = vmatpush1.bf16.msra.mxu0 %v1160_v6  ;;  %704 = vmatpush1.bf16.msra.mxu1 %v1162_v10  ;;  %v1170_v20 = vcombine.low %v237_v12, %v241_v13  ;;  %v1165_v6 = vcombine.high %v230_v63, %v234_v1  ;;  %v1167_v7 = vcombine.high %v231_v2, %v235_v3  ;;  %v238_v8 = vld [vmem:[#allocation2 + $0x50] sm:$0xff] }
  0x4a   : > { %662 = vmatprep.subr.bf16.mxu0 %v1169_v11  ;;  %v1177_v21 = vcombine.high %v244_v14, %v248_v16  ;;  %705 = vmatprep.subr.bf16.mxu1 %v1171_v15  ;;  %v1179_v22 = vcombine.high %v245_v17, %v249_v18  ;;  %v252_v23 = vld [vmem:[#allocation2 + $0xc0] sm:$0xff]  ;;  %v253_v25 = vld [vmem:[#allocation2 + $0xc8] sm:$0xff]  ;;  %v1176_v27 = vcombine.low %v244_v14, %v248_v16  ;;  %v242_v9 = vld [vmem:[#allocation2 + $0x70] sm:$0xff] }
  0x4b   : > { %v256_v24 = vld [vmem:[#allocation2 + $0xe0] sm:$0xff]  ;;  %v257_v26 = vld [vmem:[#allocation2 + $0xe8] sm:$0xff]  ;;  %v1178_v28 = vcombine.low %v245_v17, %v249_v18  ;;  %v239_v11 = vld [vmem:[#allocation2 + $0x58] sm:$0xff]  ;;  %v1164_v13 = vcombine.low %v230_v63, %v234_v1  ;;  %v1166_v14 = vcombine.low %v231_v2, %v235_v3  ;;  %v1173_v15 = vcombine.high %v238_v8, %v242_v9 }
  0x4c   : > { %v1185_v29 = vcombine.high %v252_v23, %v256_v24  ;;  %v1187_v30 = vcombine.high %v253_v25, %v257_v26  ;;  %v260_v31 = vld [vmem:[#allocation2 + $0x100] sm:$0xff]  ;;  %v261_v33 = vld [vmem:[#allocation2 + $0x108] sm:$0xff]  ;;  %v1184_v35 = vcombine.low %v252_v23, %v256_v24  ;;  %v1186_v36 = vcombine.low %v253_v25, %v257_v26  ;;  %v243_v12 = vld [vmem:[#allocation2 + $0x78] sm:$0xff] }
  0x4d   : > { %663 = vmatpush1.bf16.msra.mxu0 %v1168_v19  ;;  %706 = vmatpush1.bf16.msra.mxu1 %v1170_v20  ;;  %v264_v32 = vld [vmem:[#allocation2 + $0x120] sm:$0xff]  ;;  %v265_v34 = vld [vmem:[#allocation2 + $0x128] sm:$0xff]  ;;  %v1175_v16 = vcombine.high %v239_v11, %v243_v12  ;;  %v246_v17 = vld [vmem:[#allocation2 + $0x90] sm:$0xff]  ;;  %v294_v3 = vlaneseq }
  0x4e   : > { %664 = vmatprep.subr.bf16.mxu0 %v1177_v21  ;;  %707 = vmatprep.subr.bf16.mxu1 %v1179_v22  ;;  %v1193_v37 = vcombine.high %v260_v31, %v264_v32  ;;  %v1195_v38 = vcombine.high %v261_v33, %v265_v34  ;;  %v268_v39 = vld [vmem:[#allocation2 + $0x140] sm:$0xff]  ;;  %v269_v41 = vld [vmem:[#allocation2 + $0x148] sm:$0xff]  ;;  %v1192_v43 = vcombine.low %v260_v31, %v264_v32  ;;  %v250_v18 = vld [vmem:[#allocation2 + $0xb0] sm:$0xff] }
  0x4f   : > { %v272_v40 = vld [vmem:[#allocation2 + $0x160] sm:$0xff]  ;;  %v273_v42 = vld [vmem:[#allocation2 + $0x168] sm:$0xff]  ;;  %v1194_v44 = vcombine.low %v261_v33, %v265_v34  ;;  %v247_v19 = vld [vmem:[#allocation2 + $0x98] sm:$0xff]  ;;  %v1172_v21 = vcombine.low %v238_v8, %v242_v9  ;;  %v1174_v22 = vcombine.low %v239_v11, %v243_v12  ;;  %v1181_v23 = vcombine.high %v246_v17, %v250_v18 }
  0x50   : > { %v1201_v45 = vcombine.high %v268_v39, %v272_v40  ;;  %v1203_v46 = vcombine.high %v269_v41, %v273_v42  ;;  %v276_v47 = vld [vmem:[#allocation2 + $0x180] sm:$0xff]  ;;  %v277_v49 = vld [vmem:[#allocation2 + $0x188] sm:$0xff]  ;;  %v1200_v51 = vcombine.low %v268_v39, %v272_v40  ;;  %v1202_v52 = vcombine.low %v269_v41, %v273_v42  ;;  %v251_v20 = vld [vmem:[#allocation2 + $0xb8] sm:$0xff] }
  0x51   : > { %665 = vmatpush1.bf16.msra.mxu0 %v1176_v27  ;;  %708 = vmatpush1.bf16.msra.mxu1 %v1178_v28  ;;  %v280_v48 = vld [vmem:[#allocation2 + $0x1a0] sm:$0xff]  ;;  %v281_v50 = vld [vmem:[#allocation2 + $0x1a8] sm:$0xff]  ;;  %v1183_v24 = vcombine.high %v247_v19, %v251_v20  ;;  %v254_v25 = vld [vmem:[#allocation2 + $0xd0] sm:$0xff] }
  0x52   : > { %666 = vmatprep.subr.bf16.mxu0 %v1185_v29  ;;  %709 = vmatprep.subr.bf16.mxu1 %v1187_v30  ;;  %v1209_v53 = vcombine.high %v276_v47, %v280_v48  ;;  %v1211_v54 = vcombine.high %v277_v49, %v281_v50  ;;  %v284_v55 = vld [vmem:[#allocation2 + $0x1c0] sm:$0xff]  ;;  %v285_v57 = vld [vmem:[#allocation2 + $0x1c8] sm:$0xff]  ;;  %v1208_v59 = vcombine.low %v276_v47, %v280_v48  ;;  %v258_v26 = vld [vmem:[#allocation2 + $0xf0] sm:$0xff] }
  0x53   : > { %v288_v56 = vld [vmem:[#allocation2 + $0x1e0] sm:$0xff]  ;;  %v289_v58 = vld [vmem:[#allocation2 + $0x1e8] sm:$0xff]  ;;  %v1210_v60 = vcombine.low %v277_v49, %v281_v50  ;;  %v255_v27 = vld [vmem:[#allocation2 + $0xd8] sm:$0xff]  ;;  %v1180_v29 = vcombine.low %v246_v17, %v250_v18  ;;  %v1182_v30 = vcombine.low %v247_v19, %v251_v20  ;;  %v1189_v31 = vcombine.high %v254_v25, %v258_v26 }
  0x54   : > { %v1217_v61 = vcombine.high %v284_v55, %v288_v56  ;;  %v1219_v62 = vcombine.high %v285_v57, %v289_v58  ;;  %v1216_v4 = vcombine.low %v284_v55, %v288_v56  ;;  %v1218_v5 = vcombine.low %v285_v57, %v289_v58  ;;  %v1504_v10 = vld [vmem:[%s1501_s23] sm:$0xff]   ;;  %v259_v28 = vld [vmem:[#allocation2 + $0xf8] sm:$0xff]  ;;  %v262_v33 = vld [vmem:[#allocation2 + $0x110] sm:$0xff] }
  0x55   : > { %667 = vmatpush1.bf16.msra.mxu0 %v1184_v35  ;;  %710 = vmatpush1.bf16.msra.mxu1 %v1186_v36  ;;  %v1191_v32 = vcombine.high %v255_v27, %v259_v28  ;;  %v266_v34 = vld [vmem:[#allocation2 + $0x130] sm:$0xff]  ;;  %v263_v35 = vld [vmem:[#allocation2 + $0x118] sm:$0xff] }
  0x56   : > { %668 = vmatprep.subr.bf16.mxu0 %v1193_v37  ;;  %711 = vmatprep.subr.bf16.mxu1 %v1195_v38  ;;  %v267_v36 = vld [vmem:[#allocation2 + $0x138] sm:$0xff]  ;;  %v1188_v37 = vcombine.low %v254_v25, %v258_v26  ;;  %v1190_v38 = vcombine.low %v255_v27, %v259_v28  ;;  %v1197_v39 = vcombine.high %v262_v33, %v266_v34  ;;  %v270_v40 = vld [vmem:[#allocation2 + $0x150] sm:$0xff] }
  0x57   : > { %v274_v41 = vld [vmem:[#allocation2 + $0x170] sm:$0xff]  ;;  %v271_v42 = vld [vmem:[#allocation2 + $0x158] sm:$0xff] }
  0x58   : > { %v278_v48 = vld [vmem:[#allocation2 + $0x190] sm:$0xff]  ;;  %v279_v50 = vld [vmem:[#allocation2 + $0x198] sm:$0xff] }
  0x59   : > { %669 = vmatpush1.bf16.msra.mxu0 %v1192_v43  ;;  %712 = vmatpush1.bf16.msra.mxu1 %v1194_v44  ;;  %v275_v43 = vld [vmem:[#allocation2 + $0x178] sm:$0xff]  ;;  %v1196_v44 = vcombine.low %v262_v33, %v266_v34  ;;  %v282_v49 = vld [vmem:[#allocation2 + $0x1b0] sm:$0xff] }
  0x5a   : > { %670 = vmatprep.subr.bf16.mxu0 %v1201_v45  ;;  %713 = vmatprep.subr.bf16.mxu1 %v1203_v46  ;;  %v1198_v45 = vcombine.low %v263_v35, %v267_v36  ;;  %v1205_v46 = vcombine.high %v270_v40, %v274_v41  ;;  %v1207_v47 = vcombine.high %v271_v42, %v275_v43  ;;  %v286_v56 = vld [vmem:[#allocation2 + $0x1d0] sm:$0xff]  ;;  %v287_v58 = vld [vmem:[#allocation2 + $0x1d8] sm:$0xff] }
  0x5b   : > { %v290_v57 = vld [vmem:[#allocation2 + $0x1f0] sm:$0xff] }
  0x5c   : > { %v1220_v1 = vcombine.low %v286_v56, %v290_v57 }
  0x5d   : > { %671 = vmatpush1.bf16.msra.mxu0 %v1200_v51  ;;  %714 = vmatpush1.bf16.msra.mxu1 %v1202_v52  ;;  %v283_v51 = vld [vmem:[#allocation2 + $0x1b8] sm:$0xff]  ;;  %v1204_v52 = vcombine.low %v270_v40, %v274_v41 }
  0x5e   : > { %672 = vmatprep.subr.bf16.mxu0 %v1209_v53  ;;  %715 = vmatprep.subr.bf16.mxu1 %v1211_v54  ;;  %v1206_v53 = vcombine.low %v271_v42, %v275_v43  ;;  %v1213_v54 = vcombine.high %v278_v48, %v282_v49  ;;  %v1215_v55 = vcombine.high %v279_v50, %v283_v51 }
  0x61   : > { %673 = vmatpush1.bf16.msra.mxu0 %v1208_v59  ;;  %716 = vmatpush1.bf16.msra.mxu1 %v1210_v60  ;;  %v291_v59 = vld [vmem:[#allocation2 + $0x1f8] sm:$0xff]  ;;  %v1212_v60 = vcombine.low %v278_v48, %v282_v49  ;;  %v1370_v48 = vmov 1966171168  }
  0x62   : > { %674 = vmatprep.subr.bf16.mxu0 %v1217_v61  ;;  %717 = vmatprep.subr.bf16.mxu1 %v1219_v62  ;;  %v1214_v61 = vcombine.low %v279_v50, %v283_v51  ;;  %v1221_v62 = vcombine.high %v286_v56, %v290_v57  ;;  %v1223_v63 = vcombine.high %v287_v58, %v291_v59  ;;  %v946_v49 = vunpack.c.l.s4 %v1370_v48 }
  0x63   : > { %v1222_v2 = vcombine.low %v287_v58, %v291_v59 }
  0x64   : > { %v947_v58 = vunpack.c.0.s8 %v946_v49 }
  0x65   : > { %675 = vmatpush1.bf16.msra.mxu0 %v1216_v4  ;;  %718 = vmatpush1.bf16.msra.mxu1 %v1218_v5  ;;  %v1512_v4 = vshrl.u32 %v294_v3, 7 }
  0x66   : > { %746 = vmatprep.subr.bf16.mxu0 %v1165_v6  ;;  %789 = vmatprep.subr.bf16.mxu1 %v1167_v7  ;;  %v1515_v6 = vld [vmem:[#allocation4] sm:$0xff] }
  0x67   : > { %v296_v5 = vsub.s32 0, %v1512_v4  ;;  %v304_v7 = vsub.s32 2, %v1512_v4  ;;  %v300_v8 = vsub.s32 1, %v1512_v4  ;;  %v308_v9 = vsub.s32 3, %v1512_v4 }
  0x68   : > { %693 = vmatmul.mubr.bf16.vlgmr.msra.gmra.mrb[0].mxu0 %v1504_v10  ;;  %736 = vmatmul.mubr.bf16.vlgmr.msra.gmra.mrb[0].mxu1 %v1504_v10 }
  0x69   : > { %747 = vmatpush1.bf16.msra.mxu0 %v1164_v13  ;;  %790 = vmatpush1.bf16.msra.mxu1 %v1166_v14  ;;  %v297_v11 = vrot.slane %v1515_v6, %v296_v5  ;;  %v305_v12 = vrot.slane %v1515_v6, %v304_v7  ;;  %v301_v13 = vrot.slane %v1515_v6, %v300_v8 }
  0x6a   : > { %748 = vmatprep.subr.bf16.mxu0 %v1173_v15  ;;  %791 = vmatprep.subr.bf16.mxu1 %v1175_v16  ;;  %v1525_v5 = vsub.s32 %v947_v58, %v1512_v4 }
  0x6b   : > { %778 = vmatprep.mubr.bf16.mxu0 %v1369_v0  ;;  %821 = vmatprep.mubr.bf16.mxu1 %v1369_v0  ;;  %v1199_v0 = vcombine.high %v263_v35, %v267_v36 }
  0x6d   : > { %749 = vmatpush1.bf16.msra.mxu0 %v1172_v21  ;;  %792 = vmatpush1.bf16.msra.mxu1 %v1174_v22 }
  0x6e   : > { %750 = vmatprep.subr.bf16.mxu0 %v1181_v23  ;;  %793 = vmatprep.subr.bf16.mxu1 %v1183_v24 }
  0x71   : > { %751 = vmatpush1.bf16.msra.mxu0 %v1180_v29  ;;  %794 = vmatpush1.bf16.msra.mxu1 %v1182_v30 }
  0x72   : > { %752 = vmatprep.subr.bf16.mxu0 %v1189_v31  ;;  %795 = vmatprep.subr.bf16.mxu1 %v1191_v32 }
  0x75   : > { %753 = vmatpush1.bf16.msra.mxu0 %v1188_v37  ;;  %796 = vmatpush1.bf16.msra.mxu1 %v1190_v38 }
  0x76   : > { %754 = vmatprep.subr.bf16.mxu0 %v1197_v39  ;;  %797 = vmatprep.subr.bf16.mxu1 %v1199_v0 }
  0x79   : > { %755 = vmatpush1.bf16.msra.mxu0 %v1196_v44  ;;  %798 = vmatpush1.bf16.msra.mxu1 %v1198_v45 }
  0x7a   : > { %756 = vmatprep.subr.bf16.mxu0 %v1205_v46  ;;  %799 = vmatprep.subr.bf16.mxu1 %v1207_v47 }
  0x7d   : > { %757 = vmatpush1.bf16.msra.mxu0 %v1204_v52  ;;  %800 = vmatpush1.bf16.msra.mxu1 %v1206_v53 }
  0x7e   : > { %758 = vmatprep.subr.bf16.mxu0 %v1213_v54  ;;  %801 = vmatprep.subr.bf16.mxu1 %v1215_v55 }
  0x81   : > { %759 = vmatpush1.bf16.msra.mxu0 %v1212_v60  ;;  %802 = vmatpush1.bf16.msra.mxu1 %v1214_v61 }
  0x82   : > { %760 = vmatprep.subr.bf16.mxu0 %v1221_v62  ;;  %803 = vmatprep.subr.bf16.mxu1 %v1223_v63 }
  0x85   : > { %761 = vmatpush1.bf16.msra.mxu0 %v1220_v1  ;;  %804 = vmatpush1.bf16.msra.mxu1 %v1222_v2 }
  0x88   : > { %779 = vmatmul.mubr.bf16.vlgmr.msra.gmra.mrb[4].mxu0 %v1504_v10  ;;  %822 = vmatmul.mubr.bf16.vlgmr.msra.gmra.mrb[4].mxu1 %v1504_v10  ;;  %v309_v10 = vrot.slane %v1515_v6, %v308_v9 }
 0x13b   : > { %v694_v14 = vpop.f32.mrb[0].mxu0  ;;  %v737_v16 = vpop.f32.mrb[0].mxu1 }
 0x13c   : > { %v695_v15 = vadd.f32 %v694_v14, %v297_v11  ;;  %v696_v17 = vpop.f32.mrb[1].mxu0  ;;  %v738_v18 = vadd.f32 %v737_v16, %v305_v12  ;;  %v739_v20 = vpop.f32.mrb[1].mxu1  ;;  %v316_v14 = vsub.s32 5, %v1512_v4  ;;  %v324_v16 = vsub.s32 7, %v1512_v4 }
 0x13d   : > { %v697_v19 = vadd.f32 %v696_v17, %v301_v13  ;;  %v698_v21 = vpop.f32.mrb[2].mxu0  ;;  %v740_v23 = vadd.f32 %v739_v20, %v309_v10  ;;  %v741_v25 = vpop.f32.mrb[2].mxu1 }
 0x13e   : > { %v832_v22 = vmax.f32 %v695_v15, 0.0  ;;  %v699_v24 = vadd.f32 %v698_v21, %v297_v11  ;;  %v700_v26 = vpop.f32.mrb[3].mxu0  ;;  %v834_v27 = vmax.f32 %v738_v18, 0.0  ;;  %v742_v28 = vadd.f32 %v741_v25, %v305_v12  ;;  %v743_v30 = vpop.f32.mrb[3].mxu1 }
 0x13f   : > { %v701_v29 = vadd.f32 %v700_v26, %v301_v13  ;;  %v744_v32 = vadd.f32 %v743_v30, %v309_v10  ;;  %v833_v33 = vmax.f32 %v697_v19, 0.0  ;;  %v835_v36 = vmax.f32 %v740_v23, 0.0 }
 0x140   : > { %v840_v31 = vmax.f32 %v699_v24, 0.0  ;;  %v842_v34 = vmax.f32 %v742_v28, 0.0  ;;  %v312_v13 = vsub.s32 4, %v1512_v4  ;;  %v320_v10 = vsub.s32 6, %v1512_v4 }
 0x141   : > { %v841_v35 = vmax.f32 %v701_v29, 0.0  ;;  %v843_v38 = vmax.f32 %v744_v32, 0.0  ;;  %v317_v19 = vrot.slane %v1515_v6, %v316_v14  ;;  %v325_v20 = vrot.slane %v1515_v6, %v324_v16 }
 0x142   : > { %v873_v37 = vmax.f32 %v832_v22, %v840_v31  ;;  %v887_v39 = vmax.f32 %v834_v27, %v842_v34  ;;  %v313_v17 = vrot.slane %v1515_v6, %v312_v13  ;;  %v321_v18 = vrot.slane %v1515_v6, %v320_v10 }
 0x143   : > { %v880_v0 = vmax.f32 %v833_v33, %v841_v35  ;;  %v894_v41 = vmax.f32 %v835_v36, %v843_v38 }
 0x144   : > { %v874_v40 = vrot.slane %v873_v37, 4  ;;  %v888_v42 = vrot.slane %v887_v39, 4 }
 0x145   : > { %v881_v43 = vrot.slane %v880_v0, 4  ;;  %v895_v45 = vrot.slane %v894_v41, 4 }
 0x146   : > { %v875_v44 = vmax.f32 %v873_v37, %v874_v40  ;;  %v889_v46 = vmax.f32 %v887_v39, %v888_v42 }
 0x147   : > { %v882_v47 = vmax.f32 %v880_v0, %v881_v43  ;;  %v896_v51 = vmax.f32 %v894_v41, %v895_v45 }
 0x148   : > { %v876_v50 = vrot.slane %v875_v44, 2  ;;  %v890_v52 = vrot.slane %v889_v46, 2 }
 0x149   : > { %v883_v53 = vrot.slane %v882_v47, 2  ;;  %v897_v55 = vrot.slane %v896_v51, 2 }
 0x14a   : > { %v877_v54 = vmax.f32 %v875_v44, %v876_v50  ;;  %v891_v56 = vmax.f32 %v889_v46, %v890_v52 }
 0x14b   : > { %v884_v57 = vmax.f32 %v882_v47, %v883_v53  ;;  %v898_v60 = vmax.f32 %v896_v51, %v897_v55 }
 0x14c   : > { %v878_v59 = vrot.slane %v877_v54, 1  ;;  %v892_v61 = vrot.slane %v891_v56, 1 }
 0x14d   : > { %v885_v62 = vrot.slane %v884_v57, 1  ;;  %v899_v1 = vrot.slane %v898_v60, 1 }
 0x14e   : > { %v879_v63 = vmax.f32 %v877_v54, %v878_v59  ;;  %v893_v2 = vmax.f32 %v891_v56, %v892_v61 }
 0x14f   : > { %v886_v3 = vmax.f32 %v884_v57, %v885_v62  ;;  %v900_v7 = vmax.f32 %v898_v60, %v899_v1 }
 0x151   : > { %v941_v8 = vcombine.low %v879_v63, %v886_v3  ;;  %v942_v9 = vcombine.low %v893_v2, %v900_v7 }
 0x153   : > { %v1528_v11 = vrot.slane %v941_v8, %v1525_v5  ;;  %v1531_v12 = vrot.slane %v942_v9, %v1525_v5 }
 0x155   : > { %v973_v15 = vcombine.low %v1528_v11, %v1531_v12 }
 0x15b   : > { %v780_v21 = vpop.f32.mrb[4].mxu0  ;;  %v823_v23 = vpop.f32.mrb[4].mxu1 }
 0x15c   : > { %v781_v22 = vadd.f32 %v780_v21, %v313_v17  ;;  %v782_v24 = vpop.f32.mrb[5].mxu0  ;;  %v824_v25 = vadd.f32 %v823_v23, %v321_v18  ;;  %v825_v27 = vpop.f32.mrb[5].mxu1 }
 0x15d   : > { %v783_v26 = vadd.f32 %v782_v24, %v317_v19  ;;  %v784_v28 = vpop.f32.mrb[6].mxu0  ;;  %v826_v29 = vadd.f32 %v825_v27, %v325_v20  ;;  %v827_v31 = vpop.f32.mrb[6].mxu1 }
 0x15e   : > { %v785_v30 = vadd.f32 %v784_v28, %v313_v17  ;;  %v786_v4 = vpop.f32.mrb[7].mxu0  ;;  %v828_v32 = vadd.f32 %v827_v31, %v321_v18  ;;  %v829_v34 = vpop.f32.mrb[7].mxu1  ;;  %v836_v35 = vmax.f32 %v781_v22, 0.0  ;;  %v838_v38 = vmax.f32 %v824_v25, 0.0 }
 0x15f   : > { %v787_v33 = vadd.f32 %v786_v4, %v317_v19  ;;  %v830_v37 = vadd.f32 %v829_v34, %v325_v20  ;;  %v837_v6 = vmax.f32 %v783_v26, 0.0  ;;  %v839_v40 = vmax.f32 %v826_v29, 0.0 }
 0x160   : > { %v844_v36 = vmax.f32 %v785_v30, 0.0  ;;  %v846_v39 = vmax.f32 %v828_v32, 0.0  ;;  %v981_v18 = vrot.slane %v973_v15, %v1525_v5 }
 0x161   : > { %v845_v0 = vmax.f32 %v787_v33, 0.0  ;;  %v847_v42 = vmax.f32 %v830_v37, 0.0 }
 0x162   : > { %v901_v41 = vmax.f32 %v836_v35, %v844_v36  ;;  %v915_v43 = vmax.f32 %v838_v38, %v846_v39 }
 0x163   : > { %v908_v44 = vmax.f32 %v837_v6, %v845_v0  ;;  %v922_v46 = vmax.f32 %v839_v40, %v847_v42 }
 0x164   : > { %v902_v45 = vrot.slane %v901_v41, 4  ;;  %v916_v47 = vrot.slane %v915_v43, 4 }
 0x165   : > { %v909_v48 = vrot.slane %v908_v44, 4  ;;  %v923_v50 = vrot.slane %v922_v46, 4 }
 0x166   : > { %v903_v49 = vmax.f32 %v901_v41, %v902_v45  ;;  %v917_v51 = vmax.f32 %v915_v43, %v916_v47 }
 0x167   : > { %v910_v52 = vmax.f32 %v908_v44, %v909_v48  ;;  %v924_v54 = vmax.f32 %v922_v46, %v923_v50 }
 0x168   : > { %v904_v53 = vrot.slane %v903_v49, 2  ;;  %v918_v55 = vrot.slane %v917_v51, 2 }
 0x169   : > { %v911_v56 = vrot.slane %v910_v52, 2  ;;  %v925_v58 = vrot.slane %v924_v54, 2 }
 0x16a   : > { %v905_v57 = vmax.f32 %v903_v49, %v904_v53  ;;  %v919_v59 = vmax.f32 %v917_v51, %v918_v55 }
 0x16b   : > { %v912_v60 = vmax.f32 %v910_v52, %v911_v56  ;;  %v926_v62 = vmax.f32 %v924_v54, %v925_v58 }
 0x16c   : > { %v906_v61 = vrot.slane %v905_v57, 1  ;;  %v920_v63 = vrot.slane %v919_v59, 1 }
 0x16d   : > { %v913_v1 = vrot.slane %v912_v60, 1  ;;  %v927_v3 = vrot.slane %v926_v62, 1 }
 0x16e   : > { %v907_v2 = vmax.f32 %v905_v57, %v906_v61  ;;  %v921_v7 = vmax.f32 %v919_v59, %v920_v63 }
 0x16f   : > { %v914_v8 = vmax.f32 %v912_v60, %v913_v1  ;;  %v928_v9 = vmax.f32 %v926_v62, %v927_v3 }
 0x171   : > { %v943_v13 = vcombine.low %v907_v2, %v914_v8  ;;  %v944_v10 = vcombine.low %v921_v7, %v928_v9 }
 0x173   : > { %v965_v14 = vrot.slane %v943_v13, %v1525_v5  ;;  %v972_v16 = vrot.slane %v944_v10, %v1525_v5 }
 0x175   : > { %v974_v17 = vcombine.low %v965_v14, %v972_v16 }
 0x177   : > { %v988_v19 = vrot.slane %v974_v17, %v1525_v5 }
 0x179   : > { %v989_v20 = vcombine.low %v981_v18, %v988_v19 }
 0x17b   : > { %991 = vst [vmem:[%s224_s29] sm:$0xff] %v989_v20 }
 0x17c PF: > { %s15_s14 = sadd.s32 1, %s1363_s14   ;;  %s1576_s12 = smov %s1359_s13 }
 0x17d   : > { %p12_p8 = scmp.ge.s32.totalorder %s15_s14, 4   ;;  %s1577_s13 = smov %s1579_s16 }
 0x17f   :  { %14 = sbr.rel (!%p12_p8) target bundleno = 3 (0x3), region = 79 }
 0x186   :  { %1076 = vsyncpa [#allocation3], 1 }
 0x187   :  { %1078 = vsyncpa [#allocation3 + $0x1], 1 }
 0x188   :  { %1079 = vsyncpa [#allocation5], 1 }

// kernel: pointnet_forward.14
= control target key start
LH: loop header
LB: loop body
LE: loop exit
PB: predicated region body
PF: predicated region fallthrough
CT: control target
= control target key end

     0   :  { %10 = vsyncpa [#allocation3], 0  ;;  %s600_s0 = inlined_call_operand.vmem [shape: bf16[32,64], index: 0, kind: input, shape index: {}]   ;;  %s601_s1 = inlined_call_operand.hbm [shape: bf16[64,64], index: 1, kind: input, shape index: {}]   ;;  %s602_s2 = inlined_call_operand.hbm [shape: f32[1,64], index: 2, kind: input, shape index: {}]   ;;  %s603_s3 = inlined_call_operand.hbm [shape: bf16[64,128], index: 3, kind: input, shape index: {}]   ;;  %s604_s4 = inlined_call_operand.hbm [shape: f32[1,128], index: 4, kind: input, shape index: {}]   ;;  %s605_s5 = inlined_call_operand.vmem [shape: bf16[32,128], index: 5, kind: output, shape index: {}]  }
   0x1   :  { %11 = vsyncpa [#allocation5], 0 }
   0x2   :  { %12 = vsyncpa [#allocation8], 0  ;;  %s493_s18 = smov [#allocation4]   ;;  %s494_s20 = smov [#allocation2]  }
   0x3   :  { %s33_s19 = sshll.u32 %s493_s18, 4  ;;  %s20_s21 = sshll.u32 %s494_s20, 4  ;;  %s34_s19 = int_to_ptr.vmem [resolvable:$true] %s33_s19  ;;  %s529_s21 = int_to_ptr.vmem [resolvable:$true] %s20_s21 }
   0x4   :  { %s399_s24 = scalar_lea.hbm %s602_s2, 16 }
   0x5   :  { %p400_p0 = scmp.ne.s32.totalorder %s602_s2, %s399_s24  ;;  %p403_p1 = scmp.lt.u32.totalorder %s399_s24, %s602_s2 }
   0x7   :  { %p405_p2 = pnand %p403_p1, %p400_p0 }
   0x9   :  { %408 = shalt.err (!%p405_p2)
}
   0xa   :  { %s409_s29 = scalar_lea.vmem %s34_s19, 16  ;;  %s413_s30 = scalar_lea.vmem %s34_s19, 32 }
   0xb   :  { %p410_p3 = scmp.ne.s32.totalorder %s34_s19, %s409_s29  ;;  %p414_p4 = scmp.lt.s32.totalorder %s34_s19, %s34_s19 }
   0xc   :  { %p415_p5 = scmp.lt.s32.totalorder %s413_s30, %s409_s29 }
   0xe   :  { %p416_p6 = por %p415_p5, %p414_p4 }
  0x10   :  { %p417_p7 = pnand %p416_p6, %p410_p3 }
  0x12   :  { %420 = shalt.err (!%p417_p7)
}
  0x13   :  { %36 = dma.hbm_to_vmem [thread:$0]  %s602_s2, 16, %s34_s19, [#allocation5]  }
  0x14   :  { %s421_s10 = scalar_lea.hbm %s601_s1, 512 }
  0x15   :  { %p422_p8 = scmp.ne.s32.totalorder %s601_s1, %s421_s10  ;;  %p425_p9 = scmp.lt.u32.totalorder %s421_s10, %s601_s1 }
  0x17   :  { %p427_p10 = pnand %p425_p9, %p422_p8 }
  0x19   :  { %430 = shalt.err (!%p427_p10)
}
  0x1a   :  { %s431_s15 = scalar_lea.vmem %s529_s21, 512  ;;  %p436_p12 = scmp.lt.s32.totalorder %s529_s21, %s529_s21 }
  0x1b   :  { %p432_p11 = scmp.ne.s32.totalorder %s529_s21, %s431_s15  ;;  %p437_p13 = scmp.lt.s32.totalorder %s431_s15, %s431_s15 }
  0x1d   :  { %p438_p0 = por %p437_p13, %p436_p12 }
  0x1f   :  { %p439_p1 = pnand %p438_p0, %p432_p11 }
  0x21   :  { %442 = shalt.err (!%p439_p1)
}
  0x22   :  { %s495_s2 = smov 64   ;;  %s496_s16 = smov 4  }
  0x23   :  { %26 = dma.hbm_to_vmem [thread:$0]  %s601_s1, 512, %s529_s21, [#allocation3], %s495_s2, %s495_s2, %s496_s16  }
  0x24   :  { %s497_s19 = smov [#allocation6]   ;;  %s498_s22 = smov [#allocation7]  }
  0x25   :  { %s42_s20 = sshll.u32 %s497_s19, 4  ;;  %s55_s23 = sshll.u32 %s498_s22, 4  ;;  %s43_s20 = int_to_ptr.vmem [resolvable:$true] %s42_s20  ;;  %s56_s23 = int_to_ptr.vmem [resolvable:$true] %s55_s23 }
  0x26   :  { %s443_s26 = scalar_lea.hbm %s603_s3, 512 }
  0x27   :  { %p444_p2 = scmp.ne.s32.totalorder %s603_s3, %s443_s26  ;;  %p447_p3 = scmp.lt.u32.totalorder %s443_s26, %s603_s3 }
  0x29   :  { %p449_p4 = pnand %p447_p3, %p444_p2 }
  0x2b   :  { %452 = shalt.err (!%p449_p4)
}
  0x2c   :  { %s453_s1 = scalar_lea.vmem %s43_s20, 512  ;;  %p458_p6 = scmp.lt.s32.totalorder %s43_s20, %s43_s20 }
  0x2d   :  { %p454_p5 = scmp.ne.s32.totalorder %s43_s20, %s453_s1  ;;  %p459_p7 = scmp.lt.s32.totalorder %s453_s1, %s453_s1 }
  0x2f   :  { %p460_p8 = por %p459_p7, %p458_p6 }
  0x31   :  { %p461_p9 = pnand %p460_p8, %p454_p5 }
  0x33   :  { %464 = shalt.err (!%p461_p9)
}
  0x34   :  { %48 = dma.hbm_to_vmem [thread:$0]  %s603_s3, 512, %s43_s20, [#allocation5], %s495_s2, %s495_s2, %s496_s16  }
  0x35   :  { %s465_s9 = scalar_lea.hbm %s604_s4, 16 }
  0x36   :  { %p466_p10 = scmp.ne.s32.totalorder %s604_s4, %s465_s9  ;;  %p469_p11 = scmp.lt.u32.totalorder %s465_s9, %s604_s4 }
  0x38   :  { %p471_p12 = pnand %p469_p11, %p466_p10 }
  0x3a   :  { %474 = shalt.err (!%p471_p12)
}
  0x3b   :  { %s475_s14 = scalar_lea.vmem %s56_s23, 16  ;;  %s479_s15 = scalar_lea.vmem %s56_s23, 32 }
  0x3c   :  { %p476_p13 = scmp.ne.s32.totalorder %s56_s23, %s475_s14  ;;  %p480_p0 = scmp.lt.s32.totalorder %s56_s23, %s56_s23 }
  0x3d   :  { %p481_p1 = scmp.lt.s32.totalorder %s479_s15, %s475_s14 }
  0x3f   :  { %p482_p2 = por %p481_p1, %p480_p0 }
  0x41   :  { %p483_p3 = pnand %p482_p2, %p476_p13 }
  0x43   :  { %486 = shalt.err (!%p483_p3)
}
  0x44   :  { %58 = dma.hbm_to_vmem [thread:$0]  %s604_s4, 16, %s56_s23, [#allocation8]  }
  0x45   :  { %487 = dma.done.wait [#allocation3], 512  }
  0x46   :  { %488 = vsyncadd [#allocation3], 4294966784 }
  0x47   :  { %489 = dma.done.wait [#allocation5], 528  }
  0x48   :  { %490 = vsyncadd [#allocation5], 4294966768 }
  0x49   :  { %491 = dma.done.wait [#allocation8], 16  }
  0x4a   :  { %492 = vsyncadd [#allocation8], 4294967280  ;;  %v389_v0 = vld [vmem:[#allocation2] sm:$0xff]   ;;  %v390_v1 = vld [vmem:[#allocation2 + $0x8] sm:$0xff]   ;;  %vm125_vm0 = vcmask 523264  }
  0x4b   :  { %359 = vmatprep.subr.bf16.mxu0 %v389_v0  ;;  %v391_v2 = vld [vmem:[#allocation2 + $0x10] sm:$0xff]   ;;  %v393_v3 = vld [vmem:[%s600_s0] sm:$0xff]   ;;  %v392_v4 = vld [vmem:[#allocation2 + $0x18] sm:$0xff]  }
  0x4c   :  { %360 = vmatpush3.bf16.msra.mxu0 %v389_v0  ;;  %367 = vmatprep.mubr.msk.bf16.mxu0 %vm125_vm0, %v393_v3  ;;  %v395_v5 = vld [vmem:[#allocation6] sm:$0xff]   ;;  %v396_v6 = vld [vmem:[#allocation6 + $0x8] sm:$0xff]   ;;  %v397_v8 = vld [vmem:[#allocation6 + $0x10] sm:$0xff]  }
  0x4d   :  { %361 = vmatprep.subr.bf16.mxu0 %v390_v1  ;;  %371 = vmatprep.subr.bf16.mxu1 %v395_v5  ;;  %v394_v7 = vld [vmem:[%s600_s0 + $0x8] sm:$0xff]   ;;  %v398_v9 = vld [vmem:[#allocation6 + $0x18] sm:$0xff]   ;;  %v321_v25 = vld [vmem:[#allocation7] ss:$0 sm:$0xff] }
  0x4e   :  { %372 = vmatpush3.bf16.msra.mxu1 %v395_v5  ;;  %v312_v10 = vld [vmem:[#allocation4] ss:$0 sm:$0xff] }
  0x4f   :  { %373 = vmatprep.subr.bf16.mxu1 %v396_v6 }
  0x50   :  { %362 = vmatpush3.bf16.msra.mxu0 %v390_v1 }
  0x51   :  { %363 = vmatprep.subr.bf16.mxu0 %v391_v2 }
  0x52   :  { %374 = vmatpush3.bf16.msra.mxu1 %v396_v6 }
  0x53   :  { %375 = vmatprep.subr.bf16.mxu1 %v397_v8 }
  0x54   :  { %364 = vmatpush3.bf16.msra.mxu0 %v391_v2 }
  0x55   :  { %365 = vmatprep.subr.bf16.mxu0 %v392_v4 }
  0x56   :  { %376 = vmatpush3.bf16.msra.mxu1 %v397_v8 }
  0x57   :  { %377 = vmatprep.subr.bf16.mxu1 %v398_v9 }
  0x58   :  { %366 = vmatpush3.bf16.msra.mxu0 %v392_v4 }
  0x5a   :  { %378 = vmatpush3.bf16.msra.mxu1 %v398_v9 }
  0x5b   :  { %368 = vmatmul.mubr.msk.bf16.vlgmr.msra.gmra.mrb[0].mxu0 %vm125_vm0, %v394_v7 }
 0x12e   :  { %v369_v11 = vpop.f32.mrb[0].mxu0 }
 0x12f   :  { %v175_v12 = vadd.f32 %v369_v11, %v312_v10  ;;  %v166_v13 = vpop.f32.mrb[1].mxu0 }
 0x130   :  { %v167_v14 = vadd.f32 %v312_v10, %v166_v13  ;;  %v370_v15 = vpop.f32.mrb[2].mxu0 }
 0x131   :  { %v178_v16 = vadd.f32 %v370_v15, %v312_v10  ;;  %v169_v17 = vpop.f32.mrb[3].mxu0  ;;  %v183_v19 = vmax.f32 %v175_v12, 0.0 }
 0x132   :  { %v170_v18 = vadd.f32 %v312_v10, %v169_v17  ;;  %v181_v21 = vmax.f32 %v167_v14, 0.0 }
 0x133   :  { %v184_v20 = vmax.f32 %v178_v16, 0.0 }
 0x134   :  { %v182_v22 = vmax.f32 %v170_v18, 0.0 }
 0x135   :  { %v186_v23 = vpack.c.bf16 %v184_v20, %v183_v19 }
 0x136   :  { %v185_v24 = vpack.c.bf16 %v182_v22, %v181_v21 }
 0x138   :  { %379 = vmatprep.mubr.msk.bf16.mxu1 %vm125_vm0, %v185_v24 }
 0x139   :  { %380 = vmatmul.mubr.msk.bf16.vlgmr.msra.gmra.mrb[0].mxu1 %vm125_vm0, %v186_v23 }
 0x20c   :  { %v381_v26 = vpop.f32.mrb[0].mxu1 }
 0x20d   :  { %v275_v27 = vadd.f32 %v381_v26, %v321_v25  ;;  %v266_v28 = vpop.f32.mrb[1].mxu1 }
 0x20e   :  { %v267_v29 = vadd.f32 %v321_v25, %v266_v28  ;;  %v382_v30 = vpop.f32.mrb[2].mxu1 }
 0x20f   :  { %v278_v31 = vadd.f32 %v382_v30, %v321_v25  ;;  %v269_v32 = vpop.f32.mrb[3].mxu1  ;;  %v283_v34 = vmax.f32 %v275_v27, 0.0 }
 0x210   :  { %v270_v33 = vadd.f32 %v321_v25, %v269_v32  ;;  %v281_v36 = vmax.f32 %v267_v29, 0.0 }
 0x211   :  { %v284_v35 = vmax.f32 %v278_v31, 0.0 }
 0x212   :  { %v282_v37 = vmax.f32 %v270_v33, 0.0 }
 0x213   :  { %v344_v38 = vpack.c.bf16 %v284_v35, %v283_v34 }
 0x214   :  { %v339_v39 = vpack.c.bf16 %v282_v37, %v281_v36 }
 0x215   :  { %346 = vst [vmem:[%s605_s5 + $0x8] sm:$0xff] %v344_v38  }
 0x216   :  { %340 = vst [vmem:[%s605_s5] sm:$0xff] %v339_v39  }
 0x217   :  { %309 = vsyncpa [#allocation3], 1 }
 0x218   :  { %310 = vsyncpa [#allocation5], 1 }
 0x219   :  { %311 = vsyncpa [#allocation8], 1 }

// kernel: pointnet_forward.12
= control target key start
LH: loop header
LB: loop body
LE: loop exit
PB: predicated region body
PF: predicated region fallthrough
CT: control target
= control target key end

     0   :  { %12 = vsyncpa [#allocation3], 0  ;;  %s3957_s0 = inlined_call_operand.vmem [shape: f32[2,1024], index: 0, kind: input, shape index: {}]   ;;  %s3958_s1 = inlined_call_operand.hbm [shape: bf16[1024,512], index: 1, kind: input, shape index: {}]   ;;  %s3959_s2 = inlined_call_operand.hbm [shape: f32[1,512], index: 2, kind: input, shape index: {}]   ;;  %s3960_s3 = inlined_call_operand.hbm [shape: bf16[512,256], index: 3, kind: input, shape index: {}]   ;;  %s3961_s4 = inlined_call_operand.hbm [shape: f32[1,256], index: 4, kind: input, shape index: {}]   ;;  %s3962_s5 = inlined_call_operand.vmem [shape: bf16[256,9], index: 5, kind: input, shape index: {}]   ;;  %s3963_s6 = inlined_call_operand.hbm [shape: f32[1,9], index: 6, kind: input, shape index: {}]   ;;  %s3964_s7 = inlined_call_operand.vmem [shape: f32[2,9], index: 7, kind: output, shape index: {}]  }
   0x1   :  { %13 = vsyncpa [#allocation5], 0 }
   0x2   :  { %14 = vsyncpa [#allocation8], 0  ;;  %s3718_s24 = smov [#allocation4]   ;;  %s3719_s26 = smov [#allocation7]  }
   0x3   :  { %s35_s25 = sshll.u32 %s3718_s24, 4  ;;  %s57_s27 = sshll.u32 %s3719_s26, 4  ;;  %s36_s25 = int_to_ptr.vmem [resolvable:$true] %s35_s25  ;;  %s58_s27 = int_to_ptr.vmem [resolvable:$true] %s57_s27 }
   0x4   :  { %s3602_s30 = scalar_lea.hbm %s3959_s2, 64 }
   0x5   :  { %p3603_p0 = scmp.ne.s32.totalorder %s3959_s2, %s3602_s30  ;;  %p3606_p1 = scmp.lt.u32.totalorder %s3602_s30, %s3959_s2 }
   0x7   :  { %p3608_p2 = pnand %p3606_p1, %p3603_p0 }
   0x9   :  { %3611 = shalt.err (!%p3608_p2)
}
   0xa   :  { %s3612_s12 = scalar_lea.vmem %s36_s25, 64  ;;  %p3617_p4 = scmp.lt.s32.totalorder %s36_s25, %s36_s25 }
   0xb   :  { %p3613_p3 = scmp.ne.s32.totalorder %s36_s25, %s3612_s12  ;;  %p3618_p5 = scmp.lt.s32.totalorder %s3612_s12, %s3612_s12 }
   0xd   :  { %p3619_p6 = por %p3618_p5, %p3617_p4 }
   0xf   :  { %p3620_p7 = pnand %p3619_p6, %p3613_p3 }
  0x11   :  { %3623 = shalt.err (!%p3620_p7)
}
  0x12   :  { %38 = dma.hbm_to_vmem [thread:$0]  %s3959_s2, 64, %s36_s25, [#allocation5]  }
  0x13   :  { %s3624_s17 = scalar_lea.hbm %s3961_s4, 32 }
  0x14   :  { %p3625_p8 = scmp.ne.s32.totalorder %s3961_s4, %s3624_s17  ;;  %p3628_p9 = scmp.lt.u32.totalorder %s3624_s17, %s3961_s4 }
  0x16   :  { %p3630_p10 = pnand %p3628_p9, %p3625_p8 }
  0x18   :  { %3633 = shalt.err (!%p3630_p10)
}
  0x19   :  { %s3634_s22 = scalar_lea.vmem %s58_s27, 32  ;;  %p3639_p12 = scmp.lt.s32.totalorder %s58_s27, %s58_s27 }
  0x1a   :  { %p3635_p11 = scmp.ne.s32.totalorder %s58_s27, %s3634_s22  ;;  %p3640_p13 = scmp.lt.s32.totalorder %s3634_s22, %s3634_s22 }
  0x1c   :  { %p3641_p0 = por %p3640_p13, %p3639_p12 }
  0x1e   :  { %p3642_p1 = pnand %p3641_p0, %p3635_p11 }
  0x20   :  { %3645 = shalt.err (!%p3642_p1)
}
  0x21   :  { %60 = dma.hbm_to_vmem [thread:$0]  %s3961_s4, 32, %s58_s27, [#allocation8]  }
  0x22   :  { %s3720_s24 = smov [#allocation2]   ;;  %s3646_s29 = scalar_lea.hbm %s3958_s1, 32768 }
  0x23   :  { %s22_s25 = sshll.u32 %s3720_s24, 4  ;;  %p3647_p2 = scmp.ne.s32.totalorder %s3958_s1, %s3646_s29  ;;  %s23_s25 = int_to_ptr.vmem [resolvable:$true] %s22_s25 }
  0x24   :  { %p3650_p3 = scmp.lt.u32.totalorder %s3646_s29, %s3958_s1 }
  0x26   :  { %p3652_p4 = pnand %p3650_p3, %p3647_p2 }
  0x28   :  { %3655 = shalt.err (!%p3652_p4)
}
  0x29   :  { %s3656_s11 = scalar_lea.vmem %s23_s25, 32768  ;;  %p3661_p6 = scmp.lt.s32.totalorder %s23_s25, %s23_s25 }
  0x2a   :  { %p3657_p5 = scmp.ne.s32.totalorder %s23_s25, %s3656_s11  ;;  %p3662_p7 = scmp.lt.s32.totalorder %s3656_s11, %s3656_s11 }
  0x2c   :  { %p3663_p8 = por %p3662_p7, %p3661_p6 }
  0x2e   :  { %p3664_p9 = pnand %p3663_p8, %p3657_p5 }
  0x30   :  { %3667 = shalt.err (!%p3664_p9)
}
  0x31   :  { %s3721_s4 = smov 256   ;;  %s3722_s27 = smov 16  }
  0x32   :  { %28 = dma.hbm_to_vmem [thread:$0]  %s3958_s1, 32768, %s23_s25, [#allocation3], %s3721_s4, %s3721_s4, %s3722_s27  }
  0x33   :  { %s3723_s14 = smov [#allocation6]   ;;  %s3668_s18 = scalar_lea.hbm %s3960_s3, 8192 }
  0x34   :  { %s44_s15 = sshll.u32 %s3723_s14, 4  ;;  %p3669_p10 = scmp.ne.s32.totalorder %s3960_s3, %s3668_s18  ;;  %s45_s15 = int_to_ptr.vmem [resolvable:$true] %s44_s15 }
  0x35   :  { %p3672_p11 = scmp.lt.u32.totalorder %s3668_s18, %s3960_s3 }
  0x37   :  { %p3674_p12 = pnand %p3672_p11, %p3669_p10 }
  0x39   :  { %3677 = shalt.err (!%p3674_p12)
}
  0x3a   :  { %s3678_s2 = scalar_lea.vmem %s45_s15, 8192  ;;  %p3683_p0 = scmp.lt.s32.totalorder %s45_s15, %s45_s15 }
  0x3b   :  { %p3679_p13 = scmp.ne.s32.totalorder %s45_s15, %s3678_s2  ;;  %p3684_p1 = scmp.lt.s32.totalorder %s3678_s2, %s3678_s2 }
  0x3d   :  { %p3685_p2 = por %p3684_p1, %p3683_p0 }
  0x3f   :  { %p3686_p3 = pnand %p3685_p2, %p3679_p13 }
  0x41   :  { %3689 = shalt.err (!%p3686_p3)
}
  0x42   :  { %s3724_s1 = smov 128   ;;  %s3725_s23 = smov 8  }
  0x43   :  { %50 = dma.hbm_to_vmem [thread:$0]  %s3960_s3, 8192, %s45_s15, [#allocation5], %s3724_s1, %s3724_s1, %s3725_s23  }
  0x44   :  { %s3726_s26 = smov [#allocation9]   ;;  %s3690_s8 = scalar_lea.hbm %s3963_s6, 16 }
  0x45   :  { %s69_s28 = sshll.u32 %s3726_s26, 4  ;;  %p3691_p4 = scmp.ne.s32.totalorder %s3963_s6, %s3690_s8  ;;  %s70_s28 = int_to_ptr.vmem [resolvable:$true] %s69_s28 }
  0x46   :  { %p3694_p5 = scmp.lt.u32.totalorder %s3690_s8, %s3963_s6 }
  0x48   :  { %p3696_p6 = pnand %p3694_p5, %p3691_p4 }
  0x4a   :  { %3699 = shalt.err (!%p3696_p6)
}
  0x4b   :  { %s3700_s27 = scalar_lea.vmem %s70_s28, 16  ;;  %s3704_s3 = scalar_lea.vmem %s70_s28, 32 }
  0x4c   :  { %p3701_p7 = scmp.ne.s32.totalorder %s70_s28, %s3700_s27  ;;  %p3705_p8 = scmp.lt.s32.totalorder %s70_s28, %s70_s28 }
  0x4d   :  { %p3706_p9 = scmp.lt.s32.totalorder %s3704_s3, %s3700_s27 }
  0x4f   :  { %p3707_p10 = por %p3706_p9, %p3705_p8 }
  0x51   :  { %p3708_p11 = pnand %p3707_p10, %p3701_p7 }
  0x53   :  { %3711 = shalt.err (!%p3708_p11)
}
  0x54   :  { %72 = dma.hbm_to_vmem [thread:$0]  %s3963_s6, 16, %s70_s28, [#allocation8]  }
  0x55   :  { %3712 = dma.done.wait [#allocation3], 32768  }
  0x56   :  { %3713 = vsyncadd [#allocation3], 4294934528 }
  0x57   :  { %3714 = dma.done.wait [#allocation5], 8256  }
  0x58   :  { %3715 = vsyncadd [#allocation5], 4294959040 }
  0x59   :  { %3716 = dma.done.wait [#allocation8], 48  }
  0x5a   :  { %3717 = vsyncadd [#allocation8], 4294967248  ;;  %v3104_v0 = vld [vmem:[#allocation2 + $0x4] ss:$16 sps:$4 sm:$0xff]   ;;  %v3108_v2 = vld [vmem:[#allocation2] ss:$16 sps:$4 sm:$0xff]   ;;  %v97_v38 = vlaneseq }
  0x5b   :  { %v3106_v1 = vld [vmem:[#allocation2 + $0x204] ss:$16 sps:$4 sm:$0xff]   ;;  %1701 = vmatprep.subr.bf16.mxu1 %v3104_v0  ;;  %v3109_v3 = vld [vmem:[#allocation2 + $0x200] ss:$16 sps:$4 sm:$0xff]   ;;  %v3727_v36 = vmov 1983009808  }
  0x5c   :  { %1742 = vmatprep.subr.bf16.mxu0 %v3106_v1  ;;  %v3110_v4 = vld [vmem:[#allocation2 + $0x24] ss:$16 sps:$4 sm:$0xff]   ;;  %1702 = vmatpush1.bf16.msra.mxu1 %v3108_v2  ;;  %v3114_v6 = vld [vmem:[#allocation2 + $0x20] ss:$16 sps:$4 sm:$0xff]   ;;  %v95_v37 = vunpack.c.l.s4 %v3727_v36  ;;  %v3828_v43 = vshrl.u32 %v97_v38, 7  ;;  %vm2694_vm0 = vcmask 66560  }
  0x5d   :  { %1743 = vmatpush1.bf16.msra.mxu0 %v3109_v3  ;;  %v3112_v5 = vld [vmem:[#allocation2 + $0x224] ss:$16 sps:$4 sm:$0xff]   ;;  %1703 = vmatprep.subr.bf16.mxu1 %v3110_v4  ;;  %v3115_v7 = vld [vmem:[#allocation2 + $0x220] ss:$16 sps:$4 sm:$0xff]  }
  0x5e   :  { %1744 = vmatprep.subr.bf16.mxu0 %v3112_v5  ;;  %v3116_v8 = vld [vmem:[#allocation2 + $0x44] ss:$16 sps:$4 sm:$0xff]   ;;  %v3120_v10 = vld [vmem:[#allocation2 + $0x40] ss:$16 sps:$4 sm:$0xff]   ;;  %v96_v42 = vunpack.c.0.s8 %v95_v37  ;;  %v3236_v37 = vld [vmem:[#allocation2 + $0xac] ss:$16 sps:$4 sm:$0xff]  }
  0x5f   :  { %v3118_v9 = vld [vmem:[#allocation2 + $0x244] ss:$16 sps:$4 sm:$0xff]   ;;  %v3121_v11 = vld [vmem:[#allocation2 + $0x240] ss:$16 sps:$4 sm:$0xff]  }
  0x60   :  { %1704 = vmatpush1.bf16.msra.mxu1 %v3114_v6  ;;  %v3122_v12 = vld [vmem:[#allocation2 + $0x64] ss:$16 sps:$4 sm:$0xff]   ;;  %v3126_v14 = vld [vmem:[#allocation2 + $0x60] ss:$16 sps:$4 sm:$0xff]   ;;  %v3831_v49 = vsub.s32 %v96_v42, %v3828_v43  ;;  %v3850_v42 = vld [vmem:[%s3957_s0 + $0x8] sm:$0xff] }
  0x61   :  { %1745 = vmatpush1.bf16.msra.mxu0 %v3115_v7  ;;  %1705 = vmatprep.subr.bf16.mxu1 %v3116_v8  ;;  %v3124_v13 = vld [vmem:[#allocation2 + $0x264] ss:$16 sps:$4 sm:$0xff]   ;;  %v3127_v15 = vld [vmem:[#allocation2 + $0x260] ss:$16 sps:$4 sm:$0xff]  }
  0x62   :  { %1746 = vmatprep.subr.bf16.mxu0 %v3118_v9  ;;  %v3128_v16 = vld [vmem:[#allocation2 + $0x84] ss:$16 sps:$4 sm:$0xff]   ;;  %v3132_v18 = vld [vmem:[#allocation2 + $0x80] ss:$16 sps:$4 sm:$0xff]  }
  0x63   :  { %v3130_v17 = vld [vmem:[#allocation2 + $0x284] ss:$16 sps:$4 sm:$0xff]   ;;  %v3133_v19 = vld [vmem:[#allocation2 + $0x280] ss:$16 sps:$4 sm:$0xff]  }
  0x64   :  { %1706 = vmatpush1.bf16.msra.mxu1 %v3120_v10  ;;  %v3134_v20 = vld [vmem:[#allocation2 + $0xa4] ss:$16 sps:$4 sm:$0xff]   ;;  %v3138_v22 = vld [vmem:[#allocation2 + $0xa0] ss:$16 sps:$4 sm:$0xff]  }
  0x65   :  { %1747 = vmatpush1.bf16.msra.mxu0 %v3121_v11  ;;  %1707 = vmatprep.subr.bf16.mxu1 %v3122_v12  ;;  %v3136_v21 = vld [vmem:[#allocation2 + $0x2a4] ss:$16 sps:$4 sm:$0xff]   ;;  %v3139_v23 = vld [vmem:[#allocation2 + $0x2a0] ss:$16 sps:$4 sm:$0xff]  }
  0x66   :  { %1748 = vmatprep.subr.bf16.mxu0 %v3124_v13  ;;  %v3140_v24 = vld [vmem:[#allocation2 + $0xc4] ss:$16 sps:$4 sm:$0xff]   ;;  %v3144_v26 = vld [vmem:[#allocation2 + $0xc0] ss:$16 sps:$4 sm:$0xff]  }
  0x67   :  { %v3142_v25 = vld [vmem:[#allocation2 + $0x2c4] ss:$16 sps:$4 sm:$0xff]   ;;  %v3145_v27 = vld [vmem:[#allocation2 + $0x2c0] ss:$16 sps:$4 sm:$0xff]  }
  0x68   :  { %1708 = vmatpush1.bf16.msra.mxu1 %v3126_v14  ;;  %v3146_v28 = vld [vmem:[#allocation2 + $0xe4] ss:$16 sps:$4 sm:$0xff]   ;;  %v3150_v30 = vld [vmem:[#allocation2 + $0xe0] ss:$16 sps:$4 sm:$0xff]  }
  0x69   :  { %1749 = vmatpush1.bf16.msra.mxu0 %v3127_v15  ;;  %1709 = vmatprep.subr.bf16.mxu1 %v3128_v16  ;;  %v3148_v29 = vld [vmem:[#allocation2 + $0x2e4] ss:$16 sps:$4 sm:$0xff]   ;;  %v3151_v31 = vld [vmem:[#allocation2 + $0x2e0] ss:$16 sps:$4 sm:$0xff]   ;;  %v3206_v15 = vld [vmem:[#allocation2 + $0xc] ss:$16 sps:$4 sm:$0xff]  }
  0x6a   :  { %1750 = vmatprep.subr.bf16.mxu0 %v3130_v17  ;;  %v3152_v32 = vld [vmem:[#allocation2 + $0x104] ss:$16 sps:$4 sm:$0xff]   ;;  %v3156_v34 = vld [vmem:[#allocation2 + $0x100] ss:$16 sps:$4 sm:$0xff]  }
  0x6b   :  { %v3154_v33 = vld [vmem:[#allocation2 + $0x304] ss:$16 sps:$4 sm:$0xff]   ;;  %v3157_v35 = vld [vmem:[#allocation2 + $0x300] ss:$16 sps:$4 sm:$0xff]  }
  0x6c   :  { %1710 = vmatpush1.bf16.msra.mxu1 %v3132_v18  ;;  %v3158_v39 = vld [vmem:[#allocation2 + $0x124] ss:$16 sps:$4 sm:$0xff]   ;;  %v3162_v41 = vld [vmem:[#allocation2 + $0x120] ss:$16 sps:$4 sm:$0xff]  }
  0x6d   :  { %1751 = vmatpush1.bf16.msra.mxu0 %v3133_v19  ;;  %1711 = vmatprep.subr.bf16.mxu1 %v3134_v20  ;;  %v3160_v40 = vld [vmem:[#allocation2 + $0x324] ss:$16 sps:$4 sm:$0xff]   ;;  %v3163_v44 = vld [vmem:[#allocation2 + $0x320] ss:$16 sps:$4 sm:$0xff]   ;;  %v3204_v19 = vld [vmem:[#allocation2 + $0x8] ss:$16 sps:$4 sm:$0xff]  }
  0x6e   :  { %1752 = vmatprep.subr.bf16.mxu0 %v3136_v21  ;;  %v3164_v45 = vld [vmem:[#allocation2 + $0x144] ss:$16 sps:$4 sm:$0xff]   ;;  %v3168_v47 = vld [vmem:[#allocation2 + $0x140] ss:$16 sps:$4 sm:$0xff]   ;;  %v3212_v21 = vld [vmem:[#allocation2 + $0x2c] ss:$16 sps:$4 sm:$0xff]  }
  0x6f   :  { %v3166_v46 = vld [vmem:[#allocation2 + $0x344] ss:$16 sps:$4 sm:$0xff]   ;;  %v3169_v48 = vld [vmem:[#allocation2 + $0x340] ss:$16 sps:$4 sm:$0xff]  }
  0x70   :  { %1712 = vmatpush1.bf16.msra.mxu1 %v3138_v22  ;;  %v3170_v50 = vld [vmem:[#allocation2 + $0x164] ss:$16 sps:$4 sm:$0xff]   ;;  %v3174_v53 = vld [vmem:[#allocation2 + $0x160] ss:$16 sps:$4 sm:$0xff]  }
  0x71   :  { %1753 = vmatpush1.bf16.msra.mxu0 %v3139_v23  ;;  %1713 = vmatprep.subr.bf16.mxu1 %v3140_v24  ;;  %v3172_v51 = vld [vmem:[#allocation2 + $0x364] ss:$16 sps:$4 sm:$0xff]   ;;  %v3175_v56 = vld [vmem:[#allocation2 + $0x360] ss:$16 sps:$4 sm:$0xff]   ;;  %v3210_v23 = vld [vmem:[#allocation2 + $0x28] ss:$16 sps:$4 sm:$0xff]  }
  0x72   :  { %1754 = vmatprep.subr.bf16.mxu0 %v3142_v25  ;;  %v89_v52 = vld [vmem:[%s3957_s0] sm:$0xff]  ;;  %v3218_v25 = vld [vmem:[#allocation2 + $0x4c] ss:$16 sps:$4 sm:$0xff]  }
  0x73   :  { %v100_v54 = vrot.slane %v89_v52, %v3831_v49  ;;  %v93_v55 = vcombine.high %v89_v52, %v89_v52  ;;  %v3176_v57 = vld [vmem:[#allocation2 + $0x184] ss:$16 sps:$4 sm:$0xff]   ;;  %v3180_v61 = vld [vmem:[#allocation2 + $0x180] ss:$16 sps:$4 sm:$0xff]  }
  0x74   :  { %1714 = vmatpush1.bf16.msra.mxu1 %v3144_v26  ;;  %v3178_v58 = vld [vmem:[#allocation2 + $0x384] ss:$16 sps:$4 sm:$0xff]   ;;  %v3181_v0 = vld [vmem:[#allocation2 + $0x380] ss:$16 sps:$4 sm:$0xff]  }
  0x75   :  { %1755 = vmatpush1.bf16.msra.mxu0 %v3145_v27  ;;  %1715 = vmatprep.subr.bf16.mxu1 %v3146_v28  ;;  %v108_v59 = vcombine.high %v100_v54, %v100_v54  ;;  %v107_v60 = vrot.slane %v93_v55, %v3831_v49  ;;  %v3182_v1 = vld [vmem:[#allocation2 + $0x1a4] ss:$16 sps:$4 sm:$0xff]   ;;  %v3186_v4 = vld [vmem:[#allocation2 + $0x1a0] ss:$16 sps:$4 sm:$0xff]   ;;  %v3841_v16 = vpack.c.bf16 %v100_v54, %v100_v54  ;;  %v3216_v27 = vld [vmem:[#allocation2 + $0x48] ss:$16 sps:$4 sm:$0xff]  }
  0x76   :  { %1756 = vmatprep.subr.bf16.mxu0 %v3148_v29  ;;  %v3184_v2 = vld [vmem:[#allocation2 + $0x3a4] ss:$16 sps:$4 sm:$0xff]   ;;  %v3187_v5 = vld [vmem:[#allocation2 + $0x3a0] ss:$16 sps:$4 sm:$0xff]   ;;  %v3224_v29 = vld [vmem:[#allocation2 + $0x6c] ss:$16 sps:$4 sm:$0xff]  }
  0x77   :  { %v136_v62 = vpack.c.bf16 %v108_v59, %v108_v59  ;;  %v109_v63 = vcombine.high %v107_v60, %v107_v60  ;;  %v3188_v6 = vld [vmem:[#allocation2 + $0x1c4] ss:$16 sps:$4 sm:$0xff]   ;;  %v3192_v8 = vld [vmem:[#allocation2 + $0x1c0] ss:$16 sps:$4 sm:$0xff]   ;;  %v3843_v18 = vpack.c.bf16 %v107_v60, %v107_v60  ;;  %v3254_v55 = vld [vmem:[#allocation2 + $0x10c] ss:$16 sps:$4 sm:$0xff]  }
  0x78   :  { %1716 = vmatpush1.bf16.msra.mxu1 %v3150_v30  ;;  %v3190_v7 = vld [vmem:[#allocation2 + $0x3c4] ss:$16 sps:$4 sm:$0xff]   ;;  %v3193_v9 = vld [vmem:[#allocation2 + $0x3c0] ss:$16 sps:$4 sm:$0xff]   ;;  %v3260_v59 = vld [vmem:[#allocation2 + $0x12c] ss:$16 sps:$4 sm:$0xff]  }
  0x79   :  { %1757 = vmatpush1.bf16.msra.mxu0 %v3151_v31  ;;  %1717 = vmatprep.subr.bf16.mxu1 %v3152_v32  ;;  %v3838_v3 = vpack.c.bf16 %v109_v63, %v109_v63  ;;  %v3194_v10 = vld [vmem:[#allocation2 + $0x1e4] ss:$16 sps:$4 sm:$0xff]   ;;  %v3198_v12 = vld [vmem:[#allocation2 + $0x1e0] ss:$16 sps:$4 sm:$0xff]   ;;  %v3222_v31 = vld [vmem:[#allocation2 + $0x68] ss:$16 sps:$4 sm:$0xff]  }
  0x7a   :  { %1758 = vmatprep.subr.bf16.mxu0 %v3154_v33  ;;  %1733 = vmatprep.mubr.bf16.mxu1 %v136_v62  ;;  %v3196_v11 = vld [vmem:[#allocation2 + $0x3e4] ss:$16 sps:$4 sm:$0xff]   ;;  %v3199_v13 = vld [vmem:[#allocation2 + $0x3e0] ss:$16 sps:$4 sm:$0xff]   ;;  %v3230_v33 = vld [vmem:[#allocation2 + $0x8c] ss:$16 sps:$4 sm:$0xff]  }
  0x7b   :  { %1774 = vmatprep.mubr.bf16.mxu0 %v3838_v3  ;;  %v3203_v14 = vld [vmem:[#allocation2 + $0x404] ss:$16 sps:$4 sm:$0xff]   ;;  %v3201_v17 = vld [vmem:[#allocation2 + $0x400] ss:$16 sps:$4 sm:$0xff]   ;;  %v3266_v63 = vld [vmem:[#allocation2 + $0x14c] ss:$16 sps:$4 sm:$0xff]  }
  0x7c   :  { %1718 = vmatpush1.bf16.msra.mxu1 %v3156_v34  ;;  %v3209_v20 = vld [vmem:[#allocation2 + $0x424] ss:$16 sps:$4 sm:$0xff]   ;;  %v3207_v22 = vld [vmem:[#allocation2 + $0x420] ss:$16 sps:$4 sm:$0xff]  }
  0x7d   :  { %1759 = vmatpush1.bf16.msra.mxu0 %v3157_v35  ;;  %1719 = vmatprep.subr.bf16.mxu1 %v3158_v39  ;;  %v3215_v24 = vld [vmem:[#allocation2 + $0x444] ss:$16 sps:$4 sm:$0xff]   ;;  %v3213_v26 = vld [vmem:[#allocation2 + $0x440] ss:$16 sps:$4 sm:$0xff]   ;;  %v3228_v35 = vld [vmem:[#allocation2 + $0x88] ss:$16 sps:$4 sm:$0xff]  }
  0x7e   :  { %1760 = vmatprep.subr.bf16.mxu0 %v3160_v40  ;;  %v3221_v28 = vld [vmem:[#allocation2 + $0x464] ss:$16 sps:$4 sm:$0xff]   ;;  %v3219_v30 = vld [vmem:[#allocation2 + $0x460] ss:$16 sps:$4 sm:$0xff]   ;;  %v3234_v39 = vld [vmem:[#allocation2 + $0xa8] ss:$16 sps:$4 sm:$0xff]  }
  0x7f   :  { %v3227_v32 = vld [vmem:[#allocation2 + $0x484] ss:$16 sps:$4 sm:$0xff]   ;;  %v3225_v34 = vld [vmem:[#allocation2 + $0x480] ss:$16 sps:$4 sm:$0xff]  }
  0x80   :  { %1720 = vmatpush1.bf16.msra.mxu1 %v3162_v41  ;;  %v3233_v36 = vld [vmem:[#allocation2 + $0x4a4] ss:$16 sps:$4 sm:$0xff]   ;;  %v3231_v38 = vld [vmem:[#allocation2 + $0x4a0] ss:$16 sps:$4 sm:$0xff]   ;;  %v3242_v41 = vld [vmem:[#allocation2 + $0xcc] ss:$16 sps:$4 sm:$0xff]  }
  0x81   :  { %1761 = vmatpush1.bf16.msra.mxu0 %v3163_v44  ;;  %1721 = vmatprep.subr.bf16.mxu1 %v3164_v45  ;;  %v3239_v40 = vld [vmem:[#allocation2 + $0x4c4] ss:$16 sps:$4 sm:$0xff]   ;;  %v3854_v44 = vrot.slane %v3850_v42, %v3831_v49  ;;  %v3237_v45 = vld [vmem:[#allocation2 + $0x4c0] ss:$16 sps:$4 sm:$0xff]  }
  0x82   :  { %1762 = vmatprep.subr.bf16.mxu0 %v3166_v46  ;;  %v3240_v46 = vld [vmem:[#allocation2 + $0xc8] ss:$16 sps:$4 sm:$0xff]   ;;  %v3243_v52 = vld [vmem:[#allocation2 + $0x4e0] ss:$16 sps:$4 sm:$0xff]   ;;  %v3251_v54 = vld [vmem:[#allocation2 + $0x504] ss:$16 sps:$4 sm:$0xff]  }
  0x83   :  { %v3255_v60 = vld [vmem:[#allocation2 + $0x520] ss:$16 sps:$4 sm:$0xff]  }
  0x84   :  { %1722 = vmatpush1.bf16.msra.mxu1 %v3168_v47  ;;  %v125_v47 = vcombine.high %v3854_v44, %v3854_v44 }
  0x85   :  { %1763 = vmatpush1.bf16.msra.mxu0 %v3169_v48  ;;  %1723 = vmatprep.subr.bf16.mxu1 %v3170_v50  ;;  %v3245_v48 = vld [vmem:[#allocation2 + $0x4e4] ss:$16 sps:$4 sm:$0xff]   ;;  %v3248_v50 = vld [vmem:[#allocation2 + $0xec] ss:$16 sps:$4 sm:$0xff]  }
  0x86   :  { %1764 = vmatprep.subr.bf16.mxu0 %v3172_v51  ;;  %v3858_v51 = vpack.c.bf16 %v125_v47, %v125_v47  ;;  %v3321_v47 = vld [vmem:[#allocation2 + $0x680] ss:$16 sps:$4 sm:$0xff]  }
  0x88   :  { %1724 = vmatpush1.bf16.msra.mxu1 %v3174_v53  ;;  %v3246_v53 = vld [vmem:[#allocation2 + $0xe8] ss:$16 sps:$4 sm:$0xff]  }
  0x89   :  { %1765 = vmatpush1.bf16.msra.mxu0 %v3175_v56  ;;  %1725 = vmatprep.subr.bf16.mxu1 %v3176_v57  ;;  %v3249_v56 = vld [vmem:[#allocation2 + $0x500] ss:$16 sps:$4 sm:$0xff]   ;;  %v3252_v57 = vld [vmem:[#allocation2 + $0x108] ss:$16 sps:$4 sm:$0xff]  }
  0x8a   :  { %1766 = vmatprep.subr.bf16.mxu0 %v3178_v58  ;;  %v3257_v58 = vld [vmem:[#allocation2 + $0x524] ss:$16 sps:$4 sm:$0xff]  }
  0x8c   :  { %1726 = vmatpush1.bf16.msra.mxu1 %v3180_v61  ;;  %v3258_v61 = vld [vmem:[#allocation2 + $0x128] ss:$16 sps:$4 sm:$0xff]  }
  0x8d   :  { %1767 = vmatpush1.bf16.msra.mxu0 %v3181_v0  ;;  %1727 = vmatprep.subr.bf16.mxu1 %v3182_v1  ;;  %v3261_v0 = vld [vmem:[#allocation2 + $0x540] ss:$16 sps:$4 sm:$0xff]   ;;  %v3264_v1 = vld [vmem:[#allocation2 + $0x148] ss:$16 sps:$4 sm:$0xff]  }
  0x8e   :  { %1768 = vmatprep.subr.bf16.mxu0 %v3184_v2  ;;  %v3269_v2 = vld [vmem:[#allocation2 + $0x564] ss:$16 sps:$4 sm:$0xff]  }
  0x90   :  { %1728 = vmatpush1.bf16.msra.mxu1 %v3186_v4  ;;  %v3272_v4 = vld [vmem:[#allocation2 + $0x16c] ss:$16 sps:$4 sm:$0xff]  }
  0x91   :  { %1769 = vmatpush1.bf16.msra.mxu0 %v3187_v5  ;;  %1729 = vmatprep.subr.bf16.mxu1 %v3188_v6  ;;  %v3267_v5 = vld [vmem:[#allocation2 + $0x560] ss:$16 sps:$4 sm:$0xff]   ;;  %v3270_v6 = vld [vmem:[#allocation2 + $0x168] ss:$16 sps:$4 sm:$0xff]  }
  0x92   :  { %1770 = vmatprep.subr.bf16.mxu0 %v3190_v7  ;;  %v3275_v7 = vld [vmem:[#allocation2 + $0x584] ss:$16 sps:$4 sm:$0xff]  }
  0x94   :  { %1730 = vmatpush1.bf16.msra.mxu1 %v3192_v8  ;;  %v3278_v8 = vld [vmem:[#allocation2 + $0x18c] ss:$16 sps:$4 sm:$0xff]  }
  0x95   :  { %1771 = vmatpush1.bf16.msra.mxu0 %v3193_v9  ;;  %1731 = vmatprep.subr.bf16.mxu1 %v3194_v10  ;;  %v3273_v9 = vld [vmem:[#allocation2 + $0x580] ss:$16 sps:$4 sm:$0xff]   ;;  %v3276_v10 = vld [vmem:[#allocation2 + $0x188] ss:$16 sps:$4 sm:$0xff]  }
  0x96   :  { %1772 = vmatprep.subr.bf16.mxu0 %v3196_v11  ;;  %v3281_v11 = vld [vmem:[#allocation2 + $0x5a4] ss:$16 sps:$4 sm:$0xff]  }
  0x98   :  { %1732 = vmatpush1.bf16.msra.mxu1 %v3198_v12  ;;  %v3284_v12 = vld [vmem:[#allocation2 + $0x1ac] ss:$16 sps:$4 sm:$0xff]  }
  0x99   :  { %1773 = vmatpush1.bf16.msra.mxu0 %v3199_v13  ;;  %1865 = vmatprep.subr.bf16.mxu1 %v3206_v15  ;;  %v3279_v13 = vld [vmem:[#allocation2 + $0x5a0] ss:$16 sps:$4 sm:$0xff]   ;;  %v3287_v15 = vld [vmem:[#allocation2 + $0x5c4] ss:$16 sps:$4 sm:$0xff]  }
  0x9a   :  { %1783 = vmatprep.subr.bf16.mxu0 %v3203_v14  ;;  %v3282_v14 = vld [vmem:[#allocation2 + $0x1a8] ss:$16 sps:$4 sm:$0xff]  }
  0x9b   :  { %1734 = vmatmul.mubr.bf16.vlgmr.msra.gmra.mrb[0].mxu1 %v3841_v16 }
  0x9c   :  { %1775 = vmatmul.mubr.bf16.vlgmr.msra.gmra.mrb[0].mxu0 %v3843_v18  ;;  %1866 = vmatpush1.bf16.msra.mxu1 %v3204_v19  ;;  %v110_v19 = vcombine.high %v3850_v42, %v3850_v42  ;;  %v3315_v42 = vld [vmem:[#allocation2 + $0x660] ss:$16 sps:$4 sm:$0xff]  }
  0x9d   :  { %1784 = vmatpush1.bf16.msra.mxu0 %v3201_v17  ;;  %1867 = vmatprep.subr.bf16.mxu1 %v3212_v21  ;;  %v3290_v17 = vld [vmem:[#allocation2 + $0x1cc] ss:$16 sps:$4 sm:$0xff]   ;;  %v3288_v21 = vld [vmem:[#allocation2 + $0x1c8] ss:$16 sps:$4 sm:$0xff]  }
  0x9e   :  { %1785 = vmatprep.subr.bf16.mxu0 %v3209_v20  ;;  %1897 = vmatprep.mubr.bf16.mxu1 %v136_v62  ;;  %v3263_v62 = vld [vmem:[#allocation2 + $0x544] ss:$16 sps:$4 sm:$0xff]   ;;  %v3285_v20 = vld [vmem:[#allocation2 + $0x5c0] ss:$16 sps:$4 sm:$0xff]  }
  0x9f   :  { %1815 = vmatprep.mubr.bf16.mxu0 %v3858_v51 }
  0xa0   :  { %1868 = vmatpush1.bf16.msra.mxu1 %v3210_v23  ;;  %v3296_v23 = vld [vmem:[#allocation2 + $0x1ec] ss:$16 sps:$4 sm:$0xff]  }
  0xa1   :  { %1786 = vmatpush1.bf16.msra.mxu0 %v3207_v22  ;;  %1869 = vmatprep.subr.bf16.mxu1 %v3218_v25  ;;  %v3293_v22 = vld [vmem:[#allocation2 + $0x5e4] ss:$16 sps:$4 sm:$0xff]   ;;  %v3291_v25 = vld [vmem:[#allocation2 + $0x5e0] ss:$16 sps:$4 sm:$0xff]  }
  0xa2   :  { %1787 = vmatprep.subr.bf16.mxu0 %v3215_v24  ;;  %v3864_v24 = vrot.slane %v110_v19, %v3831_v49  ;;  %v3300_v49 = vld [vmem:[#allocation2 + $0x208] ss:$16 sps:$4 sm:$0xff]   ;;  %v3369_v19 = vld [vmem:[#allocation2 + $0x780] ss:$16 sps:$4 sm:$0xff]  }
  0xa4   :  { %1870 = vmatpush1.bf16.msra.mxu1 %v3216_v27  ;;  %v3299_v27 = vld [vmem:[#allocation2 + $0x604] ss:$16 sps:$4 sm:$0xff]  }
  0xa5   :  { %1788 = vmatpush1.bf16.msra.mxu0 %v3213_v26  ;;  %1871 = vmatprep.subr.bf16.mxu1 %v3224_v29  ;;  %v3294_v26 = vld [vmem:[#allocation2 + $0x1e8] ss:$16 sps:$4 sm:$0xff]   ;;  %v126_v29 = vcombine.high %v3864_v24, %v3864_v24 }
  0xa6   :  { %1789 = vmatprep.subr.bf16.mxu0 %v3221_v28  ;;  %v3302_v28 = vld [vmem:[#allocation2 + $0x20c] ss:$16 sps:$4 sm:$0xff]  }
  0xa8   :  { %1872 = vmatpush1.bf16.msra.mxu1 %v3222_v31  ;;  %v3297_v31 = vld [vmem:[#allocation2 + $0x600] ss:$16 sps:$4 sm:$0xff]  }
  0xa9   :  { %1790 = vmatpush1.bf16.msra.mxu0 %v3219_v30  ;;  %1873 = vmatprep.subr.bf16.mxu1 %v3230_v33  ;;  %v3870_v30 = vpack.c.bf16 %v3854_v44, %v3854_v44  ;;  %v3308_v33 = vld [vmem:[#allocation2 + $0x22c] ss:$16 sps:$4 sm:$0xff]   ;;  %v3318_v44 = vld [vmem:[#allocation2 + $0x268] ss:$16 sps:$4 sm:$0xff]  }
  0xaa   :  { %1791 = vmatprep.subr.bf16.mxu0 %v3227_v32  ;;  %v3305_v32 = vld [vmem:[#allocation2 + $0x624] ss:$16 sps:$4 sm:$0xff]  }
  0xac   :  { %1874 = vmatpush1.bf16.msra.mxu1 %v3228_v35  ;;  %v3303_v35 = vld [vmem:[#allocation2 + $0x620] ss:$16 sps:$4 sm:$0xff]  }
  0xad   :  { %1792 = vmatpush1.bf16.msra.mxu0 %v3225_v34  ;;  %1875 = vmatprep.subr.bf16.mxu1 %v3236_v37  ;;  %v3872_v34 = vpack.c.bf16 %v126_v29, %v126_v29  ;;  %v3311_v37 = vld [vmem:[#allocation2 + $0x644] ss:$16 sps:$4 sm:$0xff]   ;;  %v3384_v29 = vld [vmem:[#allocation2 + $0x3c8] ss:$16 sps:$4 sm:$0xff]  }
  0xae   :  { %1793 = vmatprep.subr.bf16.mxu0 %v3233_v36  ;;  %v3306_v36 = vld [vmem:[#allocation2 + $0x228] ss:$16 sps:$4 sm:$0xff]  }
  0xb0   :  { %1876 = vmatpush1.bf16.msra.mxu1 %v3234_v39  ;;  %v3309_v39 = vld [vmem:[#allocation2 + $0x640] ss:$16 sps:$4 sm:$0xff]  }
  0xb1   :  { %1794 = vmatpush1.bf16.msra.mxu0 %v3231_v38  ;;  %1877 = vmatprep.subr.bf16.mxu1 %v3242_v41  ;;  %v3314_v38 = vld [vmem:[#allocation2 + $0x24c] ss:$16 sps:$4 sm:$0xff]   ;;  %v3317_v41 = vld [vmem:[#allocation2 + $0x664] ss:$16 sps:$4 sm:$0xff]  }
  0xb2   :  { %1795 = vmatprep.subr.bf16.mxu0 %v3239_v40  ;;  %v3312_v40 = vld [vmem:[#allocation2 + $0x248] ss:$16 sps:$4 sm:$0xff]  }
  0xb4   :  { %1878 = vmatpush1.bf16.msra.mxu1 %v3240_v46  ;;  %v3326_v46 = vld [vmem:[#allocation2 + $0x28c] ss:$16 sps:$4 sm:$0xff]  }
  0xb5   :  { %1796 = vmatpush1.bf16.msra.mxu0 %v3237_v45  ;;  %1879 = vmatprep.subr.bf16.mxu1 %v3248_v50  ;;  %v3323_v45 = vld [vmem:[#allocation2 + $0x684] ss:$16 sps:$4 sm:$0xff]   ;;  %v3332_v50 = vld [vmem:[#allocation2 + $0x2ac] ss:$16 sps:$4 sm:$0xff]  }
  0xb6   :  { %1797 = vmatprep.subr.bf16.mxu0 %v3245_v48  ;;  %v3329_v48 = vld [vmem:[#allocation2 + $0x6a4] ss:$16 sps:$4 sm:$0xff]  }
  0xb8   :  { %1880 = vmatpush1.bf16.msra.mxu1 %v3246_v53  ;;  %v3330_v53 = vld [vmem:[#allocation2 + $0x2a8] ss:$16 sps:$4 sm:$0xff]  }
  0xb9   :  { %1798 = vmatpush1.bf16.msra.mxu0 %v3243_v52  ;;  %1881 = vmatprep.subr.bf16.mxu1 %v3254_v55  ;;  %v3327_v52 = vld [vmem:[#allocation2 + $0x6a0] ss:$16 sps:$4 sm:$0xff]   ;;  %v3338_v55 = vld [vmem:[#allocation2 + $0x2cc] ss:$16 sps:$4 sm:$0xff]  }
  0xba   :  { %1799 = vmatprep.subr.bf16.mxu0 %v3251_v54  ;;  %v3335_v54 = vld [vmem:[#allocation2 + $0x6c4] ss:$16 sps:$4 sm:$0xff]  }
  0xbc   :  { %1882 = vmatpush1.bf16.msra.mxu1 %v3252_v57  ;;  %v3336_v57 = vld [vmem:[#allocation2 + $0x2c8] ss:$16 sps:$4 sm:$0xff]  }
  0xbd   :  { %1800 = vmatpush1.bf16.msra.mxu0 %v3249_v56  ;;  %1883 = vmatprep.subr.bf16.mxu1 %v3260_v59  ;;  %v3333_v56 = vld [vmem:[#allocation2 + $0x6c0] ss:$16 sps:$4 sm:$0xff]   ;;  %v3344_v59 = vld [vmem:[#allocation2 + $0x2ec] ss:$16 sps:$4 sm:$0xff]  }
  0xbe   :  { %1801 = vmatprep.subr.bf16.mxu0 %v3257_v58  ;;  %v3341_v58 = vld [vmem:[#allocation2 + $0x6e4] ss:$16 sps:$4 sm:$0xff]  }
  0xc0   :  { %1884 = vmatpush1.bf16.msra.mxu1 %v3258_v61  ;;  %v3342_v61 = vld [vmem:[#allocation2 + $0x2e8] ss:$16 sps:$4 sm:$0xff]  }
  0xc1   :  { %1802 = vmatpush1.bf16.msra.mxu0 %v3255_v60  ;;  %1885 = vmatprep.subr.bf16.mxu1 %v3266_v63  ;;  %v3339_v60 = vld [vmem:[#allocation2 + $0x6e0] ss:$16 sps:$4 sm:$0xff]   ;;  %v3350_v63 = vld [vmem:[#allocation2 + $0x30c] ss:$16 sps:$4 sm:$0xff]  }
  0xc2   :  { %1803 = vmatprep.subr.bf16.mxu0 %v3263_v62  ;;  %v3347_v62 = vld [vmem:[#allocation2 + $0x704] ss:$16 sps:$4 sm:$0xff]  }
  0xc4   :  { %1886 = vmatpush1.bf16.msra.mxu1 %v3264_v1  ;;  %v3348_v1 = vld [vmem:[#allocation2 + $0x308] ss:$16 sps:$4 sm:$0xff]  }
  0xc5   :  { %1804 = vmatpush1.bf16.msra.mxu0 %v3261_v0  ;;  %1887 = vmatprep.subr.bf16.mxu1 %v3272_v4  ;;  %v3345_v0 = vld [vmem:[#allocation2 + $0x700] ss:$16 sps:$4 sm:$0xff]   ;;  %v3356_v4 = vld [vmem:[#allocation2 + $0x32c] ss:$16 sps:$4 sm:$0xff]  }
  0xc6   :  { %1805 = vmatprep.subr.bf16.mxu0 %v3269_v2  ;;  %v3353_v2 = vld [vmem:[#allocation2 + $0x724] ss:$16 sps:$4 sm:$0xff]  }
  0xc8   :  { %1888 = vmatpush1.bf16.msra.mxu1 %v3270_v6  ;;  %v3354_v6 = vld [vmem:[#allocation2 + $0x328] ss:$16 sps:$4 sm:$0xff]  }
  0xc9   :  { %1806 = vmatpush1.bf16.msra.mxu0 %v3267_v5  ;;  %1889 = vmatprep.subr.bf16.mxu1 %v3278_v8  ;;  %v3351_v5 = vld [vmem:[#allocation2 + $0x720] ss:$16 sps:$4 sm:$0xff]   ;;  %v3362_v8 = vld [vmem:[#allocation2 + $0x34c] ss:$16 sps:$4 sm:$0xff]  }
  0xca   :  { %1807 = vmatprep.subr.bf16.mxu0 %v3275_v7  ;;  %v3359_v7 = vld [vmem:[#allocation2 + $0x744] ss:$16 sps:$4 sm:$0xff]  }
  0xcc   :  { %1890 = vmatpush1.bf16.msra.mxu1 %v3276_v10  ;;  %v3360_v10 = vld [vmem:[#allocation2 + $0x348] ss:$16 sps:$4 sm:$0xff]  }
  0xcd   :  { %1808 = vmatpush1.bf16.msra.mxu0 %v3273_v9  ;;  %1891 = vmatprep.subr.bf16.mxu1 %v3284_v12  ;;  %v3357_v9 = vld [vmem:[#allocation2 + $0x740] ss:$16 sps:$4 sm:$0xff]   ;;  %v3368_v12 = vld [vmem:[#allocation2 + $0x36c] ss:$16 sps:$4 sm:$0xff]  }
  0xce   :  { %1809 = vmatprep.subr.bf16.mxu0 %v3281_v11  ;;  %v3365_v11 = vld [vmem:[#allocation2 + $0x764] ss:$16 sps:$4 sm:$0xff]  }
  0xd0   :  { %1892 = vmatpush1.bf16.msra.mxu1 %v3282_v14  ;;  %v3366_v14 = vld [vmem:[#allocation2 + $0x368] ss:$16 sps:$4 sm:$0xff]  }
  0xd1   :  { %1810 = vmatpush1.bf16.msra.mxu0 %v3279_v13  ;;  %1893 = vmatprep.subr.bf16.mxu1 %v3290_v17  ;;  %v3363_v13 = vld [vmem:[#allocation2 + $0x760] ss:$16 sps:$4 sm:$0xff]   ;;  %v3374_v17 = vld [vmem:[#allocation2 + $0x38c] ss:$16 sps:$4 sm:$0xff]  }
  0xd2   :  { %1811 = vmatprep.subr.bf16.mxu0 %v3287_v15  ;;  %v3371_v15 = vld [vmem:[#allocation2 + $0x784] ss:$16 sps:$4 sm:$0xff]  }
  0xd4   :  { %1894 = vmatpush1.bf16.msra.mxu1 %v3288_v21  ;;  %v3377_v21 = vld [vmem:[#allocation2 + $0x7a4] ss:$16 sps:$4 sm:$0xff]  }
  0xd5   :  { %1812 = vmatpush1.bf16.msra.mxu0 %v3285_v20  ;;  %1895 = vmatprep.subr.bf16.mxu1 %v3296_v23  ;;  %v3372_v20 = vld [vmem:[#allocation2 + $0x388] ss:$16 sps:$4 sm:$0xff]   ;;  %v3375_v23 = vld [vmem:[#allocation2 + $0x7a0] ss:$16 sps:$4 sm:$0xff]  }
  0xd6   :  { %1813 = vmatprep.subr.bf16.mxu0 %v3293_v22  ;;  %v3380_v22 = vld [vmem:[#allocation2 + $0x3ac] ss:$16 sps:$4 sm:$0xff]  }
  0xd8   :  { %1896 = vmatpush1.bf16.msra.mxu1 %v3294_v26  ;;  %v3383_v26 = vld [vmem:[#allocation2 + $0x7c4] ss:$16 sps:$4 sm:$0xff]  }
  0xd9   :  { %1814 = vmatpush1.bf16.msra.mxu0 %v3291_v25  ;;  %1906 = vmatprep.subr.bf16.mxu1 %v3302_v28  ;;  %v3378_v25 = vld [vmem:[#allocation2 + $0x3a8] ss:$16 sps:$4 sm:$0xff]   ;;  %v3381_v28 = vld [vmem:[#allocation2 + $0x7c0] ss:$16 sps:$4 sm:$0xff]  }
  0xda   :  { %1824 = vmatprep.subr.bf16.mxu0 %v3299_v27  ;;  %v3386_v27 = vld [vmem:[#allocation2 + $0x3cc] ss:$16 sps:$4 sm:$0xff]  }
  0xdb   :  { %1898 = vmatmul.mubr.bf16.vlgmr.msra.gmra.mrb[4].mxu1 %v3841_v16  ;;  %v3320_v16 = vld [vmem:[#allocation2 + $0x26c] ss:$16 sps:$4 sm:$0xff]  }
  0xdc   :  { %1816 = vmatmul.mubr.bf16.vlgmr.msra.gmra.mrb[0].mxu0 %v3870_v30  ;;  %1907 = vmatpush1.bf16.msra.mxu1 %v3300_v49  ;;  %v3392_v49 = vld [vmem:[#allocation2 + $0x3ec] ss:$16 sps:$4 sm:$0xff]  }
  0xdd   :  { %1825 = vmatpush1.bf16.msra.mxu0 %v3297_v31  ;;  %1908 = vmatprep.subr.bf16.mxu1 %v3308_v33  ;;  %v3389_v31 = vld [vmem:[#allocation2 + $0x7e4] ss:$16 sps:$4 sm:$0xff]   ;;  %v3390_v33 = vld [vmem:[#allocation2 + $0x3e8] ss:$16 sps:$4 sm:$0xff]  }
  0xde   :  { %1826 = vmatprep.subr.bf16.mxu0 %v3305_v32  ;;  %1856 = vmatprep.mubr.bf16.mxu0 %v3872_v34  ;;  %v3387_v32 = vld [vmem:[#allocation2 + $0x7e0] ss:$16 sps:$4 sm:$0xff]  }
  0xdf   :  { %1938 = vmatprep.mubr.bf16.mxu1 %v3838_v3  ;;  %v3324_v3 = vld [vmem:[#allocation2 + $0x288] ss:$16 sps:$4 sm:$0xff]  }
  0xe0   :  { %1909 = vmatpush1.bf16.msra.mxu1 %v3306_v36  ;;  %v3394_v36 = vld [vmem:[#allocation2 + $0x408] ss:$16 sps:$4 sm:$0xff]  }
  0xe1   :  { %1827 = vmatpush1.bf16.msra.mxu0 %v3303_v35  ;;  %1910 = vmatprep.subr.bf16.mxu1 %v3314_v38  ;;  %v3396_v35 = vld [vmem:[#allocation2 + $0x40c] ss:$16 sps:$4 sm:$0xff]  }
  0xe2   :  { %1828 = vmatprep.subr.bf16.mxu0 %v3311_v37  ;;  %v3880_v37 = vpack.c.bf16 %v3864_v24, %v3864_v24  ;;  %v3399_v38 = vld [vmem:[#allocation2 + $0x42c] ss:$16 sps:$4 sm:$0xff]  }
  0xe3   :  { %v3493_v24 = vld [vmem:[#allocation6 + $0x10] ss:$8 sps:$4 sm:$0xff]  }
  0xe4   :  { %1911 = vmatpush1.bf16.msra.mxu1 %v3312_v40  ;;  %v3492_v40 = vld [vmem:[#allocation6 + $0x4] ss:$8 sps:$4 sm:$0xff]  }
  0xe5   :  { %1829 = vmatpush1.bf16.msra.mxu0 %v3309_v39  ;;  %1912 = vmatprep.subr.bf16.mxu1 %v3320_v16  ;;  %v3490_v39 = vld [vmem:[#allocation6] ss:$8 sps:$4 sm:$0xff]   ;;  %v3495_v16 = vld [vmem:[#allocation6 + $0x14] ss:$8 sps:$4 sm:$0xff]  }
  0xe6   :  { %1830 = vmatprep.subr.bf16.mxu0 %v3317_v41  ;;  %v3397_v41 = vld [vmem:[#allocation2 + $0x428] ss:$16 sps:$4 sm:$0xff]  }
  0xe8   :  { %1913 = vmatpush1.bf16.msra.mxu1 %v3318_v44  ;;  %v3498_v44 = vld [vmem:[#allocation6 + $0x24] ss:$8 sps:$4 sm:$0xff]  }
  0xe9   :  { %1831 = vmatpush1.bf16.msra.mxu0 %v3315_v42  ;;  %1914 = vmatprep.subr.bf16.mxu1 %v3326_v46  ;;  %v3402_v42 = vld [vmem:[#allocation2 + $0x44c] ss:$16 sps:$4 sm:$0xff]  }
  0xea   :  { %1832 = vmatprep.subr.bf16.mxu0 %v3323_v45  ;;  %v3400_v45 = vld [vmem:[#allocation2 + $0x448] ss:$16 sps:$4 sm:$0xff]   ;;  %v3405_v46 = vld [vmem:[#allocation2 + $0x46c] ss:$16 sps:$4 sm:$0xff]  }
  0xec   :  { %1915 = vmatpush1.bf16.msra.mxu1 %v3324_v3  ;;  %v3408_v3 = vld [vmem:[#allocation2 + $0x48c] ss:$16 sps:$4 sm:$0xff]  }
  0xed   :  { %1833 = vmatpush1.bf16.msra.mxu0 %v3321_v47  ;;  %1916 = vmatprep.subr.bf16.mxu1 %v3332_v50  ;;  %v3403_v47 = vld [vmem:[#allocation2 + $0x468] ss:$16 sps:$4 sm:$0xff]  }
  0xee   :  { %1834 = vmatprep.subr.bf16.mxu0 %v3329_v48  ;;  %v3501_v48 = vld [vmem:[#allocation6 + $0x34] ss:$8 sps:$4 sm:$0xff]   ;;  %v3504_v50 = vld [vmem:[#allocation6 + $0x44] ss:$8 sps:$4 sm:$0xff]  }
  0xf0   :  { %1917 = vmatpush1.bf16.msra.mxu1 %v3330_v53  ;;  %v3411_v53 = vld [vmem:[#allocation2 + $0x4ac] ss:$16 sps:$4 sm:$0xff]  }
  0xf1   :  { %1835 = vmatpush1.bf16.msra.mxu0 %v3327_v52  ;;  %1918 = vmatprep.subr.bf16.mxu1 %v3338_v55  ;;  %v3406_v52 = vld [vmem:[#allocation2 + $0x488] ss:$16 sps:$4 sm:$0xff]  }
  0xf2   :  { %1836 = vmatprep.subr.bf16.mxu0 %v3335_v54  ;;  %v3502_v54 = vld [vmem:[#allocation6 + $0x40] ss:$8 sps:$4 sm:$0xff]   ;;  %v3507_v55 = vld [vmem:[#allocation6 + $0x54] ss:$8 sps:$4 sm:$0xff]  }
  0xf4   :  { %1919 = vmatpush1.bf16.msra.mxu1 %v3336_v57  ;;  %v3414_v57 = vld [vmem:[#allocation2 + $0x4cc] ss:$16 sps:$4 sm:$0xff]  }
  0xf5   :  { %1837 = vmatpush1.bf16.msra.mxu0 %v3333_v56  ;;  %1920 = vmatprep.subr.bf16.mxu1 %v3344_v59  ;;  %v3409_v56 = vld [vmem:[#allocation2 + $0x4a8] ss:$16 sps:$4 sm:$0xff]  }
  0xf6   :  { %1838 = vmatprep.subr.bf16.mxu0 %v3341_v58  ;;  %v3505_v58 = vld [vmem:[#allocation6 + $0x50] ss:$8 sps:$4 sm:$0xff]   ;;  %v3510_v59 = vld [vmem:[#allocation6 + $0x64] ss:$8 sps:$4 sm:$0xff]  }
  0xf8   :  { %1921 = vmatpush1.bf16.msra.mxu1 %v3342_v61  ;;  %v3417_v61 = vld [vmem:[#allocation2 + $0x4ec] ss:$16 sps:$4 sm:$0xff]  }
  0xf9   :  { %1839 = vmatpush1.bf16.msra.mxu0 %v3339_v60  ;;  %1922 = vmatprep.subr.bf16.mxu1 %v3350_v63  ;;  %v3412_v60 = vld [vmem:[#allocation2 + $0x4c8] ss:$16 sps:$4 sm:$0xff]  }
  0xfa   :  { %1840 = vmatprep.subr.bf16.mxu0 %v3347_v62  ;;  %v3508_v62 = vld [vmem:[#allocation6 + $0x60] ss:$8 sps:$4 sm:$0xff]   ;;  %v3513_v63 = vld [vmem:[#allocation6 + $0x74] ss:$8 sps:$4 sm:$0xff]  }
  0xfc   :  { %1923 = vmatpush1.bf16.msra.mxu1 %v3348_v1  ;;  %v3420_v1 = vld [vmem:[#allocation2 + $0x50c] ss:$16 sps:$4 sm:$0xff]  }
  0xfd   :  { %1841 = vmatpush1.bf16.msra.mxu0 %v3345_v0  ;;  %1924 = vmatprep.subr.bf16.mxu1 %v3356_v4  ;;  %v3415_v0 = vld [vmem:[#allocation2 + $0x4e8] ss:$16 sps:$4 sm:$0xff]  }
  0xfe   :  { %1842 = vmatprep.subr.bf16.mxu0 %v3353_v2  ;;  %v3511_v2 = vld [vmem:[#allocation6 + $0x70] ss:$8 sps:$4 sm:$0xff]   ;;  %v3516_v4 = vld [vmem:[#allocation6 + $0x84] ss:$8 sps:$4 sm:$0xff]  }
 0x100   :  { %1925 = vmatpush1.bf16.msra.mxu1 %v3354_v6  ;;  %v3423_v6 = vld [vmem:[#allocation2 + $0x52c] ss:$16 sps:$4 sm:$0xff]  }
 0x101   :  { %1843 = vmatpush1.bf16.msra.mxu0 %v3351_v5  ;;  %1926 = vmatprep.subr.bf16.mxu1 %v3362_v8  ;;  %v3418_v5 = vld [vmem:[#allocation2 + $0x508] ss:$16 sps:$4 sm:$0xff]  }
 0x102   :  { %1844 = vmatprep.subr.bf16.mxu0 %v3359_v7  ;;  %v3514_v7 = vld [vmem:[#allocation6 + $0x80] ss:$8 sps:$4 sm:$0xff]   ;;  %v3519_v8 = vld [vmem:[#allocation6 + $0x94] ss:$8 sps:$4 sm:$0xff]  }
 0x104   :  { %1927 = vmatpush1.bf16.msra.mxu1 %v3360_v10  ;;  %v3426_v10 = vld [vmem:[#allocation2 + $0x54c] ss:$16 sps:$4 sm:$0xff]  }
 0x105   :  { %1845 = vmatpush1.bf16.msra.mxu0 %v3357_v9  ;;  %1928 = vmatprep.subr.bf16.mxu1 %v3368_v12  ;;  %v3421_v9 = vld [vmem:[#allocation2 + $0x528] ss:$16 sps:$4 sm:$0xff]  }
 0x106   :  { %1846 = vmatprep.subr.bf16.mxu0 %v3365_v11  ;;  %v3517_v11 = vld [vmem:[#allocation6 + $0x90] ss:$8 sps:$4 sm:$0xff]   ;;  %v3522_v12 = vld [vmem:[#allocation6 + $0xa4] ss:$8 sps:$4 sm:$0xff]  }
 0x108   :  { %1929 = vmatpush1.bf16.msra.mxu1 %v3366_v14  ;;  %v3429_v14 = vld [vmem:[#allocation2 + $0x56c] ss:$16 sps:$4 sm:$0xff]  }
 0x109   :  { %1847 = vmatpush1.bf16.msra.mxu0 %v3363_v13  ;;  %1930 = vmatprep.subr.bf16.mxu1 %v3374_v17  ;;  %v3424_v13 = vld [vmem:[#allocation2 + $0x548] ss:$16 sps:$4 sm:$0xff]  }
 0x10a   :  { %1848 = vmatprep.subr.bf16.mxu0 %v3371_v15  ;;  %v3520_v15 = vld [vmem:[#allocation6 + $0xa0] ss:$8 sps:$4 sm:$0xff]   ;;  %v3525_v17 = vld [vmem:[#allocation6 + $0xb4] ss:$8 sps:$4 sm:$0xff]  }
 0x10c   :  { %1931 = vmatpush1.bf16.msra.mxu1 %v3372_v20  ;;  %v3432_v20 = vld [vmem:[#allocation2 + $0x58c] ss:$16 sps:$4 sm:$0xff]  }
 0x10d   :  { %1849 = vmatpush1.bf16.msra.mxu0 %v3369_v19  ;;  %1932 = vmatprep.subr.bf16.mxu1 %v3380_v22  ;;  %v3427_v19 = vld [vmem:[#allocation2 + $0x568] ss:$16 sps:$4 sm:$0xff]  }
 0x10e   :  { %1850 = vmatprep.subr.bf16.mxu0 %v3377_v21  ;;  %v3523_v21 = vld [vmem:[#allocation6 + $0xb0] ss:$8 sps:$4 sm:$0xff]   ;;  %v3528_v22 = vld [vmem:[#allocation6 + $0xc4] ss:$8 sps:$4 sm:$0xff]  }
 0x110   :  { %1933 = vmatpush1.bf16.msra.mxu1 %v3378_v25  ;;  %v3435_v25 = vld [vmem:[#allocation2 + $0x5ac] ss:$16 sps:$4 sm:$0xff]  }
 0x111   :  { %1851 = vmatpush1.bf16.msra.mxu0 %v3375_v23  ;;  %1934 = vmatprep.subr.bf16.mxu1 %v3386_v27  ;;  %v3430_v23 = vld [vmem:[#allocation2 + $0x588] ss:$16 sps:$4 sm:$0xff]  }
 0x112   :  { %1852 = vmatprep.subr.bf16.mxu0 %v3383_v26  ;;  %v3526_v26 = vld [vmem:[#allocation6 + $0xc0] ss:$8 sps:$4 sm:$0xff]   ;;  %v3531_v27 = vld [vmem:[#allocation6 + $0xd4] ss:$8 sps:$4 sm:$0xff]  }
 0x114   :  { %1935 = vmatpush1.bf16.msra.mxu1 %v3384_v29  ;;  %v3438_v29 = vld [vmem:[#allocation2 + $0x5cc] ss:$16 sps:$4 sm:$0xff]  }
 0x115   :  { %1853 = vmatpush1.bf16.msra.mxu0 %v3381_v28  ;;  %1936 = vmatprep.subr.bf16.mxu1 %v3392_v49  ;;  %v3433_v28 = vld [vmem:[#allocation2 + $0x5a8] ss:$16 sps:$4 sm:$0xff]  }
 0x116   :  { %1854 = vmatprep.subr.bf16.mxu0 %v3389_v31  ;;  %v3529_v31 = vld [vmem:[#allocation6 + $0xd0] ss:$8 sps:$4 sm:$0xff]   ;;  %v3436_v49 = vld [vmem:[#allocation2 + $0x5c8] ss:$16 sps:$4 sm:$0xff]  }
 0x118   :  { %1937 = vmatpush1.bf16.msra.mxu1 %v3390_v33  ;;  %v3439_v33 = vld [vmem:[#allocation2 + $0x5e8] ss:$16 sps:$4 sm:$0xff]  }
 0x119   :  { %1855 = vmatpush1.bf16.msra.mxu0 %v3387_v32  ;;  %1947 = vmatprep.subr.bf16.mxu1 %v3396_v35  ;;  %v3441_v32 = vld [vmem:[#allocation2 + $0x5ec] ss:$16 sps:$4 sm:$0xff]  }
 0x11a   :  { %2433 = vmatprep.subr.bf16.mxu0 %v3492_v40  ;;  %v3444_v35 = vld [vmem:[#allocation2 + $0x60c] ss:$16 sps:$4 sm:$0xff]  }
 0x11b   :  { %1939 = vmatmul.mubr.bf16.vlgmr.msra.gmra.mrb[4].mxu1 %v3843_v18  ;;  %v3496_v18 = vld [vmem:[#allocation6 + $0x20] ss:$8 sps:$4 sm:$0xff]  }
 0x11c   :  { %1857 = vmatmul.mubr.bf16.vlgmr.msra.gmra.mrb[0].mxu0 %v3880_v37  ;;  %1948 = vmatpush1.bf16.msra.mxu1 %v3394_v36  ;;  %v3442_v36 = vld [vmem:[#allocation2 + $0x608] ss:$16 sps:$4 sm:$0xff]   ;;  %v3450_v40 = vld [vmem:[#allocation2 + $0x64c] ss:$16 sps:$4 sm:$0xff]  }
 0x11d   :  { %1979 = vmatprep.mubr.bf16.mxu1 %v3858_v51  ;;  %1949 = vmatprep.subr.bf16.mxu1 %v3399_v38  ;;  %v3499_v51 = vld [vmem:[#allocation6 + $0x30] ss:$8 sps:$4 sm:$0xff]  }
 0x11e   :  { %2434 = vmatpush1.bf16.msra.mxu0 %v3490_v39  ;;  %v3447_v38 = vld [vmem:[#allocation2 + $0x62c] ss:$16 sps:$4 sm:$0xff]   ;;  %v3445_v39 = vld [vmem:[#allocation2 + $0x628] ss:$16 sps:$4 sm:$0xff]  }
 0x11f   :  { %2435 = vmatprep.subr.bf16.mxu0 %v3495_v16  ;;  %v3453_v16 = vld [vmem:[#allocation2 + $0x66c] ss:$16 sps:$4 sm:$0xff]  }
 0x120   :  { %1950 = vmatpush1.bf16.msra.mxu1 %v3397_v41  ;;  %v3448_v41 = vld [vmem:[#allocation2 + $0x648] ss:$16 sps:$4 sm:$0xff]  }
 0x121   :  { %1951 = vmatprep.subr.bf16.mxu1 %v3402_v42  ;;  %v3451_v42 = vld [vmem:[#allocation2 + $0x668] ss:$16 sps:$4 sm:$0xff]  }
 0x122   :  { %2436 = vmatpush1.bf16.msra.mxu0 %v3493_v24  ;;  %v3456_v24 = vld [vmem:[#allocation2 + $0x68c] ss:$16 sps:$4 sm:$0xff]  }
 0x123   :  { %2437 = vmatprep.subr.bf16.mxu0 %v3498_v44  ;;  %v3454_v44 = vld [vmem:[#allocation2 + $0x688] ss:$16 sps:$4 sm:$0xff]  }
 0x124   :  { %1952 = vmatpush1.bf16.msra.mxu1 %v3400_v45  ;;  %v3459_v45 = vld [vmem:[#allocation2 + $0x6ac] ss:$16 sps:$4 sm:$0xff]  }
 0x125   :  { %1953 = vmatprep.subr.bf16.mxu1 %v3405_v46  ;;  %v3462_v46 = vld [vmem:[#allocation2 + $0x6cc] ss:$16 sps:$4 sm:$0xff]  }
 0x126   :  { %2438 = vmatpush1.bf16.msra.mxu0 %v3496_v18  ;;  %v3534_v18 = vld [vmem:[#allocation6 + $0xe4] ss:$8 sps:$4 sm:$0xff]  }
 0x127   :  { %2439 = vmatprep.subr.bf16.mxu0 %v3501_v48 }
 0x128   :  { %1954 = vmatpush1.bf16.msra.mxu1 %v3403_v47  ;;  %v3532_v47 = vld [vmem:[#allocation6 + $0xe0] ss:$8 sps:$4 sm:$0xff]  }
 0x129   :  { %1955 = vmatprep.subr.bf16.mxu1 %v3408_v3 }
 0x12a   :  { %2440 = vmatpush1.bf16.msra.mxu0 %v3499_v51  ;;  %v3460_v51 = vld [vmem:[#allocation2 + $0x6c8] ss:$16 sps:$4 sm:$0xff]  }
 0x12b   :  { %2441 = vmatprep.subr.bf16.mxu0 %v3504_v50 }
 0x12c   :  { %1956 = vmatpush1.bf16.msra.mxu1 %v3406_v52  ;;  %v3465_v52 = vld [vmem:[#allocation2 + $0x6ec] ss:$16 sps:$4 sm:$0xff]  }
 0x12d   :  { %1957 = vmatprep.subr.bf16.mxu1 %v3411_v53  ;;  %v3537_v53 = vld [vmem:[#allocation6 + $0xf4] ss:$8 sps:$4 sm:$0xff]  }
 0x12e   :  { %2442 = vmatpush1.bf16.msra.mxu0 %v3502_v54  ;;  %v3535_v54 = vld [vmem:[#allocation6 + $0xf0] ss:$8 sps:$4 sm:$0xff]  }
 0x12f   :  { %2443 = vmatprep.subr.bf16.mxu0 %v3507_v55  ;;  %v3463_v55 = vld [vmem:[#allocation2 + $0x6e8] ss:$16 sps:$4 sm:$0xff]  }
 0x130   :  { %1958 = vmatpush1.bf16.msra.mxu1 %v3409_v56  ;;  %v3468_v56 = vld [vmem:[#allocation2 + $0x70c] ss:$16 sps:$4 sm:$0xff]  }
 0x131   :  { %1959 = vmatprep.subr.bf16.mxu1 %v3414_v57  ;;  %v3540_v57 = vld [vmem:[#allocation6 + $0x104] ss:$8 sps:$4 sm:$0xff]  }
 0x132   :  { %2444 = vmatpush1.bf16.msra.mxu0 %v3505_v58  ;;  %v3466_v58 = vld [vmem:[#allocation2 + $0x708] ss:$16 sps:$4 sm:$0xff]  }
 0x133   :  { %2445 = vmatprep.subr.bf16.mxu0 %v3510_v59  ;;  %v3471_v59 = vld [vmem:[#allocation2 + $0x72c] ss:$16 sps:$4 sm:$0xff]  }
 0x134   :  { %1960 = vmatpush1.bf16.msra.mxu1 %v3412_v60  ;;  %v3469_v60 = vld [vmem:[#allocation2 + $0x728] ss:$16 sps:$4 sm:$0xff]  }
 0x135   :  { %1961 = vmatprep.subr.bf16.mxu1 %v3417_v61  ;;  %v3474_v61 = vld [vmem:[#allocation2 + $0x74c] ss:$16 sps:$4 sm:$0xff]  }
 0x136   :  { %2446 = vmatpush1.bf16.msra.mxu0 %v3508_v62  ;;  %v3472_v62 = vld [vmem:[#allocation2 + $0x748] ss:$16 sps:$4 sm:$0xff]  }
 0x137   :  { %2447 = vmatprep.subr.bf16.mxu0 %v3513_v63  ;;  %v3477_v63 = vld [vmem:[#allocation2 + $0x76c] ss:$16 sps:$4 sm:$0xff]  }
 0x138   :  { %1962 = vmatpush1.bf16.msra.mxu1 %v3415_v0  ;;  %v3475_v0 = vld [vmem:[#allocation2 + $0x768] ss:$16 sps:$4 sm:$0xff]  }
 0x139   :  { %1963 = vmatprep.subr.bf16.mxu1 %v3420_v1  ;;  %v3480_v1 = vld [vmem:[#allocation2 + $0x78c] ss:$16 sps:$4 sm:$0xff]  }
 0x13a   :  { %2448 = vmatpush1.bf16.msra.mxu0 %v3511_v2  ;;  %v3478_v2 = vld [vmem:[#allocation2 + $0x788] ss:$16 sps:$4 sm:$0xff]  }
 0x13b   :  { %2449 = vmatprep.subr.bf16.mxu0 %v3516_v4  ;;  %v3483_v4 = vld [vmem:[#allocation2 + $0x7ac] ss:$16 sps:$4 sm:$0xff]  }
 0x13c   :  { %1964 = vmatpush1.bf16.msra.mxu1 %v3418_v5  ;;  %v3481_v5 = vld [vmem:[#allocation2 + $0x7a8] ss:$16 sps:$4 sm:$0xff]  }
 0x13d   :  { %1965 = vmatprep.subr.bf16.mxu1 %v3423_v6  ;;  %v3486_v6 = vld [vmem:[#allocation2 + $0x7cc] ss:$16 sps:$4 sm:$0xff]  }
 0x13e   :  { %2450 = vmatpush1.bf16.msra.mxu0 %v3514_v7  ;;  %v3484_v7 = vld [vmem:[#allocation2 + $0x7c8] ss:$16 sps:$4 sm:$0xff]  }
 0x13f   :  { %2451 = vmatprep.subr.bf16.mxu0 %v3519_v8  ;;  %v3489_v8 = vld [vmem:[#allocation2 + $0x7ec] ss:$16 sps:$4 sm:$0xff]  }
 0x140   :  { %1966 = vmatpush1.bf16.msra.mxu1 %v3421_v9  ;;  %v3487_v9 = vld [vmem:[#allocation2 + $0x7e8] ss:$16 sps:$4 sm:$0xff]  }
 0x141   :  { %1967 = vmatprep.subr.bf16.mxu1 %v3426_v10  ;;  %v403_v10 = vsub.s32 0, %v3828_v43 }
 0x142   :  { %2452 = vmatpush1.bf16.msra.mxu0 %v3517_v11  ;;  %v3889_v11 = vld [vmem:[#allocation4] sm:$0xf] }
 0x143   :  { %2453 = vmatprep.subr.bf16.mxu0 %v3522_v12  ;;  %v407_v12 = vsub.s32 1, %v3828_v43 }
 0x144   :  { %1968 = vmatpush1.bf16.msra.mxu1 %v3424_v13  ;;  %v404_v13 = vrot.slane %v3889_v11, %v403_v10 }
 0x145   :  { %1969 = vmatprep.subr.bf16.mxu1 %v3429_v14  ;;  %v408_v14 = vrot.slane %v3889_v11, %v407_v12 }
 0x146   :  { %2454 = vmatpush1.bf16.msra.mxu0 %v3520_v15 }
 0x147   :  { %2455 = vmatprep.subr.bf16.mxu0 %v3525_v17 }
 0x148   :  { %1970 = vmatpush1.bf16.msra.mxu1 %v3427_v19 }
 0x149   :  { %1971 = vmatprep.subr.bf16.mxu1 %v3432_v20 }
 0x14a   :  { %2456 = vmatpush1.bf16.msra.mxu0 %v3523_v21 }
 0x14b   :  { %2457 = vmatprep.subr.bf16.mxu0 %v3528_v22 }
 0x14c   :  { %1972 = vmatpush1.bf16.msra.mxu1 %v3430_v23 }
 0x14d   :  { %1973 = vmatprep.subr.bf16.mxu1 %v3435_v25 }
 0x14e   :  { %2458 = vmatpush1.bf16.msra.mxu0 %v3526_v26 }
 0x14f   :  { %2459 = vmatprep.subr.bf16.mxu0 %v3531_v27 }
 0x150   :  { %1974 = vmatpush1.bf16.msra.mxu1 %v3433_v28  ;;  %v3538_v28 = vld [vmem:[#allocation6 + $0x100] ss:$8 sps:$4 sm:$0xff]  }
 0x151   :  { %1975 = vmatprep.subr.bf16.mxu1 %v3438_v29 }
 0x152   :  { %2460 = vmatpush1.bf16.msra.mxu0 %v3529_v31  ;;  %v3543_v31 = vld [vmem:[#allocation6 + $0x114] ss:$8 sps:$4 sm:$0xff]  }
 0x153   :  { %2461 = vmatprep.subr.bf16.mxu0 %v3534_v18  ;;  %v3555_v18 = vld [vmem:[#allocation6 + $0x154] ss:$8 sps:$4 sm:$0xff]  }
 0x154   :  { %1976 = vmatpush1.bf16.msra.mxu1 %v3436_v49  ;;  %v3586_v49 = vld [vmem:[%s3962_s5 + $0x40] sm:$0xff]  }
 0x155   :  { %1977 = vmatprep.subr.bf16.mxu1 %v3441_v32  ;;  %v3587_v32 = vld [vmem:[%s3962_s5] sm:$0xff]  }
 0x156   :  { %2462 = vmatpush1.bf16.msra.mxu0 %v3532_v47  ;;  %v3596_v47 = vld [vmem:[%s3962_s5 + $0x68] sm:$0xff]  }
 0x157   :  { %2463 = vmatprep.subr.bf16.mxu0 %v3537_v53  ;;  %v3559_v53 = vld [vmem:[#allocation6 + $0x170] ss:$8 sps:$4 sm:$0xff]  }
 0x158   :  { %1978 = vmatpush1.bf16.msra.mxu1 %v3439_v33  ;;  %v3588_v33 = vld [vmem:[%s3962_s5 + $0x48] sm:$0xff]  }
 0x159   :  { %1988 = vmatprep.subr.bf16.mxu1 %v3444_v35  ;;  %v3541_v35 = vld [vmem:[#allocation6 + $0x110] ss:$8 sps:$4 sm:$0xff]  }
 0x15a   :  { %2464 = vmatpush1.bf16.msra.mxu0 %v3535_v54  ;;  %v3564_v54 = vld [vmem:[#allocation6 + $0x184] ss:$8 sps:$4 sm:$0xff]  }
 0x15b   :  { %1980 = vmatmul.mubr.bf16.vlgmr.msra.gmra.mrb[4].mxu1 %v3870_v30  ;;  %v3457_v30 = vld [vmem:[#allocation2 + $0x6a8] ss:$16 sps:$4 sm:$0xff]   ;;  %2474 = vmatprep.subr.bf16.mxu0 %v3540_v57  ;;  %v3565_v57 = vld [vmem:[#allocation6 + $0x190] ss:$8 sps:$4 sm:$0xff]  }
 0x15c   :  { %1989 = vmatpush1.bf16.msra.mxu1 %v3442_v36  ;;  %2020 = vmatprep.mubr.bf16.mxu1 %v3872_v34  ;;  %v3546_v36 = vld [vmem:[#allocation6 + $0x124] ss:$8 sps:$4 sm:$0xff]  }
 0x15d   :  { %1990 = vmatprep.subr.bf16.mxu1 %v3447_v38  ;;  %v3589_v38 = vld [vmem:[%s3962_s5 + $0x8] sm:$0xff]  }
 0x160   :  { %1991 = vmatpush1.bf16.msra.mxu1 %v3445_v39  ;;  %v3590_v39 = vld [vmem:[%s3962_s5 + $0x50] sm:$0xff]  }
 0x161   :  { %1992 = vmatprep.subr.bf16.mxu1 %v3450_v40  ;;  %v3544_v40 = vld [vmem:[#allocation6 + $0x120] ss:$8 sps:$4 sm:$0xff]  }
 0x164   :  { %1993 = vmatpush1.bf16.msra.mxu1 %v3448_v41  ;;  %v3549_v41 = vld [vmem:[#allocation6 + $0x134] ss:$8 sps:$4 sm:$0xff]  }
 0x165   :  { %1994 = vmatprep.subr.bf16.mxu1 %v3453_v16  ;;  %v3591_v16 = vld [vmem:[%s3962_s5 + $0x10] sm:$0xff]  }
 0x168   :  { %1995 = vmatpush1.bf16.msra.mxu1 %v3451_v42  ;;  %v3592_v42 = vld [vmem:[%s3962_s5 + $0x58] sm:$0xff]  }
 0x169   :  { %1996 = vmatprep.subr.bf16.mxu1 %v3456_v24  ;;  %v3547_v24 = vld [vmem:[#allocation6 + $0x130] ss:$8 sps:$4 sm:$0xff]  }
 0x16c   :  { %1997 = vmatpush1.bf16.msra.mxu1 %v3454_v44  ;;  %v3552_v44 = vld [vmem:[#allocation6 + $0x144] ss:$8 sps:$4 sm:$0xff]  }
 0x16d   :  { %1998 = vmatprep.subr.bf16.mxu1 %v3459_v45  ;;  %v3593_v45 = vld [vmem:[%s3962_s5 + $0x18] sm:$0xff]  }
 0x16e   :  { %v1735_v34 = vpop.f32.mrb[0].mxu1 }
 0x16f   :  { %v1737_v3 = vpop.f32.mrb[1].mxu1  ;;  %v1736_v15 = vadd.f32 %v1735_v34, %v404_v13  ;;  %v3595_v34 = vld [vmem:[%s3962_s5 + $0x20] sm:$0xff]  }
 0x170   :  { %v1739_v48 = vpop.f32.mrb[2].mxu1  ;;  %1999 = vmatpush1.bf16.msra.mxu1 %v3457_v30  ;;  %v1738_v17 = vadd.f32 %v1737_v3, %v408_v14  ;;  %v3594_v30 = vld [vmem:[%s3962_s5 + $0x60] sm:$0xff]   ;;  %v3553_v3 = vld [vmem:[#allocation6 + $0x150] ss:$8 sps:$4 sm:$0xff]  }
 0x171   :  { %v1740_v50 = vpop.f32.mrb[3].mxu1  ;;  %2000 = vmatprep.subr.bf16.mxu1 %v3462_v46  ;;  %v3550_v46 = vld [vmem:[#allocation6 + $0x140] ss:$8 sps:$4 sm:$0xff]   ;;  %v3558_v48 = vld [vmem:[#allocation6 + $0x164] ss:$8 sps:$4 sm:$0xff]  }
 0x172   :  { %v3556_v50 = vld [vmem:[#allocation6 + $0x160] ss:$8 sps:$4 sm:$0xff]  }
 0x174   :  { %2001 = vmatpush1.bf16.msra.mxu1 %v3460_v51  ;;  %v3597_v51 = vld [vmem:[%s3962_s5 + $0x28] sm:$0xff]  }
 0x175   :  { %2002 = vmatprep.subr.bf16.mxu1 %v3465_v52  ;;  %v3561_v52 = vld [vmem:[#allocation6 + $0x174] ss:$8 sps:$4 sm:$0xff]  }
 0x178   :  { %2003 = vmatpush1.bf16.msra.mxu1 %v3463_v55  ;;  %v3562_v55 = vld [vmem:[#allocation6 + $0x180] ss:$8 sps:$4 sm:$0xff]  }
 0x179   :  { %2004 = vmatprep.subr.bf16.mxu1 %v3468_v56  ;;  %v3567_v56 = vld [vmem:[#allocation6 + $0x194] ss:$8 sps:$4 sm:$0xff]  }
 0x17c   :  { %2005 = vmatpush1.bf16.msra.mxu1 %v3466_v58  ;;  %v3570_v58 = vld [vmem:[#allocation6 + $0x1a4] ss:$8 sps:$4 sm:$0xff]  }
 0x17d   :  { %2006 = vmatprep.subr.bf16.mxu1 %v3471_v59  ;;  %v3568_v59 = vld [vmem:[#allocation6 + $0x1a0] ss:$8 sps:$4 sm:$0xff]  }
 0x180   :  { %2007 = vmatpush1.bf16.msra.mxu1 %v3469_v60  ;;  %v3573_v60 = vld [vmem:[#allocation6 + $0x1b4] ss:$8 sps:$4 sm:$0xff]  }
 0x181   :  { %2008 = vmatprep.subr.bf16.mxu1 %v3474_v61  ;;  %v3571_v61 = vld [vmem:[#allocation6 + $0x1b0] ss:$8 sps:$4 sm:$0xff]  }
 0x184   :  { %2009 = vmatpush1.bf16.msra.mxu1 %v3472_v62  ;;  %v3576_v62 = vld [vmem:[#allocation6 + $0x1c4] ss:$8 sps:$4 sm:$0xff]  }
 0x185   :  { %2010 = vmatprep.subr.bf16.mxu1 %v3477_v63  ;;  %v3574_v63 = vld [vmem:[#allocation6 + $0x1c0] ss:$8 sps:$4 sm:$0xff]  }
 0x188   :  { %2011 = vmatpush1.bf16.msra.mxu1 %v3475_v0  ;;  %v3579_v0 = vld [vmem:[#allocation6 + $0x1d4] ss:$8 sps:$4 sm:$0xff]  }
 0x189   :  { %2012 = vmatprep.subr.bf16.mxu1 %v3480_v1  ;;  %v3577_v1 = vld [vmem:[#allocation6 + $0x1d0] ss:$8 sps:$4 sm:$0xff]  }
 0x18c   :  { %2013 = vmatpush1.bf16.msra.mxu1 %v3478_v2  ;;  %v3582_v2 = vld [vmem:[#allocation6 + $0x1e4] ss:$8 sps:$4 sm:$0xff]  }
 0x18d   :  { %2014 = vmatprep.subr.bf16.mxu1 %v3483_v4  ;;  %v3580_v4 = vld [vmem:[#allocation6 + $0x1e0] ss:$8 sps:$4 sm:$0xff]  }
 0x190   :  { %2015 = vmatpush1.bf16.msra.mxu1 %v3481_v5  ;;  %v3585_v5 = vld [vmem:[#allocation6 + $0x1f4] ss:$8 sps:$4 sm:$0xff]  }
 0x191   :  { %2016 = vmatprep.subr.bf16.mxu1 %v3486_v6  ;;  %v3583_v6 = vld [vmem:[#allocation6 + $0x1f0] ss:$8 sps:$4 sm:$0xff]  }
 0x194   :  { %2017 = vmatpush1.bf16.msra.mxu1 %v3484_v7  ;;  %v411_v7 = vsub.s32 2, %v3828_v43 }
 0x195   :  { %2018 = vmatprep.subr.bf16.mxu1 %v3489_v8  ;;  %v415_v8 = vsub.s32 3, %v3828_v43 }
 0x197   :  { %v416_v13 = vrot.slane %v3889_v11, %v415_v8 }
 0x198   :  { %2019 = vmatpush1.bf16.msra.mxu1 %v3487_v9  ;;  %v412_v9 = vrot.slane %v3889_v11, %v411_v7  ;;  %v3599_v11 = vld [vmem:[%s3962_s5 + $0x30] sm:$0xff]  }
 0x199   :  { %3040 = vmatprep.subr.bf16.mxu1 %v3586_v49 }
 0x19b   :  { %2021 = vmatmul.mubr.bf16.vlgmr.msra.gmra.mrb[4].mxu1 %v3880_v37 }
 0x19c   :  { %3041 = vmatpush3.bf16.msra.mxu1 %v3587_v32 }
 0x19d   :  { %3042 = vmatprep.subr.bf16.mxu1 %v3588_v33 }
 0x1a0   :  { %3043 = vmatpush3.bf16.msra.mxu1 %v3589_v38 }
 0x1a1   :  { %3044 = vmatprep.subr.bf16.mxu1 %v3590_v39 }
 0x1a4   :  { %3045 = vmatpush3.bf16.msra.mxu1 %v3591_v16 }
 0x1a5   :  { %3046 = vmatprep.subr.bf16.mxu1 %v3592_v42 }
 0x1a8   :  { %3047 = vmatpush3.bf16.msra.mxu1 %v3593_v45 }
 0x1a9   :  { %3048 = vmatprep.subr.bf16.mxu1 %v3594_v30 }
 0x1ac   :  { %3049 = vmatpush3.bf16.msra.mxu1 %v3595_v34 }
 0x1ad   :  { %3050 = vmatprep.subr.bf16.mxu1 %v3596_v47 }
 0x1b0   :  { %3051 = vmatpush3.bf16.msra.mxu1 %v3597_v51 }
 0x1ef   :  { %v1858_v19 = vpop.f32.mrb[0].mxu0 }
 0x1f0   :  { %v3063_v20 = vadd.f32 %v1858_v19, %v1736_v15  ;;  %v1860_v21 = vpop.f32.mrb[1].mxu0 }
 0x1f1   :  { %v3065_v37 = vadd.f32 %v1860_v21, %v1738_v17  ;;  %v1862_v22 = vpop.f32.mrb[2].mxu0 }
 0x1f2   :  { %v2029_v23 = vmax.f32 %v3063_v20, 0.0  ;;  %v1863_v25 = vpop.f32.mrb[3].mxu0 }
 0x1f3   :  { %v2030_v26 = vmax.f32 %v3065_v37, 0.0 }
 0x1f4   :  { %v2033_v29 = vpack.c.bf16 %v2029_v23, %v2029_v23 }
 0x1f5   :  { %v2034_v27 = vpack.c.bf16 %v2030_v26, %v2030_v26  ;;  %v3598_v26 = vld [vmem:[%s3962_s5 + $0x70] sm:$0xff]  }
 0x1f6   :  { %3052 = vmatprep.subr.bf16.mxu1 %v3598_v26 }
 0x1f7   :  { %2465 = vmatprep.mubr.bf16.mxu0 %v2034_v27  ;;  %3053 = vmatpush3.bf16.msra.mxu1 %v3599_v11  ;;  %v3600_v27 = vld [vmem:[%s3962_s5 + $0x78] sm:$0xff]  }
 0x1f8   :  { %2466 = vmatmul.mubr.bf16.vlgmr.msra.gmra.mrb[4].mxu0 %v2033_v29  ;;  %3054 = vmatprep.subr.bf16.mxu1 %v3600_v27  ;;  %v2101_v29 = vld [vmem:[#allocation7] sm:$0x3] }
 0x1f9   :  { %2475 = vmatpush1.bf16.msra.mxu0 %v3538_v28  ;;  %v3601_v28 = vld [vmem:[%s3962_s5 + $0x38] sm:$0xff]   ;;  %v2110_v49 = vrot.slane %v2101_v29, %v407_v12 }
 0x1fa   :  { %2476 = vmatprep.subr.bf16.mxu0 %v3543_v31  ;;  %v2106_v31 = vrot.slane %v2101_v29, %v403_v10 }
 0x1fb   :  { %3055 = vmatpush3.bf16.msra.mxu1 %v3601_v28 }
 0x1fd   :  { %2477 = vmatpush1.bf16.msra.mxu0 %v3541_v35 }
 0x1fe   :  { %2478 = vmatprep.subr.bf16.mxu0 %v3546_v36 }
 0x201   :  { %2479 = vmatpush1.bf16.msra.mxu0 %v3544_v40 }
 0x202   :  { %2480 = vmatprep.subr.bf16.mxu0 %v3549_v41 }
 0x205   :  { %2481 = vmatpush1.bf16.msra.mxu0 %v3547_v24 }
 0x206   :  { %2482 = vmatprep.subr.bf16.mxu0 %v3552_v44  ;;  %v3023_v44 = vld [vmem:[#allocation9] ss:$0 sm:$0xff] }
 0x209   :  { %2483 = vmatpush1.bf16.msra.mxu0 %v3550_v46 }
 0x20a   :  { %2484 = vmatprep.subr.bf16.mxu0 %v3555_v18 }
 0x20d   :  { %2485 = vmatpush1.bf16.msra.mxu0 %v3553_v3 }
 0x20e   :  { %2486 = vmatprep.subr.bf16.mxu0 %v3558_v48 }
 0x211   :  { %2487 = vmatpush1.bf16.msra.mxu0 %v3556_v50 }
 0x212   :  { %2488 = vmatprep.subr.bf16.mxu0 %v3561_v52 }
 0x215   :  { %2489 = vmatpush1.bf16.msra.mxu0 %v3559_v53 }
 0x216   :  { %2490 = vmatprep.subr.bf16.mxu0 %v3564_v54 }
 0x219   :  { %2491 = vmatpush1.bf16.msra.mxu0 %v3562_v55 }
 0x21a   :  { %2492 = vmatprep.subr.bf16.mxu0 %v3567_v56 }
 0x21d   :  { %2493 = vmatpush1.bf16.msra.mxu0 %v3565_v57 }
 0x21e   :  { %2494 = vmatprep.subr.bf16.mxu0 %v3570_v58 }
 0x221   :  { %2495 = vmatpush1.bf16.msra.mxu0 %v3568_v59 }
 0x222   :  { %2496 = vmatprep.subr.bf16.mxu0 %v3573_v60 }
 0x225   :  { %2497 = vmatpush1.bf16.msra.mxu0 %v3571_v61 }
 0x226   :  { %2498 = vmatprep.subr.bf16.mxu0 %v3576_v62 }
 0x229   :  { %2499 = vmatpush1.bf16.msra.mxu0 %v3574_v63 }
 0x22a   :  { %2500 = vmatprep.subr.bf16.mxu0 %v3579_v0 }
 0x22d   :  { %2501 = vmatpush1.bf16.msra.mxu0 %v3577_v1 }
 0x22e   :  { %2502 = vmatprep.subr.bf16.mxu0 %v3582_v2 }
 0x231   :  { %2503 = vmatpush1.bf16.msra.mxu0 %v3580_v4 }
 0x232   :  { %2504 = vmatprep.subr.bf16.mxu0 %v3585_v5 }
 0x235   :  { %2505 = vmatpush1.bf16.msra.mxu0 %v3583_v6 }
 0x26e   :  { %v2022_v14 = vpop.f32.mrb[4].mxu1 }
 0x26f   :  { %v3066_v15 = vadd.f32 %v2022_v14, %v412_v9  ;;  %v2024_v17 = vpop.f32.mrb[5].mxu1 }
 0x270   :  { %v3067_v19 = vadd.f32 %v2024_v17, %v416_v13  ;;  %v2026_v20 = vpop.f32.mrb[6].mxu1 }
 0x271   :  { %v2031_v21 = vmax.f32 %v3066_v15, 0.0  ;;  %v2027_v37 = vpop.f32.mrb[7].mxu1 }
 0x272   :  { %v2032_v22 = vmax.f32 %v3067_v19, 0.0 }
 0x273   :  { %v2035_v25 = vpack.c.bf16 %v2031_v21, %v2031_v21 }
 0x274   :  { %v2036_v23 = vpack.c.bf16 %v2032_v22, %v2032_v22 }
 0x276   :  { %2506 = vmatprep.mubr.bf16.mxu0 %v2036_v23 }
 0x277   :  { %2507 = vmatmul.mubr.bf16.vlgmr.msra.gmra.mrb[4].mxu0 %v2035_v25 }
 0x34a   :  { %v2508_v32 = vpop.f32.mrb[4].mxu0 }
 0x34b   :  { %v3068_v33 = vadd.f32 %v2508_v32, %v2106_v31  ;;  %v2510_v35 = vpop.f32.mrb[5].mxu0 }
 0x34c   :  { %v3069_v36 = vadd.f32 %v2510_v35, %v2110_v49  ;;  %v2512_v38 = vpop.f32.mrb[6].mxu0 }
 0x34d   :  { %v2515_v39 = vmax.f32 %v3068_v33, 0.0  ;;  %v2513_v40 = vpop.f32.mrb[7].mxu0 }
 0x34e   :  { %v2516_v41 = vmax.f32 %v3069_v36, 0.0 }
 0x34f   :  { %v2517_v42 = vpack.c.bf16 %v2515_v39, %v2515_v39 }
 0x350   :  { %v2518_v16 = vpack.c.bf16 %v2516_v41, %v2516_v41 }
 0x352   :  { %2686 = vmatprep.mubr.bf16.mxu1 %v2518_v16 }
 0x353   :  { %2687 = vmatmul.mubr.bf16.vlgmr.msra.gmra.mrb[8].mxu1 %v2517_v42 }
 0x426   :  { %v3056_v24 = vpop.f32.mrb[8].mxu1 }
 0x427   :  { %v3057_v45 = vpop.f32.mrb[9].mxu1 }
 0x428   :  { %v3058_v30 = vadd.f32 %v3057_v45, %v3056_v24  ;;  %v3059_v10 = vpop.f32.mrb[10].mxu1 }
 0x429   :  { %v3060_v43 = vpop.f32.mrb[11].mxu1 }
 0x42a   :  { %v2689_v12 = vadd.f32 %v3058_v30, %v3023_v44 }
 0x42c   :  { %2695 = vst.msk [vmem:[%s3964_s7] sm:$0x3] %vm2694_vm0, %v2689_v12 }
 0x42d   :  { %2700 = vsyncpa [#allocation3], 1 }
 0x42e   :  { %2701 = vsyncpa [#allocation5], 1 }
 0x42f   :  { %2702 = vsyncpa [#allocation8], 1 }

// kernel: pointnet_forward.13
= control target key start
LH: loop header
LB: loop body
LE: loop exit
PB: predicated region body
PF: predicated region fallthrough
CT: control target
= control target key end

     0   :  { %8 = vsyncpa [#allocation3], 0  ;;  %s576_s12 = smov 0   ;;  %s578_s13 = smov 0   ;;  %s660_s0 = inlined_call_operand.vmem [shape: f32[2,16,3], index: 0, kind: input, shape index: {}]   ;;  %s661_s1 = inlined_call_operand.vmem [shape: bf16[2,3,64], index: 1, kind: input, shape index: {}]   ;;  %s662_s2 = inlined_call_operand.hbm [shape: f32[1,64], index: 2, kind: input, shape index: {}]   ;;  %s663_s3 = inlined_call_operand.vmem [shape: bf16[2,16,64], index: 3, kind: output, shape index: {}]  }
   0x1   :  { %s580_s14 = smov 0  }
   0x2 LB: > { %s428_s15 = sadd.s32 4294967295, %s550_s14   ;;  %s26_s16 = sadd.s32 1, %s546_s13  ;;  %s550_s14 = sphi %s580_s14, %s14_s14   ;;  %s546_s13 = sphi %s578_s13, %s673_s13   ;;  %s542_s12 = sphi %s576_s12, %s672_s12  }
   0x3   : > { %p28_p0 = scmp.ge.s32.totalorder %s26_s16, 2  ;;  %p430_p1 = scmp.ge.s32.totalorder %s550_s14, 1 }
   0x4   : > { %p134_p2 = scmp.lt.s32.totalorder %s550_s14, 3  ;;  %p601_p4 = scmp.eq.s32.totalorder %s428_s15, 0 }
   0x5   : > { %s675_s16 = smov (%p28_p0, %s26_s16), 0  ;;  %s552_s19 = smov [#allocation2]  }
   0x6   : > { %p597_p3 = pnand %p430_p1, %p134_p2  ;;  %s147_s20 = sshll.u32 %s552_s19, 4  ;;  %s148_s20 = int_to_ptr.vmem [resolvable:$true] %s147_s20 }
   0x7   : > { %s668_s18 = scalar_select %p601_p4, 1, 0 }
   0x8   : > { %s667_s17 = scalar_select %p597_p3, 1, 0 }
   0x9   : > { %p462_p5 = pneg %p597_p3  ;;  %s496_s24 = scalar_lea.hbm %s662_s2, 16 }
   0xa   : > { %p497_p7 = scmp.ne.s32.totalorder %s662_s2, %s496_s24  ;;  %p503_p11 = scmp.lt.u32.totalorder %s496_s24, %s662_s2 }
   0xb   : > { %p609_p6 = pnand %p601_p4, %p462_p5 }
   0xd   : > { %p498_p8 = pneg %p609_p6 }
   0xf   : > { %p499_p9 = pnand %p498_p8, %p497_p7 }
  0x11   : > { %p500_p10 = pneg %p499_p9 }
  0x13   : > { %p505_p12 = pnand %p503_p11, %p500_p10 }
  0x15   : > { %508 = shalt.err (!%p505_p12)
}
  0x16   : > { %s509_s29 = scalar_lea.vmem %s148_s20, 16  ;;  %s516_s30 = scalar_lea.vmem %s148_s20, 32 }
  0x17   : > { %p510_p13 = scmp.ne.s32.totalorder %s148_s20, %s509_s29  ;;  %p517_p2 = scmp.lt.s32.totalorder %s148_s20, %s148_s20 }
  0x18   : > { %p518_p5 = scmp.lt.s32.totalorder %s516_s30, %s509_s29 }
  0x19   : > { %p512_p0 = pnand %p510_p13, %p498_p8 }
  0x1a   : > { %p519_p4 = por %p518_p5, %p517_p2 }
  0x1b   : > { %p513_p1 = pneg %p512_p0 }
  0x1d   : > { %p520_p3 = pnand %p519_p4, %p513_p1 }
  0x1f   : > { %523 = shalt.err (!%p520_p3)
}
  0x20   : > { %465 = dma.hbm_to_vmem [thread:$0]  (!%p609_p6), %s662_s2, 16, %s148_s20, [#allocation3]  }
  0x21   : > { %p670_p7 = scmp.ne.s32.totalorder %s667_s17, 0 }
  0x22   : > { %p671_p9 = scmp.ne.s32.totalorder (!%p670_p7), %s668_s18, 0 }
  0x23   : > { %180 = sbr.rel (%p670_p7) target bundleno = 275 (0x113), region = 32 }
  0x2a   : > { %537 = dma.done.wait (%p671_p9), [#allocation3], 16  }
  0x2b   : > { %539 = vsyncadd (%p671_p9), [#allocation3], 4294967280  ;;  %p217_p8 = scmp.lt.s32.totalorder %s542_s12, 1  ;;  %vm256_vm0 = vcmask 1040384   ;;  %v553_v0 = vmov 0.0   ;;  %vm257_vm1 = vcmask 1041408  }
  0x2c   : > { %452 = vmatprep.subr.bf16.mxu0 %v553_v0  ;;  %v554_v1 = vmov 65535   ;;  %vm555_vm2 = vmmov 0   ;;  %vm252_vm3 = vcmask 23552   ;;  %v440_v9 = vld [vmem:[#allocation2] ss:$0 sm:$0xff]  ;;  %vm314_vm4 = vcmask 519168  }
  0x2d   : > { %s677_s12 = smov (!%p217_p8, %s542_s12), 1  ;;  %v258_v2 = vsel %vm256_vm0, 4294967295, %v554_v1  ;;  %454 = vmatprep.mubr.msk.bf16.mxu0 %vm555_vm2, %v553_v0 }
  0x2e   : > { %s437_s6 = sshll.u32 %s677_s12, 1  ;;  %v259_v3 = vsel %vm257_vm1, %v258_v2, 0  ;;  %s446_s10 = sshll.u32 %s677_s12, 4 }
  0x2f   : > { %s229_s9 = scalar_lea.vmem %s661_s1, %s437_s6  ;;  %s224_s17 = scalar_lea.vmem %s660_s0, %s446_s10 }
  0x30   : > { %v244_v4 = vld [vmem:[%s229_s9] sm:$0x3]  ;;  %v242_v7 = vld [vmem:[%s224_s17 + $0x8] sm:$0xff]  ;;  %s447_s18 = sshll.u32 %s677_s12, 3 }
  0x31   : > { %v261_v5 = vand.u32 %v259_v3, %v244_v4  ;;  %v241_v6 = vld [vmem:[%s224_s17] sm:$0xff]  ;;  %s238_s21 = scalar_lea.vmem %s663_s3, %s447_s18 }
  0x32   : > { %v243_v8 = vpack.c.bf16 %v242_v7, %v241_v6 }
  0x33   : > { %453 = vmatpush3.bf16.msra.mxu0 %v261_v5 }
  0x36   : > { %455 = vmatmul.mubr.msk.bf16.vlgmr.msra.gmra.mrb[0].mxu0 %vm252_vm3, %v243_v8 }
 0x109   : > { %v297_v10 = vpop.f32.mrb[0].mxu0 }
 0x10a   : > { %v298_v11 = vadd.f32 %v440_v9, %v297_v10  ;;  %v456_v12 = vpop.f32.mrb[1].mxu0 }
 0x10b   : > { %v300_v13 = vpop.f32.mrb[2].mxu0 }
 0x10c   : > { %v304_v14 = vmax.f32 %v298_v11, 0.0  ;;  %v301_v15 = vadd.f32 %v440_v9, %v300_v13  ;;  %v457_v16 = vpop.f32.mrb[3].mxu0 }
 0x10e   : > { %v448_v17 = vpack.c.bf16 %v304_v14, %v304_v14  ;;  %v305_v18 = vmax.f32 %v301_v15, 0.0 }
 0x110   : > { %315 = vst.msk [vmem:[%s238_s21] sm:$0xf] %vm314_vm4, %v448_v17  ;;  %v449_v19 = vpack.c.bf16 %v305_v18, %v305_v18 }
 0x112   : > { %316 = vst.msk [vmem:[%s238_s21 + $0x4] sm:$0xf] %vm314_vm4, %v449_v19 }
 0x113 PF: > { %s14_s14 = sadd.s32 1, %s550_s14   ;;  %s672_s12 = smov %s546_s13 }
 0x114   : > { %p11_p3 = scmp.ge.s32.totalorder %s14_s14, 4   ;;  %s673_s13 = smov %s675_s16 }
 0x116   :  { %13 = sbr.rel (!%p11_p3) target bundleno = 2 (0x2), region = 70 }
 0x11d   :  { %347 = vsyncpa [#allocation3], 1 }
 0x11e   :  { %349 = vsyncpa [#allocation3 + $0x1], 1 }

// kernel: pointnet_forward.17
= control target key start
LH: loop header
LB: loop body
LE: loop exit
PB: predicated region body
PF: predicated region fallthrough
CT: control target
= control target key end

     0   :  { %s559_s12 = smov 0   ;;  %s561_s13 = smov 0   ;;  %s602_s0 = inlined_call_operand.vmem [shape: bf16[2,16,64], index: 0, kind: input, shape index: {}]   ;;  %s603_s1 = inlined_call_operand.vmem [shape: bf16[2,64,128], index: 1, kind: input, shape index: {}]   ;;  %s604_s2 = inlined_call_operand.vmem [shape: f32[1,128], index: 2, kind: input, shape index: {}]   ;;  %s605_s3 = inlined_call_operand.vmem [shape: bf16[2,16,128], index: 3, kind: output, shape index: {}]  }
   0x1   :  { %s563_s14 = smov 0  }
   0x2 LB: > { %s25_s15 = sadd.s32 1, %s531_s13  ;;  %p437_p0 = scmp.ge.s32.totalorder %s535_s14, 1  ;;  %s535_s14 = sphi %s563_s14, %s13_s14   ;;  %s531_s13 = sphi %s561_s13, %s607_s13   ;;  %s527_s12 = sphi %s559_s12, %s606_s12  }
   0x3   : > { %p27_p1 = scmp.ge.s32.totalorder %s25_s15, 2  ;;  %p168_p2 = scmp.lt.s32.totalorder %s535_s14, 3 }
   0x5   : > { %s609_s15 = smov (%p27_p1, %s25_s15), 0  ;;  %p169_p3 = pnand %p437_p0, %p168_p2 }
   0x6   : > { %p206_p4 = scmp.lt.s32.totalorder (!%p169_p3), %s527_s12, 1  ;;  %v537_v0 = vmov (!%p169_p3), 0.0   ;;  %vm538_vm0 = vmmov (!%p169_p3), 0   ;;  %vm277_vm1 = vcmask (!%p169_p3), 523264   ;;  %v444_v6 = vld [vmem:[%s604_s2] ss:$0 sm:$0xff] (!%p169_p3) }
   0x7   : > { %172 = sbr.rel (%p169_p3) target bundleno = 254 (0xfe), region = 32  ;;  %470 = vmatprep.subr.bf16.mxu0 (!%p169_p3), %v537_v0  ;;  %478 = vmatprep.mubr.msk.bf16.mxu0 (!%p169_p3), %vm538_vm0, %v537_v0 }
   0xe   : > { %s611_s12 = smov (!%p206_p4, %s527_s12), 1 }
   0xf   : > { %s456_s16 = sshll.u32 %s611_s12, 5  ;;  %s455_s20 = sshll.u32 %s611_s12, 3 }
  0x10   : > { %s219_s19 = scalar_lea.vmem %s603_s1, %s456_s16  ;;  %s213_s23 = scalar_lea.vmem %s602_s0, %s455_s20 }
  0x11   : > { %v508_v1 = vld [vmem:[%s219_s19] sm:$0xff]   ;;  %v509_v2 = vld [vmem:[%s219_s19 + $0x8] sm:$0xff]   ;;  %v510_v3 = vld [vmem:[%s219_s19 + $0x10] sm:$0xff]   ;;  %s228_s28 = scalar_lea.vmem %s605_s3, %s455_s20 }
  0x12   : > { %471 = vmatpush3.bf16.msra.mxu0 %v508_v1  ;;  %v511_v4 = vld [vmem:[%s219_s19 + $0x18] sm:$0xff]   ;;  %v512_v5 = vld [vmem:[%s213_s23] sm:$0xff]  }
  0x13   : > { %472 = vmatprep.subr.bf16.mxu0 %v537_v0 }
  0x16   : > { %473 = vmatpush3.bf16.msra.mxu0 %v509_v2 }
  0x17   : > { %474 = vmatprep.subr.bf16.mxu0 %v537_v0 }
  0x1a   : > { %475 = vmatpush3.bf16.msra.mxu0 %v510_v3 }
  0x1b   : > { %476 = vmatprep.subr.bf16.mxu0 %v537_v0 }
  0x1e   : > { %477 = vmatpush3.bf16.msra.mxu0 %v511_v4 }
  0x21   : > { %479 = vmatmul.mubr.msk.bf16.vlgmr.msra.gmra.mrb[0].mxu0 %vm277_vm1, %v512_v5 }
  0xf4   : > { %v315_v7 = vpop.f32.mrb[0].mxu0 }
  0xf5   : > { %v316_v8 = vadd.f32 %v444_v6, %v315_v7  ;;  %v480_v9 = vpop.f32.mrb[1].mxu0 }
  0xf6   : > { %v318_v10 = vpop.f32.mrb[2].mxu0 }
  0xf7   : > { %v319_v11 = vadd.f32 %v444_v6, %v318_v10  ;;  %v481_v12 = vpop.f32.mrb[3].mxu0  ;;  %v322_v13 = vmax.f32 %v316_v8, 0.0 }
  0xf9   : > { %v323_v14 = vmax.f32 %v319_v11, 0.0 }
  0xfb   : > { %v463_v15 = vpack.c.bf16 %v323_v14, %v322_v13 }
  0xfd   : > { %464 = vst [vmem:[%s228_s28] sm:$0xff] %v463_v15  }
  0xfe PF: > { %s13_s14 = sadd.s32 1, %s535_s14   ;;  %s606_s12 = smov %s531_s13 }
  0xff   : > { %p10_p5 = scmp.ge.s32.totalorder %s13_s14, 4   ;;  %s607_s13 = smov %s609_s15 }
 0x101   :  { %12 = sbr.rel (!%p10_p5) target bundleno = 2 (0x2), region = 65 }

// kernel: pointnet_forward.18
= control target key start
LH: loop header
LB: loop body
LE: loop exit
PB: predicated region body
PF: predicated region fallthrough
CT: control target
= control target key end

     0   :  { %s1229_s12 = smov 0   ;;  %s1231_s13 = smov 0   ;;  %s1507_s0 = inlined_call_operand.vmem [shape: bf16[2,16,128], index: 0, kind: input, shape index: {}]   ;;  %s1508_s1 = inlined_call_operand.vmem [shape: bf16[128,1024], index: 1, kind: input, shape index: {}]   ;;  %s1509_s2 = inlined_call_operand.vmem [shape: f32[1,1024], index: 2, kind: input, shape index: {}]   ;;  %s1510_s3 = inlined_call_operand.vmem [shape: f32[2,1,1024], index: 3, kind: output, shape index: {}]  }
   0x1   :  { %s1233_s14 = smov 0  }
   0x2 LB: > { %s25_s15 = sadd.s32 1, %s1201_s13  ;;  %p1084_p0 = scmp.ge.s32.totalorder %s1205_s14, 1  ;;  %s1205_s14 = sphi %s1233_s14, %s13_s14   ;;  %s1201_s13 = sphi %s1231_s13, %s1512_s13   ;;  %s1197_s12 = sphi %s1229_s12, %s1511_s12  }
   0x3   : > { %p27_p1 = scmp.ge.s32.totalorder %s25_s15, 2  ;;  %p156_p2 = scmp.lt.s32.totalorder %s1205_s14, 3 }
   0x5   : > { %s1514_s15 = smov (%p27_p1, %s25_s15), 0  ;;  %p157_p3 = pnand %p1084_p0, %p156_p2 }
   0x6   : > { %v200_v0 = vld [vmem:[%s1508_s1] sm:$0xff] (!%p157_p3)  ;;  %v201_v2 = vld [vmem:[%s1508_s1 + $0x8] sm:$0xff] (!%p157_p3)  ;;  %p184_p4 = scmp.lt.s32.totalorder (!%p157_p3), %s1197_s12, 1  ;;  %v1207_v8 = vmov (!%p157_p3), 0   ;;  %v202_v63 = vld [vmem:[%s1508_s1 + $0x10] sm:$0xff] (!%p157_p3) }
   0x7   : > { %160 = sbr.rel (%p157_p3) target bundleno = 316 (0x13c), region = 32  ;;  %v204_v1 = vld [vmem:[%s1508_s1 + $0x20] sm:$0xff] (!%p157_p3)  ;;  %v205_v4 = vld [vmem:[%s1508_s1 + $0x28] sm:$0xff] (!%p157_p3)  ;;  %664 = vmatprep.mubr.bf16.mxu0 (!%p157_p3), %v1207_v8  ;;  %707 = vmatprep.mubr.bf16.mxu1 (!%p157_p3), %v1207_v8 }
   0x8   : > { %v1090_v3 = vcombine.high (!%p157_p3), %v200_v0, %v204_v1  ;;  %v1089_v5 = vcombine.low (!%p157_p3), %v200_v0, %v204_v1  ;;  %v208_v6 = vld [vmem:[%s1508_s1 + $0x40] sm:$0xff] (!%p157_p3)  ;;  %v1092_v9 = vcombine.high (!%p157_p3), %v201_v2, %v205_v4  ;;  %v1091_v10 = vcombine.low (!%p157_p3), %v201_v2, %v205_v4  ;;  %v209_v12 = vld [vmem:[%s1508_s1 + $0x48] sm:$0xff] (!%p157_p3)  ;;  %v206_v0 = vld [vmem:[%s1508_s1 + $0x30] sm:$0xff] (!%p157_p3) }
   0x9   : > { %v212_v7 = vld [vmem:[%s1508_s1 + $0x60] sm:$0xff] (!%p157_p3)  ;;  %v213_v13 = vld [vmem:[%s1508_s1 + $0x68] sm:$0xff] (!%p157_p3)  ;;  %v203_v1 = vld [vmem:[%s1508_s1 + $0x18] sm:$0xff] (!%p157_p3) }
   0xa   : > { %v1098_v11 = vcombine.high (!%p157_p3), %v208_v6, %v212_v7  ;;  %v216_v14 = vld [vmem:[%s1508_s1 + $0x80] sm:$0xff] (!%p157_p3)  ;;  %632 = vmatprep.subr.bf16.mxu0 (!%p157_p3), %v1090_v3  ;;  %v1100_v15 = vcombine.high (!%p157_p3), %v209_v12, %v213_v13  ;;  %v217_v17 = vld [vmem:[%s1508_s1 + $0x88] sm:$0xff] (!%p157_p3)  ;;  %675 = vmatprep.subr.bf16.mxu1 (!%p157_p3), %v1092_v9  ;;  %v1097_v19 = vcombine.low (!%p157_p3), %v208_v6, %v212_v7  ;;  %v207_v2 = vld [vmem:[%s1508_s1 + $0x38] sm:$0xff] (!%p157_p3) }
   0xb   : > { %v220_v16 = vld [vmem:[%s1508_s1 + $0xa0] sm:$0xff] (!%p157_p3)  ;;  %v221_v18 = vld [vmem:[%s1508_s1 + $0xa8] sm:$0xff] (!%p157_p3)  ;;  %633 = vmatpush1.bf16.msra.mxu0 (!%p157_p3), %v1089_v5  ;;  %676 = vmatpush1.bf16.msra.mxu1 (!%p157_p3), %v1091_v10  ;;  %v1099_v20 = vcombine.low (!%p157_p3), %v209_v12, %v213_v13  ;;  %v1094_v5 = vcombine.high (!%p157_p3), %v202_v63, %v206_v0  ;;  %v1096_v6 = vcombine.high (!%p157_p3), %v203_v1, %v207_v2  ;;  %v210_v7 = vld [vmem:[%s1508_s1 + $0x50] sm:$0xff] (!%p157_p3) }
   0xc   : > { %634 = vmatprep.subr.bf16.mxu0 (!%p157_p3), %v1098_v11  ;;  %v1106_v21 = vcombine.high (!%p157_p3), %v216_v14, %v220_v16  ;;  %677 = vmatprep.subr.bf16.mxu1 (!%p157_p3), %v1100_v15  ;;  %v1108_v22 = vcombine.high (!%p157_p3), %v217_v17, %v221_v18  ;;  %v224_v23 = vld [vmem:[%s1508_s1 + $0xc0] sm:$0xff] (!%p157_p3)  ;;  %v225_v25 = vld [vmem:[%s1508_s1 + $0xc8] sm:$0xff] (!%p157_p3)  ;;  %v1105_v27 = vcombine.low (!%p157_p3), %v216_v14, %v220_v16  ;;  %v214_v9 = vld [vmem:[%s1508_s1 + $0x70] sm:$0xff] (!%p157_p3) }
   0xd   : > { %v228_v24 = vld [vmem:[%s1508_s1 + $0xe0] sm:$0xff] (!%p157_p3)  ;;  %v229_v26 = vld [vmem:[%s1508_s1 + $0xe8] sm:$0xff] (!%p157_p3)  ;;  %v1107_v28 = vcombine.low (!%p157_p3), %v217_v17, %v221_v18  ;;  %v211_v11 = vld [vmem:[%s1508_s1 + $0x58] sm:$0xff] (!%p157_p3)  ;;  %v1093_v13 = vcombine.low (!%p157_p3), %v202_v63, %v206_v0  ;;  %v1095_v14 = vcombine.low (!%p157_p3), %v203_v1, %v207_v2  ;;  %v1102_v15 = vcombine.high (!%p157_p3), %v210_v7, %v214_v9 }
   0xe   : > { %s1516_s12 = smov (!%p184_p4, %s1197_s12), 1  ;;  %v1114_v29 = vcombine.high %v224_v23, %v228_v24  ;;  %v1116_v30 = vcombine.high %v225_v25, %v229_v26  ;;  %v232_v31 = vld [vmem:[%s1508_s1 + $0x100] sm:$0xff]  ;;  %v233_v33 = vld [vmem:[%s1508_s1 + $0x108] sm:$0xff]  ;;  %v1113_v35 = vcombine.low %v224_v23, %v228_v24  ;;  %v1115_v36 = vcombine.low %v225_v25, %v229_v26  ;;  %v215_v12 = vld [vmem:[%s1508_s1 + $0x78] sm:$0xff] }
   0xf   : > { %s1155_s21 = sshll.u32 %s1516_s12, 3  ;;  %635 = vmatpush1.bf16.msra.mxu0 %v1097_v19  ;;  %678 = vmatpush1.bf16.msra.mxu1 %v1099_v20  ;;  %v236_v32 = vld [vmem:[%s1508_s1 + $0x120] sm:$0xff]  ;;  %v237_v34 = vld [vmem:[%s1508_s1 + $0x128] sm:$0xff]  ;;  %v1104_v16 = vcombine.high %v211_v11, %v215_v12  ;;  %v218_v17 = vld [vmem:[%s1508_s1 + $0x90] sm:$0xff]  ;;  %v266_v2 = vlaneseq }
  0x10   : > { %636 = vmatprep.subr.bf16.mxu0 %v1106_v21  ;;  %s1306_s28 = scalar_lea.vmem %s1507_s0, %s1155_s21  ;;  %679 = vmatprep.subr.bf16.mxu1 %v1108_v22  ;;  %v1122_v37 = vcombine.high %v232_v31, %v236_v32  ;;  %v1124_v38 = vcombine.high %v233_v33, %v237_v34  ;;  %v240_v39 = vld [vmem:[%s1508_s1 + $0x140] sm:$0xff]  ;;  %v241_v41 = vld [vmem:[%s1508_s1 + $0x148] sm:$0xff]  ;;  %v1121_v43 = vcombine.low %v232_v31, %v236_v32  ;;  %v222_v18 = vld [vmem:[%s1508_s1 + $0xb0] sm:$0xff]  ;;  %s196_s19 = scalar_lea.vmem %s1510_s3, %s1155_s21 }
  0x11   : > { %v244_v40 = vld [vmem:[%s1508_s1 + $0x160] sm:$0xff]  ;;  %v245_v42 = vld [vmem:[%s1508_s1 + $0x168] sm:$0xff]  ;;  %v1123_v44 = vcombine.low %v233_v33, %v237_v34  ;;  %v219_v19 = vld [vmem:[%s1508_s1 + $0x98] sm:$0xff]  ;;  %v1101_v21 = vcombine.low %v210_v7, %v214_v9  ;;  %v1103_v22 = vcombine.low %v211_v11, %v215_v12  ;;  %v1110_v23 = vcombine.high %v218_v17, %v222_v18 }
  0x12   : > { %v1130_v45 = vcombine.high %v240_v39, %v244_v40  ;;  %v1132_v46 = vcombine.high %v241_v41, %v245_v42  ;;  %v248_v47 = vld [vmem:[%s1508_s1 + $0x180] sm:$0xff]  ;;  %v249_v49 = vld [vmem:[%s1508_s1 + $0x188] sm:$0xff]  ;;  %v1129_v51 = vcombine.low %v240_v39, %v244_v40  ;;  %v1131_v52 = vcombine.low %v241_v41, %v245_v42  ;;  %v223_v20 = vld [vmem:[%s1508_s1 + $0xb8] sm:$0xff] }
  0x13   : > { %637 = vmatpush1.bf16.msra.mxu0 %v1105_v27  ;;  %680 = vmatpush1.bf16.msra.mxu1 %v1107_v28  ;;  %v252_v48 = vld [vmem:[%s1508_s1 + $0x1a0] sm:$0xff]  ;;  %v253_v50 = vld [vmem:[%s1508_s1 + $0x1a8] sm:$0xff]  ;;  %v1112_v24 = vcombine.high %v219_v19, %v223_v20  ;;  %v226_v25 = vld [vmem:[%s1508_s1 + $0xd0] sm:$0xff] }
  0x14   : > { %638 = vmatprep.subr.bf16.mxu0 %v1114_v29  ;;  %681 = vmatprep.subr.bf16.mxu1 %v1116_v30  ;;  %v1138_v53 = vcombine.high %v248_v47, %v252_v48  ;;  %v1140_v54 = vcombine.high %v249_v49, %v253_v50  ;;  %v256_v55 = vld [vmem:[%s1508_s1 + $0x1c0] sm:$0xff]  ;;  %v257_v57 = vld [vmem:[%s1508_s1 + $0x1c8] sm:$0xff]  ;;  %v1137_v59 = vcombine.low %v248_v47, %v252_v48  ;;  %v230_v26 = vld [vmem:[%s1508_s1 + $0xf0] sm:$0xff] }
  0x15   : > { %v260_v56 = vld [vmem:[%s1508_s1 + $0x1e0] sm:$0xff]  ;;  %v261_v58 = vld [vmem:[%s1508_s1 + $0x1e8] sm:$0xff]  ;;  %v1139_v60 = vcombine.low %v249_v49, %v253_v50  ;;  %v227_v27 = vld [vmem:[%s1508_s1 + $0xd8] sm:$0xff]  ;;  %v1109_v29 = vcombine.low %v218_v17, %v222_v18  ;;  %v1111_v30 = vcombine.low %v219_v19, %v223_v20  ;;  %v1118_v31 = vcombine.high %v226_v25, %v230_v26 }
  0x16   : > { %v1146_v61 = vcombine.high %v256_v55, %v260_v56  ;;  %v1148_v62 = vcombine.high %v257_v57, %v261_v58  ;;  %v1145_v3 = vcombine.low %v256_v55, %v260_v56  ;;  %v1147_v4 = vcombine.low %v257_v57, %v261_v58  ;;  %v1375_v10 = vld [vmem:[%s1306_s28] sm:$0xff]   ;;  %v231_v28 = vld [vmem:[%s1508_s1 + $0xf8] sm:$0xff]  ;;  %v234_v33 = vld [vmem:[%s1508_s1 + $0x110] sm:$0xff] }
  0x17   : > { %639 = vmatpush1.bf16.msra.mxu0 %v1113_v35  ;;  %682 = vmatpush1.bf16.msra.mxu1 %v1115_v36  ;;  %v1120_v32 = vcombine.high %v227_v27, %v231_v28  ;;  %v238_v34 = vld [vmem:[%s1508_s1 + $0x130] sm:$0xff]  ;;  %v239_v35 = vld [vmem:[%s1508_s1 + $0x138] sm:$0xff]  ;;  %v1117_v36 = vcombine.low %v226_v25, %v230_v26 }
  0x18   : > { %640 = vmatprep.subr.bf16.mxu0 %v1122_v37  ;;  %683 = vmatprep.subr.bf16.mxu1 %v1124_v38  ;;  %v1119_v37 = vcombine.low %v227_v27, %v231_v28  ;;  %v1126_v38 = vcombine.high %v234_v33, %v238_v34  ;;  %v242_v40 = vld [vmem:[%s1508_s1 + $0x150] sm:$0xff]  ;;  %v243_v42 = vld [vmem:[%s1508_s1 + $0x158] sm:$0xff] }
  0x19   : > { %v246_v41 = vld [vmem:[%s1508_s1 + $0x170] sm:$0xff]  ;;  %v251_v50 = vld [vmem:[%s1508_s1 + $0x198] sm:$0xff] }
  0x1a   : > { %v250_v48 = vld [vmem:[%s1508_s1 + $0x190] sm:$0xff]  ;;  %v259_v58 = vld [vmem:[%s1508_s1 + $0x1d8] sm:$0xff] }
  0x1b   : > { %641 = vmatpush1.bf16.msra.mxu0 %v1121_v43  ;;  %684 = vmatpush1.bf16.msra.mxu1 %v1123_v44  ;;  %v247_v43 = vld [vmem:[%s1508_s1 + $0x178] sm:$0xff]  ;;  %v1125_v44 = vcombine.low %v234_v33, %v238_v34  ;;  %v254_v49 = vld [vmem:[%s1508_s1 + $0x1b0] sm:$0xff] }
  0x1c   : > { %642 = vmatprep.subr.bf16.mxu0 %v1130_v45  ;;  %685 = vmatprep.subr.bf16.mxu1 %v1132_v46  ;;  %v1134_v46 = vcombine.high %v242_v40, %v246_v41  ;;  %v1136_v47 = vcombine.high %v243_v42, %v247_v43  ;;  %v258_v56 = vld [vmem:[%s1508_s1 + $0x1d0] sm:$0xff] }
  0x1d   : > { %v262_v57 = vld [vmem:[%s1508_s1 + $0x1f0] sm:$0xff] }
  0x1e   : > { %v1149_v0 = vcombine.low %v258_v56, %v262_v57 }
  0x1f   : > { %643 = vmatpush1.bf16.msra.mxu0 %v1129_v51  ;;  %686 = vmatpush1.bf16.msra.mxu1 %v1131_v52  ;;  %v255_v51 = vld [vmem:[%s1508_s1 + $0x1b8] sm:$0xff]  ;;  %v1133_v52 = vcombine.low %v242_v40, %v246_v41  ;;  %v1208_v40 = vmov 1966171168  }
  0x20   : > { %644 = vmatprep.subr.bf16.mxu0 %v1138_v53  ;;  %687 = vmatprep.subr.bf16.mxu1 %v1140_v54  ;;  %v1135_v53 = vcombine.low %v243_v42, %v247_v43  ;;  %v1142_v54 = vcombine.high %v250_v48, %v254_v49  ;;  %v1144_v55 = vcombine.high %v251_v50, %v255_v51  ;;  %v902_v41 = vunpack.c.l.s4 %v1208_v40 }
  0x23   : > { %645 = vmatpush1.bf16.msra.mxu0 %v1137_v59  ;;  %688 = vmatpush1.bf16.msra.mxu1 %v1139_v60  ;;  %v263_v59 = vld [vmem:[%s1508_s1 + $0x1f8] sm:$0xff]  ;;  %v1141_v60 = vcombine.low %v250_v48, %v254_v49 }
  0x24   : > { %646 = vmatprep.subr.bf16.mxu0 %v1146_v61  ;;  %689 = vmatprep.subr.bf16.mxu1 %v1148_v62  ;;  %v1143_v61 = vcombine.low %v251_v50, %v255_v51  ;;  %v1150_v62 = vcombine.high %v258_v56, %v262_v57  ;;  %v1152_v63 = vcombine.high %v259_v58, %v263_v59  ;;  %v903_v50 = vunpack.c.0.s8 %v902_v41 }
  0x25   : > { %v1151_v1 = vcombine.low %v259_v58, %v263_v59 }
  0x27   : > { %647 = vmatpush1.bf16.msra.mxu0 %v1145_v3  ;;  %690 = vmatpush1.bf16.msra.mxu1 %v1147_v4  ;;  %v1461_v3 = vshrl.u32 %v266_v2, 7 }
  0x28   : > { %718 = vmatprep.subr.bf16.mxu0 %v1094_v5  ;;  %761 = vmatprep.subr.bf16.mxu1 %v1096_v6  ;;  %v1467_v5 = vld [vmem:[%s1509_s2] sm:$0xff] }
  0x29   : > { %v268_v4 = vsub.s32 0, %v1461_v3  ;;  %v276_v6 = vsub.s32 2, %v1461_v3  ;;  %v272_v7 = vsub.s32 1, %v1461_v3  ;;  %v280_v11 = vsub.s32 3, %v1461_v3 }
  0x2a   : > { %665 = vmatmul.mubr.bf16.vlgmr.msra.gmra.mrb[0].mxu0 %v1375_v10  ;;  %708 = vmatmul.mubr.bf16.vlgmr.msra.gmra.mrb[0].mxu1 %v1375_v10  ;;  %v1477_v59 = vsub.s32 %v903_v50, %v1461_v3  ;;  %v284_v2 = vsub.s32 4, %v1461_v3 }
  0x2b   : > { %719 = vmatpush1.bf16.msra.mxu0 %v1093_v13  ;;  %762 = vmatpush1.bf16.msra.mxu1 %v1095_v14  ;;  %v269_v9 = vrot.slane %v1467_v5, %v268_v4  ;;  %v273_v13 = vrot.slane %v1467_v5, %v272_v7  ;;  %v281_v17 = vrot.slane %v1467_v5, %v280_v11  ;;  %v292_v4 = vsub.s32 6, %v1461_v3 }
  0x2c   : > { %720 = vmatprep.subr.bf16.mxu0 %v1102_v15  ;;  %763 = vmatprep.subr.bf16.mxu1 %v1104_v16  ;;  %v296_v7 = vsub.s32 7, %v1461_v3 }
  0x2d   : > { %750 = vmatprep.mubr.bf16.mxu0 %v1207_v8  ;;  %793 = vmatprep.mubr.bf16.mxu1 %v1207_v8  ;;  %v235_v8 = vld [vmem:[%s1508_s1 + $0x118] sm:$0xff] }
  0x2e   : > { %v1128_v39 = vcombine.high %v235_v8, %v239_v35  ;;  %v1127_v45 = vcombine.low %v235_v8, %v239_v35 }
  0x2f   : > { %721 = vmatpush1.bf16.msra.mxu0 %v1101_v21  ;;  %764 = vmatpush1.bf16.msra.mxu1 %v1103_v22 }
  0x30   : > { %722 = vmatprep.subr.bf16.mxu0 %v1110_v23  ;;  %765 = vmatprep.subr.bf16.mxu1 %v1112_v24 }
  0x33   : > { %723 = vmatpush1.bf16.msra.mxu0 %v1109_v29  ;;  %766 = vmatpush1.bf16.msra.mxu1 %v1111_v30 }
  0x34   : > { %724 = vmatprep.subr.bf16.mxu0 %v1118_v31  ;;  %767 = vmatprep.subr.bf16.mxu1 %v1120_v32 }
  0x37   : > { %725 = vmatpush1.bf16.msra.mxu0 %v1117_v36  ;;  %768 = vmatpush1.bf16.msra.mxu1 %v1119_v37 }
  0x38   : > { %726 = vmatprep.subr.bf16.mxu0 %v1126_v38  ;;  %769 = vmatprep.subr.bf16.mxu1 %v1128_v39 }
  0x3b   : > { %727 = vmatpush1.bf16.msra.mxu0 %v1125_v44  ;;  %770 = vmatpush1.bf16.msra.mxu1 %v1127_v45 }
  0x3c   : > { %728 = vmatprep.subr.bf16.mxu0 %v1134_v46  ;;  %771 = vmatprep.subr.bf16.mxu1 %v1136_v47 }
  0x3f   : > { %729 = vmatpush1.bf16.msra.mxu0 %v1133_v52  ;;  %772 = vmatpush1.bf16.msra.mxu1 %v1135_v53 }
  0x40   : > { %730 = vmatprep.subr.bf16.mxu0 %v1142_v54  ;;  %773 = vmatprep.subr.bf16.mxu1 %v1144_v55 }
  0x43   : > { %731 = vmatpush1.bf16.msra.mxu0 %v1141_v60  ;;  %774 = vmatpush1.bf16.msra.mxu1 %v1143_v61 }
  0x44   : > { %732 = vmatprep.subr.bf16.mxu0 %v1150_v62  ;;  %775 = vmatprep.subr.bf16.mxu1 %v1152_v63 }
  0x47   : > { %733 = vmatpush1.bf16.msra.mxu0 %v1149_v0  ;;  %776 = vmatpush1.bf16.msra.mxu1 %v1151_v1 }
  0x4a   : > { %751 = vmatmul.mubr.bf16.vlgmr.msra.gmra.mrb[4].mxu0 %v1375_v10  ;;  %794 = vmatmul.mubr.bf16.vlgmr.msra.gmra.mrb[4].mxu1 %v1375_v10  ;;  %v277_v10 = vrot.slane %v1467_v5, %v276_v6  ;;  %v288_v6 = vsub.s32 5, %v1461_v3 }
  0xfd   : > { %v666_v12 = vpop.f32.mrb[0].mxu0  ;;  %v709_v15 = vpop.f32.mrb[0].mxu1 }
  0xfe   : > { %v667_v14 = vadd.f32 %v666_v12, %v269_v9  ;;  %v668_v16 = vpop.f32.mrb[1].mxu0  ;;  %v710_v18 = vadd.f32 %v709_v15, %v277_v10  ;;  %v711_v19 = vpop.f32.mrb[1].mxu1  ;;  %v289_v12 = vrot.slane %v1467_v5, %v288_v6  ;;  %v297_v15 = vrot.slane %v1467_v5, %v296_v7 }
  0xff   : > { %v670_v20 = vpop.f32.mrb[2].mxu0  ;;  %v713_v22 = vpop.f32.mrb[2].mxu1  ;;  %v669_v24 = vadd.f32 %v668_v16, %v273_v13  ;;  %v712_v28 = vadd.f32 %v711_v19, %v281_v17 }
 0x100   : > { %v671_v21 = vadd.f32 %v670_v20, %v269_v9  ;;  %v672_v23 = vpop.f32.mrb[3].mxu0  ;;  %v714_v25 = vadd.f32 %v713_v22, %v277_v10  ;;  %v715_v27 = vpop.f32.mrb[3].mxu1  ;;  %v285_v9 = vrot.slane %v1467_v5, %v284_v2  ;;  %v293_v10 = vrot.slane %v1467_v5, %v292_v4 }
 0x101   : > { %v673_v26 = vadd.f32 %v672_v23, %v273_v13  ;;  %v716_v30 = vadd.f32 %v715_v27, %v281_v17 }
 0x102   : > { %v829_v29 = vmax.f32 %v667_v14, %v671_v21  ;;  %v843_v31 = vmax.f32 %v710_v18, %v714_v25 }
 0x103   : > { %v836_v32 = vmax.f32 %v669_v24, %v673_v26  ;;  %v850_v34 = vmax.f32 %v712_v28, %v716_v30 }
 0x104   : > { %v830_v33 = vrot.slane %v829_v29, 4  ;;  %v844_v8 = vrot.slane %v843_v31, 4 }
 0x105   : > { %v837_v35 = vrot.slane %v836_v32, 4  ;;  %v851_v37 = vrot.slane %v850_v34, 4 }
 0x106   : > { %v831_v36 = vmax.f32 %v829_v29, %v830_v33  ;;  %v845_v38 = vmax.f32 %v843_v31, %v844_v8 }
 0x107   : > { %v838_v39 = vmax.f32 %v836_v32, %v837_v35  ;;  %v852_v43 = vmax.f32 %v850_v34, %v851_v37 }
 0x108   : > { %v832_v42 = vrot.slane %v831_v36, 2  ;;  %v846_v44 = vrot.slane %v845_v38, 2 }
 0x109   : > { %v839_v45 = vrot.slane %v838_v39, 2  ;;  %v853_v47 = vrot.slane %v852_v43, 2 }
 0x10a   : > { %v833_v46 = vmax.f32 %v831_v36, %v832_v42  ;;  %v847_v48 = vmax.f32 %v845_v38, %v846_v44 }
 0x10b   : > { %v840_v49 = vmax.f32 %v838_v39, %v839_v45  ;;  %v854_v52 = vmax.f32 %v852_v43, %v853_v47 }
 0x10c   : > { %v834_v51 = vrot.slane %v833_v46, 1  ;;  %v848_v53 = vrot.slane %v847_v48, 1 }
 0x10d   : > { %v841_v54 = vrot.slane %v840_v49, 1  ;;  %v855_v56 = vrot.slane %v854_v52, 1 }
 0x10e   : > { %v835_v55 = vmax.f32 %v833_v46, %v834_v51  ;;  %v849_v57 = vmax.f32 %v847_v48, %v848_v53 }
 0x10f   : > { %v842_v58 = vmax.f32 %v840_v49, %v841_v54  ;;  %v856_v60 = vmax.f32 %v854_v52, %v855_v56 }
 0x111   : > { %v897_v61 = vcombine.low %v835_v55, %v842_v58  ;;  %v898_v62 = vcombine.low %v849_v57, %v856_v60 }
 0x113   : > { %v907_v63 = vrot.slane %v897_v61, %v1477_v59  ;;  %v914_v0 = vrot.slane %v898_v62, %v1477_v59 }
 0x115   : > { %v929_v1 = vcombine.low %v907_v63, %v914_v0 }
 0x117   : > { %v937_v60 = vrot.slane %v929_v1, %v1477_v59 }
 0x11d   : > { %v752_v11 = vpop.f32.mrb[4].mxu0  ;;  %v795_v13 = vpop.f32.mrb[4].mxu1 }
 0x11e   : > { %v754_v14 = vpop.f32.mrb[5].mxu0  ;;  %v797_v16 = vpop.f32.mrb[5].mxu1  ;;  %v753_v18 = vadd.f32 %v752_v11, %v285_v9  ;;  %v796_v22 = vadd.f32 %v795_v13, %v293_v10 }
 0x11f   : > { %v756_v17 = vpop.f32.mrb[6].mxu0  ;;  %v799_v20 = vpop.f32.mrb[6].mxu1  ;;  %v755_v23 = vadd.f32 %v754_v14, %v289_v12  ;;  %v798_v26 = vadd.f32 %v797_v16, %v297_v15 }
 0x120   : > { %v757_v19 = vadd.f32 %v756_v17, %v285_v9  ;;  %v758_v21 = vpop.f32.mrb[7].mxu0  ;;  %v800_v3 = vadd.f32 %v799_v20, %v293_v10  ;;  %v801_v25 = vpop.f32.mrb[7].mxu1 }
 0x121   : > { %v759_v24 = vadd.f32 %v758_v21, %v289_v12  ;;  %v802_v28 = vadd.f32 %v801_v25, %v297_v15 }
 0x122   : > { %v857_v27 = vmax.f32 %v753_v18, %v757_v19  ;;  %v871_v29 = vmax.f32 %v796_v22, %v800_v3 }
 0x123   : > { %v864_v30 = vmax.f32 %v755_v23, %v759_v24  ;;  %v878_v32 = vmax.f32 %v798_v26, %v802_v28 }
 0x124   : > { %v858_v31 = vrot.slane %v857_v27, 4  ;;  %v872_v33 = vrot.slane %v871_v29, 4 }
 0x125   : > { %v865_v5 = vrot.slane %v864_v30, 4  ;;  %v879_v8 = vrot.slane %v878_v32, 4 }
 0x126   : > { %v859_v34 = vmax.f32 %v857_v27, %v858_v31  ;;  %v873_v35 = vmax.f32 %v871_v29, %v872_v33 }
 0x127   : > { %v866_v36 = vmax.f32 %v864_v30, %v865_v5  ;;  %v880_v38 = vmax.f32 %v878_v32, %v879_v8 }
 0x128   : > { %v860_v37 = vrot.slane %v859_v34, 2  ;;  %v874_v39 = vrot.slane %v873_v35, 2 }
 0x129   : > { %v867_v40 = vrot.slane %v866_v36, 2  ;;  %v881_v42 = vrot.slane %v880_v38, 2 }
 0x12a   : > { %v861_v41 = vmax.f32 %v859_v34, %v860_v37  ;;  %v875_v43 = vmax.f32 %v873_v35, %v874_v39 }
 0x12b   : > { %v868_v44 = vmax.f32 %v866_v36, %v867_v40  ;;  %v882_v46 = vmax.f32 %v880_v38, %v881_v42 }
 0x12c   : > { %v862_v45 = vrot.slane %v861_v41, 1  ;;  %v876_v47 = vrot.slane %v875_v43, 1 }
 0x12d   : > { %v869_v48 = vrot.slane %v868_v44, 1  ;;  %v883_v50 = vrot.slane %v882_v46, 1 }
 0x12e   : > { %v863_v49 = vmax.f32 %v861_v41, %v862_v45  ;;  %v877_v51 = vmax.f32 %v875_v43, %v876_v47 }
 0x12f   : > { %v870_v52 = vmax.f32 %v868_v44, %v869_v48  ;;  %v884_v53 = vmax.f32 %v882_v46, %v883_v50 }
 0x131   : > { %v899_v54 = vcombine.low %v863_v49, %v870_v52  ;;  %v900_v55 = vcombine.low %v877_v51, %v884_v53 }
 0x133   : > { %v921_v56 = vrot.slane %v899_v54, %v1477_v59  ;;  %v928_v57 = vrot.slane %v900_v55, %v1477_v59 }
 0x135   : > { %v930_v58 = vcombine.low %v921_v56, %v928_v57 }
 0x137   : > { %v944_v61 = vrot.slane %v930_v58, %v1477_v59 }
 0x139   : > { %v945_v62 = vcombine.low %v937_v60, %v944_v61 }
 0x13b   : > { %947 = vst [vmem:[%s196_s19] sm:$0xff] %v945_v62 }
 0x13c PF: > { %s13_s14 = sadd.s32 1, %s1205_s14   ;;  %s1511_s12 = smov %s1201_s13 }
 0x13d   : > { %p10_p5 = scmp.ge.s32.totalorder %s13_s14, 4   ;;  %s1512_s13 = smov %s1514_s15 }
 0x13f   :  { %12 = sbr.rel (!%p10_p5) target bundleno = 2 (0x2), region = 70 }

// kernel: pointnet_forward.19
= control target key start
LH: loop header
LB: loop body
LE: loop exit
PB: predicated region body
PF: predicated region fallthrough
CT: control target
= control target key end

     0   :  { %v3580_v36 = vmov 1983009808   ;;  %v36_v38 = vlaneseq  ;;  %s4732_s0 = inlined_call_operand.vmem [shape: f32[2,1024], index: 0, kind: input, shape index: {}]   ;;  %s4733_s1 = inlined_call_operand.vmem [shape: bf16[1024,512], index: 1, kind: input, shape index: {}]   ;;  %s4734_s2 = inlined_call_operand.vmem [shape: f32[1,512], index: 2, kind: input, shape index: {}]   ;;  %s4735_s3 = inlined_call_operand.vmem [shape: bf16[512,256], index: 3, kind: input, shape index: {}]   ;;  %s4736_s4 = inlined_call_operand.vmem [shape: f32[1,256], index: 4, kind: input, shape index: {}]   ;;  %s4737_s5 = inlined_call_operand.vmem [shape: bf16[256,2], index: 5, kind: input, shape index: {}]   ;;  %s4738_s6 = inlined_call_operand.vmem [shape: f32[1,2], index: 6, kind: input, shape index: {}]   ;;  %s4739_s7 = inlined_call_operand.hbm [shape: f32[2,2], index: 7, kind: output, shape index: {}]  }
   0x1   :  { %v3054_v0 = vld [vmem:[%s4733_s1 + $0x4] ss:$16 sps:$4 sm:$0xff]   ;;  %v3058_v2 = vld [vmem:[%s4733_s1] ss:$16 sps:$4 sm:$0xff]   ;;  %v34_v37 = vunpack.c.l.s4 %v3580_v36 }
   0x2   :  { %v3056_v1 = vld [vmem:[%s4733_s1 + $0x204] ss:$16 sps:$4 sm:$0xff]   ;;  %1640 = vmatprep.subr.bf16.mxu1 %v3054_v0  ;;  %v3059_v3 = vld [vmem:[%s4733_s1 + $0x200] ss:$16 sps:$4 sm:$0xff]   ;;  %v3739_v43 = vshrl.u32 %v36_v38, 7 }
   0x3   :  { %1681 = vmatprep.subr.bf16.mxu0 %v3056_v1  ;;  %v3060_v4 = vld [vmem:[%s4733_s1 + $0x24] ss:$16 sps:$4 sm:$0xff]   ;;  %1641 = vmatpush1.bf16.msra.mxu1 %v3058_v2  ;;  %v3064_v6 = vld [vmem:[%s4733_s1 + $0x20] ss:$16 sps:$4 sm:$0xff]   ;;  %v35_v42 = vunpack.c.0.s8 %v34_v37  ;;  %v3186_v37 = vld [vmem:[%s4733_s1 + $0xac] ss:$16 sps:$4 sm:$0xff]  }
   0x4   :  { %1682 = vmatpush1.bf16.msra.mxu0 %v3059_v3  ;;  %v3062_v5 = vld [vmem:[%s4733_s1 + $0x224] ss:$16 sps:$4 sm:$0xff]   ;;  %1642 = vmatprep.subr.bf16.mxu1 %v3060_v4  ;;  %v3065_v7 = vld [vmem:[%s4733_s1 + $0x220] ss:$16 sps:$4 sm:$0xff]  }
   0x5   :  { %1683 = vmatprep.subr.bf16.mxu0 %v3062_v5  ;;  %v3066_v8 = vld [vmem:[%s4733_s1 + $0x44] ss:$16 sps:$4 sm:$0xff]   ;;  %v3070_v10 = vld [vmem:[%s4733_s1 + $0x40] ss:$16 sps:$4 sm:$0xff]   ;;  %v3757_v49 = vsub.s32 %v35_v42, %v3739_v43  ;;  %v3914_v42 = vld [vmem:[%s4732_s0 + $0x8] sm:$0xff] }
   0x6   :  { %v3068_v9 = vld [vmem:[%s4733_s1 + $0x244] ss:$16 sps:$4 sm:$0xff]   ;;  %v3071_v11 = vld [vmem:[%s4733_s1 + $0x240] ss:$16 sps:$4 sm:$0xff]  }
   0x7   :  { %1643 = vmatpush1.bf16.msra.mxu1 %v3064_v6  ;;  %v3072_v12 = vld [vmem:[%s4733_s1 + $0x64] ss:$16 sps:$4 sm:$0xff]   ;;  %v3076_v14 = vld [vmem:[%s4733_s1 + $0x60] ss:$16 sps:$4 sm:$0xff]  }
   0x8   :  { %1684 = vmatpush1.bf16.msra.mxu0 %v3065_v7  ;;  %1644 = vmatprep.subr.bf16.mxu1 %v3066_v8  ;;  %v3074_v13 = vld [vmem:[%s4733_s1 + $0x264] ss:$16 sps:$4 sm:$0xff]   ;;  %v3077_v15 = vld [vmem:[%s4733_s1 + $0x260] ss:$16 sps:$4 sm:$0xff]  }
   0x9   :  { %1685 = vmatprep.subr.bf16.mxu0 %v3068_v9  ;;  %v3078_v16 = vld [vmem:[%s4733_s1 + $0x84] ss:$16 sps:$4 sm:$0xff]   ;;  %v3082_v18 = vld [vmem:[%s4733_s1 + $0x80] ss:$16 sps:$4 sm:$0xff]  }
   0xa   :  { %v3080_v17 = vld [vmem:[%s4733_s1 + $0x284] ss:$16 sps:$4 sm:$0xff]   ;;  %v3083_v19 = vld [vmem:[%s4733_s1 + $0x280] ss:$16 sps:$4 sm:$0xff]  }
   0xb   :  { %1645 = vmatpush1.bf16.msra.mxu1 %v3070_v10  ;;  %v3084_v20 = vld [vmem:[%s4733_s1 + $0xa4] ss:$16 sps:$4 sm:$0xff]   ;;  %v3088_v22 = vld [vmem:[%s4733_s1 + $0xa0] ss:$16 sps:$4 sm:$0xff]  }
   0xc   :  { %1686 = vmatpush1.bf16.msra.mxu0 %v3071_v11  ;;  %1646 = vmatprep.subr.bf16.mxu1 %v3072_v12  ;;  %v3086_v21 = vld [vmem:[%s4733_s1 + $0x2a4] ss:$16 sps:$4 sm:$0xff]   ;;  %v3089_v23 = vld [vmem:[%s4733_s1 + $0x2a0] ss:$16 sps:$4 sm:$0xff]  }
   0xd   :  { %1687 = vmatprep.subr.bf16.mxu0 %v3074_v13  ;;  %v3090_v24 = vld [vmem:[%s4733_s1 + $0xc4] ss:$16 sps:$4 sm:$0xff]   ;;  %v3094_v26 = vld [vmem:[%s4733_s1 + $0xc0] ss:$16 sps:$4 sm:$0xff]  }
   0xe   :  { %v3092_v25 = vld [vmem:[%s4733_s1 + $0x2c4] ss:$16 sps:$4 sm:$0xff]   ;;  %v3095_v27 = vld [vmem:[%s4733_s1 + $0x2c0] ss:$16 sps:$4 sm:$0xff]  }
   0xf   :  { %1647 = vmatpush1.bf16.msra.mxu1 %v3076_v14  ;;  %v3096_v28 = vld [vmem:[%s4733_s1 + $0xe4] ss:$16 sps:$4 sm:$0xff]   ;;  %v3100_v30 = vld [vmem:[%s4733_s1 + $0xe0] ss:$16 sps:$4 sm:$0xff]  }
  0x10   :  { %1688 = vmatpush1.bf16.msra.mxu0 %v3077_v15  ;;  %1648 = vmatprep.subr.bf16.mxu1 %v3078_v16  ;;  %v3098_v29 = vld [vmem:[%s4733_s1 + $0x2e4] ss:$16 sps:$4 sm:$0xff]   ;;  %v3101_v31 = vld [vmem:[%s4733_s1 + $0x2e0] ss:$16 sps:$4 sm:$0xff]   ;;  %v3156_v15 = vld [vmem:[%s4733_s1 + $0xc] ss:$16 sps:$4 sm:$0xff]  }
  0x11   :  { %1689 = vmatprep.subr.bf16.mxu0 %v3080_v17  ;;  %v3102_v32 = vld [vmem:[%s4733_s1 + $0x104] ss:$16 sps:$4 sm:$0xff]   ;;  %v3106_v34 = vld [vmem:[%s4733_s1 + $0x100] ss:$16 sps:$4 sm:$0xff]  }
  0x12   :  { %v3104_v33 = vld [vmem:[%s4733_s1 + $0x304] ss:$16 sps:$4 sm:$0xff]   ;;  %v3107_v35 = vld [vmem:[%s4733_s1 + $0x300] ss:$16 sps:$4 sm:$0xff]  }
  0x13   :  { %1649 = vmatpush1.bf16.msra.mxu1 %v3082_v18  ;;  %v3108_v39 = vld [vmem:[%s4733_s1 + $0x124] ss:$16 sps:$4 sm:$0xff]   ;;  %v3112_v41 = vld [vmem:[%s4733_s1 + $0x120] ss:$16 sps:$4 sm:$0xff]  }
  0x14   :  { %1690 = vmatpush1.bf16.msra.mxu0 %v3083_v19  ;;  %1650 = vmatprep.subr.bf16.mxu1 %v3084_v20  ;;  %v3110_v40 = vld [vmem:[%s4733_s1 + $0x324] ss:$16 sps:$4 sm:$0xff]   ;;  %v3113_v44 = vld [vmem:[%s4733_s1 + $0x320] ss:$16 sps:$4 sm:$0xff]   ;;  %v3154_v19 = vld [vmem:[%s4733_s1 + $0x8] ss:$16 sps:$4 sm:$0xff]  }
  0x15   :  { %1691 = vmatprep.subr.bf16.mxu0 %v3086_v21  ;;  %v3114_v45 = vld [vmem:[%s4733_s1 + $0x144] ss:$16 sps:$4 sm:$0xff]   ;;  %v3118_v47 = vld [vmem:[%s4733_s1 + $0x140] ss:$16 sps:$4 sm:$0xff]   ;;  %v3162_v21 = vld [vmem:[%s4733_s1 + $0x2c] ss:$16 sps:$4 sm:$0xff]  }
  0x16   :  { %v3116_v46 = vld [vmem:[%s4733_s1 + $0x344] ss:$16 sps:$4 sm:$0xff]   ;;  %v3119_v48 = vld [vmem:[%s4733_s1 + $0x340] ss:$16 sps:$4 sm:$0xff]  }
  0x17   :  { %1651 = vmatpush1.bf16.msra.mxu1 %v3088_v22  ;;  %v3120_v50 = vld [vmem:[%s4733_s1 + $0x164] ss:$16 sps:$4 sm:$0xff]   ;;  %v3124_v53 = vld [vmem:[%s4733_s1 + $0x160] ss:$16 sps:$4 sm:$0xff]  }
  0x18   :  { %1692 = vmatpush1.bf16.msra.mxu0 %v3089_v23  ;;  %1652 = vmatprep.subr.bf16.mxu1 %v3090_v24  ;;  %v3122_v51 = vld [vmem:[%s4733_s1 + $0x364] ss:$16 sps:$4 sm:$0xff]   ;;  %v3125_v56 = vld [vmem:[%s4733_s1 + $0x360] ss:$16 sps:$4 sm:$0xff]   ;;  %v3160_v23 = vld [vmem:[%s4733_s1 + $0x28] ss:$16 sps:$4 sm:$0xff]  }
  0x19   :  { %1693 = vmatprep.subr.bf16.mxu0 %v3092_v25  ;;  %v28_v52 = vld [vmem:[%s4732_s0] sm:$0xff]  ;;  %v3168_v25 = vld [vmem:[%s4733_s1 + $0x4c] ss:$16 sps:$4 sm:$0xff]  }
  0x1a   :  { %v39_v54 = vrot.slane %v28_v52, %v3757_v49  ;;  %v32_v55 = vcombine.high %v28_v52, %v28_v52  ;;  %v3126_v57 = vld [vmem:[%s4733_s1 + $0x184] ss:$16 sps:$4 sm:$0xff]   ;;  %v3130_v61 = vld [vmem:[%s4733_s1 + $0x180] ss:$16 sps:$4 sm:$0xff]  }
  0x1b   :  { %1653 = vmatpush1.bf16.msra.mxu1 %v3094_v26  ;;  %v3128_v58 = vld [vmem:[%s4733_s1 + $0x384] ss:$16 sps:$4 sm:$0xff]   ;;  %v3131_v0 = vld [vmem:[%s4733_s1 + $0x380] ss:$16 sps:$4 sm:$0xff]  }
  0x1c   :  { %1694 = vmatpush1.bf16.msra.mxu0 %v3095_v27  ;;  %1654 = vmatprep.subr.bf16.mxu1 %v3096_v28  ;;  %v47_v59 = vcombine.high %v39_v54, %v39_v54  ;;  %v46_v60 = vrot.slane %v32_v55, %v3757_v49  ;;  %v3132_v1 = vld [vmem:[%s4733_s1 + $0x1a4] ss:$16 sps:$4 sm:$0xff]   ;;  %v3136_v4 = vld [vmem:[%s4733_s1 + $0x1a0] ss:$16 sps:$4 sm:$0xff]   ;;  %v3833_v16 = vpack.c.bf16 %v39_v54, %v39_v54  ;;  %v3166_v27 = vld [vmem:[%s4733_s1 + $0x48] ss:$16 sps:$4 sm:$0xff]  }
  0x1d   :  { %1695 = vmatprep.subr.bf16.mxu0 %v3098_v29  ;;  %v3134_v2 = vld [vmem:[%s4733_s1 + $0x3a4] ss:$16 sps:$4 sm:$0xff]   ;;  %v3137_v5 = vld [vmem:[%s4733_s1 + $0x3a0] ss:$16 sps:$4 sm:$0xff]   ;;  %v3174_v29 = vld [vmem:[%s4733_s1 + $0x6c] ss:$16 sps:$4 sm:$0xff]  }
  0x1e   :  { %v75_v62 = vpack.c.bf16 %v47_v59, %v47_v59  ;;  %v48_v63 = vcombine.high %v46_v60, %v46_v60  ;;  %v3138_v6 = vld [vmem:[%s4733_s1 + $0x1c4] ss:$16 sps:$4 sm:$0xff]   ;;  %v3142_v8 = vld [vmem:[%s4733_s1 + $0x1c0] ss:$16 sps:$4 sm:$0xff]   ;;  %v3838_v18 = vpack.c.bf16 %v46_v60, %v46_v60  ;;  %v3204_v55 = vld [vmem:[%s4733_s1 + $0x10c] ss:$16 sps:$4 sm:$0xff]  }
  0x1f   :  { %1655 = vmatpush1.bf16.msra.mxu1 %v3100_v30  ;;  %v3140_v7 = vld [vmem:[%s4733_s1 + $0x3c4] ss:$16 sps:$4 sm:$0xff]   ;;  %v3143_v9 = vld [vmem:[%s4733_s1 + $0x3c0] ss:$16 sps:$4 sm:$0xff]   ;;  %v3210_v59 = vld [vmem:[%s4733_s1 + $0x12c] ss:$16 sps:$4 sm:$0xff]  }
  0x20   :  { %1696 = vmatpush1.bf16.msra.mxu0 %v3101_v31  ;;  %1656 = vmatprep.subr.bf16.mxu1 %v3102_v32  ;;  %v3794_v3 = vpack.c.bf16 %v48_v63, %v48_v63  ;;  %v3144_v10 = vld [vmem:[%s4733_s1 + $0x1e4] ss:$16 sps:$4 sm:$0xff]   ;;  %v3148_v12 = vld [vmem:[%s4733_s1 + $0x1e0] ss:$16 sps:$4 sm:$0xff]   ;;  %v3172_v31 = vld [vmem:[%s4733_s1 + $0x68] ss:$16 sps:$4 sm:$0xff]  }
  0x21   :  { %1697 = vmatprep.subr.bf16.mxu0 %v3104_v33  ;;  %1672 = vmatprep.mubr.bf16.mxu1 %v75_v62  ;;  %v3146_v11 = vld [vmem:[%s4733_s1 + $0x3e4] ss:$16 sps:$4 sm:$0xff]   ;;  %v3149_v13 = vld [vmem:[%s4733_s1 + $0x3e0] ss:$16 sps:$4 sm:$0xff]   ;;  %v3180_v33 = vld [vmem:[%s4733_s1 + $0x8c] ss:$16 sps:$4 sm:$0xff]  }
  0x22   :  { %1713 = vmatprep.mubr.bf16.mxu0 %v3794_v3  ;;  %v3153_v14 = vld [vmem:[%s4733_s1 + $0x404] ss:$16 sps:$4 sm:$0xff]   ;;  %v3151_v17 = vld [vmem:[%s4733_s1 + $0x400] ss:$16 sps:$4 sm:$0xff]   ;;  %v3216_v63 = vld [vmem:[%s4733_s1 + $0x14c] ss:$16 sps:$4 sm:$0xff]  }
  0x23   :  { %1657 = vmatpush1.bf16.msra.mxu1 %v3106_v34  ;;  %v3159_v20 = vld [vmem:[%s4733_s1 + $0x424] ss:$16 sps:$4 sm:$0xff]   ;;  %v3157_v22 = vld [vmem:[%s4733_s1 + $0x420] ss:$16 sps:$4 sm:$0xff]  }
  0x24   :  { %1698 = vmatpush1.bf16.msra.mxu0 %v3107_v35  ;;  %1658 = vmatprep.subr.bf16.mxu1 %v3108_v39  ;;  %v3165_v24 = vld [vmem:[%s4733_s1 + $0x444] ss:$16 sps:$4 sm:$0xff]   ;;  %v3163_v26 = vld [vmem:[%s4733_s1 + $0x440] ss:$16 sps:$4 sm:$0xff]   ;;  %v3178_v35 = vld [vmem:[%s4733_s1 + $0x88] ss:$16 sps:$4 sm:$0xff]  }
  0x25   :  { %1699 = vmatprep.subr.bf16.mxu0 %v3110_v40  ;;  %v3171_v28 = vld [vmem:[%s4733_s1 + $0x464] ss:$16 sps:$4 sm:$0xff]   ;;  %v3169_v30 = vld [vmem:[%s4733_s1 + $0x460] ss:$16 sps:$4 sm:$0xff]   ;;  %v3184_v39 = vld [vmem:[%s4733_s1 + $0xa8] ss:$16 sps:$4 sm:$0xff]  }
  0x26   :  { %v3177_v32 = vld [vmem:[%s4733_s1 + $0x484] ss:$16 sps:$4 sm:$0xff]   ;;  %v3175_v34 = vld [vmem:[%s4733_s1 + $0x480] ss:$16 sps:$4 sm:$0xff]  }
  0x27   :  { %1659 = vmatpush1.bf16.msra.mxu1 %v3112_v41  ;;  %v3183_v36 = vld [vmem:[%s4733_s1 + $0x4a4] ss:$16 sps:$4 sm:$0xff]   ;;  %v3181_v38 = vld [vmem:[%s4733_s1 + $0x4a0] ss:$16 sps:$4 sm:$0xff]   ;;  %v3192_v41 = vld [vmem:[%s4733_s1 + $0xcc] ss:$16 sps:$4 sm:$0xff]  }
  0x28   :  { %1700 = vmatpush1.bf16.msra.mxu0 %v3113_v44  ;;  %1660 = vmatprep.subr.bf16.mxu1 %v3114_v45  ;;  %v3189_v40 = vld [vmem:[%s4733_s1 + $0x4c4] ss:$16 sps:$4 sm:$0xff]   ;;  %v3918_v44 = vrot.slane %v3914_v42, %v3757_v49  ;;  %v3187_v45 = vld [vmem:[%s4733_s1 + $0x4c0] ss:$16 sps:$4 sm:$0xff]  }
  0x29   :  { %1701 = vmatprep.subr.bf16.mxu0 %v3116_v46  ;;  %v3190_v46 = vld [vmem:[%s4733_s1 + $0xc8] ss:$16 sps:$4 sm:$0xff]   ;;  %v3193_v52 = vld [vmem:[%s4733_s1 + $0x4e0] ss:$16 sps:$4 sm:$0xff]   ;;  %v3201_v54 = vld [vmem:[%s4733_s1 + $0x504] ss:$16 sps:$4 sm:$0xff]  }
  0x2a   :  { %v3205_v60 = vld [vmem:[%s4733_s1 + $0x520] ss:$16 sps:$4 sm:$0xff]  }
  0x2b   :  { %1661 = vmatpush1.bf16.msra.mxu1 %v3118_v47  ;;  %v64_v47 = vcombine.high %v3918_v44, %v3918_v44 }
  0x2c   :  { %1702 = vmatpush1.bf16.msra.mxu0 %v3119_v48  ;;  %1662 = vmatprep.subr.bf16.mxu1 %v3120_v50  ;;  %v3195_v48 = vld [vmem:[%s4733_s1 + $0x4e4] ss:$16 sps:$4 sm:$0xff]   ;;  %v3198_v50 = vld [vmem:[%s4733_s1 + $0xec] ss:$16 sps:$4 sm:$0xff]  }
  0x2d   :  { %1703 = vmatprep.subr.bf16.mxu0 %v3122_v51  ;;  %v3934_v51 = vpack.c.bf16 %v64_v47, %v64_v47  ;;  %v3274_v47 = vld [vmem:[%s4733_s1 + $0x288] ss:$16 sps:$4 sm:$0xff]  }
  0x2f   :  { %1663 = vmatpush1.bf16.msra.mxu1 %v3124_v53  ;;  %v3196_v53 = vld [vmem:[%s4733_s1 + $0xe8] ss:$16 sps:$4 sm:$0xff]  }
  0x30   :  { %1704 = vmatpush1.bf16.msra.mxu0 %v3125_v56  ;;  %1664 = vmatprep.subr.bf16.mxu1 %v3126_v57  ;;  %v3199_v56 = vld [vmem:[%s4733_s1 + $0x500] ss:$16 sps:$4 sm:$0xff]   ;;  %v3202_v57 = vld [vmem:[%s4733_s1 + $0x108] ss:$16 sps:$4 sm:$0xff]  }
  0x31   :  { %1705 = vmatprep.subr.bf16.mxu0 %v3128_v58  ;;  %v3207_v58 = vld [vmem:[%s4733_s1 + $0x524] ss:$16 sps:$4 sm:$0xff]  }
  0x33   :  { %1665 = vmatpush1.bf16.msra.mxu1 %v3130_v61  ;;  %v3208_v61 = vld [vmem:[%s4733_s1 + $0x128] ss:$16 sps:$4 sm:$0xff]  }
  0x34   :  { %1706 = vmatpush1.bf16.msra.mxu0 %v3131_v0  ;;  %1666 = vmatprep.subr.bf16.mxu1 %v3132_v1  ;;  %v3211_v0 = vld [vmem:[%s4733_s1 + $0x540] ss:$16 sps:$4 sm:$0xff]   ;;  %v3214_v1 = vld [vmem:[%s4733_s1 + $0x148] ss:$16 sps:$4 sm:$0xff]  }
  0x35   :  { %1707 = vmatprep.subr.bf16.mxu0 %v3134_v2  ;;  %v3219_v2 = vld [vmem:[%s4733_s1 + $0x564] ss:$16 sps:$4 sm:$0xff]  }
  0x37   :  { %1667 = vmatpush1.bf16.msra.mxu1 %v3136_v4  ;;  %v3222_v4 = vld [vmem:[%s4733_s1 + $0x16c] ss:$16 sps:$4 sm:$0xff]  }
  0x38   :  { %1708 = vmatpush1.bf16.msra.mxu0 %v3137_v5  ;;  %1668 = vmatprep.subr.bf16.mxu1 %v3138_v6  ;;  %v3217_v5 = vld [vmem:[%s4733_s1 + $0x560] ss:$16 sps:$4 sm:$0xff]   ;;  %v3220_v6 = vld [vmem:[%s4733_s1 + $0x168] ss:$16 sps:$4 sm:$0xff]  }
  0x39   :  { %1709 = vmatprep.subr.bf16.mxu0 %v3140_v7  ;;  %v3225_v7 = vld [vmem:[%s4733_s1 + $0x584] ss:$16 sps:$4 sm:$0xff]  }
  0x3b   :  { %1669 = vmatpush1.bf16.msra.mxu1 %v3142_v8  ;;  %v3228_v8 = vld [vmem:[%s4733_s1 + $0x18c] ss:$16 sps:$4 sm:$0xff]  }
  0x3c   :  { %1710 = vmatpush1.bf16.msra.mxu0 %v3143_v9  ;;  %1670 = vmatprep.subr.bf16.mxu1 %v3144_v10  ;;  %v3223_v9 = vld [vmem:[%s4733_s1 + $0x580] ss:$16 sps:$4 sm:$0xff]   ;;  %v3226_v10 = vld [vmem:[%s4733_s1 + $0x188] ss:$16 sps:$4 sm:$0xff]  }
  0x3d   :  { %1711 = vmatprep.subr.bf16.mxu0 %v3146_v11  ;;  %v3231_v11 = vld [vmem:[%s4733_s1 + $0x5a4] ss:$16 sps:$4 sm:$0xff]  }
  0x3f   :  { %1671 = vmatpush1.bf16.msra.mxu1 %v3148_v12  ;;  %v3234_v12 = vld [vmem:[%s4733_s1 + $0x1ac] ss:$16 sps:$4 sm:$0xff]  }
  0x40   :  { %1712 = vmatpush1.bf16.msra.mxu0 %v3149_v13  ;;  %1804 = vmatprep.subr.bf16.mxu1 %v3156_v15  ;;  %v3229_v13 = vld [vmem:[%s4733_s1 + $0x5a0] ss:$16 sps:$4 sm:$0xff]   ;;  %v3237_v15 = vld [vmem:[%s4733_s1 + $0x5c4] ss:$16 sps:$4 sm:$0xff]  }
  0x41   :  { %1722 = vmatprep.subr.bf16.mxu0 %v3153_v14  ;;  %v3232_v14 = vld [vmem:[%s4733_s1 + $0x1a8] ss:$16 sps:$4 sm:$0xff]  }
  0x42   :  { %1673 = vmatmul.mubr.bf16.vlgmr.msra.gmra.mrb[0].mxu1 %v3833_v16 }
  0x43   :  { %1714 = vmatmul.mubr.bf16.vlgmr.msra.gmra.mrb[0].mxu0 %v3838_v18  ;;  %1805 = vmatpush1.bf16.msra.mxu1 %v3154_v19  ;;  %v49_v19 = vcombine.high %v3914_v42, %v3914_v42  ;;  %v3268_v42 = vld [vmem:[%s4733_s1 + $0x268] ss:$16 sps:$4 sm:$0xff]  }
  0x44   :  { %1723 = vmatpush1.bf16.msra.mxu0 %v3151_v17  ;;  %1806 = vmatprep.subr.bf16.mxu1 %v3162_v21  ;;  %v3240_v17 = vld [vmem:[%s4733_s1 + $0x1cc] ss:$16 sps:$4 sm:$0xff]   ;;  %v3238_v21 = vld [vmem:[%s4733_s1 + $0x1c8] ss:$16 sps:$4 sm:$0xff]  }
  0x45   :  { %1724 = vmatprep.subr.bf16.mxu0 %v3159_v20  ;;  %1836 = vmatprep.mubr.bf16.mxu1 %v75_v62  ;;  %v3213_v62 = vld [vmem:[%s4733_s1 + $0x544] ss:$16 sps:$4 sm:$0xff]   ;;  %v3235_v20 = vld [vmem:[%s4733_s1 + $0x5c0] ss:$16 sps:$4 sm:$0xff]  }
  0x46   :  { %1754 = vmatprep.mubr.bf16.mxu0 %v3934_v51 }
  0x47   :  { %1807 = vmatpush1.bf16.msra.mxu1 %v3160_v23  ;;  %v3246_v23 = vld [vmem:[%s4733_s1 + $0x1ec] ss:$16 sps:$4 sm:$0xff]  }
  0x48   :  { %1725 = vmatpush1.bf16.msra.mxu0 %v3157_v22  ;;  %1808 = vmatprep.subr.bf16.mxu1 %v3168_v25  ;;  %v3243_v22 = vld [vmem:[%s4733_s1 + $0x5e4] ss:$16 sps:$4 sm:$0xff]   ;;  %v3241_v25 = vld [vmem:[%s4733_s1 + $0x5e0] ss:$16 sps:$4 sm:$0xff]  }
  0x49   :  { %1726 = vmatprep.subr.bf16.mxu0 %v3165_v24  ;;  %v4036_v24 = vrot.slane %v49_v19, %v3757_v49  ;;  %v3252_v49 = vld [vmem:[%s4733_s1 + $0x20c] ss:$16 sps:$4 sm:$0xff]   ;;  %v3319_v19 = vld [vmem:[%s4733_s1 + $0x780] ss:$16 sps:$4 sm:$0xff]  }
  0x4b   :  { %1809 = vmatpush1.bf16.msra.mxu1 %v3166_v27  ;;  %v3249_v27 = vld [vmem:[%s4733_s1 + $0x604] ss:$16 sps:$4 sm:$0xff]  }
  0x4c   :  { %1727 = vmatpush1.bf16.msra.mxu0 %v3163_v26  ;;  %1810 = vmatprep.subr.bf16.mxu1 %v3174_v29  ;;  %v3244_v26 = vld [vmem:[%s4733_s1 + $0x1e8] ss:$16 sps:$4 sm:$0xff]   ;;  %v4054_v29 = vpack.c.bf16 %v3918_v44, %v3918_v44  ;;  %v3273_v44 = vld [vmem:[%s4733_s1 + $0x684] ss:$16 sps:$4 sm:$0xff]  }
  0x4d   :  { %1728 = vmatprep.subr.bf16.mxu0 %v3171_v28  ;;  %v65_v28 = vcombine.high %v4036_v24, %v4036_v24 }
  0x4f   :  { %1811 = vmatpush1.bf16.msra.mxu1 %v3172_v31  ;;  %v3250_v31 = vld [vmem:[%s4733_s1 + $0x208] ss:$16 sps:$4 sm:$0xff]  }
  0x50   :  { %1729 = vmatpush1.bf16.msra.mxu0 %v3169_v30  ;;  %1812 = vmatprep.subr.bf16.mxu1 %v3180_v33  ;;  %v3247_v30 = vld [vmem:[%s4733_s1 + $0x600] ss:$16 sps:$4 sm:$0xff]   ;;  %v3258_v33 = vld [vmem:[%s4733_s1 + $0x22c] ss:$16 sps:$4 sm:$0xff]  }
  0x51   :  { %1730 = vmatprep.subr.bf16.mxu0 %v3177_v32  ;;  %v3255_v32 = vld [vmem:[%s4733_s1 + $0x624] ss:$16 sps:$4 sm:$0xff]  }
  0x53   :  { %1813 = vmatpush1.bf16.msra.mxu1 %v3178_v35  ;;  %v3253_v35 = vld [vmem:[%s4733_s1 + $0x620] ss:$16 sps:$4 sm:$0xff]  }
  0x54   :  { %1731 = vmatpush1.bf16.msra.mxu0 %v3175_v34  ;;  %1814 = vmatprep.subr.bf16.mxu1 %v3186_v37  ;;  %v4068_v34 = vpack.c.bf16 %v65_v28, %v65_v28  ;;  %v3261_v37 = vld [vmem:[%s4733_s1 + $0x644] ss:$16 sps:$4 sm:$0xff]   ;;  %v3334_v28 = vld [vmem:[%s4733_s1 + $0x3c8] ss:$16 sps:$4 sm:$0xff]  }
  0x55   :  { %1732 = vmatprep.subr.bf16.mxu0 %v3183_v36  ;;  %v3256_v36 = vld [vmem:[%s4733_s1 + $0x228] ss:$16 sps:$4 sm:$0xff]  }
  0x57   :  { %1815 = vmatpush1.bf16.msra.mxu1 %v3184_v39  ;;  %v3262_v39 = vld [vmem:[%s4733_s1 + $0x248] ss:$16 sps:$4 sm:$0xff]  }
  0x58   :  { %1733 = vmatpush1.bf16.msra.mxu0 %v3181_v38  ;;  %1816 = vmatprep.subr.bf16.mxu1 %v3192_v41  ;;  %v3259_v38 = vld [vmem:[%s4733_s1 + $0x640] ss:$16 sps:$4 sm:$0xff]  }
  0x59   :  { %1734 = vmatprep.subr.bf16.mxu0 %v3189_v40  ;;  %v3267_v40 = vld [vmem:[%s4733_s1 + $0x664] ss:$16 sps:$4 sm:$0xff]   ;;  %v3265_v41 = vld [vmem:[%s4733_s1 + $0x660] ss:$16 sps:$4 sm:$0xff]  }
  0x5b   :  { %1817 = vmatpush1.bf16.msra.mxu1 %v3190_v46  ;;  %v3271_v46 = vld [vmem:[%s4733_s1 + $0x680] ss:$16 sps:$4 sm:$0xff]  }
  0x5c   :  { %1735 = vmatpush1.bf16.msra.mxu0 %v3187_v45  ;;  %1818 = vmatprep.subr.bf16.mxu1 %v3198_v50  ;;  %v3276_v45 = vld [vmem:[%s4733_s1 + $0x28c] ss:$16 sps:$4 sm:$0xff]  }
  0x5d   :  { %1736 = vmatprep.subr.bf16.mxu0 %v3195_v48  ;;  %v3279_v48 = vld [vmem:[%s4733_s1 + $0x6a4] ss:$16 sps:$4 sm:$0xff]   ;;  %v3282_v50 = vld [vmem:[%s4733_s1 + $0x2ac] ss:$16 sps:$4 sm:$0xff]  }
  0x5f   :  { %1819 = vmatpush1.bf16.msra.mxu1 %v3196_v53  ;;  %v3280_v53 = vld [vmem:[%s4733_s1 + $0x2a8] ss:$16 sps:$4 sm:$0xff]  }
  0x60   :  { %1737 = vmatpush1.bf16.msra.mxu0 %v3193_v52  ;;  %1820 = vmatprep.subr.bf16.mxu1 %v3204_v55  ;;  %v3277_v52 = vld [vmem:[%s4733_s1 + $0x6a0] ss:$16 sps:$4 sm:$0xff]   ;;  %v3288_v55 = vld [vmem:[%s4733_s1 + $0x2cc] ss:$16 sps:$4 sm:$0xff]  }
  0x61   :  { %1738 = vmatprep.subr.bf16.mxu0 %v3201_v54  ;;  %v3285_v54 = vld [vmem:[%s4733_s1 + $0x6c4] ss:$16 sps:$4 sm:$0xff]  }
  0x63   :  { %1821 = vmatpush1.bf16.msra.mxu1 %v3202_v57  ;;  %v3286_v57 = vld [vmem:[%s4733_s1 + $0x2c8] ss:$16 sps:$4 sm:$0xff]  }
  0x64   :  { %1739 = vmatpush1.bf16.msra.mxu0 %v3199_v56  ;;  %1822 = vmatprep.subr.bf16.mxu1 %v3210_v59  ;;  %v3283_v56 = vld [vmem:[%s4733_s1 + $0x6c0] ss:$16 sps:$4 sm:$0xff]   ;;  %v3294_v59 = vld [vmem:[%s4733_s1 + $0x2ec] ss:$16 sps:$4 sm:$0xff]  }
  0x65   :  { %1740 = vmatprep.subr.bf16.mxu0 %v3207_v58  ;;  %v3291_v58 = vld [vmem:[%s4733_s1 + $0x6e4] ss:$16 sps:$4 sm:$0xff]  }
  0x67   :  { %1823 = vmatpush1.bf16.msra.mxu1 %v3208_v61  ;;  %v3292_v61 = vld [vmem:[%s4733_s1 + $0x2e8] ss:$16 sps:$4 sm:$0xff]  }
  0x68   :  { %1741 = vmatpush1.bf16.msra.mxu0 %v3205_v60  ;;  %1824 = vmatprep.subr.bf16.mxu1 %v3216_v63  ;;  %v3289_v60 = vld [vmem:[%s4733_s1 + $0x6e0] ss:$16 sps:$4 sm:$0xff]   ;;  %v3300_v63 = vld [vmem:[%s4733_s1 + $0x30c] ss:$16 sps:$4 sm:$0xff]  }
  0x69   :  { %1742 = vmatprep.subr.bf16.mxu0 %v3213_v62  ;;  %v3297_v62 = vld [vmem:[%s4733_s1 + $0x704] ss:$16 sps:$4 sm:$0xff]  }
  0x6b   :  { %1825 = vmatpush1.bf16.msra.mxu1 %v3214_v1  ;;  %v3298_v1 = vld [vmem:[%s4733_s1 + $0x308] ss:$16 sps:$4 sm:$0xff]  }
  0x6c   :  { %1743 = vmatpush1.bf16.msra.mxu0 %v3211_v0  ;;  %1826 = vmatprep.subr.bf16.mxu1 %v3222_v4  ;;  %v3295_v0 = vld [vmem:[%s4733_s1 + $0x700] ss:$16 sps:$4 sm:$0xff]   ;;  %v3306_v4 = vld [vmem:[%s4733_s1 + $0x32c] ss:$16 sps:$4 sm:$0xff]  }
  0x6d   :  { %1744 = vmatprep.subr.bf16.mxu0 %v3219_v2  ;;  %v3303_v2 = vld [vmem:[%s4733_s1 + $0x724] ss:$16 sps:$4 sm:$0xff]  }
  0x6f   :  { %1827 = vmatpush1.bf16.msra.mxu1 %v3220_v6  ;;  %v3304_v6 = vld [vmem:[%s4733_s1 + $0x328] ss:$16 sps:$4 sm:$0xff]  }
  0x70   :  { %1745 = vmatpush1.bf16.msra.mxu0 %v3217_v5  ;;  %1828 = vmatprep.subr.bf16.mxu1 %v3228_v8  ;;  %v3301_v5 = vld [vmem:[%s4733_s1 + $0x720] ss:$16 sps:$4 sm:$0xff]   ;;  %v3312_v8 = vld [vmem:[%s4733_s1 + $0x34c] ss:$16 sps:$4 sm:$0xff]  }
  0x71   :  { %1746 = vmatprep.subr.bf16.mxu0 %v3225_v7  ;;  %v3309_v7 = vld [vmem:[%s4733_s1 + $0x744] ss:$16 sps:$4 sm:$0xff]  }
  0x73   :  { %1829 = vmatpush1.bf16.msra.mxu1 %v3226_v10  ;;  %v3310_v10 = vld [vmem:[%s4733_s1 + $0x348] ss:$16 sps:$4 sm:$0xff]  }
  0x74   :  { %1747 = vmatpush1.bf16.msra.mxu0 %v3223_v9  ;;  %1830 = vmatprep.subr.bf16.mxu1 %v3234_v12  ;;  %v3307_v9 = vld [vmem:[%s4733_s1 + $0x740] ss:$16 sps:$4 sm:$0xff]   ;;  %v3318_v12 = vld [vmem:[%s4733_s1 + $0x36c] ss:$16 sps:$4 sm:$0xff]  }
  0x75   :  { %1748 = vmatprep.subr.bf16.mxu0 %v3231_v11  ;;  %v3315_v11 = vld [vmem:[%s4733_s1 + $0x764] ss:$16 sps:$4 sm:$0xff]  }
  0x77   :  { %1831 = vmatpush1.bf16.msra.mxu1 %v3232_v14  ;;  %v3316_v14 = vld [vmem:[%s4733_s1 + $0x368] ss:$16 sps:$4 sm:$0xff]  }
  0x78   :  { %1749 = vmatpush1.bf16.msra.mxu0 %v3229_v13  ;;  %1832 = vmatprep.subr.bf16.mxu1 %v3240_v17  ;;  %v3313_v13 = vld [vmem:[%s4733_s1 + $0x760] ss:$16 sps:$4 sm:$0xff]   ;;  %v3324_v17 = vld [vmem:[%s4733_s1 + $0x38c] ss:$16 sps:$4 sm:$0xff]  }
  0x79   :  { %1750 = vmatprep.subr.bf16.mxu0 %v3237_v15  ;;  %v3321_v15 = vld [vmem:[%s4733_s1 + $0x784] ss:$16 sps:$4 sm:$0xff]  }
  0x7b   :  { %1833 = vmatpush1.bf16.msra.mxu1 %v3238_v21  ;;  %v3327_v21 = vld [vmem:[%s4733_s1 + $0x7a4] ss:$16 sps:$4 sm:$0xff]  }
  0x7c   :  { %1751 = vmatpush1.bf16.msra.mxu0 %v3235_v20  ;;  %1834 = vmatprep.subr.bf16.mxu1 %v3246_v23  ;;  %v3322_v20 = vld [vmem:[%s4733_s1 + $0x388] ss:$16 sps:$4 sm:$0xff]   ;;  %v3325_v23 = vld [vmem:[%s4733_s1 + $0x7a0] ss:$16 sps:$4 sm:$0xff]  }
  0x7d   :  { %1752 = vmatprep.subr.bf16.mxu0 %v3243_v22  ;;  %v3330_v22 = vld [vmem:[%s4733_s1 + $0x3ac] ss:$16 sps:$4 sm:$0xff]  }
  0x7f   :  { %1835 = vmatpush1.bf16.msra.mxu1 %v3244_v26  ;;  %v3333_v26 = vld [vmem:[%s4733_s1 + $0x7c4] ss:$16 sps:$4 sm:$0xff]  }
  0x80   :  { %1753 = vmatpush1.bf16.msra.mxu0 %v3241_v25  ;;  %1845 = vmatprep.subr.bf16.mxu1 %v3252_v49  ;;  %v3328_v25 = vld [vmem:[%s4733_s1 + $0x3a8] ss:$16 sps:$4 sm:$0xff]   ;;  %v3331_v49 = vld [vmem:[%s4733_s1 + $0x7c0] ss:$16 sps:$4 sm:$0xff]  }
  0x81   :  { %1763 = vmatprep.subr.bf16.mxu0 %v3249_v27  ;;  %v3336_v27 = vld [vmem:[%s4733_s1 + $0x3cc] ss:$16 sps:$4 sm:$0xff]  }
  0x82   :  { %1837 = vmatmul.mubr.bf16.vlgmr.msra.gmra.mrb[4].mxu1 %v3833_v16  ;;  %v3264_v16 = vld [vmem:[%s4733_s1 + $0x24c] ss:$16 sps:$4 sm:$0xff]  }
  0x83   :  { %1755 = vmatmul.mubr.bf16.vlgmr.msra.gmra.mrb[0].mxu0 %v4054_v29  ;;  %1846 = vmatpush1.bf16.msra.mxu1 %v3250_v31  ;;  %v3342_v31 = vld [vmem:[%s4733_s1 + $0x3ec] ss:$16 sps:$4 sm:$0xff]  }
  0x84   :  { %1764 = vmatpush1.bf16.msra.mxu0 %v3247_v30  ;;  %1847 = vmatprep.subr.bf16.mxu1 %v3258_v33  ;;  %v3339_v30 = vld [vmem:[%s4733_s1 + $0x7e4] ss:$16 sps:$4 sm:$0xff]   ;;  %v3340_v33 = vld [vmem:[%s4733_s1 + $0x3e8] ss:$16 sps:$4 sm:$0xff]  }
  0x85   :  { %1765 = vmatprep.subr.bf16.mxu0 %v3255_v32  ;;  %1795 = vmatprep.mubr.bf16.mxu0 %v4068_v34  ;;  %v3337_v32 = vld [vmem:[%s4733_s1 + $0x7e0] ss:$16 sps:$4 sm:$0xff]  }
  0x86   :  { %1877 = vmatprep.mubr.bf16.mxu1 %v3794_v3  ;;  %v3270_v3 = vld [vmem:[%s4733_s1 + $0x26c] ss:$16 sps:$4 sm:$0xff]  }
  0x87   :  { %1848 = vmatpush1.bf16.msra.mxu1 %v3256_v36  ;;  %v3344_v36 = vld [vmem:[%s4733_s1 + $0x408] ss:$16 sps:$4 sm:$0xff]  }
  0x88   :  { %1766 = vmatpush1.bf16.msra.mxu0 %v3253_v35  ;;  %1849 = vmatprep.subr.bf16.mxu1 %v3264_v16  ;;  %v3346_v35 = vld [vmem:[%s4733_s1 + $0x40c] ss:$16 sps:$4 sm:$0xff]  }
  0x89   :  { %1767 = vmatprep.subr.bf16.mxu0 %v3261_v37  ;;  %v4256_v37 = vpack.c.bf16 %v4036_v24, %v4036_v24  ;;  %v3349_v16 = vld [vmem:[%s4733_s1 + $0x42c] ss:$16 sps:$4 sm:$0xff]  }
  0x8a   :  { %v3442_v24 = vld [vmem:[%s4735_s3 + $0x4] ss:$8 sps:$4 sm:$0xff]  }
  0x8b   :  { %1850 = vmatpush1.bf16.msra.mxu1 %v3262_v39  ;;  %v3347_v39 = vld [vmem:[%s4733_s1 + $0x428] ss:$16 sps:$4 sm:$0xff]  }
  0x8c   :  { %1768 = vmatpush1.bf16.msra.mxu0 %v3259_v38  ;;  %1851 = vmatprep.subr.bf16.mxu1 %v3270_v3  ;;  %v3440_v38 = vld [vmem:[%s4735_s3] ss:$8 sps:$4 sm:$0xff]   ;;  %v3443_v3 = vld [vmem:[%s4735_s3 + $0x10] ss:$8 sps:$4 sm:$0xff]  }
  0x8d   :  { %1769 = vmatprep.subr.bf16.mxu0 %v3267_v40  ;;  %v3445_v40 = vld [vmem:[%s4735_s3 + $0x14] ss:$8 sps:$4 sm:$0xff]  }
  0x8f   :  { %1852 = vmatpush1.bf16.msra.mxu1 %v3268_v42  ;;  %v3355_v42 = vld [vmem:[%s4733_s1 + $0x46c] ss:$16 sps:$4 sm:$0xff]  }
  0x90   :  { %1770 = vmatpush1.bf16.msra.mxu0 %v3265_v41  ;;  %1853 = vmatprep.subr.bf16.mxu1 %v3276_v45  ;;  %v3350_v41 = vld [vmem:[%s4733_s1 + $0x448] ss:$16 sps:$4 sm:$0xff]  }
  0x91   :  { %1771 = vmatprep.subr.bf16.mxu0 %v3273_v44  ;;  %v3446_v44 = vld [vmem:[%s4735_s3 + $0x20] ss:$8 sps:$4 sm:$0xff]  }
  0x92   :  { %v3353_v45 = vld [vmem:[%s4733_s1 + $0x468] ss:$16 sps:$4 sm:$0xff]  }
  0x93   :  { %1854 = vmatpush1.bf16.msra.mxu1 %v3274_v47  ;;  %v3451_v47 = vld [vmem:[%s4735_s3 + $0x34] ss:$8 sps:$4 sm:$0xff]  }
  0x94   :  { %1772 = vmatpush1.bf16.msra.mxu0 %v3271_v46  ;;  %1855 = vmatprep.subr.bf16.mxu1 %v3282_v50  ;;  %v3358_v46 = vld [vmem:[%s4733_s1 + $0x48c] ss:$16 sps:$4 sm:$0xff]  }
  0x95   :  { %1773 = vmatprep.subr.bf16.mxu0 %v3279_v48  ;;  %v3449_v48 = vld [vmem:[%s4735_s3 + $0x30] ss:$8 sps:$4 sm:$0xff]   ;;  %v3454_v50 = vld [vmem:[%s4735_s3 + $0x44] ss:$8 sps:$4 sm:$0xff]  }
  0x97   :  { %1856 = vmatpush1.bf16.msra.mxu1 %v3280_v53  ;;  %v3361_v53 = vld [vmem:[%s4733_s1 + $0x4ac] ss:$16 sps:$4 sm:$0xff]  }
  0x98   :  { %1774 = vmatpush1.bf16.msra.mxu0 %v3277_v52  ;;  %1857 = vmatprep.subr.bf16.mxu1 %v3288_v55  ;;  %v3356_v52 = vld [vmem:[%s4733_s1 + $0x488] ss:$16 sps:$4 sm:$0xff]   ;;  %v3457_v55 = vld [vmem:[%s4735_s3 + $0x54] ss:$8 sps:$4 sm:$0xff]  }
  0x99   :  { %1775 = vmatprep.subr.bf16.mxu0 %v3285_v54  ;;  %v3452_v54 = vld [vmem:[%s4735_s3 + $0x40] ss:$8 sps:$4 sm:$0xff]  }
  0x9b   :  { %1858 = vmatpush1.bf16.msra.mxu1 %v3286_v57  ;;  %v3364_v57 = vld [vmem:[%s4733_s1 + $0x4cc] ss:$16 sps:$4 sm:$0xff]  }
  0x9c   :  { %1776 = vmatpush1.bf16.msra.mxu0 %v3283_v56  ;;  %1859 = vmatprep.subr.bf16.mxu1 %v3294_v59  ;;  %v3359_v56 = vld [vmem:[%s4733_s1 + $0x4a8] ss:$16 sps:$4 sm:$0xff]  }
  0x9d   :  { %1777 = vmatprep.subr.bf16.mxu0 %v3291_v58 }
  0x9f   :  { %1860 = vmatpush1.bf16.msra.mxu1 %v3292_v61 }
  0xa0   :  { %1778 = vmatpush1.bf16.msra.mxu0 %v3289_v60  ;;  %1861 = vmatprep.subr.bf16.mxu1 %v3300_v63 }
  0xa1   :  { %1779 = vmatprep.subr.bf16.mxu0 %v3297_v62 }
  0xa3   :  { %1862 = vmatpush1.bf16.msra.mxu1 %v3298_v1 }
  0xa4   :  { %1780 = vmatpush1.bf16.msra.mxu0 %v3295_v0  ;;  %1863 = vmatprep.subr.bf16.mxu1 %v3306_v4 }
  0xa5   :  { %1781 = vmatprep.subr.bf16.mxu0 %v3303_v2 }
  0xa7   :  { %1864 = vmatpush1.bf16.msra.mxu1 %v3304_v6 }
  0xa8   :  { %1782 = vmatpush1.bf16.msra.mxu0 %v3301_v5  ;;  %1865 = vmatprep.subr.bf16.mxu1 %v3312_v8 }
  0xa9   :  { %1783 = vmatprep.subr.bf16.mxu0 %v3309_v7 }
  0xab   :  { %1866 = vmatpush1.bf16.msra.mxu1 %v3310_v10 }
  0xac   :  { %1784 = vmatpush1.bf16.msra.mxu0 %v3307_v9  ;;  %1867 = vmatprep.subr.bf16.mxu1 %v3318_v12 }
  0xad   :  { %1785 = vmatprep.subr.bf16.mxu0 %v3315_v11 }
  0xaf   :  { %1868 = vmatpush1.bf16.msra.mxu1 %v3316_v14 }
  0xb0   :  { %1786 = vmatpush1.bf16.msra.mxu0 %v3313_v13  ;;  %1869 = vmatprep.subr.bf16.mxu1 %v3324_v17 }
  0xb1   :  { %1787 = vmatprep.subr.bf16.mxu0 %v3321_v15 }
  0xb3   :  { %1870 = vmatpush1.bf16.msra.mxu1 %v3322_v20 }
  0xb4   :  { %1788 = vmatpush1.bf16.msra.mxu0 %v3319_v19  ;;  %1871 = vmatprep.subr.bf16.mxu1 %v3330_v22 }
  0xb5   :  { %1789 = vmatprep.subr.bf16.mxu0 %v3327_v21 }
  0xb7   :  { %1872 = vmatpush1.bf16.msra.mxu1 %v3328_v25 }
  0xb8   :  { %1790 = vmatpush1.bf16.msra.mxu0 %v3325_v23  ;;  %1873 = vmatprep.subr.bf16.mxu1 %v3336_v27 }
  0xb9   :  { %1791 = vmatprep.subr.bf16.mxu0 %v3333_v26 }
  0xbb   :  { %1874 = vmatpush1.bf16.msra.mxu1 %v3334_v28 }
  0xbc   :  { %1792 = vmatpush1.bf16.msra.mxu0 %v3331_v49  ;;  %1875 = vmatprep.subr.bf16.mxu1 %v3342_v31 }
  0xbd   :  { %1793 = vmatprep.subr.bf16.mxu0 %v3339_v30 }
  0xbf   :  { %1876 = vmatpush1.bf16.msra.mxu1 %v3340_v33 }
  0xc0   :  { %1794 = vmatpush1.bf16.msra.mxu0 %v3337_v32  ;;  %1886 = vmatprep.subr.bf16.mxu1 %v3346_v35 }
  0xc1   :  { %2372 = vmatprep.subr.bf16.mxu0 %v3442_v24 }
  0xc2   :  { %1878 = vmatmul.mubr.bf16.vlgmr.msra.gmra.mrb[4].mxu1 %v3838_v18  ;;  %v3352_v18 = vld [vmem:[%s4733_s1 + $0x44c] ss:$16 sps:$4 sm:$0xff]  }
  0xc3   :  { %1796 = vmatmul.mubr.bf16.vlgmr.msra.gmra.mrb[0].mxu0 %v4256_v37  ;;  %1887 = vmatpush1.bf16.msra.mxu1 %v3344_v36 }
  0xc4   :  { %1918 = vmatprep.mubr.bf16.mxu1 %v3934_v51  ;;  %1888 = vmatprep.subr.bf16.mxu1 %v3349_v16  ;;  %v3448_v51 = vld [vmem:[%s4735_s3 + $0x24] ss:$8 sps:$4 sm:$0xff]  }
  0xc5   :  { %2373 = vmatpush1.bf16.msra.mxu0 %v3440_v38 }
  0xc6   :  { %2374 = vmatprep.subr.bf16.mxu0 %v3445_v40 }
  0xc7   :  { %1889 = vmatpush1.bf16.msra.mxu1 %v3347_v39 }
  0xc8   :  { %1890 = vmatprep.subr.bf16.mxu1 %v3352_v18 }
  0xc9   :  { %2375 = vmatpush1.bf16.msra.mxu0 %v3443_v3 }
  0xca   :  { %2376 = vmatprep.subr.bf16.mxu0 %v3448_v51 }
  0xcb   :  { %1891 = vmatpush1.bf16.msra.mxu1 %v3350_v41 }
  0xcc   :  { %1892 = vmatprep.subr.bf16.mxu1 %v3355_v42 }
  0xcd   :  { %2377 = vmatpush1.bf16.msra.mxu0 %v3446_v44 }
  0xce   :  { %2378 = vmatprep.subr.bf16.mxu0 %v3451_v47 }
  0xcf   :  { %1893 = vmatpush1.bf16.msra.mxu1 %v3353_v45 }
  0xd0   :  { %1894 = vmatprep.subr.bf16.mxu1 %v3358_v46 }
  0xd1   :  { %2379 = vmatpush1.bf16.msra.mxu0 %v3449_v48 }
  0xd2   :  { %2380 = vmatprep.subr.bf16.mxu0 %v3454_v50 }
  0xd3   :  { %1895 = vmatpush1.bf16.msra.mxu1 %v3356_v52 }
  0xd4   :  { %1896 = vmatprep.subr.bf16.mxu1 %v3361_v53 }
  0xd5   :  { %12 = vsyncpa [#allocation3], 0  ;;  %2381 = vmatpush1.bf16.msra.mxu0 %v3452_v54  ;;  %v3455_v58 = vld [vmem:[%s4735_s3 + $0x50] ss:$8 sps:$4 sm:$0xff]   ;;  %v3460_v59 = vld [vmem:[%s4735_s3 + $0x64] ss:$8 sps:$4 sm:$0xff]  }
  0xd6   :  { %2382 = vmatprep.subr.bf16.mxu0 %v3457_v55  ;;  %v3362_v60 = vld [vmem:[%s4733_s1 + $0x4c8] ss:$16 sps:$4 sm:$0xff]   ;;  %v3367_v61 = vld [vmem:[%s4733_s1 + $0x4ec] ss:$16 sps:$4 sm:$0xff]   ;;  %vm2633_vm0 = vcmask 9216  }
  0xd7   :  { %1897 = vmatpush1.bf16.msra.mxu1 %v3359_v56  ;;  %v3458_v62 = vld [vmem:[%s4735_s3 + $0x60] ss:$8 sps:$4 sm:$0xff]   ;;  %v3463_v63 = vld [vmem:[%s4735_s3 + $0x74] ss:$8 sps:$4 sm:$0xff]   ;;  %v3461_v2 = vld [vmem:[%s4735_s3 + $0x70] ss:$8 sps:$4 sm:$0xff]  }
  0xd8   :  { %1898 = vmatprep.subr.bf16.mxu1 %v3364_v57  ;;  %v3365_v0 = vld [vmem:[%s4733_s1 + $0x4e8] ss:$16 sps:$4 sm:$0xff]   ;;  %v3370_v1 = vld [vmem:[%s4733_s1 + $0x50c] ss:$16 sps:$4 sm:$0xff]  }
  0xd9   :  { %2383 = vmatpush1.bf16.msra.mxu0 %v3455_v58  ;;  %v3466_v4 = vld [vmem:[%s4735_s3 + $0x84] ss:$8 sps:$4 sm:$0xff]   ;;  %v3368_v5 = vld [vmem:[%s4733_s1 + $0x508] ss:$16 sps:$4 sm:$0xff]   ;;  %v3469_v8 = vld [vmem:[%s4735_s3 + $0x94] ss:$8 sps:$4 sm:$0xff]  }
  0xda   :  { %2384 = vmatprep.subr.bf16.mxu0 %v3460_v59  ;;  %v3373_v6 = vld [vmem:[%s4733_s1 + $0x52c] ss:$16 sps:$4 sm:$0xff]   ;;  %v3464_v7 = vld [vmem:[%s4735_s3 + $0x80] ss:$8 sps:$4 sm:$0xff]   ;;  %v3467_v11 = vld [vmem:[%s4735_s3 + $0x90] ss:$8 sps:$4 sm:$0xff]  }
  0xdb   :  { %1899 = vmatpush1.bf16.msra.mxu1 %v3362_v60  ;;  %v3371_v9 = vld [vmem:[%s4733_s1 + $0x528] ss:$16 sps:$4 sm:$0xff]   ;;  %v3376_v10 = vld [vmem:[%s4733_s1 + $0x54c] ss:$16 sps:$4 sm:$0xff]  }
  0xdc   :  { %1900 = vmatprep.subr.bf16.mxu1 %v3367_v61  ;;  %v3472_v12 = vld [vmem:[%s4735_s3 + $0xa4] ss:$8 sps:$4 sm:$0xff]   ;;  %v3374_v13 = vld [vmem:[%s4733_s1 + $0x548] ss:$16 sps:$4 sm:$0xff]   ;;  %v3475_v17 = vld [vmem:[%s4735_s3 + $0xb4] ss:$8 sps:$4 sm:$0xff]  }
  0xdd   :  { %2385 = vmatpush1.bf16.msra.mxu0 %v3458_v62  ;;  %v3379_v14 = vld [vmem:[%s4733_s1 + $0x56c] ss:$16 sps:$4 sm:$0xff]   ;;  %v3470_v15 = vld [vmem:[%s4735_s3 + $0xa0] ss:$8 sps:$4 sm:$0xff]   ;;  %v3473_v21 = vld [vmem:[%s4735_s3 + $0xb0] ss:$8 sps:$4 sm:$0xff]  }
  0xde   :  { %2386 = vmatprep.subr.bf16.mxu0 %v3463_v63  ;;  %v3377_v19 = vld [vmem:[%s4733_s1 + $0x568] ss:$16 sps:$4 sm:$0xff]   ;;  %v3382_v20 = vld [vmem:[%s4733_s1 + $0x58c] ss:$16 sps:$4 sm:$0xff]  }
  0xdf   :  { %1901 = vmatpush1.bf16.msra.mxu1 %v3365_v0  ;;  %v3478_v22 = vld [vmem:[%s4735_s3 + $0xc4] ss:$8 sps:$4 sm:$0xff]   ;;  %v3380_v23 = vld [vmem:[%s4733_s1 + $0x588] ss:$16 sps:$4 sm:$0xff]   ;;  %v3481_v27 = vld [vmem:[%s4735_s3 + $0xd4] ss:$8 sps:$4 sm:$0xff]  }
  0xe0   :  { %1902 = vmatprep.subr.bf16.mxu1 %v3370_v1  ;;  %v3385_v25 = vld [vmem:[%s4733_s1 + $0x5ac] ss:$16 sps:$4 sm:$0xff]   ;;  %v3476_v26 = vld [vmem:[%s4735_s3 + $0xc0] ss:$8 sps:$4 sm:$0xff]   ;;  %v3479_v30 = vld [vmem:[%s4735_s3 + $0xd0] ss:$8 sps:$4 sm:$0xff]  }
  0xe1   :  { %2387 = vmatpush1.bf16.msra.mxu0 %v3461_v2  ;;  %v3383_v49 = vld [vmem:[%s4733_s1 + $0x5a8] ss:$16 sps:$4 sm:$0xff]   ;;  %v3388_v28 = vld [vmem:[%s4733_s1 + $0x5cc] ss:$16 sps:$4 sm:$0xff]  }
  0xe2   :  { %2388 = vmatprep.subr.bf16.mxu0 %v3466_v4  ;;  %v3386_v31 = vld [vmem:[%s4733_s1 + $0x5c8] ss:$16 sps:$4 sm:$0xff]   ;;  %v3391_v32 = vld [vmem:[%s4733_s1 + $0x5ec] ss:$16 sps:$4 sm:$0xff]  }
  0xe3   :  { %1903 = vmatpush1.bf16.msra.mxu1 %v3368_v5  ;;  %v3389_v33 = vld [vmem:[%s4733_s1 + $0x5e8] ss:$16 sps:$4 sm:$0xff]   ;;  %v3394_v35 = vld [vmem:[%s4733_s1 + $0x60c] ss:$16 sps:$4 sm:$0xff]  }
  0xe4   :  { %1904 = vmatprep.subr.bf16.mxu1 %v3373_v6  ;;  %v3392_v36 = vld [vmem:[%s4733_s1 + $0x608] ss:$16 sps:$4 sm:$0xff]   ;;  %v3397_v16 = vld [vmem:[%s4733_s1 + $0x62c] ss:$16 sps:$4 sm:$0xff]  }
  0xe5   :  { %2389 = vmatpush1.bf16.msra.mxu0 %v3464_v7  ;;  %v3395_v38 = vld [vmem:[%s4733_s1 + $0x628] ss:$16 sps:$4 sm:$0xff]   ;;  %v3400_v24 = vld [vmem:[%s4733_s1 + $0x64c] ss:$16 sps:$4 sm:$0xff]  }
  0xe6   :  { %2390 = vmatprep.subr.bf16.mxu0 %v3469_v8  ;;  %v3398_v39 = vld [vmem:[%s4733_s1 + $0x648] ss:$16 sps:$4 sm:$0xff]   ;;  %v3406_v40 = vld [vmem:[%s4733_s1 + $0x68c] ss:$16 sps:$4 sm:$0xff]  }
  0xe7   :  { %1905 = vmatpush1.bf16.msra.mxu1 %v3371_v9  ;;  %v3404_v18 = vld [vmem:[%s4733_s1 + $0x688] ss:$16 sps:$4 sm:$0xff]   ;;  %v3409_v3 = vld [vmem:[%s4733_s1 + $0x6ac] ss:$16 sps:$4 sm:$0xff]  }
  0xe8   :  { %1906 = vmatprep.subr.bf16.mxu1 %v3376_v10  ;;  %v3407_v51 = vld [vmem:[%s4733_s1 + $0x6a8] ss:$16 sps:$4 sm:$0xff]   ;;  %v3412_v41 = vld [vmem:[%s4733_s1 + $0x6cc] ss:$16 sps:$4 sm:$0xff]   ;;  %v342_v10 = vsub.s32 0, %v3739_v43 }
  0xe9   :  { %2391 = vmatpush1.bf16.msra.mxu0 %v3467_v11  ;;  %v3484_v42 = vld [vmem:[%s4735_s3 + $0xe4] ss:$8 sps:$4 sm:$0xff]   ;;  %v3482_v45 = vld [vmem:[%s4735_s3 + $0xe0] ss:$8 sps:$4 sm:$0xff]   ;;  %v3487_v53 = vld [vmem:[%s4735_s3 + $0xf4] ss:$8 sps:$4 sm:$0xff]  }
  0xea   :  { %2392 = vmatprep.subr.bf16.mxu0 %v3472_v12  ;;  %v3410_v48 = vld [vmem:[%s4733_s1 + $0x6c8] ss:$16 sps:$4 sm:$0xff]   ;;  %v3415_v52 = vld [vmem:[%s4733_s1 + $0x6ec] ss:$16 sps:$4 sm:$0xff]   ;;  %v4553_v11 = vld [vmem:[%s4734_s2] sm:$0xf] }
  0xeb   :  { %1907 = vmatpush1.bf16.msra.mxu1 %v3374_v13  ;;  %v3485_v54 = vld [vmem:[%s4735_s3 + $0xf0] ss:$8 sps:$4 sm:$0xff]   ;;  %v3418_v56 = vld [vmem:[%s4733_s1 + $0x70c] ss:$16 sps:$4 sm:$0xff]   ;;  %v346_v12 = vsub.s32 1, %v3739_v43  ;;  %v343_v13 = vrot.slane %v4553_v11, %v342_v10 }
  0xec   :  { %1908 = vmatprep.subr.bf16.mxu1 %v3379_v14  ;;  %v3413_v55 = vld [vmem:[%s4733_s1 + $0x6e8] ss:$16 sps:$4 sm:$0xff]   ;;  %v3490_v57 = vld [vmem:[%s4735_s3 + $0x104] ss:$8 sps:$4 sm:$0xff]  }
  0xed   :  { %2393 = vmatpush1.bf16.msra.mxu0 %v3470_v15  ;;  %v3416_v58 = vld [vmem:[%s4733_s1 + $0x708] ss:$16 sps:$4 sm:$0xff]   ;;  %v3421_v59 = vld [vmem:[%s4733_s1 + $0x72c] ss:$16 sps:$4 sm:$0xff]   ;;  %v347_v14 = vrot.slane %v4553_v11, %v346_v12 }
  0xee   :  { %2394 = vmatprep.subr.bf16.mxu0 %v3475_v17  ;;  %v3419_v60 = vld [vmem:[%s4733_s1 + $0x728] ss:$16 sps:$4 sm:$0xff]   ;;  %v3424_v61 = vld [vmem:[%s4733_s1 + $0x74c] ss:$16 sps:$4 sm:$0xff]  }
  0xef   :  { %1909 = vmatpush1.bf16.msra.mxu1 %v3377_v19  ;;  %v3422_v62 = vld [vmem:[%s4733_s1 + $0x748] ss:$16 sps:$4 sm:$0xff]   ;;  %v3427_v63 = vld [vmem:[%s4733_s1 + $0x76c] ss:$16 sps:$4 sm:$0xff]  }
  0xf0   :  { %1910 = vmatprep.subr.bf16.mxu1 %v3382_v20  ;;  %v3425_v0 = vld [vmem:[%s4733_s1 + $0x768] ss:$16 sps:$4 sm:$0xff]   ;;  %v3430_v1 = vld [vmem:[%s4733_s1 + $0x78c] ss:$16 sps:$4 sm:$0xff]  }
  0xf1   :  { %2395 = vmatpush1.bf16.msra.mxu0 %v3473_v21  ;;  %v3428_v2 = vld [vmem:[%s4733_s1 + $0x788] ss:$16 sps:$4 sm:$0xff]   ;;  %v3433_v4 = vld [vmem:[%s4733_s1 + $0x7ac] ss:$16 sps:$4 sm:$0xff]  }
  0xf2   :  { %2396 = vmatprep.subr.bf16.mxu0 %v3478_v22  ;;  %v3431_v5 = vld [vmem:[%s4733_s1 + $0x7a8] ss:$16 sps:$4 sm:$0xff]   ;;  %v3436_v6 = vld [vmem:[%s4733_s1 + $0x7cc] ss:$16 sps:$4 sm:$0xff]  }
  0xf3   :  { %1911 = vmatpush1.bf16.msra.mxu1 %v3380_v23  ;;  %v3434_v7 = vld [vmem:[%s4733_s1 + $0x7c8] ss:$16 sps:$4 sm:$0xff]   ;;  %v3439_v8 = vld [vmem:[%s4733_s1 + $0x7ec] ss:$16 sps:$4 sm:$0xff]  }
  0xf4   :  { %1912 = vmatprep.subr.bf16.mxu1 %v3385_v25  ;;  %v3437_v9 = vld [vmem:[%s4733_s1 + $0x7e8] ss:$16 sps:$4 sm:$0xff]  }
  0xf5   :  { %2397 = vmatpush1.bf16.msra.mxu0 %v3476_v26 }
  0xf6   :  { %2398 = vmatprep.subr.bf16.mxu0 %v3481_v27 }
  0xf7   :  { %1913 = vmatpush1.bf16.msra.mxu1 %v3383_v49  ;;  %v3488_v49 = vld [vmem:[%s4735_s3 + $0x100] ss:$8 sps:$4 sm:$0xff]  }
  0xf8   :  { %1914 = vmatprep.subr.bf16.mxu1 %v3388_v28 }
  0xf9   :  { %2399 = vmatpush1.bf16.msra.mxu0 %v3479_v30  ;;  %v3493_v30 = vld [vmem:[%s4735_s3 + $0x114] ss:$8 sps:$4 sm:$0xff]  }
  0xfa   :  { %2400 = vmatprep.subr.bf16.mxu0 %v3484_v42  ;;  %v3505_v42 = vld [vmem:[%s4735_s3 + $0x154] ss:$8 sps:$4 sm:$0xff]  }
  0xfb   :  { %1915 = vmatpush1.bf16.msra.mxu1 %v3386_v31  ;;  %v3536_v31 = vld [vmem:[%s4737_s5 + $0x40] sm:$0xff]  }
  0xfc   :  { %1916 = vmatprep.subr.bf16.mxu1 %v3391_v32  ;;  %v3537_v32 = vld [vmem:[%s4737_s5] sm:$0xff]  }
  0xfd   :  { %2401 = vmatpush1.bf16.msra.mxu0 %v3482_v45  ;;  %v3546_v45 = vld [vmem:[%s4737_s5 + $0x68] sm:$0xff]  }
  0xfe   :  { %2402 = vmatprep.subr.bf16.mxu0 %v3487_v53  ;;  %v3509_v53 = vld [vmem:[%s4735_s3 + $0x170] ss:$8 sps:$4 sm:$0xff]  }
  0xff   :  { %1917 = vmatpush1.bf16.msra.mxu1 %v3389_v33  ;;  %v3538_v33 = vld [vmem:[%s4737_s5 + $0x48] sm:$0xff]  }
 0x100   :  { %1927 = vmatprep.subr.bf16.mxu1 %v3394_v35  ;;  %v3491_v35 = vld [vmem:[%s4735_s3 + $0x110] ss:$8 sps:$4 sm:$0xff]  }
 0x101   :  { %2403 = vmatpush1.bf16.msra.mxu0 %v3485_v54  ;;  %v3514_v54 = vld [vmem:[%s4735_s3 + $0x184] ss:$8 sps:$4 sm:$0xff]  }
 0x102   :  { %1919 = vmatmul.mubr.bf16.vlgmr.msra.gmra.mrb[4].mxu1 %v4054_v29  ;;  %v3403_v29 = vld [vmem:[%s4733_s1 + $0x66c] ss:$16 sps:$4 sm:$0xff]   ;;  %2413 = vmatprep.subr.bf16.mxu0 %v3490_v57  ;;  %v3515_v57 = vld [vmem:[%s4735_s3 + $0x190] ss:$8 sps:$4 sm:$0xff]  }
 0x103   :  { %1928 = vmatpush1.bf16.msra.mxu1 %v3392_v36  ;;  %1959 = vmatprep.mubr.bf16.mxu1 %v4068_v34  ;;  %v3401_v34 = vld [vmem:[%s4733_s1 + $0x668] ss:$16 sps:$4 sm:$0xff]   ;;  %v3496_v36 = vld [vmem:[%s4735_s3 + $0x124] ss:$8 sps:$4 sm:$0xff]  }
 0x104   :  { %1929 = vmatprep.subr.bf16.mxu1 %v3397_v16  ;;  %v3539_v16 = vld [vmem:[%s4737_s5 + $0x8] sm:$0xff]  }
 0x107   :  { %1930 = vmatpush1.bf16.msra.mxu1 %v3395_v38  ;;  %v3540_v38 = vld [vmem:[%s4737_s5 + $0x50] sm:$0xff]  }
 0x108   :  { %1931 = vmatprep.subr.bf16.mxu1 %v3400_v24  ;;  %v3494_v24 = vld [vmem:[%s4735_s3 + $0x120] ss:$8 sps:$4 sm:$0xff]  }
 0x10b   :  { %1932 = vmatpush1.bf16.msra.mxu1 %v3398_v39  ;;  %v3499_v39 = vld [vmem:[%s4735_s3 + $0x134] ss:$8 sps:$4 sm:$0xff]  }
 0x10c   :  { %1933 = vmatprep.subr.bf16.mxu1 %v3403_v29  ;;  %v3541_v29 = vld [vmem:[%s4737_s5 + $0x10] sm:$0xff]  }
 0x10f   :  { %1934 = vmatpush1.bf16.msra.mxu1 %v3401_v34  ;;  %v3542_v34 = vld [vmem:[%s4737_s5 + $0x58] sm:$0xff]  }
 0x110   :  { %1935 = vmatprep.subr.bf16.mxu1 %v3406_v40  ;;  %v3497_v40 = vld [vmem:[%s4735_s3 + $0x130] ss:$8 sps:$4 sm:$0xff]  }
 0x113   :  { %1936 = vmatpush1.bf16.msra.mxu1 %v3404_v18  ;;  %v3502_v18 = vld [vmem:[%s4735_s3 + $0x144] ss:$8 sps:$4 sm:$0xff]  }
 0x114   :  { %1937 = vmatprep.subr.bf16.mxu1 %v3409_v3  ;;  %v3543_v3 = vld [vmem:[%s4737_s5 + $0x18] sm:$0xff]  }
 0x115   :  { %v1674_v44 = vpop.f32.mrb[0].mxu1 }
 0x116   :  { %v1676_v46 = vpop.f32.mrb[1].mxu1  ;;  %v1675_v15 = vadd.f32 %v1674_v44, %v343_v13  ;;  %v3545_v44 = vld [vmem:[%s4737_s5 + $0x20] sm:$0xff]  }
 0x117   :  { %v1678_v47 = vpop.f32.mrb[2].mxu1  ;;  %1938 = vmatpush1.bf16.msra.mxu1 %v3407_v51  ;;  %v1677_v17 = vadd.f32 %v1676_v46, %v347_v14  ;;  %v3544_v51 = vld [vmem:[%s4737_s5 + $0x60] sm:$0xff]   ;;  %v3503_v46 = vld [vmem:[%s4735_s3 + $0x150] ss:$8 sps:$4 sm:$0xff]  }
 0x118   :  { %v1679_v50 = vpop.f32.mrb[3].mxu1  ;;  %1939 = vmatprep.subr.bf16.mxu1 %v3412_v41  ;;  %v3500_v41 = vld [vmem:[%s4735_s3 + $0x140] ss:$8 sps:$4 sm:$0xff]   ;;  %v3508_v47 = vld [vmem:[%s4735_s3 + $0x164] ss:$8 sps:$4 sm:$0xff]  }
 0x119   :  { %v3506_v50 = vld [vmem:[%s4735_s3 + $0x160] ss:$8 sps:$4 sm:$0xff]  }
 0x11b   :  { %1940 = vmatpush1.bf16.msra.mxu1 %v3410_v48  ;;  %v3547_v48 = vld [vmem:[%s4737_s5 + $0x28] sm:$0xff]  }
 0x11c   :  { %1941 = vmatprep.subr.bf16.mxu1 %v3415_v52  ;;  %v3511_v52 = vld [vmem:[%s4735_s3 + $0x174] ss:$8 sps:$4 sm:$0xff]  }
 0x11f   :  { %1942 = vmatpush1.bf16.msra.mxu1 %v3413_v55  ;;  %v3512_v55 = vld [vmem:[%s4735_s3 + $0x180] ss:$8 sps:$4 sm:$0xff]  }
 0x120   :  { %1943 = vmatprep.subr.bf16.mxu1 %v3418_v56  ;;  %v3517_v56 = vld [vmem:[%s4735_s3 + $0x194] ss:$8 sps:$4 sm:$0xff]  }
 0x123   :  { %1944 = vmatpush1.bf16.msra.mxu1 %v3416_v58  ;;  %v3520_v58 = vld [vmem:[%s4735_s3 + $0x1a4] ss:$8 sps:$4 sm:$0xff]  }
 0x124   :  { %1945 = vmatprep.subr.bf16.mxu1 %v3421_v59  ;;  %v3518_v59 = vld [vmem:[%s4735_s3 + $0x1a0] ss:$8 sps:$4 sm:$0xff]  }
 0x127   :  { %1946 = vmatpush1.bf16.msra.mxu1 %v3419_v60  ;;  %v3523_v60 = vld [vmem:[%s4735_s3 + $0x1b4] ss:$8 sps:$4 sm:$0xff]  }
 0x128   :  { %1947 = vmatprep.subr.bf16.mxu1 %v3424_v61  ;;  %v3521_v61 = vld [vmem:[%s4735_s3 + $0x1b0] ss:$8 sps:$4 sm:$0xff]  }
 0x12b   :  { %1948 = vmatpush1.bf16.msra.mxu1 %v3422_v62  ;;  %v3526_v62 = vld [vmem:[%s4735_s3 + $0x1c4] ss:$8 sps:$4 sm:$0xff]  }
 0x12c   :  { %1949 = vmatprep.subr.bf16.mxu1 %v3427_v63  ;;  %v3524_v63 = vld [vmem:[%s4735_s3 + $0x1c0] ss:$8 sps:$4 sm:$0xff]  }
 0x12f   :  { %1950 = vmatpush1.bf16.msra.mxu1 %v3425_v0  ;;  %v3529_v0 = vld [vmem:[%s4735_s3 + $0x1d4] ss:$8 sps:$4 sm:$0xff]  }
 0x130   :  { %1951 = vmatprep.subr.bf16.mxu1 %v3430_v1  ;;  %v3527_v1 = vld [vmem:[%s4735_s3 + $0x1d0] ss:$8 sps:$4 sm:$0xff]  }
 0x133   :  { %1952 = vmatpush1.bf16.msra.mxu1 %v3428_v2  ;;  %v3532_v2 = vld [vmem:[%s4735_s3 + $0x1e4] ss:$8 sps:$4 sm:$0xff]  }
 0x134   :  { %1953 = vmatprep.subr.bf16.mxu1 %v3433_v4  ;;  %v3530_v4 = vld [vmem:[%s4735_s3 + $0x1e0] ss:$8 sps:$4 sm:$0xff]  }
 0x137   :  { %1954 = vmatpush1.bf16.msra.mxu1 %v3431_v5  ;;  %v3535_v5 = vld [vmem:[%s4735_s3 + $0x1f4] ss:$8 sps:$4 sm:$0xff]  }
 0x138   :  { %1955 = vmatprep.subr.bf16.mxu1 %v3436_v6  ;;  %v3533_v6 = vld [vmem:[%s4735_s3 + $0x1f0] ss:$8 sps:$4 sm:$0xff]  }
 0x13b   :  { %1956 = vmatpush1.bf16.msra.mxu1 %v3434_v7  ;;  %v350_v7 = vsub.s32 2, %v3739_v43 }
 0x13c   :  { %1957 = vmatprep.subr.bf16.mxu1 %v3439_v8  ;;  %v354_v8 = vsub.s32 3, %v3739_v43 }
 0x13e   :  { %v355_v13 = vrot.slane %v4553_v11, %v354_v8 }
 0x13f   :  { %1958 = vmatpush1.bf16.msra.mxu1 %v3437_v9  ;;  %v351_v9 = vrot.slane %v4553_v11, %v350_v7  ;;  %v3549_v11 = vld [vmem:[%s4737_s5 + $0x30] sm:$0xff]  }
 0x140   :  { %2998 = vmatprep.subr.bf16.mxu1 %v3536_v31 }
 0x142   :  { %1960 = vmatmul.mubr.bf16.vlgmr.msra.gmra.mrb[4].mxu1 %v4256_v37 }
 0x143   :  { %2999 = vmatpush3.bf16.msra.mxu1 %v3537_v32 }
 0x144   :  { %3000 = vmatprep.subr.bf16.mxu1 %v3538_v33 }
 0x147   :  { %3001 = vmatpush3.bf16.msra.mxu1 %v3539_v16 }
 0x148   :  { %3002 = vmatprep.subr.bf16.mxu1 %v3540_v38 }
 0x14b   :  { %3003 = vmatpush3.bf16.msra.mxu1 %v3541_v29 }
 0x14c   :  { %3004 = vmatprep.subr.bf16.mxu1 %v3542_v34 }
 0x14f   :  { %3005 = vmatpush3.bf16.msra.mxu1 %v3543_v3 }
 0x150   :  { %3006 = vmatprep.subr.bf16.mxu1 %v3544_v51 }
 0x153   :  { %3007 = vmatpush3.bf16.msra.mxu1 %v3545_v44 }
 0x154   :  { %3008 = vmatprep.subr.bf16.mxu1 %v3546_v45 }
 0x157   :  { %3009 = vmatpush3.bf16.msra.mxu1 %v3547_v48 }
 0x196   :  { %v1797_v37 = vpop.f32.mrb[0].mxu0 }
 0x197   :  { %v3021_v19 = vadd.f32 %v1797_v37, %v1675_v15  ;;  %v1799_v20 = vpop.f32.mrb[1].mxu0 }
 0x198   :  { %v3023_v21 = vadd.f32 %v1799_v20, %v1677_v17  ;;  %v1801_v22 = vpop.f32.mrb[2].mxu0 }
 0x199   :  { %v1968_v23 = vmax.f32 %v3021_v19, 0.0  ;;  %v1802_v25 = vpop.f32.mrb[3].mxu0 }
 0x19a   :  { %v1969_v26 = vmax.f32 %v3023_v21, 0.0 }
 0x19b   :  { %v1972_v28 = vpack.c.bf16 %v1968_v23, %v1968_v23 }
 0x19c   :  { %v1973_v27 = vpack.c.bf16 %v1969_v26, %v1969_v26  ;;  %v3548_v26 = vld [vmem:[%s4737_s5 + $0x70] sm:$0xff]  }
 0x19d   :  { %3010 = vmatprep.subr.bf16.mxu1 %v3548_v26 }
 0x19e   :  { %2404 = vmatprep.mubr.bf16.mxu0 %v1973_v27  ;;  %3011 = vmatpush3.bf16.msra.mxu1 %v3549_v11  ;;  %v3550_v27 = vld [vmem:[%s4737_s5 + $0x78] sm:$0xff]  }
 0x19f   :  { %2405 = vmatmul.mubr.bf16.vlgmr.msra.gmra.mrb[4].mxu0 %v1972_v28  ;;  %3012 = vmatprep.subr.bf16.mxu1 %v3550_v27  ;;  %v2040_v28 = vld [vmem:[%s4736_s4] sm:$0x3] }
 0x1a0   :  { %2414 = vmatpush1.bf16.msra.mxu0 %v3488_v49  ;;  %v3551_v49 = vld [vmem:[%s4737_s5 + $0x38] sm:$0xff]   ;;  %v2049_v31 = vrot.slane %v2040_v28, %v346_v12 }
 0x1a1   :  { %2415 = vmatprep.subr.bf16.mxu0 %v3493_v30  ;;  %v2045_v30 = vrot.slane %v2040_v28, %v342_v10  ;;  %v2981_v10 = vld [vmem:[%s4738_s6] ss:$0 sm:$0xff]  ;;  %s3581_s6 = smov [#allocation2]  }
 0x1a2   :  { %3013 = vmatpush3.bf16.msra.mxu1 %v3551_v49  ;;  %s2653_s30 = sshll.u32 %s3581_s6, 4  ;;  %s2654_s30 = int_to_ptr.vmem [resolvable:$true] %s2653_s30 }
 0x1a3   :  { %s3556_s8 = scalar_lea.vmem %s2654_s30, 32  ;;  %p3561_p1 = scmp.lt.s32.totalorder %s2654_s30, %s2654_s30 }
 0x1a4   :  { %2416 = vmatpush1.bf16.msra.mxu0 %v3491_v35  ;;  %p3557_p0 = scmp.ne.s32.totalorder %s2654_s30, %s3556_s8  ;;  %p3562_p2 = scmp.lt.s32.totalorder %s3556_s8, %s3556_s8 }
 0x1a5   :  { %2417 = vmatprep.subr.bf16.mxu0 %v3496_v36 }
 0x1a6   :  { %p3563_p3 = por %p3562_p2, %p3561_p1 }
 0x1a8   :  { %2418 = vmatpush1.bf16.msra.mxu0 %v3494_v24  ;;  %p3564_p4 = pnand %p3563_p3, %p3557_p0 }
 0x1a9   :  { %2419 = vmatprep.subr.bf16.mxu0 %v3499_v39 }
 0x1ac   :  { %2420 = vmatpush1.bf16.msra.mxu0 %v3497_v40 }
 0x1ad   :  { %2421 = vmatprep.subr.bf16.mxu0 %v3502_v18 }
 0x1b0   :  { %2422 = vmatpush1.bf16.msra.mxu0 %v3500_v41 }
 0x1b1   :  { %2423 = vmatprep.subr.bf16.mxu0 %v3505_v42 }
 0x1b4   :  { %2424 = vmatpush1.bf16.msra.mxu0 %v3503_v46 }
 0x1b5   :  { %2425 = vmatprep.subr.bf16.mxu0 %v3508_v47 }
 0x1b8   :  { %2426 = vmatpush1.bf16.msra.mxu0 %v3506_v50 }
 0x1b9   :  { %2427 = vmatprep.subr.bf16.mxu0 %v3511_v52 }
 0x1bc   :  { %2428 = vmatpush1.bf16.msra.mxu0 %v3509_v53 }
 0x1bd   :  { %2429 = vmatprep.subr.bf16.mxu0 %v3514_v54 }
 0x1c0   :  { %2430 = vmatpush1.bf16.msra.mxu0 %v3512_v55 }
 0x1c1   :  { %2431 = vmatprep.subr.bf16.mxu0 %v3517_v56 }
 0x1c4   :  { %2432 = vmatpush1.bf16.msra.mxu0 %v3515_v57 }
 0x1c5   :  { %2433 = vmatprep.subr.bf16.mxu0 %v3520_v58 }
 0x1c8   :  { %2434 = vmatpush1.bf16.msra.mxu0 %v3518_v59 }
 0x1c9   :  { %2435 = vmatprep.subr.bf16.mxu0 %v3523_v60 }
 0x1cc   :  { %2436 = vmatpush1.bf16.msra.mxu0 %v3521_v61 }
 0x1cd   :  { %2437 = vmatprep.subr.bf16.mxu0 %v3526_v62 }
 0x1d0   :  { %2438 = vmatpush1.bf16.msra.mxu0 %v3524_v63 }
 0x1d1   :  { %2439 = vmatprep.subr.bf16.mxu0 %v3529_v0 }
 0x1d4   :  { %2440 = vmatpush1.bf16.msra.mxu0 %v3527_v1 }
 0x1d5   :  { %2441 = vmatprep.subr.bf16.mxu0 %v3532_v2 }
 0x1d8   :  { %2442 = vmatpush1.bf16.msra.mxu0 %v3530_v4 }
 0x1d9   :  { %2443 = vmatprep.subr.bf16.mxu0 %v3535_v5 }
 0x1dc   :  { %2444 = vmatpush1.bf16.msra.mxu0 %v3533_v6 }
 0x215   :  { %v1961_v14 = vpop.f32.mrb[4].mxu1 }
 0x216   :  { %v3024_v15 = vadd.f32 %v1961_v14, %v351_v9  ;;  %v1963_v17 = vpop.f32.mrb[5].mxu1 }
 0x217   :  { %v3025_v37 = vadd.f32 %v1963_v17, %v355_v13  ;;  %v1965_v19 = vpop.f32.mrb[6].mxu1 }
 0x218   :  { %v1970_v20 = vmax.f32 %v3024_v15, 0.0  ;;  %v1966_v21 = vpop.f32.mrb[7].mxu1 }
 0x219   :  { %v1971_v22 = vmax.f32 %v3025_v37, 0.0 }
 0x21a   :  { %v1974_v25 = vpack.c.bf16 %v1970_v20, %v1970_v20 }
 0x21b   :  { %v1975_v23 = vpack.c.bf16 %v1971_v22, %v1971_v22 }
 0x21d   :  { %2445 = vmatprep.mubr.bf16.mxu0 %v1975_v23 }
 0x21e   :  { %2446 = vmatmul.mubr.bf16.vlgmr.msra.gmra.mrb[4].mxu0 %v1974_v25 }
 0x2f1   :  { %v2447_v32 = vpop.f32.mrb[4].mxu0 }
 0x2f2   :  { %v3026_v33 = vadd.f32 %v2447_v32, %v2045_v30  ;;  %v2449_v35 = vpop.f32.mrb[5].mxu0 }
 0x2f3   :  { %v3027_v36 = vadd.f32 %v2449_v35, %v2049_v31  ;;  %v2451_v16 = vpop.f32.mrb[6].mxu0 }
 0x2f4   :  { %v2454_v38 = vmax.f32 %v3026_v33, 0.0  ;;  %v2452_v24 = vpop.f32.mrb[7].mxu0 }
 0x2f5   :  { %v2455_v39 = vmax.f32 %v3027_v36, 0.0 }
 0x2f6   :  { %v2456_v34 = vpack.c.bf16 %v2454_v38, %v2454_v38 }
 0x2f7   :  { %v2457_v29 = vpack.c.bf16 %v2455_v39, %v2455_v39 }
 0x2f9   :  { %2625 = vmatprep.mubr.bf16.mxu1 %v2457_v29 }
 0x2fa   :  { %2626 = vmatmul.mubr.bf16.vlgmr.msra.gmra.mrb[8].mxu1 %v2456_v34 }
 0x3cd   :  { %v3014_v40 = vpop.f32.mrb[8].mxu1 }
 0x3ce   :  { %v3015_v18 = vpop.f32.mrb[9].mxu1 }
 0x3cf   :  { %v3016_v43 = vadd.f32 %v3015_v18, %v3014_v40  ;;  %v3017_v12 = vpop.f32.mrb[10].mxu1 }
 0x3d0   :  { %v3018_v3 = vpop.f32.mrb[11].mxu1 }
 0x3d1   :  { %v2628_v51 = vadd.f32 %v3016_v43, %v2981_v10 }
 0x3d3   :  { %v2634_v41 = vsel %vm2633_vm0, %v2628_v51, -inf }
 0x3d4   :  { %2635 = vmax.xlane.f32.xlu0 %v2634_v41 }
 0x461   :  { %v2636_v42 = vpop.xlane.xlu0 %2635 }
 0x462   :  { %v2637_v44 = vsub.f32 %v2628_v51, %v2636_v42 }
 0x464   :  { %v2638_v45 = vmul.f32 1.442695, %v2637_v44 }
 0x466   :  { %3552 = vpow2.f32 %v2638_v45 }
 0x470   :  { %v3553_v46 = vpop.eup %3552 }
 0x471   :  { %v2640_v47 = vsel %vm2633_vm0, %v3553_v46, 0.0 }
 0x472   :  { %2641 = vadd.xlane.f32.xlu0 %v2640_v47 }
 0x4ff   :  { %v2642_v48 = vpop.xlane.xlu0 %2641 }
 0x500   :  { %3554 = vlog2.f32 %v2642_v48 }
 0x50a   :  { %v3555_v50 = vpop.eup %3554 }
 0x50b   :  { %v2644_v52 = vmul.f32 0.6931472, %v3555_v50 }
 0x50d   :  { %v2645_v53 = vsub.f32 %v2637_v44, %v2644_v52 }
 0x50f   :  { %2646 = vst.msk [vmem:[#allocation2] sm:$0x3] %vm2633_vm0, %v2645_v53 }
 0x510   :  { %3567 = shalt.err (!%p3564_p4)
}
 0x511   :  { %s3568_s11 = scalar_lea.hbm %s4739_s7, 32 }
 0x512   :  { %p3569_p5 = scmp.ne.s32.totalorder %s4739_s7, %s3568_s11  ;;  %p3572_p6 = scmp.lt.u32.totalorder %s3568_s11, %s4739_s7 }
 0x514   :  { %p3574_p7 = pnand %p3572_p6, %p3569_p5 }
 0x516   :  { %3577 = shalt.err (!%p3574_p7)
}
 0x517   :  { %2656 = dma.vmem_to_hbm [thread:$0]  %s2654_s30, 32, %s4739_s7, [#allocation3]  }
 0x518   :  { %3578 = dma.done.wait [#allocation3], 32  }
 0x519   :  { %3579 = vsyncadd [#allocation3], 4294967264 }
 0x51a   :  { %2660 = vsyncpa [#allocation3], 1 }

// kernel: pointnet_forward.16
= control target key start
LH: loop header
LB: loop body
LE: loop exit
PB: predicated region body
PF: predicated region fallthrough
CT: control target
= control target key end

     0   :  { %12 = vsyncpa [#allocation3], 0  ;;  %s9879_s0 = inlined_call_operand.vmem [shape: f32[2,1024], index: 0, kind: input, shape index: {}]   ;;  %s9880_s1 = inlined_call_operand.hbm [shape: bf16[1024,512], index: 1, kind: input, shape index: {}]   ;;  %s9881_s2 = inlined_call_operand.vmem [shape: f32[1,512], index: 2, kind: input, shape index: {}]   ;;  %s9882_s3 = inlined_call_operand.hbm [shape: bf16[512,256], index: 3, kind: input, shape index: {}]   ;;  %s9883_s4 = inlined_call_operand.vmem [shape: f32[1,256], index: 4, kind: input, shape index: {}]   ;;  %s9884_s5 = inlined_call_operand.vmem [shape: bf16[256,4096], index: 5, kind: input, shape index: {}]   ;;  %s9885_s6 = inlined_call_operand.vmem [shape: f32[1,4096], index: 6, kind: input, shape index: {}]   ;;  %s9886_s7 = inlined_call_operand.vmem [shape: f32[2,4096], index: 7, kind: output, shape index: {}]  }
   0x1   :  { %13 = vsyncpa [#allocation5], 0  ;;  %s7974_s24 = smov [#allocation2]   ;;  %s7926_s28 = scalar_lea.hbm %s9880_s1, 32768 }
   0x2   :  { %s21_s25 = sshll.u32 %s7974_s24, 4  ;;  %p7927_p0 = scmp.ne.s32.totalorder %s9880_s1, %s7926_s28  ;;  %s22_s25 = int_to_ptr.vmem [resolvable:$true] %s21_s25 }
   0x3   :  { %p7930_p1 = scmp.lt.u32.totalorder %s7926_s28, %s9880_s1 }
   0x5   :  { %p7932_p2 = pnand %p7930_p1, %p7927_p0 }
   0x7   :  { %7935 = shalt.err (!%p7932_p2)
}
   0x8   :  { %s7936_s10 = scalar_lea.vmem %s22_s25, 32768  ;;  %p7941_p4 = scmp.lt.s32.totalorder %s22_s25, %s22_s25 }
   0x9   :  { %p7937_p3 = scmp.ne.s32.totalorder %s22_s25, %s7936_s10  ;;  %p7942_p5 = scmp.lt.s32.totalorder %s7936_s10, %s7936_s10 }
   0xb   :  { %p7943_p6 = por %p7942_p5, %p7941_p4 }
   0xd   :  { %p7944_p7 = pnand %p7943_p6, %p7937_p3 }
   0xf   :  { %7947 = shalt.err (!%p7944_p7)
}
  0x10   :  { %s7975_s11 = smov 256   ;;  %s7976_s12 = smov 16  }
  0x11   :  { %27 = dma.hbm_to_vmem [thread:$0]  %s9880_s1, 32768, %s22_s25, [#allocation3], %s7975_s11, %s7975_s11, %s7976_s12  }
  0x12   :  { %s7977_s15 = smov [#allocation4]   ;;  %s7948_s19 = scalar_lea.hbm %s9882_s3, 8192 }
  0x13   :  { %s35_s16 = sshll.u32 %s7977_s15, 4  ;;  %p7949_p8 = scmp.ne.s32.totalorder %s9882_s3, %s7948_s19  ;;  %s36_s16 = int_to_ptr.vmem [resolvable:$true] %s35_s16 }
  0x14   :  { %p7952_p9 = scmp.lt.u32.totalorder %s7948_s19, %s9882_s3 }
  0x16   :  { %p7954_p10 = pnand %p7952_p9, %p7949_p8 }
  0x18   :  { %7957 = shalt.err (!%p7954_p10)
}
  0x19   :  { %s7958_s24 = scalar_lea.vmem %s36_s16, 8192  ;;  %p7963_p12 = scmp.lt.s32.totalorder %s36_s16, %s36_s16 }
  0x1a   :  { %p7959_p11 = scmp.ne.s32.totalorder %s36_s16, %s7958_s24  ;;  %p7964_p13 = scmp.lt.s32.totalorder %s7958_s24, %s7958_s24 }
  0x1c   :  { %p7965_p0 = por %p7964_p13, %p7963_p12 }
  0x1e   :  { %p7966_p1 = pnand %p7965_p0, %p7959_p11 }
  0x20   :  { %7969 = shalt.err (!%p7966_p1)
}
  0x21   :  { %s7978_s1 = smov 128   ;;  %s7979_s25 = smov 8  }
  0x22   :  { %41 = dma.hbm_to_vmem [thread:$0]  %s9882_s3, 8192, %s36_s16, [#allocation5], %s7978_s1, %s7978_s1, %s7979_s25  }
  0x23   :  { %7970 = dma.done.wait [#allocation3], 32768  }
  0x24   :  { %7971 = vsyncadd [#allocation3], 4294934528 }
  0x25   :  { %7972 = dma.done.wait [#allocation5], 8192  }
  0x26   :  { %7973 = vsyncadd [#allocation5], 4294959104  ;;  %v7443_v0 = vld [vmem:[#allocation2 + $0x4] ss:$16 sps:$4 sm:$0xff]   ;;  %v7445_v1 = vld [vmem:[#allocation2 + $0xc] ss:$16 sps:$4 sm:$0xff]   ;;  %v62_v38 = vlaneseq }
  0x27   :  { %1666 = vmatprep.subr.bf16.mxu0 %v7443_v0  ;;  %v7447_v2 = vld [vmem:[#allocation2] ss:$16 sps:$4 sm:$0xff]   ;;  %v7448_v3 = vld [vmem:[#allocation2 + $0x8] ss:$16 sps:$4 sm:$0xff]   ;;  %1830 = vmatprep.subr.bf16.mxu1 %v7445_v1  ;;  %v7449_v4 = vld [vmem:[#allocation2 + $0x24] ss:$16 sps:$4 sm:$0xff]  }
  0x28   :  { %1667 = vmatpush1.bf16.msra.mxu0 %v7447_v2  ;;  %1831 = vmatpush1.bf16.msra.mxu1 %v7448_v3  ;;  %v7451_v5 = vld [vmem:[#allocation2 + $0x2c] ss:$16 sps:$4 sm:$0xff]   ;;  %v7453_v6 = vld [vmem:[#allocation2 + $0x20] ss:$16 sps:$4 sm:$0xff]   ;;  %v7454_v7 = vld [vmem:[#allocation2 + $0x28] ss:$16 sps:$4 sm:$0xff]  }
  0x29   :  { %1668 = vmatprep.subr.bf16.mxu0 %v7449_v4  ;;  %1832 = vmatprep.subr.bf16.mxu1 %v7451_v5  ;;  %v7455_v8 = vld [vmem:[#allocation2 + $0x44] ss:$16 sps:$4 sm:$0xff]   ;;  %v7457_v9 = vld [vmem:[#allocation2 + $0x4c] ss:$16 sps:$4 sm:$0xff]   ;;  %v7459_v10 = vld [vmem:[#allocation2 + $0x40] ss:$16 sps:$4 sm:$0xff]  }
  0x2a   :  { %v7460_v11 = vld [vmem:[#allocation2 + $0x48] ss:$16 sps:$4 sm:$0xff]   ;;  %v7461_v12 = vld [vmem:[#allocation2 + $0x64] ss:$16 sps:$4 sm:$0xff]   ;;  %v7463_v13 = vld [vmem:[#allocation2 + $0x6c] ss:$16 sps:$4 sm:$0xff]  }
  0x2b   :  { %v7465_v14 = vld [vmem:[#allocation2 + $0x60] ss:$16 sps:$4 sm:$0xff]   ;;  %v7466_v15 = vld [vmem:[#allocation2 + $0x68] ss:$16 sps:$4 sm:$0xff]   ;;  %v7467_v16 = vld [vmem:[#allocation2 + $0x84] ss:$16 sps:$4 sm:$0xff]  }
  0x2c   :  { %1669 = vmatpush1.bf16.msra.mxu0 %v7453_v6  ;;  %1833 = vmatpush1.bf16.msra.mxu1 %v7454_v7  ;;  %v7469_v17 = vld [vmem:[#allocation2 + $0x8c] ss:$16 sps:$4 sm:$0xff]   ;;  %v7471_v18 = vld [vmem:[#allocation2 + $0x80] ss:$16 sps:$4 sm:$0xff]   ;;  %v7472_v19 = vld [vmem:[#allocation2 + $0x88] ss:$16 sps:$4 sm:$0xff]  }
  0x2d   :  { %1670 = vmatprep.subr.bf16.mxu0 %v7455_v8  ;;  %1834 = vmatprep.subr.bf16.mxu1 %v7457_v9  ;;  %v7473_v20 = vld [vmem:[#allocation2 + $0xa4] ss:$16 sps:$4 sm:$0xff]   ;;  %v7475_v21 = vld [vmem:[#allocation2 + $0xac] ss:$16 sps:$4 sm:$0xff]   ;;  %v7477_v22 = vld [vmem:[#allocation2 + $0xa0] ss:$16 sps:$4 sm:$0xff]  }
  0x2e   :  { %v7478_v23 = vld [vmem:[#allocation2 + $0xa8] ss:$16 sps:$4 sm:$0xff]   ;;  %v7479_v24 = vld [vmem:[#allocation2 + $0xc4] ss:$16 sps:$4 sm:$0xff]   ;;  %v7481_v25 = vld [vmem:[#allocation2 + $0xcc] ss:$16 sps:$4 sm:$0xff]  }
  0x2f   :  { %v7483_v26 = vld [vmem:[#allocation2 + $0xc0] ss:$16 sps:$4 sm:$0xff]   ;;  %v7484_v27 = vld [vmem:[#allocation2 + $0xc8] ss:$16 sps:$4 sm:$0xff]   ;;  %v7485_v28 = vld [vmem:[#allocation2 + $0xe4] ss:$16 sps:$4 sm:$0xff]  }
  0x30   :  { %1671 = vmatpush1.bf16.msra.mxu0 %v7459_v10  ;;  %1835 = vmatpush1.bf16.msra.mxu1 %v7460_v11  ;;  %v7487_v29 = vld [vmem:[#allocation2 + $0xec] ss:$16 sps:$4 sm:$0xff]   ;;  %v7489_v30 = vld [vmem:[#allocation2 + $0xe0] ss:$16 sps:$4 sm:$0xff]   ;;  %v7490_v31 = vld [vmem:[#allocation2 + $0xe8] ss:$16 sps:$4 sm:$0xff]  }
  0x31   :  { %1672 = vmatprep.subr.bf16.mxu0 %v7461_v12  ;;  %1836 = vmatprep.subr.bf16.mxu1 %v7463_v13  ;;  %v7491_v32 = vld [vmem:[#allocation2 + $0x104] ss:$16 sps:$4 sm:$0xff]   ;;  %v7493_v33 = vld [vmem:[#allocation2 + $0x10c] ss:$16 sps:$4 sm:$0xff]   ;;  %v7495_v34 = vld [vmem:[#allocation2 + $0x100] ss:$16 sps:$4 sm:$0xff]  }
  0x32   :  { %v7496_v35 = vld [vmem:[#allocation2 + $0x108] ss:$16 sps:$4 sm:$0xff]   ;;  %v7980_v36 = vmov 1983009808   ;;  %v7497_v39 = vld [vmem:[#allocation2 + $0x124] ss:$16 sps:$4 sm:$0xff]  }
  0x33   :  { %v60_v37 = vunpack.c.l.s4 %v7980_v36  ;;  %v7499_v40 = vld [vmem:[#allocation2 + $0x12c] ss:$16 sps:$4 sm:$0xff]   ;;  %v7501_v41 = vld [vmem:[#allocation2 + $0x120] ss:$16 sps:$4 sm:$0xff]   ;;  %v8045_v43 = vshrl.u32 %v62_v38, 7 }
  0x34   :  { %1673 = vmatpush1.bf16.msra.mxu0 %v7465_v14  ;;  %1837 = vmatpush1.bf16.msra.mxu1 %v7466_v15  ;;  %v7502_v44 = vld [vmem:[#allocation2 + $0x128] ss:$16 sps:$4 sm:$0xff]   ;;  %v7503_v45 = vld [vmem:[#allocation2 + $0x144] ss:$16 sps:$4 sm:$0xff]   ;;  %v7505_v46 = vld [vmem:[#allocation2 + $0x14c] ss:$16 sps:$4 sm:$0xff]  }
  0x35   :  { %1674 = vmatprep.subr.bf16.mxu0 %v7467_v16  ;;  %1838 = vmatprep.subr.bf16.mxu1 %v7469_v17  ;;  %v61_v42 = vunpack.c.0.s8 %v60_v37  ;;  %v7507_v47 = vld [vmem:[#allocation2 + $0x140] ss:$16 sps:$4 sm:$0xff]   ;;  %v7508_v48 = vld [vmem:[#allocation2 + $0x148] ss:$16 sps:$4 sm:$0xff]   ;;  %v7509_v50 = vld [vmem:[#allocation2 + $0x164] ss:$16 sps:$4 sm:$0xff]  }
  0x36   :  { %v7511_v51 = vld [vmem:[#allocation2 + $0x16c] ss:$16 sps:$4 sm:$0xff]   ;;  %v54_v52 = vld [vmem:[%s9879_s0] sm:$0xff]  ;;  %v7514_v55 = vld [vmem:[#allocation2 + $0x168] ss:$16 sps:$4 sm:$0xff]  }
  0x37   :  { %v8048_v49 = vsub.s32 %v61_v42, %v8045_v43  ;;  %v7513_v53 = vld [vmem:[#allocation2 + $0x160] ss:$16 sps:$4 sm:$0xff]   ;;  %v7515_v56 = vld [vmem:[#allocation2 + $0x184] ss:$16 sps:$4 sm:$0xff]   ;;  %v7517_v57 = vld [vmem:[#allocation2 + $0x18c] ss:$16 sps:$4 sm:$0xff]   ;;  %v58_v4 = vcombine.high %v54_v52, %v54_v52 }
  0x38   :  { %1675 = vmatpush1.bf16.msra.mxu0 %v7471_v18  ;;  %1839 = vmatpush1.bf16.msra.mxu1 %v7472_v19  ;;  %v7519_v59 = vld [vmem:[#allocation2 + $0x180] ss:$16 sps:$4 sm:$0xff]   ;;  %v7520_v61 = vld [vmem:[#allocation2 + $0x188] ss:$16 sps:$4 sm:$0xff]   ;;  %v7521_v62 = vld [vmem:[#allocation2 + $0x1a4] ss:$16 sps:$4 sm:$0xff]  }
  0x39   :  { %1676 = vmatprep.subr.bf16.mxu0 %v7473_v20  ;;  %1840 = vmatprep.subr.bf16.mxu1 %v7475_v21  ;;  %v65_v54 = vrot.slane %v54_v52, %v8048_v49  ;;  %v7523_v63 = vld [vmem:[#allocation2 + $0x1ac] ss:$16 sps:$4 sm:$0xff]   ;;  %v7525_v0 = vld [vmem:[#allocation2 + $0x1a0] ss:$16 sps:$4 sm:$0xff]   ;;  %v7526_v1 = vld [vmem:[#allocation2 + $0x1a8] ss:$16 sps:$4 sm:$0xff]   ;;  %v8055_v9 = vrot.slane %v58_v4, %v8048_v49 }
  0x3a   :  { %v7527_v2 = vld [vmem:[#allocation2 + $0x1c4] ss:$16 sps:$4 sm:$0xff]   ;;  %v7529_v3 = vld [vmem:[#allocation2 + $0x1cc] ss:$16 sps:$4 sm:$0xff]   ;;  %v7531_v5 = vld [vmem:[#allocation2 + $0x1c0] ss:$16 sps:$4 sm:$0xff]  }
  0x3b   :  { %v73_v58 = vcombine.high %v65_v54, %v65_v54  ;;  %v7532_v6 = vld [vmem:[#allocation2 + $0x1c8] ss:$16 sps:$4 sm:$0xff]   ;;  %v7533_v7 = vld [vmem:[#allocation2 + $0x1e4] ss:$16 sps:$4 sm:$0xff]   ;;  %v7535_v8 = vld [vmem:[#allocation2 + $0x1ec] ss:$16 sps:$4 sm:$0xff]   ;;  %v74_v14 = vcombine.high %v8055_v9, %v8055_v9  ;;  %v100_v16 = vpack.c.bf16 %v65_v54, %v65_v54 }
  0x3c   :  { %1677 = vmatpush1.bf16.msra.mxu0 %v7477_v22  ;;  %1841 = vmatpush1.bf16.msra.mxu1 %v7478_v23  ;;  %v7537_v10 = vld [vmem:[#allocation2 + $0x1e0] ss:$16 sps:$4 sm:$0xff]   ;;  %v7538_v11 = vld [vmem:[#allocation2 + $0x1e8] ss:$16 sps:$4 sm:$0xff]   ;;  %v7542_v12 = vld [vmem:[#allocation2 + $0x204] ss:$16 sps:$4 sm:$0xff]  }
  0x3d   :  { %1678 = vmatprep.subr.bf16.mxu0 %v7479_v24  ;;  %1842 = vmatprep.subr.bf16.mxu1 %v7481_v25  ;;  %v101_v60 = vpack.c.bf16 %v73_v58, %v73_v58  ;;  %v7545_v13 = vld [vmem:[#allocation2 + $0x20c] ss:$16 sps:$4 sm:$0xff]   ;;  %v7540_v15 = vld [vmem:[#allocation2 + $0x200] ss:$16 sps:$4 sm:$0xff]   ;;  %v7543_v17 = vld [vmem:[#allocation2 + $0x208] ss:$16 sps:$4 sm:$0xff]   ;;  %v103_v20 = vpack.c.bf16 %v74_v14, %v74_v14 }
  0x3e   :  { %v7548_v18 = vld [vmem:[#allocation2 + $0x224] ss:$16 sps:$4 sm:$0xff]   ;;  %v7551_v19 = vld [vmem:[#allocation2 + $0x22c] ss:$16 sps:$4 sm:$0xff]   ;;  %v7546_v21 = vld [vmem:[#allocation2 + $0x220] ss:$16 sps:$4 sm:$0xff]  }
  0x3f   :  { %1698 = vmatprep.mubr.bf16.mxu0 %v101_v60  ;;  %1862 = vmatprep.mubr.bf16.mxu1 %v101_v60  ;;  %v7549_v22 = vld [vmem:[#allocation2 + $0x228] ss:$16 sps:$4 sm:$0xff]   ;;  %v7554_v23 = vld [vmem:[#allocation2 + $0x244] ss:$16 sps:$4 sm:$0xff]   ;;  %v7557_v24 = vld [vmem:[#allocation2 + $0x24c] ss:$16 sps:$4 sm:$0xff]  }
  0x40   :  { %1679 = vmatpush1.bf16.msra.mxu0 %v7483_v26  ;;  %1843 = vmatpush1.bf16.msra.mxu1 %v7484_v27  ;;  %v7552_v25 = vld [vmem:[#allocation2 + $0x240] ss:$16 sps:$4 sm:$0xff]   ;;  %v7555_v26 = vld [vmem:[#allocation2 + $0x248] ss:$16 sps:$4 sm:$0xff]   ;;  %v7560_v27 = vld [vmem:[#allocation2 + $0x264] ss:$16 sps:$4 sm:$0xff]  }
  0x41   :  { %1680 = vmatprep.subr.bf16.mxu0 %v7485_v28  ;;  %1844 = vmatprep.subr.bf16.mxu1 %v7487_v29  ;;  %v7563_v28 = vld [vmem:[#allocation2 + $0x26c] ss:$16 sps:$4 sm:$0xff]   ;;  %v7558_v29 = vld [vmem:[#allocation2 + $0x260] ss:$16 sps:$4 sm:$0xff]   ;;  %v7573_v38 = vld [vmem:[#allocation2 + $0x2a8] ss:$16 sps:$4 sm:$0xff]  }
  0x42   :  { %v7575_v36 = vld [vmem:[#allocation2 + $0x2ac] ss:$16 sps:$4 sm:$0xff]   ;;  %v7570_v37 = vld [vmem:[#allocation2 + $0x2a0] ss:$16 sps:$4 sm:$0xff]   ;;  %v7579_v42 = vld [vmem:[#allocation2 + $0x2c8] ss:$16 sps:$4 sm:$0xff]  }
  0x43   :  { %v7591_v52 = vld [vmem:[#allocation2 + $0x308] ss:$16 sps:$4 sm:$0xff]   ;;  %v7599_v54 = vld [vmem:[#allocation2 + $0x32c] ss:$16 sps:$4 sm:$0xff]   ;;  %v7632_v14 = vld [vmem:[#allocation2 + $0x3e4] ss:$16 sps:$4 sm:$0xff]  }
  0x44   :  { %1681 = vmatpush1.bf16.msra.mxu0 %v7489_v30  ;;  %1845 = vmatpush1.bf16.msra.mxu1 %v7490_v31  ;;  %v7561_v30 = vld [vmem:[#allocation2 + $0x268] ss:$16 sps:$4 sm:$0xff]   ;;  %v7566_v31 = vld [vmem:[#allocation2 + $0x284] ss:$16 sps:$4 sm:$0xff]   ;;  %v7605_v58 = vld [vmem:[#allocation2 + $0x34c] ss:$16 sps:$4 sm:$0xff]  }
  0x45   :  { %1682 = vmatprep.subr.bf16.mxu0 %v7491_v32  ;;  %1846 = vmatprep.subr.bf16.mxu1 %v7493_v33  ;;  %v7569_v32 = vld [vmem:[#allocation2 + $0x28c] ss:$16 sps:$4 sm:$0xff]   ;;  %v7564_v33 = vld [vmem:[#allocation2 + $0x280] ss:$16 sps:$4 sm:$0xff]   ;;  %v7603_v60 = vld [vmem:[#allocation2 + $0x348] ss:$16 sps:$4 sm:$0xff]  }
  0x46   :  { %v7615_v4 = vld [vmem:[#allocation2 + $0x388] ss:$16 sps:$4 sm:$0xff]  }
  0x48   :  { %1683 = vmatpush1.bf16.msra.mxu0 %v7495_v34  ;;  %1847 = vmatpush1.bf16.msra.mxu1 %v7496_v35  ;;  %v7567_v34 = vld [vmem:[#allocation2 + $0x288] ss:$16 sps:$4 sm:$0xff]   ;;  %v7572_v35 = vld [vmem:[#allocation2 + $0x2a4] ss:$16 sps:$4 sm:$0xff]  }
  0x49   :  { %1684 = vmatprep.subr.bf16.mxu0 %v7497_v39  ;;  %1848 = vmatprep.subr.bf16.mxu1 %v7499_v40  ;;  %v7578_v39 = vld [vmem:[#allocation2 + $0x2c4] ss:$16 sps:$4 sm:$0xff]   ;;  %v7581_v40 = vld [vmem:[#allocation2 + $0x2cc] ss:$16 sps:$4 sm:$0xff]  }
  0x4c   :  { %1685 = vmatpush1.bf16.msra.mxu0 %v7501_v41  ;;  %1849 = vmatpush1.bf16.msra.mxu1 %v7502_v44  ;;  %v7576_v41 = vld [vmem:[#allocation2 + $0x2c0] ss:$16 sps:$4 sm:$0xff]   ;;  %v7584_v44 = vld [vmem:[#allocation2 + $0x2e4] ss:$16 sps:$4 sm:$0xff]  }
  0x4d   :  { %1686 = vmatprep.subr.bf16.mxu0 %v7503_v45  ;;  %1850 = vmatprep.subr.bf16.mxu1 %v7505_v46  ;;  %v7587_v45 = vld [vmem:[#allocation2 + $0x2ec] ss:$16 sps:$4 sm:$0xff]   ;;  %v7582_v46 = vld [vmem:[#allocation2 + $0x2e0] ss:$16 sps:$4 sm:$0xff]  }
  0x50   :  { %1687 = vmatpush1.bf16.msra.mxu0 %v7507_v47  ;;  %1851 = vmatpush1.bf16.msra.mxu1 %v7508_v48  ;;  %v7585_v47 = vld [vmem:[#allocation2 + $0x2e8] ss:$16 sps:$4 sm:$0xff]   ;;  %v7590_v48 = vld [vmem:[#allocation2 + $0x304] ss:$16 sps:$4 sm:$0xff]  }
  0x51   :  { %1688 = vmatprep.subr.bf16.mxu0 %v7509_v50  ;;  %1852 = vmatprep.subr.bf16.mxu1 %v7511_v51  ;;  %v7593_v50 = vld [vmem:[#allocation2 + $0x30c] ss:$16 sps:$4 sm:$0xff]   ;;  %v7588_v51 = vld [vmem:[#allocation2 + $0x300] ss:$16 sps:$4 sm:$0xff]  }
  0x54   :  { %1689 = vmatpush1.bf16.msra.mxu0 %v7513_v53  ;;  %1853 = vmatpush1.bf16.msra.mxu1 %v7514_v55  ;;  %v7596_v53 = vld [vmem:[#allocation2 + $0x324] ss:$16 sps:$4 sm:$0xff]   ;;  %v7594_v55 = vld [vmem:[#allocation2 + $0x320] ss:$16 sps:$4 sm:$0xff]  }
  0x55   :  { %1690 = vmatprep.subr.bf16.mxu0 %v7515_v56  ;;  %1854 = vmatprep.subr.bf16.mxu1 %v7517_v57  ;;  %v7597_v56 = vld [vmem:[#allocation2 + $0x328] ss:$16 sps:$4 sm:$0xff]   ;;  %v7602_v57 = vld [vmem:[#allocation2 + $0x344] ss:$16 sps:$4 sm:$0xff]  }
  0x58   :  { %1691 = vmatpush1.bf16.msra.mxu0 %v7519_v59  ;;  %1855 = vmatpush1.bf16.msra.mxu1 %v7520_v61  ;;  %v7600_v59 = vld [vmem:[#allocation2 + $0x340] ss:$16 sps:$4 sm:$0xff]   ;;  %v7608_v61 = vld [vmem:[#allocation2 + $0x364] ss:$16 sps:$4 sm:$0xff]  }
  0x59   :  { %1692 = vmatprep.subr.bf16.mxu0 %v7521_v62  ;;  %1856 = vmatprep.subr.bf16.mxu1 %v7523_v63  ;;  %v7611_v62 = vld [vmem:[#allocation2 + $0x36c] ss:$16 sps:$4 sm:$0xff]   ;;  %v7606_v63 = vld [vmem:[#allocation2 + $0x360] ss:$16 sps:$4 sm:$0xff]  }
  0x5c   :  { %1693 = vmatpush1.bf16.msra.mxu0 %v7525_v0  ;;  %1857 = vmatpush1.bf16.msra.mxu1 %v7526_v1  ;;  %v7609_v0 = vld [vmem:[#allocation2 + $0x368] ss:$16 sps:$4 sm:$0xff]   ;;  %v7614_v1 = vld [vmem:[#allocation2 + $0x384] ss:$16 sps:$4 sm:$0xff]  }
  0x5d   :  { %1694 = vmatprep.subr.bf16.mxu0 %v7527_v2  ;;  %1858 = vmatprep.subr.bf16.mxu1 %v7529_v3  ;;  %v7617_v2 = vld [vmem:[#allocation2 + $0x38c] ss:$16 sps:$4 sm:$0xff]   ;;  %v7612_v3 = vld [vmem:[#allocation2 + $0x380] ss:$16 sps:$4 sm:$0xff]  }
  0x60   :  { %1695 = vmatpush1.bf16.msra.mxu0 %v7531_v5  ;;  %1859 = vmatpush1.bf16.msra.mxu1 %v7532_v6  ;;  %v7620_v5 = vld [vmem:[#allocation2 + $0x3a4] ss:$16 sps:$4 sm:$0xff]   ;;  %v7623_v6 = vld [vmem:[#allocation2 + $0x3ac] ss:$16 sps:$4 sm:$0xff]  }
  0x61   :  { %1696 = vmatprep.subr.bf16.mxu0 %v7533_v7  ;;  %1860 = vmatprep.subr.bf16.mxu1 %v7535_v8  ;;  %v7618_v7 = vld [vmem:[#allocation2 + $0x3a0] ss:$16 sps:$4 sm:$0xff]   ;;  %v7621_v8 = vld [vmem:[#allocation2 + $0x3a8] ss:$16 sps:$4 sm:$0xff]  }
  0x64   :  { %1697 = vmatpush1.bf16.msra.mxu0 %v7537_v10  ;;  %1861 = vmatpush1.bf16.msra.mxu1 %v7538_v11  ;;  %v7626_v10 = vld [vmem:[#allocation2 + $0x3c4] ss:$16 sps:$4 sm:$0xff]   ;;  %v7629_v11 = vld [vmem:[#allocation2 + $0x3cc] ss:$16 sps:$4 sm:$0xff]  }
  0x65   :  { %1707 = vmatprep.subr.bf16.mxu0 %v7542_v12  ;;  %1871 = vmatprep.subr.bf16.mxu1 %v7545_v13  ;;  %v7624_v12 = vld [vmem:[#allocation2 + $0x3c0] ss:$16 sps:$4 sm:$0xff]   ;;  %v7627_v13 = vld [vmem:[#allocation2 + $0x3c8] ss:$16 sps:$4 sm:$0xff]  }
  0x67   :  { %1699 = vmatmul.mubr.bf16.vlgmr.msra.gmra.mrb[0].mxu0 %v100_v16  ;;  %1863 = vmatmul.mubr.bf16.vlgmr.msra.gmra.mrb[0].mxu1 %v100_v16  ;;  %v7630_v16 = vld [vmem:[#allocation2 + $0x3e0] ss:$16 sps:$4 sm:$0xff]  }
  0x68   :  { %1708 = vmatpush1.bf16.msra.mxu0 %v7540_v15  ;;  %1872 = vmatpush1.bf16.msra.mxu1 %v7543_v17  ;;  %v7635_v15 = vld [vmem:[#allocation2 + $0x3ec] ss:$16 sps:$4 sm:$0xff]   ;;  %v7633_v17 = vld [vmem:[#allocation2 + $0x3e8] ss:$16 sps:$4 sm:$0xff]  }
  0x69   :  { %1709 = vmatprep.subr.bf16.mxu0 %v7548_v18  ;;  %1873 = vmatprep.subr.bf16.mxu1 %v7551_v19  ;;  %v7638_v18 = vld [vmem:[#allocation2 + $0x404] ss:$16 sps:$4 sm:$0xff]   ;;  %v7641_v19 = vld [vmem:[#allocation2 + $0x40c] ss:$16 sps:$4 sm:$0xff]  }
  0x6a   :  { %1739 = vmatprep.mubr.bf16.mxu0 %v103_v20  ;;  %1903 = vmatprep.mubr.bf16.mxu1 %v103_v20  ;;  %v7636_v20 = vld [vmem:[#allocation2 + $0x400] ss:$16 sps:$4 sm:$0xff]  }
  0x6c   :  { %1710 = vmatpush1.bf16.msra.mxu0 %v7546_v21  ;;  %1874 = vmatpush1.bf16.msra.mxu1 %v7549_v22  ;;  %v102_v21 = vpack.c.bf16 %v8055_v9, %v8055_v9  ;;  %v7639_v22 = vld [vmem:[#allocation2 + $0x408] ss:$16 sps:$4 sm:$0xff]  }
  0x6d   :  { %1711 = vmatprep.subr.bf16.mxu0 %v7554_v23  ;;  %1875 = vmatprep.subr.bf16.mxu1 %v7557_v24  ;;  %v8064_v23 = vld [vmem:[%s9879_s0 + $0x8] sm:$0xff]  ;;  %v7644_v24 = vld [vmem:[#allocation2 + $0x424] ss:$16 sps:$4 sm:$0xff]  }
  0x70   :  { %1712 = vmatpush1.bf16.msra.mxu0 %v7552_v25  ;;  %1876 = vmatpush1.bf16.msra.mxu1 %v7555_v26  ;;  %v7647_v25 = vld [vmem:[#allocation2 + $0x42c] ss:$16 sps:$4 sm:$0xff]   ;;  %v8068_v26 = vrot.slane %v8064_v23, %v8048_v49 }
  0x71   :  { %1713 = vmatprep.subr.bf16.mxu0 %v7560_v27  ;;  %1877 = vmatprep.subr.bf16.mxu1 %v7563_v28  ;;  %v7642_v27 = vld [vmem:[#allocation2 + $0x420] ss:$16 sps:$4 sm:$0xff]   ;;  %v7645_v28 = vld [vmem:[#allocation2 + $0x428] ss:$16 sps:$4 sm:$0xff]  }
  0x72   :  { %v90_v9 = vcombine.high %v8068_v26, %v8068_v26 }
  0x74   :  { %1714 = vmatpush1.bf16.msra.mxu0 %v7558_v29  ;;  %1878 = vmatpush1.bf16.msra.mxu1 %v7561_v30  ;;  %v7650_v29 = vld [vmem:[#allocation2 + $0x444] ss:$16 sps:$4 sm:$0xff]   ;;  %v7653_v30 = vld [vmem:[#allocation2 + $0x44c] ss:$16 sps:$4 sm:$0xff]  }
  0x75   :  { %1715 = vmatprep.subr.bf16.mxu0 %v7566_v31  ;;  %1879 = vmatprep.subr.bf16.mxu1 %v7569_v32  ;;  %v105_v31 = vpack.c.bf16 %v90_v9, %v90_v9  ;;  %v7648_v32 = vld [vmem:[#allocation2 + $0x440] ss:$16 sps:$4 sm:$0xff]  }
  0x76   :  { %v7726_v9 = vld [vmem:[#allocation2 + $0x5e0] ss:$16 sps:$4 sm:$0xff]  }
  0x78   :  { %1716 = vmatpush1.bf16.msra.mxu0 %v7564_v33  ;;  %1880 = vmatpush1.bf16.msra.mxu1 %v7567_v34  ;;  %v7651_v33 = vld [vmem:[#allocation2 + $0x448] ss:$16 sps:$4 sm:$0xff]   ;;  %v7656_v34 = vld [vmem:[#allocation2 + $0x464] ss:$16 sps:$4 sm:$0xff]  }
  0x79   :  { %1717 = vmatprep.subr.bf16.mxu0 %v7572_v35  ;;  %1881 = vmatprep.subr.bf16.mxu1 %v7575_v36  ;;  %v7659_v35 = vld [vmem:[#allocation2 + $0x46c] ss:$16 sps:$4 sm:$0xff]   ;;  %v7654_v36 = vld [vmem:[#allocation2 + $0x460] ss:$16 sps:$4 sm:$0xff]  }
  0x7c   :  { %1718 = vmatpush1.bf16.msra.mxu0 %v7570_v37  ;;  %1882 = vmatpush1.bf16.msra.mxu1 %v7573_v38  ;;  %v7657_v37 = vld [vmem:[#allocation2 + $0x468] ss:$16 sps:$4 sm:$0xff]   ;;  %v7662_v38 = vld [vmem:[#allocation2 + $0x484] ss:$16 sps:$4 sm:$0xff]  }
  0x7d   :  { %1719 = vmatprep.subr.bf16.mxu0 %v7578_v39  ;;  %1883 = vmatprep.subr.bf16.mxu1 %v7581_v40  ;;  %v7665_v39 = vld [vmem:[#allocation2 + $0x48c] ss:$16 sps:$4 sm:$0xff]   ;;  %v7660_v40 = vld [vmem:[#allocation2 + $0x480] ss:$16 sps:$4 sm:$0xff]  }
  0x80   :  { %1720 = vmatpush1.bf16.msra.mxu0 %v7576_v41  ;;  %1884 = vmatpush1.bf16.msra.mxu1 %v7579_v42  ;;  %v7663_v41 = vld [vmem:[#allocation2 + $0x488] ss:$16 sps:$4 sm:$0xff]   ;;  %v7668_v42 = vld [vmem:[#allocation2 + $0x4a4] ss:$16 sps:$4 sm:$0xff]  }
  0x81   :  { %1721 = vmatprep.subr.bf16.mxu0 %v7584_v44  ;;  %1885 = vmatprep.subr.bf16.mxu1 %v7587_v45  ;;  %v7671_v44 = vld [vmem:[#allocation2 + $0x4ac] ss:$16 sps:$4 sm:$0xff]   ;;  %v7666_v45 = vld [vmem:[#allocation2 + $0x4a0] ss:$16 sps:$4 sm:$0xff]  }
  0x84   :  { %1722 = vmatpush1.bf16.msra.mxu0 %v7582_v46  ;;  %1886 = vmatpush1.bf16.msra.mxu1 %v7585_v47  ;;  %v7669_v46 = vld [vmem:[#allocation2 + $0x4a8] ss:$16 sps:$4 sm:$0xff]   ;;  %v7674_v47 = vld [vmem:[#allocation2 + $0x4c4] ss:$16 sps:$4 sm:$0xff]  }
  0x85   :  { %1723 = vmatprep.subr.bf16.mxu0 %v7590_v48  ;;  %1887 = vmatprep.subr.bf16.mxu1 %v7593_v50  ;;  %v7677_v48 = vld [vmem:[#allocation2 + $0x4cc] ss:$16 sps:$4 sm:$0xff]   ;;  %v7672_v50 = vld [vmem:[#allocation2 + $0x4c0] ss:$16 sps:$4 sm:$0xff]  }
  0x88   :  { %1724 = vmatpush1.bf16.msra.mxu0 %v7588_v51  ;;  %1888 = vmatpush1.bf16.msra.mxu1 %v7591_v52  ;;  %v7675_v51 = vld [vmem:[#allocation2 + $0x4c8] ss:$16 sps:$4 sm:$0xff]   ;;  %v7680_v52 = vld [vmem:[#allocation2 + $0x4e4] ss:$16 sps:$4 sm:$0xff]  }
  0x89   :  { %1725 = vmatprep.subr.bf16.mxu0 %v7596_v53  ;;  %1889 = vmatprep.subr.bf16.mxu1 %v7599_v54  ;;  %v7683_v53 = vld [vmem:[#allocation2 + $0x4ec] ss:$16 sps:$4 sm:$0xff]   ;;  %v7678_v54 = vld [vmem:[#allocation2 + $0x4e0] ss:$16 sps:$4 sm:$0xff]  }
  0x8c   :  { %1726 = vmatpush1.bf16.msra.mxu0 %v7594_v55  ;;  %1890 = vmatpush1.bf16.msra.mxu1 %v7597_v56  ;;  %v7681_v55 = vld [vmem:[#allocation2 + $0x4e8] ss:$16 sps:$4 sm:$0xff]   ;;  %v7686_v56 = vld [vmem:[#allocation2 + $0x504] ss:$16 sps:$4 sm:$0xff]  }
  0x8d   :  { %1727 = vmatprep.subr.bf16.mxu0 %v7602_v57  ;;  %1891 = vmatprep.subr.bf16.mxu1 %v7605_v58  ;;  %v7689_v57 = vld [vmem:[#allocation2 + $0x50c] ss:$16 sps:$4 sm:$0xff]   ;;  %v7684_v58 = vld [vmem:[#allocation2 + $0x500] ss:$16 sps:$4 sm:$0xff]  }
  0x90   :  { %1728 = vmatpush1.bf16.msra.mxu0 %v7600_v59  ;;  %1892 = vmatpush1.bf16.msra.mxu1 %v7603_v60  ;;  %v7687_v59 = vld [vmem:[#allocation2 + $0x508] ss:$16 sps:$4 sm:$0xff]   ;;  %v7692_v60 = vld [vmem:[#allocation2 + $0x524] ss:$16 sps:$4 sm:$0xff]  }
  0x91   :  { %1729 = vmatprep.subr.bf16.mxu0 %v7608_v61  ;;  %1893 = vmatprep.subr.bf16.mxu1 %v7611_v62  ;;  %v7695_v61 = vld [vmem:[#allocation2 + $0x52c] ss:$16 sps:$4 sm:$0xff]   ;;  %v7690_v62 = vld [vmem:[#allocation2 + $0x520] ss:$16 sps:$4 sm:$0xff]  }
  0x94   :  { %1730 = vmatpush1.bf16.msra.mxu0 %v7606_v63  ;;  %1894 = vmatpush1.bf16.msra.mxu1 %v7609_v0  ;;  %v7693_v63 = vld [vmem:[#allocation2 + $0x528] ss:$16 sps:$4 sm:$0xff]   ;;  %v7698_v0 = vld [vmem:[#allocation2 + $0x544] ss:$16 sps:$4 sm:$0xff]  }
  0x95   :  { %1731 = vmatprep.subr.bf16.mxu0 %v7614_v1  ;;  %1895 = vmatprep.subr.bf16.mxu1 %v7617_v2  ;;  %v7701_v1 = vld [vmem:[#allocation2 + $0x54c] ss:$16 sps:$4 sm:$0xff]   ;;  %v7696_v2 = vld [vmem:[#allocation2 + $0x540] ss:$16 sps:$4 sm:$0xff]  }
  0x98   :  { %1732 = vmatpush1.bf16.msra.mxu0 %v7612_v3  ;;  %1896 = vmatpush1.bf16.msra.mxu1 %v7615_v4  ;;  %v7699_v3 = vld [vmem:[#allocation2 + $0x548] ss:$16 sps:$4 sm:$0xff]   ;;  %v7704_v4 = vld [vmem:[#allocation2 + $0x564] ss:$16 sps:$4 sm:$0xff]  }
  0x99   :  { %1733 = vmatprep.subr.bf16.mxu0 %v7620_v5  ;;  %1897 = vmatprep.subr.bf16.mxu1 %v7623_v6  ;;  %v7707_v5 = vld [vmem:[#allocation2 + $0x56c] ss:$16 sps:$4 sm:$0xff]   ;;  %v7702_v6 = vld [vmem:[#allocation2 + $0x560] ss:$16 sps:$4 sm:$0xff]  }
  0x9c   :  { %1734 = vmatpush1.bf16.msra.mxu0 %v7618_v7  ;;  %1898 = vmatpush1.bf16.msra.mxu1 %v7621_v8  ;;  %v7705_v7 = vld [vmem:[#allocation2 + $0x568] ss:$16 sps:$4 sm:$0xff]   ;;  %v7710_v8 = vld [vmem:[#allocation2 + $0x584] ss:$16 sps:$4 sm:$0xff]  }
  0x9d   :  { %1735 = vmatprep.subr.bf16.mxu0 %v7626_v10  ;;  %1899 = vmatprep.subr.bf16.mxu1 %v7629_v11  ;;  %v7713_v10 = vld [vmem:[#allocation2 + $0x58c] ss:$16 sps:$4 sm:$0xff]   ;;  %v7708_v11 = vld [vmem:[#allocation2 + $0x580] ss:$16 sps:$4 sm:$0xff]  }
  0xa0   :  { %1736 = vmatpush1.bf16.msra.mxu0 %v7624_v12  ;;  %1900 = vmatpush1.bf16.msra.mxu1 %v7627_v13  ;;  %v7711_v12 = vld [vmem:[#allocation2 + $0x588] ss:$16 sps:$4 sm:$0xff]   ;;  %v7716_v13 = vld [vmem:[#allocation2 + $0x5a4] ss:$16 sps:$4 sm:$0xff]  }
  0xa1   :  { %1737 = vmatprep.subr.bf16.mxu0 %v7632_v14  ;;  %1901 = vmatprep.subr.bf16.mxu1 %v7635_v15  ;;  %v7719_v14 = vld [vmem:[#allocation2 + $0x5ac] ss:$16 sps:$4 sm:$0xff]   ;;  %v7714_v15 = vld [vmem:[#allocation2 + $0x5a0] ss:$16 sps:$4 sm:$0xff]  }
  0xa4   :  { %1738 = vmatpush1.bf16.msra.mxu0 %v7630_v16  ;;  %1902 = vmatpush1.bf16.msra.mxu1 %v7633_v17  ;;  %v7717_v16 = vld [vmem:[#allocation2 + $0x5a8] ss:$16 sps:$4 sm:$0xff]   ;;  %v7722_v17 = vld [vmem:[#allocation2 + $0x5c4] ss:$16 sps:$4 sm:$0xff]  }
  0xa5   :  { %1748 = vmatprep.subr.bf16.mxu0 %v7638_v18  ;;  %1912 = vmatprep.subr.bf16.mxu1 %v7641_v19  ;;  %v7725_v18 = vld [vmem:[#allocation2 + $0x5cc] ss:$16 sps:$4 sm:$0xff]   ;;  %v75_v19 = vcombine.high %v8064_v23, %v8064_v23  ;;  %v7732_v23 = vld [vmem:[#allocation2 + $0x600] ss:$16 sps:$4 sm:$0xff]  }
  0xa7   :  { %1740 = vmatmul.mubr.bf16.vlgmr.msra.gmra.mrb[0].mxu0 %v102_v21  ;;  %1904 = vmatmul.mubr.bf16.vlgmr.msra.gmra.mrb[0].mxu1 %v102_v21  ;;  %v7723_v21 = vld [vmem:[#allocation2 + $0x5c8] ss:$16 sps:$4 sm:$0xff]  }
  0xa8   :  { %1749 = vmatpush1.bf16.msra.mxu0 %v7636_v20  ;;  %1913 = vmatpush1.bf16.msra.mxu1 %v7639_v22  ;;  %v7720_v20 = vld [vmem:[#allocation2 + $0x5c0] ss:$16 sps:$4 sm:$0xff]   ;;  %v7728_v22 = vld [vmem:[#allocation2 + $0x5e4] ss:$16 sps:$4 sm:$0xff]  }
  0xa9   :  { %1750 = vmatprep.subr.bf16.mxu0 %v7644_v24  ;;  %1914 = vmatprep.subr.bf16.mxu1 %v7647_v25  ;;  %v7731_v24 = vld [vmem:[#allocation2 + $0x5ec] ss:$16 sps:$4 sm:$0xff]   ;;  %v8075_v25 = vrot.slane %v75_v19, %v8048_v49  ;;  %v7807_v19 = vld [vmem:[#allocation2 + $0x788] ss:$16 sps:$4 sm:$0xff]  }
  0xaa   :  { %1780 = vmatprep.mubr.bf16.mxu0 %v105_v31  ;;  %1944 = vmatprep.mubr.bf16.mxu1 %v105_v31 }
  0xab   :  { %v91_v31 = vcombine.high %v8075_v25, %v8075_v25 }
  0xac   :  { %1751 = vmatpush1.bf16.msra.mxu0 %v7642_v27  ;;  %1915 = vmatpush1.bf16.msra.mxu1 %v7645_v28  ;;  %v7729_v27 = vld [vmem:[#allocation2 + $0x5e8] ss:$16 sps:$4 sm:$0xff]   ;;  %v7734_v28 = vld [vmem:[#allocation2 + $0x604] ss:$16 sps:$4 sm:$0xff]  }
  0xad   :  { %1752 = vmatprep.subr.bf16.mxu0 %v7650_v29  ;;  %1916 = vmatprep.subr.bf16.mxu1 %v7653_v30  ;;  %v7737_v29 = vld [vmem:[#allocation2 + $0x60c] ss:$16 sps:$4 sm:$0xff]   ;;  %v7735_v30 = vld [vmem:[#allocation2 + $0x608] ss:$16 sps:$4 sm:$0xff]  }
  0xb0   :  { %1753 = vmatpush1.bf16.msra.mxu0 %v7648_v32  ;;  %1917 = vmatpush1.bf16.msra.mxu1 %v7651_v33  ;;  %v104_v32 = vpack.c.bf16 %v8068_v26, %v8068_v26  ;;  %v7740_v33 = vld [vmem:[#allocation2 + $0x624] ss:$16 sps:$4 sm:$0xff]  }
  0xb1   :  { %1754 = vmatprep.subr.bf16.mxu0 %v7656_v34  ;;  %1918 = vmatprep.subr.bf16.mxu1 %v7659_v35  ;;  %v7743_v34 = vld [vmem:[#allocation2 + $0x62c] ss:$16 sps:$4 sm:$0xff]   ;;  %v7738_v35 = vld [vmem:[#allocation2 + $0x620] ss:$16 sps:$4 sm:$0xff]   ;;  %v7752_v26 = vld [vmem:[#allocation2 + $0x664] ss:$16 sps:$4 sm:$0xff]  }
  0xb4   :  { %1755 = vmatpush1.bf16.msra.mxu0 %v7654_v36  ;;  %1919 = vmatpush1.bf16.msra.mxu1 %v7657_v37  ;;  %v7741_v36 = vld [vmem:[#allocation2 + $0x628] ss:$16 sps:$4 sm:$0xff]   ;;  %v107_v37 = vpack.c.bf16 %v91_v31, %v91_v31  ;;  %v7822_v31 = vld [vmem:[#allocation2 + $0x7e0] ss:$16 sps:$4 sm:$0xff]  }
  0xb5   :  { %1756 = vmatprep.subr.bf16.mxu0 %v7662_v38  ;;  %1920 = vmatprep.subr.bf16.mxu1 %v7665_v39  ;;  %v7746_v38 = vld [vmem:[#allocation2 + $0x644] ss:$16 sps:$4 sm:$0xff]   ;;  %v7749_v39 = vld [vmem:[#allocation2 + $0x64c] ss:$16 sps:$4 sm:$0xff]  }
  0xb8   :  { %1757 = vmatpush1.bf16.msra.mxu0 %v7660_v40  ;;  %1921 = vmatpush1.bf16.msra.mxu1 %v7663_v41  ;;  %v7744_v40 = vld [vmem:[#allocation2 + $0x640] ss:$16 sps:$4 sm:$0xff]   ;;  %v7747_v41 = vld [vmem:[#allocation2 + $0x648] ss:$16 sps:$4 sm:$0xff]  }
  0xb9   :  { %1758 = vmatprep.subr.bf16.mxu0 %v7668_v42  ;;  %1922 = vmatprep.subr.bf16.mxu1 %v7671_v44  ;;  %v7755_v42 = vld [vmem:[#allocation2 + $0x66c] ss:$16 sps:$4 sm:$0xff]   ;;  %v7750_v44 = vld [vmem:[#allocation2 + $0x660] ss:$16 sps:$4 sm:$0xff]  }
  0xbc   :  { %1759 = vmatpush1.bf16.msra.mxu0 %v7666_v45  ;;  %1923 = vmatpush1.bf16.msra.mxu1 %v7669_v46  ;;  %v7753_v45 = vld [vmem:[#allocation2 + $0x668] ss:$16 sps:$4 sm:$0xff]   ;;  %v7758_v46 = vld [vmem:[#allocation2 + $0x684] ss:$16 sps:$4 sm:$0xff]  }
  0xbd   :  { %1760 = vmatprep.subr.bf16.mxu0 %v7674_v47  ;;  %1924 = vmatprep.subr.bf16.mxu1 %v7677_v48  ;;  %v7761_v47 = vld [vmem:[#allocation2 + $0x68c] ss:$16 sps:$4 sm:$0xff]   ;;  %v7756_v48 = vld [vmem:[#allocation2 + $0x680] ss:$16 sps:$4 sm:$0xff]  }
  0xc0   :  { %1761 = vmatpush1.bf16.msra.mxu0 %v7672_v50  ;;  %1925 = vmatpush1.bf16.msra.mxu1 %v7675_v51  ;;  %v7759_v50 = vld [vmem:[#allocation2 + $0x688] ss:$16 sps:$4 sm:$0xff]   ;;  %v7764_v51 = vld [vmem:[#allocation2 + $0x6a4] ss:$16 sps:$4 sm:$0xff]  }
  0xc1   :  { %1762 = vmatprep.subr.bf16.mxu0 %v7680_v52  ;;  %1926 = vmatprep.subr.bf16.mxu1 %v7683_v53  ;;  %v7767_v52 = vld [vmem:[#allocation2 + $0x6ac] ss:$16 sps:$4 sm:$0xff]   ;;  %v7762_v53 = vld [vmem:[#allocation2 + $0x6a0] ss:$16 sps:$4 sm:$0xff]  }
  0xc4   :  { %1763 = vmatpush1.bf16.msra.mxu0 %v7678_v54  ;;  %1927 = vmatpush1.bf16.msra.mxu1 %v7681_v55  ;;  %v7765_v54 = vld [vmem:[#allocation2 + $0x6a8] ss:$16 sps:$4 sm:$0xff]   ;;  %v7770_v55 = vld [vmem:[#allocation2 + $0x6c4] ss:$16 sps:$4 sm:$0xff]  }
  0xc5   :  { %1764 = vmatprep.subr.bf16.mxu0 %v7686_v56  ;;  %1928 = vmatprep.subr.bf16.mxu1 %v7689_v57  ;;  %v7773_v56 = vld [vmem:[#allocation2 + $0x6cc] ss:$16 sps:$4 sm:$0xff]   ;;  %v7768_v57 = vld [vmem:[#allocation2 + $0x6c0] ss:$16 sps:$4 sm:$0xff]  }
  0xc8   :  { %1765 = vmatpush1.bf16.msra.mxu0 %v7684_v58  ;;  %1929 = vmatpush1.bf16.msra.mxu1 %v7687_v59  ;;  %v7771_v58 = vld [vmem:[#allocation2 + $0x6c8] ss:$16 sps:$4 sm:$0xff]   ;;  %v7776_v59 = vld [vmem:[#allocation2 + $0x6e4] ss:$16 sps:$4 sm:$0xff]  }
  0xc9   :  { %1766 = vmatprep.subr.bf16.mxu0 %v7692_v60  ;;  %1930 = vmatprep.subr.bf16.mxu1 %v7695_v61  ;;  %v7779_v60 = vld [vmem:[#allocation2 + $0x6ec] ss:$16 sps:$4 sm:$0xff]   ;;  %v7774_v61 = vld [vmem:[#allocation2 + $0x6e0] ss:$16 sps:$4 sm:$0xff]  }
  0xcc   :  { %1767 = vmatpush1.bf16.msra.mxu0 %v7690_v62  ;;  %1931 = vmatpush1.bf16.msra.mxu1 %v7693_v63  ;;  %v7777_v62 = vld [vmem:[#allocation2 + $0x6e8] ss:$16 sps:$4 sm:$0xff]   ;;  %v7782_v63 = vld [vmem:[#allocation2 + $0x704] ss:$16 sps:$4 sm:$0xff]  }
  0xcd   :  { %1768 = vmatprep.subr.bf16.mxu0 %v7698_v0  ;;  %1932 = vmatprep.subr.bf16.mxu1 %v7701_v1  ;;  %v7785_v0 = vld [vmem:[#allocation2 + $0x70c] ss:$16 sps:$4 sm:$0xff]   ;;  %v7780_v1 = vld [vmem:[#allocation2 + $0x700] ss:$16 sps:$4 sm:$0xff]  }
  0xd0   :  { %1769 = vmatpush1.bf16.msra.mxu0 %v7696_v2  ;;  %1933 = vmatpush1.bf16.msra.mxu1 %v7699_v3  ;;  %v7783_v2 = vld [vmem:[#allocation2 + $0x708] ss:$16 sps:$4 sm:$0xff]   ;;  %v7788_v3 = vld [vmem:[#allocation2 + $0x724] ss:$16 sps:$4 sm:$0xff]  }
  0xd1   :  { %1770 = vmatprep.subr.bf16.mxu0 %v7704_v4  ;;  %1934 = vmatprep.subr.bf16.mxu1 %v7707_v5  ;;  %v7791_v4 = vld [vmem:[#allocation2 + $0x72c] ss:$16 sps:$4 sm:$0xff]   ;;  %v7786_v5 = vld [vmem:[#allocation2 + $0x720] ss:$16 sps:$4 sm:$0xff]  }
  0xd4   :  { %1771 = vmatpush1.bf16.msra.mxu0 %v7702_v6  ;;  %1935 = vmatpush1.bf16.msra.mxu1 %v7705_v7  ;;  %v7789_v6 = vld [vmem:[#allocation2 + $0x728] ss:$16 sps:$4 sm:$0xff]   ;;  %v7794_v7 = vld [vmem:[#allocation2 + $0x744] ss:$16 sps:$4 sm:$0xff]  }
  0xd5   :  { %1772 = vmatprep.subr.bf16.mxu0 %v7710_v8  ;;  %1936 = vmatprep.subr.bf16.mxu1 %v7713_v10  ;;  %v7797_v8 = vld [vmem:[#allocation2 + $0x74c] ss:$16 sps:$4 sm:$0xff]   ;;  %v7792_v10 = vld [vmem:[#allocation2 + $0x740] ss:$16 sps:$4 sm:$0xff]  }
  0xd8   :  { %1773 = vmatpush1.bf16.msra.mxu0 %v7708_v11  ;;  %1937 = vmatpush1.bf16.msra.mxu1 %v7711_v12  ;;  %v7795_v11 = vld [vmem:[#allocation2 + $0x748] ss:$16 sps:$4 sm:$0xff]   ;;  %v7800_v12 = vld [vmem:[#allocation2 + $0x764] ss:$16 sps:$4 sm:$0xff]  }
  0xd9   :  { %1774 = vmatprep.subr.bf16.mxu0 %v7716_v13  ;;  %1938 = vmatprep.subr.bf16.mxu1 %v7719_v14  ;;  %v7803_v13 = vld [vmem:[#allocation2 + $0x76c] ss:$16 sps:$4 sm:$0xff]   ;;  %v7798_v14 = vld [vmem:[#allocation2 + $0x760] ss:$16 sps:$4 sm:$0xff]  }
  0xdc   :  { %1775 = vmatpush1.bf16.msra.mxu0 %v7714_v15  ;;  %1939 = vmatpush1.bf16.msra.mxu1 %v7717_v16  ;;  %v7801_v15 = vld [vmem:[#allocation2 + $0x768] ss:$16 sps:$4 sm:$0xff]   ;;  %v7806_v16 = vld [vmem:[#allocation2 + $0x784] ss:$16 sps:$4 sm:$0xff]  }
  0xdd   :  { %1776 = vmatprep.subr.bf16.mxu0 %v7722_v17  ;;  %1940 = vmatprep.subr.bf16.mxu1 %v7725_v18  ;;  %v7809_v17 = vld [vmem:[#allocation2 + $0x78c] ss:$16 sps:$4 sm:$0xff]   ;;  %v7804_v18 = vld [vmem:[#allocation2 + $0x780] ss:$16 sps:$4 sm:$0xff]  }
  0xe0   :  { %1777 = vmatpush1.bf16.msra.mxu0 %v7720_v20  ;;  %1941 = vmatpush1.bf16.msra.mxu1 %v7723_v21  ;;  %v7812_v20 = vld [vmem:[#allocation2 + $0x7a4] ss:$16 sps:$4 sm:$0xff]   ;;  %v7815_v21 = vld [vmem:[#allocation2 + $0x7ac] ss:$16 sps:$4 sm:$0xff]  }
  0xe1   :  { %1778 = vmatprep.subr.bf16.mxu0 %v7728_v22  ;;  %1942 = vmatprep.subr.bf16.mxu1 %v7731_v24  ;;  %v7810_v22 = vld [vmem:[#allocation2 + $0x7a0] ss:$16 sps:$4 sm:$0xff]   ;;  %v7813_v24 = vld [vmem:[#allocation2 + $0x7a8] ss:$16 sps:$4 sm:$0xff]  }
  0xe4   :  { %1779 = vmatpush1.bf16.msra.mxu0 %v7726_v9  ;;  %1943 = vmatpush1.bf16.msra.mxu1 %v7729_v27  ;;  %v7818_v9 = vld [vmem:[#allocation2 + $0x7c4] ss:$16 sps:$4 sm:$0xff]   ;;  %v7821_v27 = vld [vmem:[#allocation2 + $0x7cc] ss:$16 sps:$4 sm:$0xff]  }
  0xe5   :  { %1789 = vmatprep.subr.bf16.mxu0 %v7734_v28  ;;  %1953 = vmatprep.subr.bf16.mxu1 %v7737_v29  ;;  %v7816_v28 = vld [vmem:[#allocation2 + $0x7c0] ss:$16 sps:$4 sm:$0xff]   ;;  %v7819_v29 = vld [vmem:[#allocation2 + $0x7c8] ss:$16 sps:$4 sm:$0xff]  }
  0xe7   :  { %1781 = vmatmul.mubr.bf16.vlgmr.msra.gmra.mrb[0].mxu0 %v104_v32  ;;  %1945 = vmatmul.mubr.bf16.vlgmr.msra.gmra.mrb[0].mxu1 %v104_v32  ;;  %v7825_v32 = vld [vmem:[#allocation2 + $0x7e8] ss:$16 sps:$4 sm:$0xff]  }
  0xe8   :  { %1790 = vmatpush1.bf16.msra.mxu0 %v7732_v23  ;;  %1954 = vmatpush1.bf16.msra.mxu1 %v7735_v30  ;;  %v7824_v23 = vld [vmem:[#allocation2 + $0x7e4] ss:$16 sps:$4 sm:$0xff]   ;;  %v7827_v30 = vld [vmem:[#allocation2 + $0x7ec] ss:$16 sps:$4 sm:$0xff]  }
  0xe9   :  { %1791 = vmatprep.subr.bf16.mxu0 %v7740_v33  ;;  %1955 = vmatprep.subr.bf16.mxu1 %v7743_v34  ;;  %v7831_v33 = vld [vmem:[#allocation4 + $0x4] ss:$8 sps:$4 sm:$0xff]   ;;  %v106_v34 = vpack.c.bf16 %v8075_v25, %v8075_v25  ;;  %v7841_v25 = vld [vmem:[#allocation4 + $0x40] ss:$8 sps:$4 sm:$0xff]  }
  0xea   :  { %1821 = vmatprep.mubr.bf16.mxu0 %v107_v37  ;;  %1985 = vmatprep.mubr.bf16.mxu1 %v107_v37  ;;  %v7832_v37 = vld [vmem:[#allocation4 + $0x10] ss:$8 sps:$4 sm:$0xff]  }
  0xec   :  { %1792 = vmatpush1.bf16.msra.mxu0 %v7738_v35  ;;  %1956 = vmatpush1.bf16.msra.mxu1 %v7741_v36  ;;  %v7829_v35 = vld [vmem:[#allocation4] ss:$8 sps:$4 sm:$0xff]   ;;  %v7834_v36 = vld [vmem:[#allocation4 + $0x14] ss:$8 sps:$4 sm:$0xff]  }
  0xed   :  { %1793 = vmatprep.subr.bf16.mxu0 %v7746_v38  ;;  %1957 = vmatprep.subr.bf16.mxu1 %v7749_v39  ;;  %v7837_v38 = vld [vmem:[#allocation4 + $0x24] ss:$8 sps:$4 sm:$0xff]   ;;  %v7835_v39 = vld [vmem:[#allocation4 + $0x20] ss:$8 sps:$4 sm:$0xff]  }
  0xf0   :  { %1794 = vmatpush1.bf16.msra.mxu0 %v7744_v40  ;;  %1958 = vmatpush1.bf16.msra.mxu1 %v7747_v41  ;;  %v7840_v40 = vld [vmem:[#allocation4 + $0x34] ss:$8 sps:$4 sm:$0xff]   ;;  %v7838_v41 = vld [vmem:[#allocation4 + $0x30] ss:$8 sps:$4 sm:$0xff]  }
  0xf1   :  { %1795 = vmatprep.subr.bf16.mxu0 %v7752_v26  ;;  %1959 = vmatprep.subr.bf16.mxu1 %v7755_v42  ;;  %v7843_v26 = vld [vmem:[#allocation4 + $0x44] ss:$8 sps:$4 sm:$0xff]   ;;  %v7846_v42 = vld [vmem:[#allocation4 + $0x54] ss:$8 sps:$4 sm:$0xff]  }
  0xf4   :  { %1796 = vmatpush1.bf16.msra.mxu0 %v7750_v44  ;;  %1960 = vmatpush1.bf16.msra.mxu1 %v7753_v45  ;;  %v7844_v44 = vld [vmem:[#allocation4 + $0x50] ss:$8 sps:$4 sm:$0xff]   ;;  %v7849_v45 = vld [vmem:[#allocation4 + $0x64] ss:$8 sps:$4 sm:$0xff]  }
  0xf5   :  { %1797 = vmatprep.subr.bf16.mxu0 %v7758_v46  ;;  %1961 = vmatprep.subr.bf16.mxu1 %v7761_v47  ;;  %v7847_v46 = vld [vmem:[#allocation4 + $0x60] ss:$8 sps:$4 sm:$0xff]   ;;  %v7852_v47 = vld [vmem:[#allocation4 + $0x74] ss:$8 sps:$4 sm:$0xff]  }
  0xf8   :  { %1798 = vmatpush1.bf16.msra.mxu0 %v7756_v48  ;;  %1962 = vmatpush1.bf16.msra.mxu1 %v7759_v50  ;;  %v7850_v48 = vld [vmem:[#allocation4 + $0x70] ss:$8 sps:$4 sm:$0xff]   ;;  %v7855_v50 = vld [vmem:[#allocation4 + $0x84] ss:$8 sps:$4 sm:$0xff]  }
  0xf9   :  { %1799 = vmatprep.subr.bf16.mxu0 %v7764_v51  ;;  %1963 = vmatprep.subr.bf16.mxu1 %v7767_v52  ;;  %v7853_v51 = vld [vmem:[#allocation4 + $0x80] ss:$8 sps:$4 sm:$0xff]   ;;  %v7858_v52 = vld [vmem:[#allocation4 + $0x94] ss:$8 sps:$4 sm:$0xff]  }
  0xfc   :  { %1800 = vmatpush1.bf16.msra.mxu0 %v7762_v53  ;;  %1964 = vmatpush1.bf16.msra.mxu1 %v7765_v54  ;;  %v7856_v53 = vld [vmem:[#allocation4 + $0x90] ss:$8 sps:$4 sm:$0xff]   ;;  %v7861_v54 = vld [vmem:[#allocation4 + $0xa4] ss:$8 sps:$4 sm:$0xff]  }
  0xfd   :  { %1801 = vmatprep.subr.bf16.mxu0 %v7770_v55  ;;  %1965 = vmatprep.subr.bf16.mxu1 %v7773_v56  ;;  %v7859_v55 = vld [vmem:[#allocation4 + $0xa0] ss:$8 sps:$4 sm:$0xff]   ;;  %v7864_v56 = vld [vmem:[#allocation4 + $0xb4] ss:$8 sps:$4 sm:$0xff]  }
 0x100   :  { %1802 = vmatpush1.bf16.msra.mxu0 %v7768_v57  ;;  %1966 = vmatpush1.bf16.msra.mxu1 %v7771_v58  ;;  %v7862_v57 = vld [vmem:[#allocation4 + $0xb0] ss:$8 sps:$4 sm:$0xff]   ;;  %v7867_v58 = vld [vmem:[#allocation4 + $0xc4] ss:$8 sps:$4 sm:$0xff]  }
 0x101   :  { %1803 = vmatprep.subr.bf16.mxu0 %v7776_v59  ;;  %1967 = vmatprep.subr.bf16.mxu1 %v7779_v60  ;;  %v7865_v59 = vld [vmem:[#allocation4 + $0xc0] ss:$8 sps:$4 sm:$0xff]   ;;  %v7870_v60 = vld [vmem:[#allocation4 + $0xd4] ss:$8 sps:$4 sm:$0xff]  }
 0x104   :  { %1804 = vmatpush1.bf16.msra.mxu0 %v7774_v61  ;;  %1968 = vmatpush1.bf16.msra.mxu1 %v7777_v62  ;;  %v7868_v61 = vld [vmem:[#allocation4 + $0xd0] ss:$8 sps:$4 sm:$0xff]   ;;  %v7873_v62 = vld [vmem:[#allocation4 + $0xe4] ss:$8 sps:$4 sm:$0xff]  }
 0x105   :  { %1805 = vmatprep.subr.bf16.mxu0 %v7782_v63  ;;  %1969 = vmatprep.subr.bf16.mxu1 %v7785_v0  ;;  %v7871_v63 = vld [vmem:[#allocation4 + $0xe0] ss:$8 sps:$4 sm:$0xff]   ;;  %v7876_v0 = vld [vmem:[#allocation4 + $0xf4] ss:$8 sps:$4 sm:$0xff]  }
 0x108   :  { %1806 = vmatpush1.bf16.msra.mxu0 %v7780_v1  ;;  %1970 = vmatpush1.bf16.msra.mxu1 %v7783_v2  ;;  %v7874_v1 = vld [vmem:[#allocation4 + $0xf0] ss:$8 sps:$4 sm:$0xff]   ;;  %v7879_v2 = vld [vmem:[#allocation4 + $0x104] ss:$8 sps:$4 sm:$0xff]  }
 0x109   :  { %1807 = vmatprep.subr.bf16.mxu0 %v7788_v3  ;;  %1971 = vmatprep.subr.bf16.mxu1 %v7791_v4  ;;  %v2484_v3 = vld [vmem:[%s9884_s5] sm:$0xff] }
 0x10a   :  { %v2500_v4 = vld [vmem:[%s9884_s5 + $0x80] sm:$0xff] }
 0x10c   :  { %1808 = vmatpush1.bf16.msra.mxu0 %v7786_v5  ;;  %1972 = vmatpush1.bf16.msra.mxu1 %v7789_v6  ;;  %v6890_v5 = vcombine.low %v2484_v3, %v2500_v4  ;;  %v6891_v6 = vcombine.high %v2484_v3, %v2500_v4 }
 0x10d   :  { %1809 = vmatprep.subr.bf16.mxu0 %v7794_v7  ;;  %1973 = vmatprep.subr.bf16.mxu1 %v7797_v8  ;;  %v2516_v7 = vld [vmem:[%s9884_s5 + $0x100] sm:$0xff] }
 0x10e   :  { %v2532_v8 = vld [vmem:[%s9884_s5 + $0x180] sm:$0xff] }
 0x110   :  { %1810 = vmatpush1.bf16.msra.mxu0 %v7792_v10  ;;  %1974 = vmatpush1.bf16.msra.mxu1 %v7795_v11  ;;  %v6923_v10 = vcombine.high %v2516_v7, %v2532_v8  ;;  %v6922_v11 = vcombine.low %v2516_v7, %v2532_v8 }
 0x111   :  { %1811 = vmatprep.subr.bf16.mxu0 %v7800_v12  ;;  %1975 = vmatprep.subr.bf16.mxu1 %v7803_v13  ;;  %v2548_v12 = vld [vmem:[%s9884_s5 + $0x200] sm:$0xff] }
 0x112   :  { %v2564_v13 = vld [vmem:[%s9884_s5 + $0x280] sm:$0xff] }
 0x114   :  { %1812 = vmatpush1.bf16.msra.mxu0 %v7798_v14  ;;  %1976 = vmatpush1.bf16.msra.mxu1 %v7801_v15  ;;  %v6955_v14 = vcombine.high %v2548_v12, %v2564_v13  ;;  %v6954_v15 = vcombine.low %v2548_v12, %v2564_v13 }
 0x115   :  { %1813 = vmatprep.subr.bf16.mxu0 %v7806_v16  ;;  %1977 = vmatprep.subr.bf16.mxu1 %v7809_v17  ;;  %v2580_v16 = vld [vmem:[%s9884_s5 + $0x300] sm:$0xff] }
 0x116   :  { %v2596_v17 = vld [vmem:[%s9884_s5 + $0x380] sm:$0xff] }
 0x118   :  { %1814 = vmatpush1.bf16.msra.mxu0 %v7804_v18  ;;  %1978 = vmatpush1.bf16.msra.mxu1 %v7807_v19  ;;  %v6987_v18 = vcombine.high %v2580_v16, %v2596_v17  ;;  %v6986_v19 = vcombine.low %v2580_v16, %v2596_v17 }
 0x119   :  { %1815 = vmatprep.subr.bf16.mxu0 %v7812_v20  ;;  %1979 = vmatprep.subr.bf16.mxu1 %v7815_v21  ;;  %v2612_v20 = vld [vmem:[%s9884_s5 + $0x400] sm:$0xff] }
 0x11a   :  { %v2628_v21 = vld [vmem:[%s9884_s5 + $0x480] sm:$0xff] }
 0x11c   :  { %1816 = vmatpush1.bf16.msra.mxu0 %v7810_v22  ;;  %1980 = vmatpush1.bf16.msra.mxu1 %v7813_v24  ;;  %v7019_v22 = vcombine.high %v2612_v20, %v2628_v21  ;;  %v7018_v24 = vcombine.low %v2612_v20, %v2628_v21  ;;  %v7877_v20 = vld [vmem:[#allocation4 + $0x100] ss:$8 sps:$4 sm:$0xff]  }
 0x11d   :  { %1817 = vmatprep.subr.bf16.mxu0 %v7818_v9  ;;  %1981 = vmatprep.subr.bf16.mxu1 %v7821_v27  ;;  %v2644_v9 = vld [vmem:[%s9884_s5 + $0x500] sm:$0xff] }
 0x11e   :  { %v2660_v27 = vld [vmem:[%s9884_s5 + $0x580] sm:$0xff] }
 0x120   :  { %1818 = vmatpush1.bf16.msra.mxu0 %v7816_v28  ;;  %1982 = vmatpush1.bf16.msra.mxu1 %v7819_v29  ;;  %v7051_v28 = vcombine.high %v2644_v9, %v2660_v27  ;;  %v7050_v29 = vcombine.low %v2644_v9, %v2660_v27  ;;  %v7880_v9 = vld [vmem:[#allocation4 + $0x110] ss:$8 sps:$4 sm:$0xff]   ;;  %v7885_v27 = vld [vmem:[#allocation4 + $0x124] ss:$8 sps:$4 sm:$0xff]  }
 0x121   :  { %1819 = vmatprep.subr.bf16.mxu0 %v7824_v23  ;;  %1983 = vmatprep.subr.bf16.mxu1 %v7827_v30  ;;  %v2676_v23 = vld [vmem:[%s9884_s5 + $0x600] sm:$0xff] }
 0x122   :  { %v2692_v30 = vld [vmem:[%s9884_s5 + $0x680] sm:$0xff] }
 0x124   :  { %1820 = vmatpush1.bf16.msra.mxu0 %v7822_v31  ;;  %1984 = vmatpush1.bf16.msra.mxu1 %v7825_v32  ;;  %v7083_v31 = vcombine.high %v2676_v23, %v2692_v30  ;;  %v7082_v32 = vcombine.low %v2676_v23, %v2692_v30  ;;  %v7886_v23 = vld [vmem:[#allocation4 + $0x130] ss:$8 sps:$4 sm:$0xff]   ;;  %v7891_v30 = vld [vmem:[#allocation4 + $0x144] ss:$8 sps:$4 sm:$0xff]  }
 0x125   :  { %2398 = vmatprep.subr.bf16.mxu0 %v7831_v33  ;;  %5724 = vmatprep.subr.bf16.mxu1 %v6891_v6  ;;  %v2708_v33 = vld [vmem:[%s9884_s5 + $0x700] sm:$0xff] }
 0x127   :  { %1822 = vmatmul.mubr.bf16.vlgmr.msra.gmra.mrb[0].mxu0 %v106_v34  ;;  %1986 = vmatmul.mubr.bf16.vlgmr.msra.gmra.mrb[0].mxu1 %v106_v34  ;;  %v2724_v34 = vld [vmem:[%s9884_s5 + $0x780] sm:$0xff] }
 0x128   :  { %2399 = vmatpush1.bf16.msra.mxu0 %v7829_v35  ;;  %5725 = vmatpush1.bf16.msra.mxu1 %v6890_v5  ;;  %v7115_v35 = vcombine.high %v2708_v33, %v2724_v34 }
 0x129   :  { %2400 = vmatprep.subr.bf16.mxu0 %v7834_v36  ;;  %5726 = vmatprep.subr.bf16.mxu1 %v6923_v10  ;;  %v7114_v36 = vcombine.low %v2708_v33, %v2724_v34  ;;  %v7892_v33 = vld [vmem:[#allocation4 + $0x150] ss:$8 sps:$4 sm:$0xff]   ;;  %v7897_v34 = vld [vmem:[#allocation4 + $0x164] ss:$8 sps:$4 sm:$0xff]  }
 0x12c   :  { %2401 = vmatpush1.bf16.msra.mxu0 %v7832_v37  ;;  %5727 = vmatpush1.bf16.msra.mxu1 %v6922_v11  ;;  %v2740_v37 = vld [vmem:[%s9884_s5 + $0x800] sm:$0xff] }
 0x12d   :  { %2402 = vmatprep.subr.bf16.mxu0 %v7837_v38  ;;  %5728 = vmatprep.subr.bf16.mxu1 %v6955_v14  ;;  %v2756_v38 = vld [vmem:[%s9884_s5 + $0x880] sm:$0xff] }
 0x130   :  { %2403 = vmatpush1.bf16.msra.mxu0 %v7835_v39  ;;  %5729 = vmatpush1.bf16.msra.mxu1 %v6954_v15  ;;  %v7147_v39 = vcombine.high %v2740_v37, %v2756_v38 }
 0x131   :  { %2404 = vmatprep.subr.bf16.mxu0 %v7840_v40  ;;  %5730 = vmatprep.subr.bf16.mxu1 %v6987_v18  ;;  %v7146_v40 = vcombine.low %v2740_v37, %v2756_v38  ;;  %v7898_v37 = vld [vmem:[#allocation4 + $0x170] ss:$8 sps:$4 sm:$0xff]   ;;  %v7903_v38 = vld [vmem:[#allocation4 + $0x184] ss:$8 sps:$4 sm:$0xff]  }
 0x134   :  { %2405 = vmatpush1.bf16.msra.mxu0 %v7838_v41  ;;  %5731 = vmatpush1.bf16.msra.mxu1 %v6986_v19  ;;  %v2772_v41 = vld [vmem:[%s9884_s5 + $0x900] sm:$0xff] }
 0x135   :  { %2406 = vmatprep.subr.bf16.mxu0 %v7843_v26  ;;  %5732 = vmatprep.subr.bf16.mxu1 %v7019_v22  ;;  %v2788_v26 = vld [vmem:[%s9884_s5 + $0x980] sm:$0xff]  ;;  %v7882_v22 = vld [vmem:[#allocation4 + $0x114] ss:$8 sps:$4 sm:$0xff]  }
 0x138   :  { %2407 = vmatpush1.bf16.msra.mxu0 %v7841_v25  ;;  %5733 = vmatpush1.bf16.msra.mxu1 %v7018_v24  ;;  %v7179_v25 = vcombine.high %v2772_v41, %v2788_v26 }
 0x139   :  { %2408 = vmatprep.subr.bf16.mxu0 %v7846_v42  ;;  %5734 = vmatprep.subr.bf16.mxu1 %v7051_v28  ;;  %v7178_v42 = vcombine.low %v2772_v41, %v2788_v26  ;;  %v7883_v28 = vld [vmem:[#allocation4 + $0x120] ss:$8 sps:$4 sm:$0xff]   ;;  %v7904_v41 = vld [vmem:[#allocation4 + $0x190] ss:$8 sps:$4 sm:$0xff]   ;;  %v7909_v26 = vld [vmem:[#allocation4 + $0x1a4] ss:$8 sps:$4 sm:$0xff]  }
 0x13c   :  { %2409 = vmatpush1.bf16.msra.mxu0 %v7844_v44  ;;  %5735 = vmatpush1.bf16.msra.mxu1 %v7050_v29  ;;  %v2804_v44 = vld [vmem:[%s9884_s5 + $0xa00] sm:$0xff]  ;;  %v7888_v29 = vld [vmem:[#allocation4 + $0x134] ss:$8 sps:$4 sm:$0xff]  }
 0x13d   :  { %2410 = vmatprep.subr.bf16.mxu0 %v7849_v45  ;;  %5736 = vmatprep.subr.bf16.mxu1 %v7083_v31  ;;  %v2820_v45 = vld [vmem:[%s9884_s5 + $0xa80] sm:$0xff] }
 0x13e   :  { %v7889_v31 = vld [vmem:[#allocation4 + $0x140] ss:$8 sps:$4 sm:$0xff]  }
 0x140   :  { %2411 = vmatpush1.bf16.msra.mxu0 %v7847_v46  ;;  %5737 = vmatpush1.bf16.msra.mxu1 %v7082_v32  ;;  %v7211_v46 = vcombine.high %v2804_v44, %v2820_v45  ;;  %v7894_v32 = vld [vmem:[#allocation4 + $0x154] ss:$8 sps:$4 sm:$0xff]  }
 0x141   :  { %2412 = vmatprep.subr.bf16.mxu0 %v7852_v47  ;;  %5738 = vmatprep.subr.bf16.mxu1 %v7115_v35  ;;  %v7210_v47 = vcombine.low %v2804_v44, %v2820_v45  ;;  %v7895_v35 = vld [vmem:[#allocation4 + $0x160] ss:$8 sps:$4 sm:$0xff]   ;;  %v7910_v44 = vld [vmem:[#allocation4 + $0x1b0] ss:$8 sps:$4 sm:$0xff]   ;;  %v7915_v45 = vld [vmem:[#allocation4 + $0x1c4] ss:$8 sps:$4 sm:$0xff]  }
 0x144   :  { %2413 = vmatpush1.bf16.msra.mxu0 %v7850_v48  ;;  %5739 = vmatpush1.bf16.msra.mxu1 %v7114_v36  ;;  %v2836_v48 = vld [vmem:[%s9884_s5 + $0xb00] sm:$0xff]  ;;  %v7900_v36 = vld [vmem:[#allocation4 + $0x174] ss:$8 sps:$4 sm:$0xff]  }
 0x145   :  { %2414 = vmatprep.subr.bf16.mxu0 %v7855_v50  ;;  %5740 = vmatprep.subr.bf16.mxu1 %v7147_v39  ;;  %v2852_v50 = vld [vmem:[%s9884_s5 + $0xb80] sm:$0xff] }
 0x146   :  { %v7901_v39 = vld [vmem:[#allocation4 + $0x180] ss:$8 sps:$4 sm:$0xff]  }
 0x148   :  { %2415 = vmatpush1.bf16.msra.mxu0 %v7853_v51  ;;  %5741 = vmatpush1.bf16.msra.mxu1 %v7146_v40  ;;  %v7243_v51 = vcombine.high %v2836_v48, %v2852_v50  ;;  %v7906_v40 = vld [vmem:[#allocation4 + $0x194] ss:$8 sps:$4 sm:$0xff]  }
 0x149   :  { %2416 = vmatprep.subr.bf16.mxu0 %v7858_v52  ;;  %5742 = vmatprep.subr.bf16.mxu1 %v7179_v25  ;;  %v7242_v52 = vcombine.low %v2836_v48, %v2852_v50  ;;  %v7907_v25 = vld [vmem:[#allocation4 + $0x1a0] ss:$8 sps:$4 sm:$0xff]   ;;  %v7918_v48 = vld [vmem:[#allocation4 + $0x1d4] ss:$8 sps:$4 sm:$0xff]   ;;  %v7916_v50 = vld [vmem:[#allocation4 + $0x1d0] ss:$8 sps:$4 sm:$0xff]  }
 0x14c   :  { %2417 = vmatpush1.bf16.msra.mxu0 %v7856_v53  ;;  %5743 = vmatpush1.bf16.msra.mxu1 %v7178_v42  ;;  %v2868_v53 = vld [vmem:[%s9884_s5 + $0xc00] sm:$0xff]  ;;  %v7912_v42 = vld [vmem:[#allocation4 + $0x1b4] ss:$8 sps:$4 sm:$0xff]  }
 0x14d   :  { %2418 = vmatprep.subr.bf16.mxu0 %v7861_v54  ;;  %5744 = vmatprep.subr.bf16.mxu1 %v7211_v46  ;;  %v2884_v54 = vld [vmem:[%s9884_s5 + $0xc80] sm:$0xff] }
 0x14e   :  { %v7913_v46 = vld [vmem:[#allocation4 + $0x1c0] ss:$8 sps:$4 sm:$0xff]  }
 0x150   :  { %2419 = vmatpush1.bf16.msra.mxu0 %v7859_v55  ;;  %5745 = vmatpush1.bf16.msra.mxu1 %v7210_v47  ;;  %v7275_v55 = vcombine.high %v2868_v53, %v2884_v54  ;;  %v8190_v47 = vsub.s32 2, %v8045_v43 }
 0x151   :  { %2420 = vmatprep.subr.bf16.mxu0 %v7864_v56  ;;  %5746 = vmatprep.subr.bf16.mxu1 %v7243_v51  ;;  %v8162_v56 = vsub.s32 0, %v8045_v43 }
 0x154   :  { %2421 = vmatpush1.bf16.msra.mxu0 %v7862_v57  ;;  %5747 = vmatpush1.bf16.msra.mxu1 %v7242_v52  ;;  %v7274_v57 = vcombine.low %v2868_v53, %v2884_v54  ;;  %v7921_v52 = vld [vmem:[#allocation4 + $0x1e4] ss:$8 sps:$4 sm:$0xff]   ;;  %v7919_v53 = vld [vmem:[#allocation4 + $0x1e0] ss:$8 sps:$4 sm:$0xff]  }
 0x155   :  { %2422 = vmatprep.subr.bf16.mxu0 %v7867_v58  ;;  %v8167_v58 = vld [vmem:[%s9881_s2] sm:$0xf]  ;;  %5748 = vmatprep.subr.bf16.mxu1 %v7275_v55  ;;  %v7924_v55 = vld [vmem:[#allocation4 + $0x1f4] ss:$8 sps:$4 sm:$0xff]  }
 0x156   :  { %v377_v51 = vrot.slane %v8167_v58, %v8190_v47 }
 0x158   :  { %2423 = vmatpush1.bf16.msra.mxu0 %v7865_v59  ;;  %v8170_v59 = vsub.s32 1, %v8045_v43  ;;  %5749 = vmatpush1.bf16.msra.mxu1 %v7274_v57  ;;  %v2486_v57 = vld [vmem:[%s9884_s5 + $0x10] sm:$0xff] }
 0x159   :  { %2424 = vmatprep.subr.bf16.mxu0 %v7870_v60  ;;  %v8173_v60 = vsub.s32 3, %v8045_v43 }
 0x15b   :  { %v381_v3 = vrot.slane %v8167_v58, %v8173_v60 }
 0x15c   :  { %2425 = vmatpush1.bf16.msra.mxu0 %v7868_v61  ;;  %v2900_v61 = vld [vmem:[%s9884_s5 + $0xd00] sm:$0xff] }
 0x15d   :  { %2426 = vmatprep.subr.bf16.mxu0 %v7873_v62  ;;  %v2916_v62 = vld [vmem:[%s9884_s5 + $0xd80] sm:$0xff] }
 0x160   :  { %2427 = vmatpush1.bf16.msra.mxu0 %v7871_v63  ;;  %v7307_v63 = vcombine.high %v2900_v61, %v2916_v62 }
 0x161   :  { %2428 = vmatprep.subr.bf16.mxu0 %v7876_v0  ;;  %v369_v0 = vrot.slane %v8167_v58, %v8162_v56 }
 0x162   :  { %5750 = vmatprep.subr.bf16.mxu1 %v7307_v63 }
 0x164   :  { %2429 = vmatpush1.bf16.msra.mxu0 %v7874_v1  ;;  %v7306_v1 = vcombine.low %v2900_v61, %v2916_v62  ;;  %v2502_v61 = vld [vmem:[%s9884_s5 + $0x90] sm:$0xff] }
 0x165   :  { %2439 = vmatprep.subr.bf16.mxu0 %v7879_v2  ;;  %v373_v2 = vrot.slane %v8167_v58, %v8170_v59  ;;  %v7922_v62 = vld [vmem:[#allocation4 + $0x1f0] ss:$8 sps:$4 sm:$0xff]   ;;  %v6895_v58 = vcombine.high %v2486_v57, %v2502_v61 }
 0x166   :  { %5751 = vmatpush1.bf16.msra.mxu1 %v7306_v1  ;;  %v2534_v1 = vld [vmem:[%s9884_s5 + $0x190] sm:$0xff] }
 0x1fa   :  { %v1823_v4 = vpop.f32.mrb[0].mxu0  ;;  %v8187_v5 = vpop.f32.mrb[0].mxu1 }
 0x1fb   :  { %v7402_v6 = vadd.f32 %v1823_v4, %v369_v0  ;;  %v1825_v7 = vpop.f32.mrb[1].mxu0  ;;  %v1989_v8 = vpop.f32.mrb[1].mxu1  ;;  %v7404_v54 = vadd.f32 %v8187_v5, %v377_v51  ;;  %v2518_v0 = vld [vmem:[%s9884_s5 + $0x110] sm:$0xff] }
 0x1fc   :  { %v7403_v10 = vadd.f32 %v1825_v7, %v373_v2  ;;  %v7405_v11 = vadd.f32 %v1989_v8, %v381_v3  ;;  %v1827_v12 = vpop.f32.mrb[2].mxu0  ;;  %v1991_v13 = vpop.f32.mrb[2].mxu1  ;;  %v6894_v2 = vcombine.low %v2486_v57, %v2502_v61  ;;  %v6927_v4 = vcombine.high %v2518_v0, %v2534_v1  ;;  %v2550_v5 = vld [vmem:[%s9884_s5 + $0x210] sm:$0xff]  ;;  %v2932_v61 = vld [vmem:[%s9884_s5 + $0xe00] sm:$0xff] }
 0x1fd   :  { %v1994_v14 = vmax.f32 %v7402_v6, 0.0  ;;  %v1828_v15 = vpop.f32.mrb[3].mxu0  ;;  %v1992_v16 = vpop.f32.mrb[3].mxu1  ;;  %v1996_v63 = vmax.f32 %v7404_v54, 0.0  ;;  %v2566_v6 = vld [vmem:[%s9884_s5 + $0x290] sm:$0xff]  ;;  %v6926_v7 = vcombine.low %v2518_v0, %v2534_v1 }
 0x1fe   :  { %v1995_v17 = vmax.f32 %v7403_v10, 0.0  ;;  %v1997_v18 = vmax.f32 %v7405_v11, 0.0  ;;  %v6959_v8 = vcombine.high %v2550_v5, %v2566_v6  ;;  %v2582_v10 = vld [vmem:[%s9884_s5 + $0x310] sm:$0xff]  ;;  %v6958_v12 = vcombine.low %v2550_v5, %v2566_v6  ;;  %v2980_v5 = vld [vmem:[%s9884_s5 + $0xf80] sm:$0xff] }
 0x1ff   :  { %v1998_v21 = vpack.c.bf16 %v1994_v14, %v1994_v14  ;;  %v2000_v3 = vpack.c.bf16 %v1996_v63, %v1996_v63  ;;  %v2598_v11 = vld [vmem:[%s9884_s5 + $0x390] sm:$0xff] }
 0x200   :  { %v1999_v19 = vpack.c.bf16 %v1995_v17, %v1995_v17  ;;  %v2001_v24 = vpack.c.bf16 %v1997_v18, %v1997_v18  ;;  %v6991_v13 = vcombine.high %v2582_v10, %v2598_v11  ;;  %v2614_v14 = vld [vmem:[%s9884_s5 + $0x410] sm:$0xff]  ;;  %v6990_v16 = vcombine.low %v2582_v10, %v2598_v11 }
 0x201   :  { %v2630_v15 = vld [vmem:[%s9884_s5 + $0x490] sm:$0xff] }
 0x202   :  { %2430 = vmatprep.mubr.bf16.mxu0 %v1999_v19  ;;  %v7023_v17 = vcombine.high %v2614_v14, %v2630_v15  ;;  %v2646_v18 = vld [vmem:[%s9884_s5 + $0x510] sm:$0xff] }
 0x203   :  { %2431 = vmatmul.mubr.bf16.vlgmr.msra.gmra.mrb[4].mxu0 %v1998_v21  ;;  %v2662_v19 = vld [vmem:[%s9884_s5 + $0x590] sm:$0xff] }
 0x204   :  { %2440 = vmatpush1.bf16.msra.mxu0 %v7877_v20  ;;  %2471 = vmatprep.mubr.bf16.mxu0 %v2001_v24  ;;  %v7022_v20 = vcombine.low %v2614_v14, %v2630_v15  ;;  %v7055_v21 = vcombine.high %v2646_v18, %v2662_v19  ;;  %v2694_v24 = vld [vmem:[%s9884_s5 + $0x690] sm:$0xff]  ;;  %v2501_v14 = vld [vmem:[%s9884_s5 + $0x88] sm:$0xff]  ;;  %v2488_v15 = vld [vmem:[%s9884_s5 + $0x20] sm:$0xff] }
 0x205   :  { %2441 = vmatprep.subr.bf16.mxu0 %v7882_v22  ;;  %v2678_v22 = vld [vmem:[%s9884_s5 + $0x610] sm:$0xff] }
 0x206   :  { %v2934_v63 = vld [vmem:[%s9884_s5 + $0xe10] sm:$0xff] }
 0x207   :  { %v2950_v0 = vld [vmem:[%s9884_s5 + $0xe90] sm:$0xff] }
 0x208   :  { %2442 = vmatpush1.bf16.msra.mxu0 %v7880_v9  ;;  %v7054_v9 = vcombine.low %v2646_v18, %v2662_v19  ;;  %v2966_v6 = vld [vmem:[%s9884_s5 + $0xf10] sm:$0xff] }
 0x209   :  { %2443 = vmatprep.subr.bf16.mxu0 %v7885_v27  ;;  %v7087_v27 = vcombine.high %v2678_v22, %v2694_v24 }
 0x20c   :  { %2444 = vmatpush1.bf16.msra.mxu0 %v7883_v28  ;;  %v2710_v28 = vld [vmem:[%s9884_s5 + $0x710] sm:$0xff] }
 0x20d   :  { %2445 = vmatprep.subr.bf16.mxu0 %v7888_v29  ;;  %v2726_v29 = vld [vmem:[%s9884_s5 + $0x790] sm:$0xff] }
 0x210   :  { %2446 = vmatpush1.bf16.msra.mxu0 %v7886_v23  ;;  %v7086_v23 = vcombine.low %v2678_v22, %v2694_v24 }
 0x211   :  { %2447 = vmatprep.subr.bf16.mxu0 %v7891_v30  ;;  %v7119_v30 = vcombine.high %v2710_v28, %v2726_v29 }
 0x214   :  { %2448 = vmatpush1.bf16.msra.mxu0 %v7889_v31  ;;  %v2742_v31 = vld [vmem:[%s9884_s5 + $0x810] sm:$0xff] }
 0x215   :  { %2449 = vmatprep.subr.bf16.mxu0 %v7894_v32  ;;  %v2758_v32 = vld [vmem:[%s9884_s5 + $0x890] sm:$0xff] }
 0x218   :  { %2450 = vmatpush1.bf16.msra.mxu0 %v7892_v33  ;;  %v7118_v33 = vcombine.low %v2710_v28, %v2726_v29 }
 0x219   :  { %2451 = vmatprep.subr.bf16.mxu0 %v7897_v34  ;;  %v7151_v34 = vcombine.high %v2742_v31, %v2758_v32 }
 0x21c   :  { %2452 = vmatpush1.bf16.msra.mxu0 %v7895_v35  ;;  %v2774_v35 = vld [vmem:[%s9884_s5 + $0x910] sm:$0xff] }
 0x21d   :  { %2453 = vmatprep.subr.bf16.mxu0 %v7900_v36  ;;  %v2790_v36 = vld [vmem:[%s9884_s5 + $0x990] sm:$0xff] }
 0x220   :  { %2454 = vmatpush1.bf16.msra.mxu0 %v7898_v37  ;;  %v7150_v37 = vcombine.low %v2742_v31, %v2758_v32 }
 0x221   :  { %2455 = vmatprep.subr.bf16.mxu0 %v7903_v38  ;;  %v7183_v38 = vcombine.high %v2774_v35, %v2790_v36 }
 0x224   :  { %2456 = vmatpush1.bf16.msra.mxu0 %v7901_v39  ;;  %v2806_v39 = vld [vmem:[%s9884_s5 + $0xa10] sm:$0xff] }
 0x225   :  { %2457 = vmatprep.subr.bf16.mxu0 %v7906_v40  ;;  %v2822_v40 = vld [vmem:[%s9884_s5 + $0xa90] sm:$0xff] }
 0x228   :  { %2458 = vmatpush1.bf16.msra.mxu0 %v7904_v41  ;;  %v7182_v41 = vcombine.low %v2774_v35, %v2790_v36  ;;  %v2520_v35 = vld [vmem:[%s9884_s5 + $0x120] sm:$0xff] }
 0x229   :  { %2459 = vmatprep.subr.bf16.mxu0 %v7909_v26  ;;  %v7215_v26 = vcombine.high %v2806_v39, %v2822_v40  ;;  %v2536_v36 = vld [vmem:[%s9884_s5 + $0x1a0] sm:$0xff] }
 0x22c   :  { %2460 = vmatpush1.bf16.msra.mxu0 %v7907_v25  ;;  %v2838_v25 = vld [vmem:[%s9884_s5 + $0xb10] sm:$0xff] }
 0x22d   :  { %2461 = vmatprep.subr.bf16.mxu0 %v7912_v42  ;;  %v2854_v42 = vld [vmem:[%s9884_s5 + $0xb90] sm:$0xff] }
 0x230   :  { %2462 = vmatpush1.bf16.msra.mxu0 %v7910_v44  ;;  %v7214_v44 = vcombine.low %v2806_v39, %v2822_v40  ;;  %v2549_v39 = vld [vmem:[%s9884_s5 + $0x208] sm:$0xff] }
 0x231   :  { %2463 = vmatprep.subr.bf16.mxu0 %v7915_v45  ;;  %v7247_v45 = vcombine.high %v2838_v25, %v2854_v42 }
 0x234   :  { %2464 = vmatpush1.bf16.msra.mxu0 %v7913_v46  ;;  %v2870_v46 = vld [vmem:[%s9884_s5 + $0xc10] sm:$0xff] }
 0x235   :  { %2465 = vmatprep.subr.bf16.mxu0 %v7918_v48  ;;  %v2886_v48 = vld [vmem:[%s9884_s5 + $0xc90] sm:$0xff] }
 0x236   :  { %v7279_v51 = vcombine.high %v2870_v46, %v2886_v48  ;;  %v7278_v54 = vcombine.low %v2870_v46, %v2886_v48 }
 0x238   :  { %2466 = vmatpush1.bf16.msra.mxu0 %v7916_v50  ;;  %v7246_v50 = vcombine.low %v2838_v25, %v2854_v42  ;;  %v2552_v25 = vld [vmem:[%s9884_s5 + $0x220] sm:$0xff] }
 0x239   :  { %2467 = vmatprep.subr.bf16.mxu0 %v7921_v52  ;;  %v2902_v52 = vld [vmem:[%s9884_s5 + $0xd10] sm:$0xff]  ;;  %v2568_v42 = vld [vmem:[%s9884_s5 + $0x2a0] sm:$0xff] }
 0x23a   :  { %v6963_v48 = vcombine.high %v2552_v25, %v2568_v42 }
 0x23c   :  { %2468 = vmatpush1.bf16.msra.mxu0 %v7919_v53  ;;  %v2918_v53 = vld [vmem:[%s9884_s5 + $0xd90] sm:$0xff] }
 0x23d   :  { %2469 = vmatprep.subr.bf16.mxu0 %v7924_v55  ;;  %v7311_v55 = vcombine.high %v2902_v52, %v2918_v53  ;;  %v7310_v57 = vcombine.low %v2902_v52, %v2918_v53  ;;  %v2584_v52 = vld [vmem:[%s9884_s5 + $0x320] sm:$0xff] }
 0x23e   :  { %v2600_v53 = vld [vmem:[%s9884_s5 + $0x3a0] sm:$0xff] }
 0x240   :  { %2470 = vmatpush1.bf16.msra.mxu0 %v7922_v62  ;;  %v2948_v62 = vld [vmem:[%s9884_s5 + $0xe80] sm:$0xff] }
 0x241   :  { %5806 = vmatprep.subr.bf16.mxu0 %v6895_v58  ;;  %v7339_v58 = vcombine.high %v2932_v61, %v2948_v62  ;;  %v7338_v1 = vcombine.low %v2932_v61, %v2948_v62  ;;  %v6995_v61 = vcombine.high %v2584_v52, %v2600_v53  ;;  %v2613_v62 = vld [vmem:[%s9884_s5 + $0x408] sm:$0xff] }
 0x243   :  { %2472 = vmatmul.mubr.bf16.vlgmr.msra.gmra.mrb[4].mxu0 %v2000_v3  ;;  %v7343_v3 = vcombine.high %v2934_v63, %v2950_v0  ;;  %5752 = vmatprep.subr.bf16.mxu1 %v7339_v58  ;;  %v2616_v58 = vld [vmem:[%s9884_s5 + $0x420] sm:$0xff] }
 0x244   :  { %5807 = vmatpush1.bf16.msra.mxu0 %v6894_v2  ;;  %v7342_v2 = vcombine.low %v2934_v63, %v2950_v0  ;;  %5753 = vmatpush1.bf16.msra.mxu1 %v7338_v1  ;;  %v2629_v63 = vld [vmem:[%s9884_s5 + $0x488] sm:$0xff]  ;;  %v2632_v0 = vld [vmem:[%s9884_s5 + $0x4a0] sm:$0xff] }
 0x245   :  { %5808 = vmatprep.subr.bf16.mxu0 %v6927_v4  ;;  %v2964_v4 = vld [vmem:[%s9884_s5 + $0xf00] sm:$0xff] }
 0x246   :  { %v7370_v10 = vcombine.low %v2964_v4, %v2980_v5 }
 0x248   :  { %5809 = vmatpush1.bf16.msra.mxu0 %v6926_v7  ;;  %v7371_v7 = vcombine.high %v2964_v4, %v2980_v5  ;;  %v7027_v4 = vcombine.high %v2616_v58, %v2632_v0  ;;  %v2645_v5 = vld [vmem:[%s9884_s5 + $0x508] sm:$0xff] }
 0x249   :  { %5810 = vmatprep.subr.bf16.mxu0 %v6959_v8  ;;  %v2982_v8 = vld [vmem:[%s9884_s5 + $0xf90] sm:$0xff] }
 0x24a   :  { %v7374_v11 = vcombine.low %v2966_v6, %v2982_v8  ;;  %5754 = vmatprep.subr.bf16.mxu1 %v7371_v7  ;;  %v2648_v7 = vld [vmem:[%s9884_s5 + $0x520] sm:$0xff] }
 0x24b   :  { %5755 = vmatpush1.bf16.msra.mxu1 %v7370_v10  ;;  %v7020_v10 = vcombine.low %v2613_v62, %v2629_v63 }
 0x24c   :  { %5811 = vmatpush1.bf16.msra.mxu0 %v6958_v12  ;;  %v7375_v12 = vcombine.high %v2966_v6, %v2982_v8  ;;  %v2661_v6 = vld [vmem:[%s9884_s5 + $0x588] sm:$0xff]  ;;  %v2664_v8 = vld [vmem:[%s9884_s5 + $0x5a0] sm:$0xff] }
 0x24d   :  { %5812 = vmatprep.subr.bf16.mxu0 %v6991_v13  ;;  %v2485_v13 = vld [vmem:[%s9884_s5 + $0x8] sm:$0xff] }
 0x24e   :  { %v6892_v18 = vcombine.low %v2485_v13, %v2501_v14 }
 0x250   :  { %5813 = vmatpush1.bf16.msra.mxu0 %v6990_v16  ;;  %v6893_v16 = vcombine.high %v2485_v13, %v2501_v14  ;;  %v7059_v13 = vcombine.high %v2648_v7, %v2664_v8  ;;  %v2677_v14 = vld [vmem:[%s9884_s5 + $0x608] sm:$0xff] }
 0x251   :  { %5814 = vmatprep.subr.bf16.mxu0 %v7023_v17  ;;  %v2504_v17 = vld [vmem:[%s9884_s5 + $0xa0] sm:$0xff] }
 0x252   :  { %v6898_v19 = vcombine.low %v2488_v15, %v2504_v17  ;;  %5765 = vmatprep.subr.bf16.mxu1 %v6893_v16  ;;  %v2680_v16 = vld [vmem:[%s9884_s5 + $0x620] sm:$0xff] }
 0x254   :  { %5815 = vmatpush1.bf16.msra.mxu0 %v7022_v20  ;;  %v6899_v20 = vcombine.high %v2488_v15, %v2504_v17  ;;  %v2693_v15 = vld [vmem:[%s9884_s5 + $0x688] sm:$0xff]  ;;  %v2696_v17 = vld [vmem:[%s9884_s5 + $0x6a0] sm:$0xff] }
 0x255   :  { %5816 = vmatprep.subr.bf16.mxu0 %v7055_v21  ;;  %v2066_v21 = vld [vmem:[%s9883_s4] sm:$0x3] }
 0x256   :  { %v2071_v22 = vrot.slane %v2066_v21, %v8162_v56  ;;  %v2075_v24 = vrot.slane %v2066_v21, %v8170_v59  ;;  %v7091_v21 = vcombine.high %v2680_v16, %v2696_v17 }
 0x258   :  { %5817 = vmatpush1.bf16.msra.mxu0 %v7054_v9 }
 0x259   :  { %5818 = vmatprep.subr.bf16.mxu0 %v7087_v27 }
 0x25c   :  { %5819 = vmatpush1.bf16.msra.mxu0 %v7086_v23 }
 0x25d   :  { %5820 = vmatprep.subr.bf16.mxu0 %v7119_v30 }
 0x260   :  { %5821 = vmatpush1.bf16.msra.mxu0 %v7118_v33  ;;  %v2517_v33 = vld [vmem:[%s9884_s5 + $0x108] sm:$0xff] }
 0x261   :  { %5822 = vmatprep.subr.bf16.mxu0 %v7151_v34  ;;  %v2533_v34 = vld [vmem:[%s9884_s5 + $0x188] sm:$0xff] }
 0x262   :  { %v6925_v40 = vcombine.high %v2517_v33, %v2533_v34 }
 0x264   :  { %5823 = vmatpush1.bf16.msra.mxu0 %v7150_v37 }
 0x265   :  { %5824 = vmatprep.subr.bf16.mxu0 %v7183_v38 }
 0x268   :  { %5825 = vmatpush1.bf16.msra.mxu0 %v7182_v41  ;;  %v6931_v41 = vcombine.high %v2520_v35, %v2536_v36 }
 0x269   :  { %5826 = vmatprep.subr.bf16.mxu0 %v7215_v26  ;;  %v2565_v26 = vld [vmem:[%s9884_s5 + $0x288] sm:$0xff] }
 0x26a   :  { %v6957_v46 = vcombine.high %v2549_v39, %v2565_v26 }
 0x26c   :  { %5827 = vmatpush1.bf16.msra.mxu0 %v7214_v44  ;;  %v6924_v44 = vcombine.low %v2517_v33, %v2533_v34  ;;  %v2744_v33 = vld [vmem:[%s9884_s5 + $0x820] sm:$0xff] }
 0x26d   :  { %5828 = vmatprep.subr.bf16.mxu0 %v7247_v45  ;;  %v6930_v45 = vcombine.low %v2520_v35, %v2536_v36  ;;  %v2760_v34 = vld [vmem:[%s9884_s5 + $0x8a0] sm:$0xff] }
 0x270   :  { %5829 = vmatpush1.bf16.msra.mxu0 %v7246_v50  ;;  %v2581_v50 = vld [vmem:[%s9884_s5 + $0x308] sm:$0xff] }
 0x271   :  { %5830 = vmatprep.subr.bf16.mxu0 %v7279_v51  ;;  %v2597_v51 = vld [vmem:[%s9884_s5 + $0x388] sm:$0xff] }
 0x272   :  { %v6988_v1 = vcombine.low %v2581_v50, %v2597_v51 }
 0x274   :  { %5831 = vmatpush1.bf16.msra.mxu0 %v7278_v54  ;;  %v6956_v54 = vcombine.low %v2549_v39, %v2565_v26  ;;  %v2789_v26 = vld [vmem:[%s9884_s5 + $0x988] sm:$0xff] }
 0x275   :  { %5832 = vmatprep.subr.bf16.mxu0 %v7311_v55  ;;  %v6962_v55 = vcombine.low %v2552_v25, %v2568_v42  ;;  %v2776_v25 = vld [vmem:[%s9884_s5 + $0x920] sm:$0xff] }
 0x276   :  { %v2792_v42 = vld [vmem:[%s9884_s5 + $0x9a0] sm:$0xff] }
 0x278   :  { %5833 = vmatpush1.bf16.msra.mxu0 %v7310_v57  ;;  %v6989_v57 = vcombine.high %v2581_v50, %v2597_v51  ;;  %v2805_v50 = vld [vmem:[%s9884_s5 + $0xa08] sm:$0xff] }
 0x279   :  { %5834 = vmatprep.subr.bf16.mxu0 %v7343_v3  ;;  %v7021_v3 = vcombine.high %v2613_v62, %v2629_v63  ;;  %v2821_v51 = vld [vmem:[%s9884_s5 + $0xa88] sm:$0xff] }
 0x27a   :  { %v2837_v62 = vld [vmem:[%s9884_s5 + $0xb08] sm:$0xff] }
 0x27b   :  { %v2853_v63 = vld [vmem:[%s9884_s5 + $0xb88] sm:$0xff] }
 0x27c   :  { %5835 = vmatpush1.bf16.msra.mxu0 %v7342_v2  ;;  %v6994_v2 = vcombine.low %v2584_v52, %v2600_v53  ;;  %v2808_v52 = vld [vmem:[%s9884_s5 + $0xa20] sm:$0xff] }
 0x27d   :  { %5836 = vmatprep.subr.bf16.mxu0 %v7375_v12  ;;  %v7053_v12 = vcombine.high %v2645_v5, %v2661_v6  ;;  %v2824_v53 = vld [vmem:[%s9884_s5 + $0xaa0] sm:$0xff] }
 0x280   :  { %5837 = vmatpush1.bf16.msra.mxu0 %v7374_v11  ;;  %v7026_v11 = vcombine.low %v2616_v58, %v2632_v0  ;;  %v2840_v58 = vld [vmem:[%s9884_s5 + $0xb20] sm:$0xff] }
 0x281   :  { %5888 = vmatprep.subr.bf16.mxu0 %v6899_v20  ;;  %v7085_v20 = vcombine.high %v2677_v14, %v2693_v15  ;;  %v2856_v0 = vld [vmem:[%s9884_s5 + $0xba0] sm:$0xff] }
 0x316   :  { %v2473_v9 = vpop.f32.mrb[4].mxu0 }
 0x317   :  { %v7406_v27 = vadd.f32 %v2473_v9, %v2071_v22  ;;  %v2475_v28 = vpop.f32.mrb[5].mxu0  ;;  %v2709_v22 = vld [vmem:[%s9884_s5 + $0x708] sm:$0xff]  ;;  %v2712_v9 = vld [vmem:[%s9884_s5 + $0x720] sm:$0xff] }
 0x318   :  { %v7407_v29 = vadd.f32 %v2475_v28, %v2075_v24  ;;  %v2477_v23 = vpop.f32.mrb[6].mxu0  ;;  %v2725_v24 = vld [vmem:[%s9884_s5 + $0x788] sm:$0xff]  ;;  %v7084_v28 = vcombine.low %v2677_v14, %v2693_v15 }
 0x319   :  { %v2480_v30 = vmax.f32 %v7406_v27, 0.0  ;;  %v2478_v31 = vpop.f32.mrb[7].mxu0  ;;  %v2728_v27 = vld [vmem:[%s9884_s5 + $0x7a0] sm:$0xff]  ;;  %v7117_v23 = vcombine.high %v2709_v22, %v2725_v24  ;;  %v7116_v35 = vcombine.low %v2709_v22, %v2725_v24  ;;  %v2901_v14 = vld [vmem:[%s9884_s5 + $0xd08] sm:$0xff] }
 0x31a   :  { %v2481_v32 = vmax.f32 %v7407_v29, 0.0  ;;  %v7090_v29 = vcombine.low %v2680_v16, %v2696_v17  ;;  %v2741_v31 = vld [vmem:[%s9884_s5 + $0x808] sm:$0xff]  ;;  %v7122_v36 = vcombine.low %v2712_v9, %v2728_v27  ;;  %v2904_v16 = vld [vmem:[%s9884_s5 + $0xd20] sm:$0xff] }
 0x31b   :  { %v8334_v38 = vpack.c.bf16 %v2480_v30, %v2480_v30  ;;  %v7123_v30 = vcombine.high %v2712_v9, %v2728_v27  ;;  %v2917_v15 = vld [vmem:[%s9884_s5 + $0xd88] sm:$0xff]  ;;  %v2920_v17 = vld [vmem:[%s9884_s5 + $0xda0] sm:$0xff] }
 0x31c   :  { %v8332_v37 = vpack.c.bf16 %v2481_v32, %v2481_v32  ;;  %v2757_v32 = vld [vmem:[%s9884_s5 + $0x888] sm:$0xff]  ;;  %v2936_v9 = vld [vmem:[%s9884_s5 + $0xe20] sm:$0xff] }
 0x31d   :  { %v7149_v39 = vcombine.high %v2741_v31, %v2757_v32  ;;  %v2933_v22 = vld [vmem:[%s9884_s5 + $0xe08] sm:$0xff]  ;;  %v2952_v27 = vld [vmem:[%s9884_s5 + $0xea0] sm:$0xff] }
 0x31e   :  { %5756 = vmatprep.mubr.bf16.mxu1 %v8332_v37  ;;  %5838 = vmatprep.mubr.bf16.mxu0 %v8332_v37  ;;  %v2949_v24 = vld [vmem:[%s9884_s5 + $0xe88] sm:$0xff] }
 0x31f   :  { %5757 = vmatmul.mubr.bf16.vlgmr.msra.gmra.mrb[4].mxu1 %v8334_v38  ;;  %5839 = vmatmul.mubr.bf16.vlgmr.msra.gmra.mrb[8].mxu0 %v8334_v38 }
 0x320   :  { %5766 = vmatpush1.bf16.msra.mxu1 %v6892_v18  ;;  %5889 = vmatpush1.bf16.msra.mxu0 %v6898_v19  ;;  %v7052_v18 = vcombine.low %v2645_v5, %v2661_v6  ;;  %v7058_v19 = vcombine.low %v2648_v7, %v2664_v8  ;;  %v2869_v5 = vld [vmem:[%s9884_s5 + $0xc08] sm:$0xff]  ;;  %v2872_v7 = vld [vmem:[%s9884_s5 + $0xc20] sm:$0xff] }
 0x321   :  { %5797 = vmatprep.mubr.bf16.mxu1 %v8332_v37  ;;  %5920 = vmatprep.mubr.bf16.mxu0 %v8332_v37  ;;  %v2885_v6 = vld [vmem:[%s9884_s5 + $0xc88] sm:$0xff]  ;;  %v2888_v8 = vld [vmem:[%s9884_s5 + $0xca0] sm:$0xff] }
 0x322   :  { %5767 = vmatprep.subr.bf16.mxu1 %v6925_v40  ;;  %5890 = vmatprep.subr.bf16.mxu0 %v6931_v41  ;;  %v7155_v40 = vcombine.high %v2744_v33, %v2760_v34  ;;  %v2773_v41 = vld [vmem:[%s9884_s5 + $0x908] sm:$0xff] }
 0x324   :  { %5768 = vmatpush1.bf16.msra.mxu1 %v6924_v44  ;;  %5891 = vmatpush1.bf16.msra.mxu0 %v6930_v45  ;;  %v7148_v44 = vcombine.low %v2741_v31, %v2757_v32  ;;  %v7154_v45 = vcombine.low %v2744_v33, %v2760_v34  ;;  %v2965_v31 = vld [vmem:[%s9884_s5 + $0xf08] sm:$0xff]  ;;  %v2968_v33 = vld [vmem:[%s9884_s5 + $0xf20] sm:$0xff] }
 0x325   :  { %5769 = vmatprep.subr.bf16.mxu1 %v6957_v46  ;;  %5892 = vmatprep.subr.bf16.mxu0 %v6963_v48  ;;  %v7181_v46 = vcombine.high %v2773_v41, %v2789_v26  ;;  %v7187_v48 = vcombine.high %v2776_v25, %v2792_v42  ;;  %v2981_v32 = vld [vmem:[%s9884_s5 + $0xf88] sm:$0xff]  ;;  %v2984_v34 = vld [vmem:[%s9884_s5 + $0xfa0] sm:$0xff] }
 0x328   :  { %5770 = vmatpush1.bf16.msra.mxu1 %v6956_v54  ;;  %5893 = vmatpush1.bf16.msra.mxu0 %v6962_v55  ;;  %v7180_v54 = vcombine.low %v2773_v41, %v2789_v26  ;;  %v7186_v55 = vcombine.low %v2776_v25, %v2792_v42  ;;  %v2487_v41 = vld [vmem:[%s9884_s5 + $0x18] sm:$0xff]  ;;  %v2490_v25 = vld [vmem:[%s9884_s5 + $0x30] sm:$0xff] }
 0x329   :  { %5771 = vmatprep.subr.bf16.mxu1 %v6989_v57  ;;  %5894 = vmatprep.subr.bf16.mxu0 %v6995_v61  ;;  %v7213_v57 = vcombine.high %v2805_v50, %v2821_v51  ;;  %v7219_v61 = vcombine.high %v2808_v52, %v2824_v53  ;;  %v2503_v26 = vld [vmem:[%s9884_s5 + $0x98] sm:$0xff]  ;;  %v2506_v42 = vld [vmem:[%s9884_s5 + $0xb0] sm:$0xff] }
 0x32c   :  { %5772 = vmatpush1.bf16.msra.mxu1 %v6988_v1  ;;  %5895 = vmatpush1.bf16.msra.mxu0 %v6994_v2  ;;  %v7212_v1 = vcombine.low %v2805_v50, %v2821_v51  ;;  %v7218_v2 = vcombine.low %v2808_v52, %v2824_v53  ;;  %v2519_v50 = vld [vmem:[%s9884_s5 + $0x118] sm:$0xff]  ;;  %v2522_v52 = vld [vmem:[%s9884_s5 + $0x130] sm:$0xff] }
 0x32d   :  { %5773 = vmatprep.subr.bf16.mxu1 %v7021_v3  ;;  %5896 = vmatprep.subr.bf16.mxu0 %v7027_v4  ;;  %v7245_v3 = vcombine.high %v2837_v62, %v2853_v63  ;;  %v7251_v4 = vcombine.high %v2840_v58, %v2856_v0  ;;  %v2535_v51 = vld [vmem:[%s9884_s5 + $0x198] sm:$0xff]  ;;  %v2538_v53 = vld [vmem:[%s9884_s5 + $0x1b0] sm:$0xff] }
 0x330   :  { %5774 = vmatpush1.bf16.msra.mxu1 %v7020_v10  ;;  %5897 = vmatpush1.bf16.msra.mxu0 %v7026_v11  ;;  %v7244_v10 = vcombine.low %v2837_v62, %v2853_v63  ;;  %v7250_v11 = vcombine.low %v2840_v58, %v2856_v0  ;;  %v2551_v62 = vld [vmem:[%s9884_s5 + $0x218] sm:$0xff]  ;;  %v2554_v58 = vld [vmem:[%s9884_s5 + $0x230] sm:$0xff] }
 0x331   :  { %5775 = vmatprep.subr.bf16.mxu1 %v7053_v12  ;;  %5898 = vmatprep.subr.bf16.mxu0 %v7059_v13  ;;  %v7277_v12 = vcombine.high %v2869_v5, %v2885_v6  ;;  %v7283_v13 = vcombine.high %v2872_v7, %v2888_v8  ;;  %v2567_v63 = vld [vmem:[%s9884_s5 + $0x298] sm:$0xff]  ;;  %v2570_v0 = vld [vmem:[%s9884_s5 + $0x2b0] sm:$0xff] }
 0x334   :  { %5776 = vmatpush1.bf16.msra.mxu1 %v7052_v18  ;;  %5899 = vmatpush1.bf16.msra.mxu0 %v7058_v19  ;;  %v7276_v18 = vcombine.low %v2869_v5, %v2885_v6  ;;  %v7282_v19 = vcombine.low %v2872_v7, %v2888_v8  ;;  %v2583_v5 = vld [vmem:[%s9884_s5 + $0x318] sm:$0xff]  ;;  %v2586_v7 = vld [vmem:[%s9884_s5 + $0x330] sm:$0xff] }
 0x335   :  { %5777 = vmatprep.subr.bf16.mxu1 %v7085_v20  ;;  %5900 = vmatprep.subr.bf16.mxu0 %v7091_v21  ;;  %v7309_v20 = vcombine.high %v2901_v14, %v2917_v15  ;;  %v7315_v21 = vcombine.high %v2904_v16, %v2920_v17  ;;  %v2599_v6 = vld [vmem:[%s9884_s5 + $0x398] sm:$0xff]  ;;  %v2602_v8 = vld [vmem:[%s9884_s5 + $0x3b0] sm:$0xff] }
 0x338   :  { %5778 = vmatpush1.bf16.msra.mxu1 %v7084_v28  ;;  %5901 = vmatpush1.bf16.msra.mxu0 %v7090_v29  ;;  %v7308_v28 = vcombine.low %v2901_v14, %v2917_v15  ;;  %v7314_v29 = vcombine.low %v2904_v16, %v2920_v17  ;;  %v2615_v14 = vld [vmem:[%s9884_s5 + $0x418] sm:$0xff]  ;;  %v2618_v16 = vld [vmem:[%s9884_s5 + $0x430] sm:$0xff] }
 0x339   :  { %5779 = vmatprep.subr.bf16.mxu1 %v7117_v23  ;;  %5902 = vmatprep.subr.bf16.mxu0 %v7123_v30  ;;  %v7341_v23 = vcombine.high %v2933_v22, %v2949_v24  ;;  %v7347_v30 = vcombine.high %v2936_v9, %v2952_v27  ;;  %v2631_v15 = vld [vmem:[%s9884_s5 + $0x498] sm:$0xff]  ;;  %v2634_v17 = vld [vmem:[%s9884_s5 + $0x4b0] sm:$0xff] }
 0x33c   :  { %5780 = vmatpush1.bf16.msra.mxu1 %v7116_v35  ;;  %5903 = vmatpush1.bf16.msra.mxu0 %v7122_v36  ;;  %v7340_v35 = vcombine.low %v2933_v22, %v2949_v24  ;;  %v7346_v36 = vcombine.low %v2936_v9, %v2952_v27  ;;  %v2647_v22 = vld [vmem:[%s9884_s5 + $0x518] sm:$0xff]  ;;  %v2650_v9 = vld [vmem:[%s9884_s5 + $0x530] sm:$0xff] }
 0x33d   :  { %5781 = vmatprep.subr.bf16.mxu1 %v7149_v39  ;;  %5904 = vmatprep.subr.bf16.mxu0 %v7155_v40  ;;  %v7373_v39 = vcombine.high %v2965_v31, %v2981_v32  ;;  %v7379_v40 = vcombine.high %v2968_v33, %v2984_v34  ;;  %v2663_v24 = vld [vmem:[%s9884_s5 + $0x598] sm:$0xff]  ;;  %v2666_v27 = vld [vmem:[%s9884_s5 + $0x5b0] sm:$0xff] }
 0x340   :  { %5782 = vmatpush1.bf16.msra.mxu1 %v7148_v44  ;;  %5905 = vmatpush1.bf16.msra.mxu0 %v7154_v45  ;;  %v7372_v44 = vcombine.low %v2965_v31, %v2981_v32  ;;  %v7378_v45 = vcombine.low %v2968_v33, %v2984_v34  ;;  %v2679_v31 = vld [vmem:[%s9884_s5 + $0x618] sm:$0xff]  ;;  %v2682_v33 = vld [vmem:[%s9884_s5 + $0x630] sm:$0xff] }
 0x341   :  { %5783 = vmatprep.subr.bf16.mxu1 %v7181_v46  ;;  %5906 = vmatprep.subr.bf16.mxu0 %v7187_v48  ;;  %v6897_v46 = vcombine.high %v2487_v41, %v2503_v26  ;;  %v6903_v48 = vcombine.high %v2490_v25, %v2506_v42  ;;  %v2695_v32 = vld [vmem:[%s9884_s5 + $0x698] sm:$0xff]  ;;  %v2698_v34 = vld [vmem:[%s9884_s5 + $0x6b0] sm:$0xff] }
 0x344   :  { %5784 = vmatpush1.bf16.msra.mxu1 %v7180_v54  ;;  %5907 = vmatpush1.bf16.msra.mxu0 %v7186_v55  ;;  %v6896_v54 = vcombine.low %v2487_v41, %v2503_v26  ;;  %v6902_v55 = vcombine.low %v2490_v25, %v2506_v42  ;;  %v2711_v41 = vld [vmem:[%s9884_s5 + $0x718] sm:$0xff]  ;;  %v2714_v25 = vld [vmem:[%s9884_s5 + $0x730] sm:$0xff] }
 0x345   :  { %5785 = vmatprep.subr.bf16.mxu1 %v7213_v57  ;;  %5908 = vmatprep.subr.bf16.mxu0 %v7219_v61  ;;  %v6929_v57 = vcombine.high %v2519_v50, %v2535_v51  ;;  %v6935_v61 = vcombine.high %v2522_v52, %v2538_v53  ;;  %v2727_v26 = vld [vmem:[%s9884_s5 + $0x798] sm:$0xff]  ;;  %v2730_v42 = vld [vmem:[%s9884_s5 + $0x7b0] sm:$0xff] }
 0x348   :  { %5786 = vmatpush1.bf16.msra.mxu1 %v7212_v1  ;;  %5909 = vmatpush1.bf16.msra.mxu0 %v7218_v2  ;;  %v6928_v1 = vcombine.low %v2519_v50, %v2535_v51  ;;  %v6934_v2 = vcombine.low %v2522_v52, %v2538_v53  ;;  %v2743_v50 = vld [vmem:[%s9884_s5 + $0x818] sm:$0xff]  ;;  %v2746_v52 = vld [vmem:[%s9884_s5 + $0x830] sm:$0xff] }
 0x349   :  { %5787 = vmatprep.subr.bf16.mxu1 %v7245_v3  ;;  %5910 = vmatprep.subr.bf16.mxu0 %v7251_v4  ;;  %v6961_v3 = vcombine.high %v2551_v62, %v2567_v63  ;;  %v6967_v4 = vcombine.high %v2554_v58, %v2570_v0  ;;  %v2759_v51 = vld [vmem:[%s9884_s5 + $0x898] sm:$0xff]  ;;  %v2762_v53 = vld [vmem:[%s9884_s5 + $0x8b0] sm:$0xff] }
 0x34c   :  { %5788 = vmatpush1.bf16.msra.mxu1 %v7244_v10  ;;  %5911 = vmatpush1.bf16.msra.mxu0 %v7250_v11  ;;  %v6960_v10 = vcombine.low %v2551_v62, %v2567_v63  ;;  %v6966_v11 = vcombine.low %v2554_v58, %v2570_v0  ;;  %v2775_v62 = vld [vmem:[%s9884_s5 + $0x918] sm:$0xff]  ;;  %v2778_v58 = vld [vmem:[%s9884_s5 + $0x930] sm:$0xff] }
 0x34d   :  { %5789 = vmatprep.subr.bf16.mxu1 %v7277_v12  ;;  %5912 = vmatprep.subr.bf16.mxu0 %v7283_v13  ;;  %v6993_v12 = vcombine.high %v2583_v5, %v2599_v6  ;;  %v6999_v13 = vcombine.high %v2586_v7, %v2602_v8  ;;  %v2791_v63 = vld [vmem:[%s9884_s5 + $0x998] sm:$0xff]  ;;  %v2794_v0 = vld [vmem:[%s9884_s5 + $0x9b0] sm:$0xff] }
 0x350   :  { %5790 = vmatpush1.bf16.msra.mxu1 %v7276_v18  ;;  %5913 = vmatpush1.bf16.msra.mxu0 %v7282_v19  ;;  %v6992_v18 = vcombine.low %v2583_v5, %v2599_v6  ;;  %v6998_v19 = vcombine.low %v2586_v7, %v2602_v8  ;;  %v2807_v5 = vld [vmem:[%s9884_s5 + $0xa18] sm:$0xff]  ;;  %v2810_v7 = vld [vmem:[%s9884_s5 + $0xa30] sm:$0xff] }
 0x351   :  { %5791 = vmatprep.subr.bf16.mxu1 %v7309_v20  ;;  %5914 = vmatprep.subr.bf16.mxu0 %v7315_v21  ;;  %v7025_v20 = vcombine.high %v2615_v14, %v2631_v15  ;;  %v7031_v21 = vcombine.high %v2618_v16, %v2634_v17  ;;  %v2823_v6 = vld [vmem:[%s9884_s5 + $0xa98] sm:$0xff]  ;;  %v2826_v8 = vld [vmem:[%s9884_s5 + $0xab0] sm:$0xff] }
 0x354   :  { %5792 = vmatpush1.bf16.msra.mxu1 %v7308_v28  ;;  %5915 = vmatpush1.bf16.msra.mxu0 %v7314_v29  ;;  %v7024_v28 = vcombine.low %v2615_v14, %v2631_v15  ;;  %v7030_v29 = vcombine.low %v2618_v16, %v2634_v17  ;;  %v2839_v14 = vld [vmem:[%s9884_s5 + $0xb18] sm:$0xff]  ;;  %v2842_v16 = vld [vmem:[%s9884_s5 + $0xb30] sm:$0xff] }
 0x355   :  { %5793 = vmatprep.subr.bf16.mxu1 %v7341_v23  ;;  %5916 = vmatprep.subr.bf16.mxu0 %v7347_v30  ;;  %v7057_v23 = vcombine.high %v2647_v22, %v2663_v24  ;;  %v7063_v30 = vcombine.high %v2650_v9, %v2666_v27  ;;  %v2855_v15 = vld [vmem:[%s9884_s5 + $0xb98] sm:$0xff]  ;;  %v2858_v17 = vld [vmem:[%s9884_s5 + $0xbb0] sm:$0xff] }
 0x358   :  { %5794 = vmatpush1.bf16.msra.mxu1 %v7340_v35  ;;  %5917 = vmatpush1.bf16.msra.mxu0 %v7346_v36  ;;  %v7056_v35 = vcombine.low %v2647_v22, %v2663_v24  ;;  %v7062_v36 = vcombine.low %v2650_v9, %v2666_v27  ;;  %v2871_v22 = vld [vmem:[%s9884_s5 + $0xc18] sm:$0xff]  ;;  %v2874_v9 = vld [vmem:[%s9884_s5 + $0xc30] sm:$0xff] }
 0x359   :  { %5795 = vmatprep.subr.bf16.mxu1 %v7373_v39  ;;  %5918 = vmatprep.subr.bf16.mxu0 %v7379_v40  ;;  %v7089_v39 = vcombine.high %v2679_v31, %v2695_v32  ;;  %v7095_v40 = vcombine.high %v2682_v33, %v2698_v34  ;;  %v2887_v24 = vld [vmem:[%s9884_s5 + $0xc98] sm:$0xff]  ;;  %v2890_v27 = vld [vmem:[%s9884_s5 + $0xcb0] sm:$0xff] }
 0x35c   :  { %5796 = vmatpush1.bf16.msra.mxu1 %v7372_v44  ;;  %5919 = vmatpush1.bf16.msra.mxu0 %v7378_v45  ;;  %v7088_v44 = vcombine.low %v2679_v31, %v2695_v32  ;;  %v7094_v45 = vcombine.low %v2682_v33, %v2698_v34  ;;  %v2903_v31 = vld [vmem:[%s9884_s5 + $0xd18] sm:$0xff]  ;;  %v2906_v33 = vld [vmem:[%s9884_s5 + $0xd30] sm:$0xff] }
 0x35d   :  { %5847 = vmatprep.subr.bf16.mxu1 %v6897_v46  ;;  %5970 = vmatprep.subr.bf16.mxu0 %v6903_v48  ;;  %v7121_v46 = vcombine.high %v2711_v41, %v2727_v26  ;;  %v7127_v48 = vcombine.high %v2714_v25, %v2730_v42  ;;  %v2919_v32 = vld [vmem:[%s9884_s5 + $0xd98] sm:$0xff]  ;;  %v2922_v34 = vld [vmem:[%s9884_s5 + $0xdb0] sm:$0xff] }
 0x35f   :  { %5798 = vmatmul.mubr.bf16.vlgmr.msra.gmra.mrb[8].mxu1 %v8334_v38  ;;  %5921 = vmatmul.mubr.bf16.vlgmr.msra.gmra.mrb[12].mxu0 %v8334_v38 }
 0x360   :  { %5848 = vmatpush1.bf16.msra.mxu1 %v6896_v54  ;;  %5879 = vmatprep.mubr.bf16.mxu1 %v8332_v37  ;;  %v7120_v54 = vcombine.low %v2711_v41, %v2727_v26  ;;  %v2935_v41 = vld [vmem:[%s9884_s5 + $0xe18] sm:$0xff] }
 0x361   :  { %5971 = vmatpush1.bf16.msra.mxu0 %v6902_v55  ;;  %6002 = vmatprep.mubr.bf16.mxu0 %v8332_v37  ;;  %v7126_v55 = vcombine.low %v2714_v25, %v2730_v42  ;;  %v2951_v26 = vld [vmem:[%s9884_s5 + $0xe98] sm:$0xff]  ;;  %v2938_v25 = vld [vmem:[%s9884_s5 + $0xe30] sm:$0xff] }
 0x362   :  { %5849 = vmatprep.subr.bf16.mxu1 %v6929_v57  ;;  %5972 = vmatprep.subr.bf16.mxu0 %v6935_v61  ;;  %v7153_v57 = vcombine.high %v2743_v50, %v2759_v51  ;;  %v7159_v61 = vcombine.high %v2746_v52, %v2762_v53  ;;  %v2954_v42 = vld [vmem:[%s9884_s5 + $0xeb0] sm:$0xff] }
 0x364   :  { %5850 = vmatpush1.bf16.msra.mxu1 %v6928_v1  ;;  %v7152_v1 = vcombine.low %v2743_v50, %v2759_v51  ;;  %v2967_v50 = vld [vmem:[%s9884_s5 + $0xf18] sm:$0xff] }
 0x365   :  { %5973 = vmatpush1.bf16.msra.mxu0 %v6934_v2  ;;  %5851 = vmatprep.subr.bf16.mxu1 %v6961_v3  ;;  %v7158_v2 = vcombine.low %v2746_v52, %v2762_v53  ;;  %v7185_v3 = vcombine.high %v2775_v62, %v2791_v63  ;;  %v2983_v51 = vld [vmem:[%s9884_s5 + $0xf98] sm:$0xff]  ;;  %v2970_v52 = vld [vmem:[%s9884_s5 + $0xf30] sm:$0xff] }
 0x366   :  { %5974 = vmatprep.subr.bf16.mxu0 %v6967_v4  ;;  %v7191_v4 = vcombine.high %v2778_v58, %v2794_v0  ;;  %v2986_v53 = vld [vmem:[%s9884_s5 + $0xfb0] sm:$0xff] }
 0x368   :  { %5852 = vmatpush1.bf16.msra.mxu1 %v6960_v10  ;;  %v7184_v10 = vcombine.low %v2775_v62, %v2791_v63  ;;  %v2489_v62 = vld [vmem:[%s9884_s5 + $0x28] sm:$0xff] }
 0x369   :  { %5975 = vmatpush1.bf16.msra.mxu0 %v6966_v11  ;;  %5853 = vmatprep.subr.bf16.mxu1 %v6993_v12  ;;  %v7190_v11 = vcombine.low %v2778_v58, %v2794_v0  ;;  %v7217_v12 = vcombine.high %v2807_v5, %v2823_v6  ;;  %v2505_v63 = vld [vmem:[%s9884_s5 + $0xa8] sm:$0xff]  ;;  %v2492_v58 = vld [vmem:[%s9884_s5 + $0x40] sm:$0xff] }
 0x36a   :  { %5976 = vmatprep.subr.bf16.mxu0 %v6999_v13  ;;  %v7223_v13 = vcombine.high %v2810_v7, %v2826_v8  ;;  %v2508_v0 = vld [vmem:[%s9884_s5 + $0xc0] sm:$0xff] }
 0x36c   :  { %5854 = vmatpush1.bf16.msra.mxu1 %v6992_v18  ;;  %v7216_v18 = vcombine.low %v2807_v5, %v2823_v6  ;;  %v2521_v5 = vld [vmem:[%s9884_s5 + $0x128] sm:$0xff] }
 0x36d   :  { %5977 = vmatpush1.bf16.msra.mxu0 %v6998_v19  ;;  %5855 = vmatprep.subr.bf16.mxu1 %v7025_v20  ;;  %v7222_v19 = vcombine.low %v2810_v7, %v2826_v8  ;;  %v7249_v20 = vcombine.high %v2839_v14, %v2855_v15  ;;  %v2537_v6 = vld [vmem:[%s9884_s5 + $0x1a8] sm:$0xff]  ;;  %v6900_v7 = vcombine.low %v2489_v62, %v2505_v63  ;;  %v2524_v8 = vld [vmem:[%s9884_s5 + $0x140] sm:$0xff] }
 0x36e   :  { %5978 = vmatprep.subr.bf16.mxu0 %v7031_v21  ;;  %v7255_v21 = vcombine.high %v2842_v16, %v2858_v17 }
 0x370   :  { %5856 = vmatpush1.bf16.msra.mxu1 %v7024_v28  ;;  %v7248_v28 = vcombine.low %v2839_v14, %v2855_v15  ;;  %v2569_v14 = vld [vmem:[%s9884_s5 + $0x2a8] sm:$0xff] }
 0x371   :  { %5979 = vmatpush1.bf16.msra.mxu0 %v7030_v29  ;;  %5857 = vmatprep.subr.bf16.mxu1 %v7057_v23  ;;  %v7254_v29 = vcombine.low %v2842_v16, %v2858_v17  ;;  %v7281_v23 = vcombine.high %v2871_v22, %v2887_v24  ;;  %v2556_v16 = vld [vmem:[%s9884_s5 + $0x240] sm:$0xff] }
 0x372   :  { %5980 = vmatprep.subr.bf16.mxu0 %v7063_v30  ;;  %v7287_v30 = vcombine.high %v2874_v9, %v2890_v27  ;;  %v2572_v17 = vld [vmem:[%s9884_s5 + $0x2c0] sm:$0xff] }
 0x374   :  { %5858 = vmatpush1.bf16.msra.mxu1 %v7056_v35  ;;  %v7280_v35 = vcombine.low %v2871_v22, %v2887_v24  ;;  %v2585_v22 = vld [vmem:[%s9884_s5 + $0x328] sm:$0xff] }
 0x375   :  { %5981 = vmatpush1.bf16.msra.mxu0 %v7062_v36  ;;  %5859 = vmatprep.subr.bf16.mxu1 %v7089_v39  ;;  %v7286_v36 = vcombine.low %v2874_v9, %v2890_v27  ;;  %v7313_v39 = vcombine.high %v2903_v31, %v2919_v32  ;;  %v2601_v24 = vld [vmem:[%s9884_s5 + $0x3a8] sm:$0xff]  ;;  %v2588_v9 = vld [vmem:[%s9884_s5 + $0x340] sm:$0xff] }
 0x376   :  { %5982 = vmatprep.subr.bf16.mxu0 %v7095_v40  ;;  %v7319_v40 = vcombine.high %v2906_v33, %v2922_v34  ;;  %v2604_v27 = vld [vmem:[%s9884_s5 + $0x3c0] sm:$0xff] }
 0x378   :  { %5860 = vmatpush1.bf16.msra.mxu1 %v7088_v44  ;;  %v7312_v44 = vcombine.low %v2903_v31, %v2919_v32  ;;  %v2617_v31 = vld [vmem:[%s9884_s5 + $0x428] sm:$0xff] }
 0x379   :  { %5983 = vmatpush1.bf16.msra.mxu0 %v7094_v45  ;;  %5861 = vmatprep.subr.bf16.mxu1 %v7121_v46  ;;  %v7318_v45 = vcombine.low %v2906_v33, %v2922_v34  ;;  %v7345_v46 = vcombine.high %v2935_v41, %v2951_v26  ;;  %v2633_v32 = vld [vmem:[%s9884_s5 + $0x4a8] sm:$0xff]  ;;  %v2620_v33 = vld [vmem:[%s9884_s5 + $0x440] sm:$0xff] }
 0x37a   :  { %5984 = vmatprep.subr.bf16.mxu0 %v7127_v48  ;;  %v7351_v48 = vcombine.high %v2938_v25, %v2954_v42  ;;  %v2636_v34 = vld [vmem:[%s9884_s5 + $0x4c0] sm:$0xff] }
 0x37c   :  { %5862 = vmatpush1.bf16.msra.mxu1 %v7120_v54  ;;  %v7344_v54 = vcombine.low %v2935_v41, %v2951_v26  ;;  %v2649_v41 = vld [vmem:[%s9884_s5 + $0x528] sm:$0xff] }
 0x37d   :  { %5985 = vmatpush1.bf16.msra.mxu0 %v7126_v55  ;;  %5863 = vmatprep.subr.bf16.mxu1 %v7153_v57  ;;  %v7350_v55 = vcombine.low %v2938_v25, %v2954_v42  ;;  %v7377_v57 = vcombine.high %v2967_v50, %v2983_v51  ;;  %v2665_v26 = vld [vmem:[%s9884_s5 + $0x5a8] sm:$0xff]  ;;  %v2652_v25 = vld [vmem:[%s9884_s5 + $0x540] sm:$0xff] }
 0x37e   :  { %5986 = vmatprep.subr.bf16.mxu0 %v7159_v61  ;;  %v7383_v61 = vcombine.high %v2970_v52, %v2986_v53  ;;  %v2668_v42 = vld [vmem:[%s9884_s5 + $0x5c0] sm:$0xff] }
 0x380   :  { %5864 = vmatpush1.bf16.msra.mxu1 %v7152_v1  ;;  %v7376_v1 = vcombine.low %v2967_v50, %v2983_v51  ;;  %v2681_v50 = vld [vmem:[%s9884_s5 + $0x628] sm:$0xff] }
 0x381   :  { %5987 = vmatpush1.bf16.msra.mxu0 %v7158_v2  ;;  %5865 = vmatprep.subr.bf16.mxu1 %v7185_v3  ;;  %v7382_v2 = vcombine.low %v2970_v52, %v2986_v53  ;;  %v6901_v3 = vcombine.high %v2489_v62, %v2505_v63  ;;  %v2697_v51 = vld [vmem:[%s9884_s5 + $0x6a8] sm:$0xff]  ;;  %v2684_v52 = vld [vmem:[%s9884_s5 + $0x640] sm:$0xff] }
 0x382   :  { %5988 = vmatprep.subr.bf16.mxu0 %v7191_v4  ;;  %v6907_v4 = vcombine.high %v2492_v58, %v2508_v0  ;;  %v2700_v53 = vld [vmem:[%s9884_s5 + $0x6c0] sm:$0xff]  ;;  %v2713_v62 = vld [vmem:[%s9884_s5 + $0x728] sm:$0xff] }
 0x383   :  { %v2729_v63 = vld [vmem:[%s9884_s5 + $0x7a8] sm:$0xff] }
 0x384   :  { %5866 = vmatpush1.bf16.msra.mxu1 %v7184_v10  ;;  %v2540_v10 = vld [vmem:[%s9884_s5 + $0x1c0] sm:$0xff] }
 0x385   :  { %5989 = vmatpush1.bf16.msra.mxu0 %v7190_v11  ;;  %5867 = vmatprep.subr.bf16.mxu1 %v7217_v12  ;;  %v6906_v11 = vcombine.low %v2492_v58, %v2508_v0  ;;  %v6933_v12 = vcombine.high %v2521_v5, %v2537_v6  ;;  %v6939_v15 = vcombine.high %v2524_v8, %v2540_v10  ;;  %v2716_v58 = vld [vmem:[%s9884_s5 + $0x740] sm:$0xff] }
 0x386   :  { %5990 = vmatprep.subr.bf16.mxu0 %v7223_v13  ;;  %v2553_v13 = vld [vmem:[%s9884_s5 + $0x228] sm:$0xff]  ;;  %v2732_v0 = vld [vmem:[%s9884_s5 + $0x7c0] sm:$0xff] }
 0x388   :  { %5868 = vmatpush1.bf16.msra.mxu1 %v7216_v18  ;;  %v6932_v18 = vcombine.low %v2521_v5, %v2537_v6  ;;  %v2745_v5 = vld [vmem:[%s9884_s5 + $0x828] sm:$0xff] }
 0x389   :  { %5991 = vmatpush1.bf16.msra.mxu0 %v7222_v19  ;;  %5869 = vmatprep.subr.bf16.mxu1 %v7249_v20  ;;  %v6938_v19 = vcombine.low %v2524_v8, %v2540_v10  ;;  %v6965_v20 = vcombine.high %v2553_v13, %v2569_v14  ;;  %v2761_v6 = vld [vmem:[%s9884_s5 + $0x8a8] sm:$0xff]  ;;  %v2764_v8 = vld [vmem:[%s9884_s5 + $0x8c0] sm:$0xff]  ;;  %v7124_v10 = vcombine.low %v2713_v62, %v2729_v63 }
 0x38a   :  { %5992 = vmatprep.subr.bf16.mxu0 %v7255_v21  ;;  %v6971_v21 = vcombine.high %v2556_v16, %v2572_v17 }
 0x38c   :  { %5870 = vmatpush1.bf16.msra.mxu1 %v7248_v28  ;;  %v6964_v28 = vcombine.low %v2553_v13, %v2569_v14  ;;  %v2777_v14 = vld [vmem:[%s9884_s5 + $0x928] sm:$0xff] }
 0x38d   :  { %5993 = vmatpush1.bf16.msra.mxu0 %v7254_v29  ;;  %5871 = vmatprep.subr.bf16.mxu1 %v7281_v23  ;;  %v6970_v29 = vcombine.low %v2556_v16, %v2572_v17  ;;  %v6997_v23 = vcombine.high %v2585_v22, %v2601_v24  ;;  %v2780_v16 = vld [vmem:[%s9884_s5 + $0x940] sm:$0xff] }
 0x38e   :  { %5994 = vmatprep.subr.bf16.mxu0 %v7287_v30  ;;  %v7003_v30 = vcombine.high %v2588_v9, %v2604_v27  ;;  %v2796_v17 = vld [vmem:[%s9884_s5 + $0x9c0] sm:$0xff] }
 0x390   :  { %5872 = vmatpush1.bf16.msra.mxu1 %v7280_v35  ;;  %v6996_v35 = vcombine.low %v2585_v22, %v2601_v24  ;;  %v2809_v22 = vld [vmem:[%s9884_s5 + $0xa28] sm:$0xff] }
 0x391   :  { %5995 = vmatpush1.bf16.msra.mxu0 %v7286_v36  ;;  %5873 = vmatprep.subr.bf16.mxu1 %v7313_v39  ;;  %v7002_v36 = vcombine.low %v2588_v9, %v2604_v27  ;;  %v7029_v39 = vcombine.high %v2617_v31, %v2633_v32  ;;  %v2825_v24 = vld [vmem:[%s9884_s5 + $0xaa8] sm:$0xff]  ;;  %v2812_v9 = vld [vmem:[%s9884_s5 + $0xa40] sm:$0xff] }
 0x392   :  { %5996 = vmatprep.subr.bf16.mxu0 %v7319_v40  ;;  %v7035_v40 = vcombine.high %v2620_v33, %v2636_v34  ;;  %v2828_v27 = vld [vmem:[%s9884_s5 + $0xac0] sm:$0xff] }
 0x394   :  { %5874 = vmatpush1.bf16.msra.mxu1 %v7312_v44  ;;  %v7028_v44 = vcombine.low %v2617_v31, %v2633_v32  ;;  %v2841_v31 = vld [vmem:[%s9884_s5 + $0xb28] sm:$0xff] }
 0x395   :  { %5997 = vmatpush1.bf16.msra.mxu0 %v7318_v45  ;;  %5875 = vmatprep.subr.bf16.mxu1 %v7345_v46  ;;  %v7034_v45 = vcombine.low %v2620_v33, %v2636_v34  ;;  %v7061_v46 = vcombine.high %v2649_v41, %v2665_v26  ;;  %v2857_v32 = vld [vmem:[%s9884_s5 + $0xba8] sm:$0xff]  ;;  %v2844_v33 = vld [vmem:[%s9884_s5 + $0xb40] sm:$0xff] }
 0x396   :  { %5998 = vmatprep.subr.bf16.mxu0 %v7351_v48  ;;  %v7067_v48 = vcombine.high %v2652_v25, %v2668_v42  ;;  %v2860_v34 = vld [vmem:[%s9884_s5 + $0xbc0] sm:$0xff] }
 0x398   :  { %5876 = vmatpush1.bf16.msra.mxu1 %v7344_v54  ;;  %v7060_v54 = vcombine.low %v2649_v41, %v2665_v26  ;;  %v2873_v41 = vld [vmem:[%s9884_s5 + $0xc28] sm:$0xff] }
 0x399   :  { %5999 = vmatpush1.bf16.msra.mxu0 %v7350_v55  ;;  %5877 = vmatprep.subr.bf16.mxu1 %v7377_v57  ;;  %v7066_v55 = vcombine.low %v2652_v25, %v2668_v42  ;;  %v7093_v57 = vcombine.high %v2681_v50, %v2697_v51  ;;  %v2889_v26 = vld [vmem:[%s9884_s5 + $0xca8] sm:$0xff]  ;;  %v2876_v25 = vld [vmem:[%s9884_s5 + $0xc40] sm:$0xff] }
 0x39a   :  { %6000 = vmatprep.subr.bf16.mxu0 %v7383_v61  ;;  %v7099_v61 = vcombine.high %v2684_v52, %v2700_v53  ;;  %v2892_v42 = vld [vmem:[%s9884_s5 + $0xcc0] sm:$0xff] }
 0x39c   :  { %5878 = vmatpush1.bf16.msra.mxu1 %v7376_v1  ;;  %v7092_v1 = vcombine.low %v2681_v50, %v2697_v51  ;;  %v2905_v50 = vld [vmem:[%s9884_s5 + $0xd28] sm:$0xff] }
 0x39d   :  { %6001 = vmatpush1.bf16.msra.mxu0 %v7382_v2  ;;  %5929 = vmatprep.subr.bf16.mxu1 %v6901_v3  ;;  %v7098_v2 = vcombine.low %v2684_v52, %v2700_v53  ;;  %v7125_v3 = vcombine.high %v2713_v62, %v2729_v63  ;;  %v2921_v51 = vld [vmem:[%s9884_s5 + $0xda8] sm:$0xff]  ;;  %v2908_v52 = vld [vmem:[%s9884_s5 + $0xd40] sm:$0xff] }
 0x39e   :  { %6052 = vmatprep.subr.bf16.mxu0 %v6907_v4  ;;  %v7131_v4 = vcombine.high %v2716_v58, %v2732_v0  ;;  %v2924_v53 = vld [vmem:[%s9884_s5 + $0xdc0] sm:$0xff]  ;;  %v2937_v62 = vld [vmem:[%s9884_s5 + $0xe28] sm:$0xff] }
 0x39f   :  { %5880 = vmatmul.mubr.bf16.vlgmr.msra.gmra.mrb[12].mxu1 %v8334_v38  ;;  %v2953_v63 = vld [vmem:[%s9884_s5 + $0xea8] sm:$0xff] }
 0x3a0   :  { %6003 = vmatmul.mubr.bf16.vlgmr.msra.gmra.mrb[16].mxu0 %v8334_v38  ;;  %5930 = vmatpush1.bf16.msra.mxu1 %v6900_v7  ;;  %v2748_v7 = vld [vmem:[%s9884_s5 + $0x840] sm:$0xff] }
 0x3a1   :  { %5961 = vmatprep.mubr.bf16.mxu1 %v8332_v37  ;;  %6053 = vmatpush1.bf16.msra.mxu0 %v6906_v11  ;;  %v7130_v11 = vcombine.low %v2716_v58, %v2732_v0  ;;  %v7163_v13 = vcombine.high %v2748_v7, %v2764_v8  ;;  %v2940_v58 = vld [vmem:[%s9884_s5 + $0xe40] sm:$0xff] }
 0x3a2   :  { %6084 = vmatprep.mubr.bf16.mxu0 %v8332_v37  ;;  %5931 = vmatprep.subr.bf16.mxu1 %v6933_v12  ;;  %v7157_v12 = vcombine.high %v2745_v5, %v2761_v6  ;;  %v2956_v0 = vld [vmem:[%s9884_s5 + $0xec0] sm:$0xff] }
 0x3a3   :  { %6054 = vmatprep.subr.bf16.mxu0 %v6939_v15  ;;  %v2793_v15 = vld [vmem:[%s9884_s5 + $0x9a8] sm:$0xff] }
 0x3a4   :  { %5932 = vmatpush1.bf16.msra.mxu1 %v6932_v18  ;;  %v7156_v18 = vcombine.low %v2745_v5, %v2761_v6  ;;  %v2969_v5 = vld [vmem:[%s9884_s5 + $0xf28] sm:$0xff] }
 0x3a5   :  { %6055 = vmatpush1.bf16.msra.mxu0 %v6938_v19  ;;  %5933 = vmatprep.subr.bf16.mxu1 %v6965_v20  ;;  %v7162_v19 = vcombine.low %v2748_v7, %v2764_v8  ;;  %v7189_v20 = vcombine.high %v2777_v14, %v2793_v15  ;;  %v2985_v6 = vld [vmem:[%s9884_s5 + $0xfa8] sm:$0xff]  ;;  %v2972_v7 = vld [vmem:[%s9884_s5 + $0xf40] sm:$0xff] }
 0x3a6   :  { %6056 = vmatprep.subr.bf16.mxu0 %v6971_v21  ;;  %v7195_v21 = vcombine.high %v2780_v16, %v2796_v17  ;;  %v2988_v8 = vld [vmem:[%s9884_s5 + $0xfc0] sm:$0xff] }
 0x3a8   :  { %5934 = vmatpush1.bf16.msra.mxu1 %v6964_v28  ;;  %v7188_v28 = vcombine.low %v2777_v14, %v2793_v15  ;;  %v2491_v14 = vld [vmem:[%s9884_s5 + $0x38] sm:$0xff] }
 0x3a9   :  { %6057 = vmatpush1.bf16.msra.mxu0 %v6970_v29  ;;  %5935 = vmatprep.subr.bf16.mxu1 %v6997_v23  ;;  %v7194_v29 = vcombine.low %v2780_v16, %v2796_v17  ;;  %v7221_v23 = vcombine.high %v2809_v22, %v2825_v24  ;;  %v2507_v15 = vld [vmem:[%s9884_s5 + $0xb8] sm:$0xff]  ;;  %v2494_v16 = vld [vmem:[%s9884_s5 + $0x50] sm:$0xff] }
 0x3aa   :  { %6058 = vmatprep.subr.bf16.mxu0 %v7003_v30  ;;  %v7227_v30 = vcombine.high %v2812_v9, %v2828_v27  ;;  %v2510_v17 = vld [vmem:[%s9884_s5 + $0xd0] sm:$0xff] }
 0x3ac   :  { %5936 = vmatpush1.bf16.msra.mxu1 %v6996_v35  ;;  %v7220_v35 = vcombine.low %v2809_v22, %v2825_v24  ;;  %v2523_v22 = vld [vmem:[%s9884_s5 + $0x138] sm:$0xff] }
 0x3ad   :  { %6059 = vmatpush1.bf16.msra.mxu0 %v7002_v36  ;;  %5937 = vmatprep.subr.bf16.mxu1 %v7029_v39  ;;  %v7226_v36 = vcombine.low %v2812_v9, %v2828_v27  ;;  %v7253_v39 = vcombine.high %v2841_v31, %v2857_v32  ;;  %v2539_v24 = vld [vmem:[%s9884_s5 + $0x1b8] sm:$0xff]  ;;  %v6904_v9 = vcombine.low %v2491_v14, %v2507_v15  ;;  %v2526_v27 = vld [vmem:[%s9884_s5 + $0x150] sm:$0xff] }
 0x3ae   :  { %6060 = vmatprep.subr.bf16.mxu0 %v7035_v40  ;;  %v7259_v40 = vcombine.high %v2844_v33, %v2860_v34 }
 0x3b0   :  { %5938 = vmatpush1.bf16.msra.mxu1 %v7028_v44  ;;  %v7252_v44 = vcombine.low %v2841_v31, %v2857_v32  ;;  %v2571_v31 = vld [vmem:[%s9884_s5 + $0x2b8] sm:$0xff] }
 0x3b1   :  { %6061 = vmatpush1.bf16.msra.mxu0 %v7034_v45  ;;  %5939 = vmatprep.subr.bf16.mxu1 %v7061_v46  ;;  %v7258_v45 = vcombine.low %v2844_v33, %v2860_v34  ;;  %v7285_v46 = vcombine.high %v2873_v41, %v2889_v26  ;;  %v2558_v33 = vld [vmem:[%s9884_s5 + $0x250] sm:$0xff] }
 0x3b2   :  { %6062 = vmatprep.subr.bf16.mxu0 %v7067_v48  ;;  %v7291_v48 = vcombine.high %v2876_v25, %v2892_v42  ;;  %v2574_v34 = vld [vmem:[%s9884_s5 + $0x2d0] sm:$0xff] }
 0x3b4   :  { %5940 = vmatpush1.bf16.msra.mxu1 %v7060_v54  ;;  %v7284_v54 = vcombine.low %v2873_v41, %v2889_v26  ;;  %v2587_v41 = vld [vmem:[%s9884_s5 + $0x338] sm:$0xff] }
 0x3b5   :  { %6063 = vmatpush1.bf16.msra.mxu0 %v7066_v55  ;;  %5941 = vmatprep.subr.bf16.mxu1 %v7093_v57  ;;  %v7290_v55 = vcombine.low %v2876_v25, %v2892_v42  ;;  %v7317_v57 = vcombine.high %v2905_v50, %v2921_v51  ;;  %v2603_v26 = vld [vmem:[%s9884_s5 + $0x3b8] sm:$0xff]  ;;  %v2590_v25 = vld [vmem:[%s9884_s5 + $0x350] sm:$0xff] }
 0x3b6   :  { %6064 = vmatprep.subr.bf16.mxu0 %v7099_v61  ;;  %v7323_v61 = vcombine.high %v2908_v52, %v2924_v53  ;;  %v2606_v42 = vld [vmem:[%s9884_s5 + $0x3d0] sm:$0xff] }
 0x3b8   :  { %5942 = vmatpush1.bf16.msra.mxu1 %v7092_v1  ;;  %v7316_v1 = vcombine.low %v2905_v50, %v2921_v51  ;;  %v2619_v50 = vld [vmem:[%s9884_s5 + $0x438] sm:$0xff] }
 0x3b9   :  { %6065 = vmatpush1.bf16.msra.mxu0 %v7098_v2  ;;  %5943 = vmatprep.subr.bf16.mxu1 %v7125_v3  ;;  %v7322_v2 = vcombine.low %v2908_v52, %v2924_v53  ;;  %v7349_v3 = vcombine.high %v2937_v62, %v2953_v63  ;;  %v2635_v51 = vld [vmem:[%s9884_s5 + $0x4b8] sm:$0xff]  ;;  %v2622_v52 = vld [vmem:[%s9884_s5 + $0x450] sm:$0xff] }
 0x3ba   :  { %6066 = vmatprep.subr.bf16.mxu0 %v7131_v4  ;;  %v7355_v4 = vcombine.high %v2940_v58, %v2956_v0  ;;  %v2638_v53 = vld [vmem:[%s9884_s5 + $0x4d0] sm:$0xff] }
 0x3bc   :  { %5944 = vmatpush1.bf16.msra.mxu1 %v7124_v10  ;;  %v7348_v10 = vcombine.low %v2937_v62, %v2953_v63  ;;  %v2651_v62 = vld [vmem:[%s9884_s5 + $0x538] sm:$0xff] }
 0x3bd   :  { %6067 = vmatpush1.bf16.msra.mxu0 %v7130_v11  ;;  %5945 = vmatprep.subr.bf16.mxu1 %v7157_v12  ;;  %v7354_v11 = vcombine.low %v2940_v58, %v2956_v0  ;;  %v7381_v12 = vcombine.high %v2969_v5, %v2985_v6  ;;  %v2667_v63 = vld [vmem:[%s9884_s5 + $0x5b8] sm:$0xff]  ;;  %v8973_v58 = vsub.s32 4, %v8045_v43  ;;  %v2654_v0 = vld [vmem:[%s9884_s5 + $0x550] sm:$0xff] }
 0x3be   :  { %6068 = vmatprep.subr.bf16.mxu0 %v7163_v13  ;;  %v7387_v13 = vcombine.high %v2972_v7, %v2988_v8 }
 0x3c0   :  { %5946 = vmatpush1.bf16.msra.mxu1 %v7156_v18  ;;  %v7380_v18 = vcombine.low %v2969_v5, %v2985_v6  ;;  %v7038_v5 = vcombine.low %v2622_v52, %v2638_v53  ;;  %v7065_v6 = vcombine.high %v2651_v62, %v2667_v63 }
 0x3c1   :  { %6069 = vmatpush1.bf16.msra.mxu0 %v7162_v19  ;;  %5947 = vmatprep.subr.bf16.mxu1 %v7189_v20  ;;  %v7386_v19 = vcombine.low %v2972_v7, %v2988_v8  ;;  %v6905_v20 = vcombine.high %v2491_v14, %v2507_v15  ;;  %v2683_v8 = vld [vmem:[%s9884_s5 + $0x638] sm:$0xff]  ;;  %v2702_v14 = vld [vmem:[%s9884_s5 + $0x6d0] sm:$0xff]  ;;  %v7064_v15 = vcombine.low %v2651_v62, %v2667_v63 }
 0x3c2   :  { %6070 = vmatprep.subr.bf16.mxu0 %v7195_v21  ;;  %v6911_v21 = vcombine.high %v2494_v16, %v2510_v17  ;;  %v2798_v62 = vld [vmem:[%s9884_s5 + $0x9d0] sm:$0xff] }
 0x3c4   :  { %5948 = vmatpush1.bf16.msra.mxu1 %v7188_v28  ;;  %v2542_v28 = vld [vmem:[%s9884_s5 + $0x1d0] sm:$0xff] }
 0x3c5   :  { %6071 = vmatpush1.bf16.msra.mxu0 %v7194_v29  ;;  %5949 = vmatprep.subr.bf16.mxu1 %v7221_v23  ;;  %v6910_v29 = vcombine.low %v2494_v16, %v2510_v17  ;;  %v6937_v23 = vcombine.high %v2523_v22, %v2539_v24  ;;  %v6943_v32 = vcombine.high %v2526_v27, %v2542_v28 }
 0x3c6   :  { %6072 = vmatprep.subr.bf16.mxu0 %v7227_v30  ;;  %v2555_v30 = vld [vmem:[%s9884_s5 + $0x238] sm:$0xff] }
 0x3c8   :  { %5950 = vmatpush1.bf16.msra.mxu1 %v7220_v35  ;;  %v6936_v35 = vcombine.low %v2523_v22, %v2539_v24  ;;  %v2715_v24 = vld [vmem:[%s9884_s5 + $0x738] sm:$0xff] }
 0x3c9   :  { %6073 = vmatpush1.bf16.msra.mxu0 %v7226_v36  ;;  %5951 = vmatprep.subr.bf16.mxu1 %v7253_v39  ;;  %v6942_v36 = vcombine.low %v2526_v27, %v2542_v28  ;;  %v6969_v39 = vcombine.high %v2555_v30, %v2571_v31 }
 0x3ca   :  { %6074 = vmatprep.subr.bf16.mxu0 %v7259_v40  ;;  %v6975_v40 = vcombine.high %v2558_v33, %v2574_v34 }
 0x3cc   :  { %5952 = vmatpush1.bf16.msra.mxu1 %v7252_v44  ;;  %v6968_v44 = vcombine.low %v2555_v30, %v2571_v31  ;;  %v2718_v30 = vld [vmem:[%s9884_s5 + $0x750] sm:$0xff] }
 0x3cd   :  { %6075 = vmatpush1.bf16.msra.mxu0 %v7258_v45  ;;  %5953 = vmatprep.subr.bf16.mxu1 %v7285_v46  ;;  %v6974_v45 = vcombine.low %v2558_v33, %v2574_v34  ;;  %v7001_v46 = vcombine.high %v2587_v41, %v2603_v26  ;;  %v2734_v31 = vld [vmem:[%s9884_s5 + $0x7d0] sm:$0xff] }
 0x3ce   :  { %6076 = vmatprep.subr.bf16.mxu0 %v7291_v48  ;;  %v7007_v48 = vcombine.high %v2590_v25, %v2606_v42 }
 0x3d0   :  { %5954 = vmatpush1.bf16.msra.mxu1 %v7284_v54  ;;  %v7000_v54 = vcombine.low %v2587_v41, %v2603_v26 }
 0x3d1   :  { %6077 = vmatpush1.bf16.msra.mxu0 %v7290_v55  ;;  %5955 = vmatprep.subr.bf16.mxu1 %v7317_v57  ;;  %v7006_v55 = vcombine.low %v2590_v25, %v2606_v42  ;;  %v7033_v57 = vcombine.high %v2619_v50, %v2635_v51 }
 0x3d2   :  { %6078 = vmatprep.subr.bf16.mxu0 %v7323_v61  ;;  %v7039_v61 = vcombine.high %v2622_v52, %v2638_v53  ;;  %v7134_v52 = vcombine.low %v2718_v30, %v2734_v31 }
 0x3d4   :  { %5956 = vmatpush1.bf16.msra.mxu1 %v7316_v1  ;;  %v2670_v1 = vld [vmem:[%s9884_s5 + $0x5d0] sm:$0xff] }
 0x3d5   :  { %6079 = vmatpush1.bf16.msra.mxu0 %v7322_v2  ;;  %5957 = vmatprep.subr.bf16.mxu1 %v7349_v3  ;;  %v7032_v2 = vcombine.low %v2619_v50, %v2635_v51  ;;  %v8984_v3 = vld [vmem:[%s9885_s6] sm:$0xff]  ;;  %v7071_v7 = vcombine.high %v2654_v0, %v2670_v1  ;;  %v2766_v50 = vld [vmem:[%s9884_s5 + $0x8d0] sm:$0xff] }
 0x3d6   :  { %6080 = vmatprep.subr.bf16.mxu0 %v7355_v4  ;;  %v8987_v4 = vsub.s32 5, %v8045_v43  ;;  %v3011_v16 = vrot.slane %v8984_v3, %v8170_v59 }
 0x3d8   :  { %5958 = vmatpush1.bf16.msra.mxu1 %v7348_v10  ;;  %v2699_v10 = vld [vmem:[%s9884_s5 + $0x6b8] sm:$0xff]  ;;  %v3027_v17 = vrot.slane %v8984_v3, %v8987_v4 }
 0x3d9   :  { %6081 = vmatpush1.bf16.msra.mxu0 %v7354_v11  ;;  %5959 = vmatprep.subr.bf16.mxu1 %v7381_v12  ;;  %v3007_v11 = vrot.slane %v8984_v3, %v8162_v56  ;;  %v3023_v12 = vrot.slane %v8984_v3, %v8973_v58 }
 0x3da   :  { %6082 = vmatprep.subr.bf16.mxu0 %v7387_v13  ;;  %v2686_v13 = vld [vmem:[%s9884_s5 + $0x650] sm:$0xff] }
 0x3db   :  { %v7103_v22 = vcombine.high %v2686_v13, %v2702_v14  ;;  %v7102_v41 = vcombine.low %v2686_v13, %v2702_v14  ;;  %v2843_v14 = vld [vmem:[%s9884_s5 + $0xb38] sm:$0xff] }
 0x3dc   :  { %5960 = vmatpush1.bf16.msra.mxu1 %v7380_v18  ;;  %v7070_v18 = vcombine.low %v2654_v0, %v2670_v1 }
 0x3dd   :  { %6083 = vmatpush1.bf16.msra.mxu0 %v7386_v19  ;;  %6011 = vmatprep.subr.bf16.mxu1 %v6905_v20  ;;  %v7097_v19 = vcombine.high %v2683_v8, %v2699_v10 }
 0x3de   :  { %6134 = vmatprep.subr.bf16.mxu0 %v6911_v21 }
 0x3df   :  { %5962 = vmatmul.mubr.bf16.vlgmr.msra.gmra.mrb[16].mxu1 %v8334_v38 }
 0x3e0   :  { %6085 = vmatmul.mubr.bf16.vlgmr.msra.gmra.mrb[20].mxu0 %v8334_v38  ;;  %6012 = vmatpush1.bf16.msra.mxu1 %v6904_v9  ;;  %v2731_v9 = vld [vmem:[%s9884_s5 + $0x7b8] sm:$0xff] }
 0x3e1   :  { %6043 = vmatprep.mubr.bf16.mxu1 %v8332_v37  ;;  %6135 = vmatpush1.bf16.msra.mxu0 %v6910_v29  ;;  %v7129_v26 = vcombine.high %v2715_v24, %v2731_v9  ;;  %v7128_v51 = vcombine.low %v2715_v24, %v2731_v9  ;;  %v2891_v24 = vld [vmem:[%s9884_s5 + $0xcb8] sm:$0xff]  ;;  %v2878_v9 = vld [vmem:[%s9884_s5 + $0xc50] sm:$0xff] }
 0x3e2   :  { %6166 = vmatprep.mubr.bf16.mxu0 %v8332_v37  ;;  %6013 = vmatprep.subr.bf16.mxu1 %v6937_v23 }
 0x3e3   :  { %6136 = vmatprep.subr.bf16.mxu0 %v6943_v32 }
 0x3e4   :  { %6014 = vmatpush1.bf16.msra.mxu1 %v6936_v35 }
 0x3e5   :  { %6137 = vmatpush1.bf16.msra.mxu0 %v6942_v36  ;;  %6015 = vmatprep.subr.bf16.mxu1 %v6969_v39  ;;  %v7096_v36 = vcombine.low %v2683_v8, %v2699_v10  ;;  %v2830_v8 = vld [vmem:[%s9884_s5 + $0xad0] sm:$0xff] }
 0x3e6   :  { %6138 = vmatprep.subr.bf16.mxu0 %v6975_v40 }
 0x3e8   :  { %6016 = vmatpush1.bf16.msra.mxu1 %v6968_v44  ;;  %v7135_v44 = vcombine.high %v2718_v30, %v2734_v31 }
 0x3e9   :  { %6139 = vmatpush1.bf16.msra.mxu0 %v6974_v45  ;;  %6017 = vmatprep.subr.bf16.mxu1 %v7001_v46  ;;  %v2747_v45 = vld [vmem:[%s9884_s5 + $0x838] sm:$0xff] }
 0x3ea   :  { %6140 = vmatprep.subr.bf16.mxu0 %v7007_v48  ;;  %v2763_v46 = vld [vmem:[%s9884_s5 + $0x8b8] sm:$0xff]  ;;  %v2750_v48 = vld [vmem:[%s9884_s5 + $0x850] sm:$0xff] }
 0x3eb   :  { %v7161_v53 = vcombine.high %v2747_v45, %v2763_v46  ;;  %v7160_v63 = vcombine.low %v2747_v45, %v2763_v46  ;;  %v7166_v0 = vcombine.low %v2750_v48, %v2766_v50  ;;  %v2939_v46 = vld [vmem:[%s9884_s5 + $0xe38] sm:$0xff] }
 0x3ec   :  { %6018 = vmatpush1.bf16.msra.mxu1 %v7000_v54  ;;  %v7167_v54 = vcombine.high %v2750_v48, %v2766_v50  ;;  %v2955_v48 = vld [vmem:[%s9884_s5 + $0xeb8] sm:$0xff]  ;;  %v2942_v50 = vld [vmem:[%s9884_s5 + $0xe50] sm:$0xff] }
 0x3ed   :  { %6141 = vmatpush1.bf16.msra.mxu0 %v7006_v55  ;;  %6019 = vmatprep.subr.bf16.mxu1 %v7033_v57  ;;  %v2779_v55 = vld [vmem:[%s9884_s5 + $0x938] sm:$0xff] }
 0x3ee   :  { %6142 = vmatprep.subr.bf16.mxu0 %v7039_v61  ;;  %v2795_v57 = vld [vmem:[%s9884_s5 + $0x9b8] sm:$0xff]  ;;  %v2782_v61 = vld [vmem:[%s9884_s5 + $0x950] sm:$0xff] }
 0x3ef   :  { %v7193_v1 = vcombine.high %v2779_v55, %v2795_v57  ;;  %v7192_v10 = vcombine.low %v2779_v55, %v2795_v57  ;;  %v2971_v57 = vld [vmem:[%s9884_s5 + $0xf38] sm:$0xff] }
 0x3f0   :  { %6020 = vmatpush1.bf16.msra.mxu1 %v7032_v2  ;;  %v7199_v2 = vcombine.high %v2782_v61, %v2798_v62 }
 0x3f1   :  { %6143 = vmatpush1.bf16.msra.mxu0 %v7038_v5  ;;  %6021 = vmatprep.subr.bf16.mxu1 %v7065_v6  ;;  %v2811_v5 = vld [vmem:[%s9884_s5 + $0xa38] sm:$0xff] }
 0x3f2   :  { %v5758_v20 = vpop.f32.mrb[4].mxu1  ;;  %v5840_v21 = vpop.f32.mrb[8].mxu0  ;;  %6144 = vmatprep.subr.bf16.mxu0 %v7071_v7  ;;  %v2827_v6 = vld [vmem:[%s9884_s5 + $0xab8] sm:$0xff]  ;;  %v2814_v7 = vld [vmem:[%s9884_s5 + $0xa50] sm:$0xff] }
 0x3f3   :  { %v9015_v27 = vadd.f32 %v5758_v20, %v3007_v11  ;;  %v9017_v28 = vadd.f32 %v5840_v21, %v3023_v12  ;;  %v5760_v29 = vpop.f32.mrb[5].mxu1  ;;  %v5842_v23 = vpop.f32.mrb[9].mxu0  ;;  %v7198_v11 = vcombine.low %v2782_v61, %v2798_v62  ;;  %v7225_v12 = vcombine.high %v2811_v5, %v2827_v6  ;;  %v2987_v61 = vld [vmem:[%s9884_s5 + $0xfb8] sm:$0xff]  ;;  %v2974_v62 = vld [vmem:[%s9884_s5 + $0xf50] sm:$0xff] }
 0x3f4   :  { %v9025_v32 = vadd.f32 %v5760_v29, %v3011_v16  ;;  %v9027_v33 = vadd.f32 %v5842_v23, %v3027_v17  ;;  %6022 = vmatpush1.bf16.msra.mxu1 %v7064_v15  ;;  %v5762_v34 = vpop.f32.mrb[6].mxu1  ;;  %v5844_v35 = vpop.f32.mrb[10].mxu0  ;;  %v7231_v13 = vcombine.high %v2814_v7, %v2830_v8  ;;  %v2859_v15 = vld [vmem:[%s9884_s5 + $0xbb8] sm:$0xff]  ;;  %v2846_v16 = vld [vmem:[%s9884_s5 + $0xb50] sm:$0xff] }
 0x3f5   :  { %6145 = vmatpush1.bf16.msra.mxu0 %v7070_v18  ;;  %v5763_v39 = vpop.f32.mrb[7].mxu1  ;;  %v5845_v40 = vpop.f32.mrb[11].mxu0  ;;  %6023 = vmatprep.subr.bf16.mxu1 %v7097_v19  ;;  %v2862_v17 = vld [vmem:[%s9884_s5 + $0xbd0] sm:$0xff]  ;;  %v7224_v18 = vcombine.low %v2811_v5, %v2827_v6  ;;  %v7230_v19 = vcombine.low %v2814_v7, %v2830_v8  ;;  %v7257_v20 = vcombine.high %v2843_v14, %v2859_v15  ;;  %v2907_v35 = vld [vmem:[%s9884_s5 + $0xd38] sm:$0xff]  ;;  %v2493_v6 = vld [vmem:[%s9884_s5 + $0x48] sm:$0xff] }
 0x3f6   :  { %v6412_v25 = vcombine.low %v9015_v27, %v9025_v32  ;;  %v6429_v42 = vcombine.low %v9017_v28, %v9027_v33  ;;  %6146 = vmatprep.subr.bf16.mxu0 %v7103_v22  ;;  %v7263_v21 = vcombine.high %v2846_v16, %v2862_v17  ;;  %v2875_v22 = vld [vmem:[%s9884_s5 + $0xc38] sm:$0xff]  ;;  %v2894_v29 = vld [vmem:[%s9884_s5 + $0xcd0] sm:$0xff]  ;;  %v7256_v23 = vcombine.low %v2843_v14, %v2859_v15  ;;  %v2509_v7 = vld [vmem:[%s9884_s5 + $0xc8] sm:$0xff] }
 0x3f7   :  { %v7262_v30 = vcombine.low %v2846_v16, %v2862_v17  ;;  %v7289_v31 = vcombine.high %v2875_v22, %v2891_v24  ;;  %v7295_v34 = vcombine.high %v2878_v9, %v2894_v29  ;;  %v2910_v39 = vld [vmem:[%s9884_s5 + $0xd50] sm:$0xff]  ;;  %v2496_v8 = vld [vmem:[%s9884_s5 + $0x60] sm:$0xff]  ;;  %v2525_v15 = vld [vmem:[%s9884_s5 + $0x148] sm:$0xff]  ;;  %v6908_v17 = vcombine.low %v2493_v6, %v2509_v7 }
 0x3f8   :  { %6024 = vmatpush1.bf16.msra.mxu1 %v7096_v36  ;;  %v2923_v36 = vld [vmem:[%s9884_s5 + $0xdb8] sm:$0xff]  ;;  %v2926_v40 = vld [vmem:[%s9884_s5 + $0xdd0] sm:$0xff]  ;;  %v2541_v16 = vld [vmem:[%s9884_s5 + $0x1c8] sm:$0xff] }
 0x3f9   :  { %6147 = vmatpush1.bf16.msra.mxu0 %v7102_v41  ;;  %6025 = vmatprep.subr.bf16.mxu1 %v7129_v26  ;;  %v7288_v41 = vcombine.low %v2875_v22, %v2891_v24  ;;  %v7294_v26 = vcombine.low %v2878_v9, %v2894_v29  ;;  %v7327_v45 = vcombine.high %v2910_v39, %v2926_v40  ;;  %v2557_v22 = vld [vmem:[%s9884_s5 + $0x248] sm:$0xff]  ;;  %v2560_v29 = vld [vmem:[%s9884_s5 + $0x260] sm:$0xff]  ;;  %v2799_v28 = vld [vmem:[%s9884_s5 + $0x9d8] sm:$0xff] }
 0x3fa   :  { %6148 = vmatprep.subr.bf16.mxu0 %v7135_v44  ;;  %v7321_v44 = vcombine.high %v2907_v35, %v2923_v36  ;;  %v2573_v24 = vld [vmem:[%s9884_s5 + $0x2c8] sm:$0xff]  ;;  %v2784_v32 = vld [vmem:[%s9884_s5 + $0x960] sm:$0xff]  ;;  %v2786_v33 = vld [vmem:[%s9884_s5 + $0x970] sm:$0xff] }
 0x3fb   :  { %v2797_v27 = vld [vmem:[%s9884_s5 + $0x9c8] sm:$0xff] }
 0x3fc   :  { %6026 = vmatpush1.bf16.msra.mxu1 %v7128_v51  ;;  %v2958_v51 = vld [vmem:[%s9884_s5 + $0xed0] sm:$0xff] }
 0x3fd   :  { %6149 = vmatpush1.bf16.msra.mxu0 %v7134_v52  ;;  %6027 = vmatprep.subr.bf16.mxu1 %v7161_v53  ;;  %v7320_v52 = vcombine.low %v2907_v35, %v2923_v36  ;;  %v7326_v53 = vcombine.low %v2910_v39, %v2926_v40  ;;  %v7359_v55 = vcombine.high %v2942_v50, %v2958_v51  ;;  %v2589_v36 = vld [vmem:[%s9884_s5 + $0x348] sm:$0xff]  ;;  %v2592_v40 = vld [vmem:[%s9884_s5 + $0x360] sm:$0xff] }
 0x3fe   :  { %6150 = vmatprep.subr.bf16.mxu0 %v7167_v54  ;;  %v7353_v54 = vcombine.high %v2939_v46, %v2955_v48  ;;  %v2605_v39 = vld [vmem:[%s9884_s5 + $0x3c8] sm:$0xff] }
 0x400   :  { %6028 = vmatpush1.bf16.msra.mxu1 %v7160_v63  ;;  %v2990_v63 = vld [vmem:[%s9884_s5 + $0xfd0] sm:$0xff] }
 0x401   :  { %6151 = vmatpush1.bf16.msra.mxu0 %v7166_v0  ;;  %6029 = vmatprep.subr.bf16.mxu1 %v7193_v1  ;;  %v7352_v0 = vcombine.low %v2939_v46, %v2955_v48  ;;  %v7358_v1 = vcombine.low %v2942_v50, %v2958_v51  ;;  %v7391_v5 = vcombine.high %v2974_v62, %v2990_v63  ;;  %v2621_v48 = vld [vmem:[%s9884_s5 + $0x448] sm:$0xff]  ;;  %v2624_v51 = vld [vmem:[%s9884_s5 + $0x460] sm:$0xff] }
 0x402   :  { %6152 = vmatprep.subr.bf16.mxu0 %v7199_v2  ;;  %v7385_v2 = vcombine.high %v2971_v57, %v2987_v61  ;;  %v2637_v50 = vld [vmem:[%s9884_s5 + $0x4c8] sm:$0xff] }
 0x404   :  { %6030 = vmatpush1.bf16.msra.mxu1 %v7192_v10  ;;  %v2512_v10 = vld [vmem:[%s9884_s5 + $0xe0] sm:$0xff] }
 0x405   :  { %6153 = vmatpush1.bf16.msra.mxu0 %v7198_v11  ;;  %6031 = vmatprep.subr.bf16.mxu1 %v7225_v12  ;;  %v7384_v11 = vcombine.low %v2971_v57, %v2987_v61  ;;  %v7390_v12 = vcombine.low %v2974_v62, %v2990_v63  ;;  %v6915_v14 = vcombine.high %v2496_v8, %v2512_v10  ;;  %v2653_v61 = vld [vmem:[%s9884_s5 + $0x548] sm:$0xff]  ;;  %v2656_v63 = vld [vmem:[%s9884_s5 + $0x560] sm:$0xff] }
 0x406   :  { %6154 = vmatprep.subr.bf16.mxu0 %v7231_v13  ;;  %v6909_v13 = vcombine.high %v2493_v6, %v2509_v7  ;;  %v2669_v62 = vld [vmem:[%s9884_s5 + $0x5c8] sm:$0xff] }
 0x407   :  { %v7069_v6 = vcombine.high %v2653_v61, %v2669_v62 }
 0x408   :  { %6032 = vmatpush1.bf16.msra.mxu1 %v7224_v18  ;;  %v2528_v18 = vld [vmem:[%s9884_s5 + $0x160] sm:$0xff] }
 0x409   :  { %6155 = vmatpush1.bf16.msra.mxu0 %v7230_v19  ;;  %6033 = vmatprep.subr.bf16.mxu1 %v7257_v20  ;;  %v2544_v19 = vld [vmem:[%s9884_s5 + $0x1e0] sm:$0xff]  ;;  %v6914_v20 = vcombine.low %v2496_v8, %v2512_v10  ;;  %v2685_v8 = vld [vmem:[%s9884_s5 + $0x648] sm:$0xff] }
 0x40a   :  { %6156 = vmatprep.subr.bf16.mxu0 %v7263_v21  ;;  %v6941_v21 = vcombine.high %v2525_v15, %v2541_v16  ;;  %v6947_v9 = vcombine.high %v2528_v18, %v2544_v19  ;;  %v2701_v10 = vld [vmem:[%s9884_s5 + $0x6c8] sm:$0xff] }
 0x40c   :  { %6034 = vmatpush1.bf16.msra.mxu1 %v7256_v23  ;;  %v2576_v23 = vld [vmem:[%s9884_s5 + $0x2e0] sm:$0xff] }
 0x40d   :  { %6157 = vmatpush1.bf16.msra.mxu0 %v7262_v30  ;;  %6035 = vmatprep.subr.bf16.mxu1 %v7289_v31  ;;  %v6940_v30 = vcombine.low %v2525_v15, %v2541_v16  ;;  %v6946_v31 = vcombine.low %v2528_v18, %v2544_v19  ;;  %v6979_v35 = vcombine.high %v2560_v29, %v2576_v23 }
 0x40e   :  { %6158 = vmatprep.subr.bf16.mxu0 %v7295_v34  ;;  %v6973_v34 = vcombine.high %v2557_v22, %v2573_v24  ;;  %v3019_v15 = vrot.slane %v8984_v3, %v8173_v60  ;;  %v7101_v19 = vcombine.high %v2685_v8, %v2701_v10 }
 0x410   :  { %6036 = vmatpush1.bf16.msra.mxu1 %v7288_v41  ;;  %v2608_v41 = vld [vmem:[%s9884_s5 + $0x3e0] sm:$0xff] }
 0x411   :  { %6159 = vmatpush1.bf16.msra.mxu0 %v7294_v26  ;;  %6037 = vmatprep.subr.bf16.mxu1 %v7321_v44  ;;  %v6972_v26 = vcombine.low %v2557_v22, %v2573_v24  ;;  %v6978_v44 = vcombine.low %v2560_v29, %v2576_v23  ;;  %v7011_v46 = vcombine.high %v2592_v40, %v2608_v41  ;;  %v2717_v24 = vld [vmem:[%s9884_s5 + $0x748] sm:$0xff] }
 0x412   :  { %6160 = vmatprep.subr.bf16.mxu0 %v7327_v45  ;;  %v7005_v45 = vcombine.high %v2589_v36, %v2605_v39 }
 0x414   :  { %6038 = vmatpush1.bf16.msra.mxu1 %v7320_v52  ;;  %v2640_v52 = vld [vmem:[%s9884_s5 + $0x4e0] sm:$0xff] }
 0x415   :  { %6161 = vmatpush1.bf16.msra.mxu0 %v7326_v53  ;;  %6039 = vmatprep.subr.bf16.mxu1 %v7353_v54  ;;  %v7004_v53 = vcombine.low %v2589_v36, %v2605_v39  ;;  %v7010_v54 = vcombine.low %v2592_v40, %v2608_v41  ;;  %v7043_v57 = vcombine.high %v2624_v51, %v2640_v52 }
 0x416   :  { %6162 = vmatprep.subr.bf16.mxu0 %v7359_v55  ;;  %v7037_v55 = vcombine.high %v2621_v48, %v2637_v50 }
 0x418   :  { %6040 = vmatpush1.bf16.msra.mxu1 %v7352_v0  ;;  %v2672_v0 = vld [vmem:[%s9884_s5 + $0x5e0] sm:$0xff] }
 0x419   :  { %6163 = vmatpush1.bf16.msra.mxu0 %v7358_v1  ;;  %6041 = vmatprep.subr.bf16.mxu1 %v7385_v2  ;;  %v7036_v1 = vcombine.low %v2621_v48, %v2637_v50  ;;  %v9208_v2 = vld [vmem:[%s9885_s6 + $0x8] sm:$0xff]  ;;  %v7075_v7 = vcombine.high %v2656_v63, %v2672_v0  ;;  %v7074_v18 = vcombine.low %v2656_v63, %v2672_v0 }
 0x41a   :  { %6164 = vmatprep.subr.bf16.mxu0 %v7391_v5  ;;  %v7042_v5 = vcombine.low %v2624_v51, %v2640_v52  ;;  %v3043_v16 = vrot.slane %v9208_v2, %v8170_v59 }
 0x41c   :  { %6042 = vmatpush1.bf16.msra.mxu1 %v7384_v11  ;;  %v3015_v11 = vrot.slane %v8984_v3, %v8190_v47 }
 0x41d   :  { %6165 = vmatpush1.bf16.msra.mxu0 %v7390_v12  ;;  %6093 = vmatprep.subr.bf16.mxu1 %v6909_v13  ;;  %v3039_v12 = vrot.slane %v9208_v2, %v8162_v56  ;;  %v2688_v13 = vld [vmem:[%s9884_s5 + $0x660] sm:$0xff] }
 0x41e   :  { %6216 = vmatprep.subr.bf16.mxu0 %v6915_v14  ;;  %v2704_v14 = vld [vmem:[%s9884_s5 + $0x6e0] sm:$0xff] }
 0x41f   :  { %6044 = vmatmul.mubr.bf16.vlgmr.msra.gmra.mrb[20].mxu1 %v8334_v38  ;;  %v7107_v22 = vcombine.high %v2688_v13, %v2704_v14 }
 0x420   :  { %6167 = vmatmul.mubr.bf16.vlgmr.msra.gmra.mrb[24].mxu0 %v8334_v38  ;;  %6094 = vmatpush1.bf16.msra.mxu1 %v6908_v17  ;;  %v7068_v17 = vcombine.low %v2653_v61, %v2669_v62  ;;  %v6420_v61 = vrot.slane %v6412_v25, %v8048_v49  ;;  %v2800_v25 = vld [vmem:[%s9884_s5 + $0x9e0] sm:$0xff] }
 0x421   :  { %6125 = vmatprep.mubr.bf16.mxu1 %v8332_v37  ;;  %6217 = vmatpush1.bf16.msra.mxu0 %v6914_v20 }
 0x422   :  { %6248 = vmatprep.mubr.bf16.mxu0 %v8332_v37  ;;  %6095 = vmatprep.subr.bf16.mxu1 %v6941_v21 }
 0x423   :  { %6218 = vmatprep.subr.bf16.mxu0 %v6947_v9  ;;  %v2733_v9 = vld [vmem:[%s9884_s5 + $0x7c8] sm:$0xff] }
 0x424   :  { %6096 = vmatpush1.bf16.msra.mxu1 %v6940_v30  ;;  %v7133_v48 = vcombine.high %v2717_v24, %v2733_v9  ;;  %v7132_v63 = vcombine.low %v2717_v24, %v2733_v9  ;;  %v2848_v24 = vld [vmem:[%s9884_s5 + $0xb60] sm:$0xff] }
 0x425   :  { %6219 = vmatpush1.bf16.msra.mxu0 %v6946_v31  ;;  %6097 = vmatprep.subr.bf16.mxu1 %v6973_v34  ;;  %v2720_v34 = vld [vmem:[%s9884_s5 + $0x760] sm:$0xff] }
 0x426   :  { %6220 = vmatprep.subr.bf16.mxu0 %v6979_v35  ;;  %v2736_v35 = vld [vmem:[%s9884_s5 + $0x7e0] sm:$0xff] }
 0x427   :  { %v7139_v52 = vcombine.high %v2720_v34, %v2736_v35  ;;  %v7138_v0 = vcombine.low %v2720_v34, %v2736_v35  ;;  %v2864_v9 = vld [vmem:[%s9884_s5 + $0xbe0] sm:$0xff]  ;;  %v2877_v35 = vld [vmem:[%s9884_s5 + $0xc48] sm:$0xff] }
 0x428   :  { %6098 = vmatpush1.bf16.msra.mxu1 %v6972_v26  ;;  %v7100_v26 = vcombine.low %v2685_v8, %v2701_v10  ;;  %v7267_v34 = vcombine.high %v2848_v24, %v2864_v9 }
 0x429   :  { %6221 = vmatpush1.bf16.msra.mxu0 %v6978_v44  ;;  %6099 = vmatprep.subr.bf16.mxu1 %v7005_v45 }
 0x42a   :  { %6222 = vmatprep.subr.bf16.mxu0 %v7011_v46  ;;  %v7106_v46 = vcombine.low %v2688_v13, %v2704_v14  ;;  %v2813_v13 = vld [vmem:[%s9884_s5 + $0xa48] sm:$0xff] }
 0x42b   :  { %v2829_v14 = vld [vmem:[%s9884_s5 + $0xac8] sm:$0xff] }
 0x42c   :  { %6100 = vmatpush1.bf16.msra.mxu1 %v7004_v53  ;;  %v2749_v53 = vld [vmem:[%s9884_s5 + $0x848] sm:$0xff] }
 0x42d   :  { %6223 = vmatpush1.bf16.msra.mxu0 %v7010_v54  ;;  %6101 = vmatprep.subr.bf16.mxu1 %v7037_v55  ;;  %v2765_v54 = vld [vmem:[%s9884_s5 + $0x8c8] sm:$0xff]  ;;  %v2752_v55 = vld [vmem:[%s9884_s5 + $0x860] sm:$0xff] }
 0x42e   :  { %6224 = vmatprep.subr.bf16.mxu0 %v7043_v57  ;;  %v2768_v57 = vld [vmem:[%s9884_s5 + $0x8e0] sm:$0xff]  ;;  %v7164_v8 = vcombine.low %v2749_v53, %v2765_v54 }
 0x42f   :  { %v7170_v10 = vcombine.low %v2752_v55, %v2768_v57 }
 0x430   :  { %6102 = vmatpush1.bf16.msra.mxu1 %v7036_v1  ;;  %v7165_v1 = vcombine.high %v2749_v53, %v2765_v54  ;;  %v2928_v53 = vld [vmem:[%s9884_s5 + $0xde0] sm:$0xff] }
 0x431   :  { %6225 = vmatpush1.bf16.msra.mxu0 %v7042_v5  ;;  %6103 = vmatprep.subr.bf16.mxu1 %v7069_v6  ;;  %v7171_v6 = vcombine.high %v2752_v55, %v2768_v57 }
 0x432   :  { %v5799_v20 = vpop.f32.mrb[8].mxu1  ;;  %v5922_v21 = vpop.f32.mrb[12].mxu0  ;;  %6226 = vmatprep.subr.bf16.mxu0 %v7075_v7  ;;  %v2781_v7 = vld [vmem:[%s9884_s5 + $0x948] sm:$0xff] }
 0x433   :  { %v5800_v29 = vadd.f32 %v5799_v20, %v3015_v11  ;;  %v9236_v23 = vadd.f32 %v5922_v21, %v3039_v12  ;;  %v5801_v30 = vpop.f32.mrb[9].mxu1  ;;  %v5924_v31 = vpop.f32.mrb[13].mxu0  ;;  %v7197_v11 = vcombine.high %v2781_v7, %v2797_v27  ;;  %v7203_v12 = vcombine.high %v2784_v32, %v2800_v25  ;;  %v2845_v21 = vld [vmem:[%s9884_s5 + $0xb48] sm:$0xff] }
 0x434   :  { %v5802_v36 = vadd.f32 %v5801_v30, %v3019_v15  ;;  %v9244_v39 = vadd.f32 %v5924_v31, %v3043_v16  ;;  %v5803_v40 = vpop.f32.mrb[10].mxu1  ;;  %v5926_v41 = vpop.f32.mrb[14].mxu0  ;;  %6104 = vmatpush1.bf16.msra.mxu1 %v7068_v17  ;;  %v2816_v15 = vld [vmem:[%s9884_s5 + $0xa60] sm:$0xff]  ;;  %v7196_v17 = vcombine.low %v2781_v7, %v2797_v27 }
 0x435   :  { %6227 = vmatpush1.bf16.msra.mxu0 %v7074_v18  ;;  %v5804_v44 = vpop.f32.mrb[11].mxu1  ;;  %v5927_v45 = vpop.f32.mrb[15].mxu0  ;;  %6105 = vmatprep.subr.bf16.mxu1 %v7101_v19  ;;  %v2832_v16 = vld [vmem:[%s9884_s5 + $0xae0] sm:$0xff]  ;;  %v7202_v18 = vcombine.low %v2784_v32, %v2800_v25  ;;  %v7229_v19 = vcombine.high %v2813_v13, %v2829_v14  ;;  %v2973_v32 = vld [vmem:[%s9884_s5 + $0xf48] sm:$0xff] }
 0x436   :  { %v6413_v50 = vcombine.low %v5800_v29, %v5802_v36  ;;  %v6446_v51 = vcombine.low %v9236_v23, %v9244_v39  ;;  %6228 = vmatprep.subr.bf16.mxu0 %v7107_v22  ;;  %v7235_v20 = vcombine.high %v2816_v15, %v2832_v16  ;;  %v2861_v22 = vld [vmem:[%s9884_s5 + $0xbc8] sm:$0xff]  ;;  %v7228_v29 = vcombine.low %v2813_v13, %v2829_v14  ;;  %v2880_v40 = vld [vmem:[%s9884_s5 + $0xc60] sm:$0xff] }
 0x437   :  { %v7234_v30 = vcombine.low %v2816_v15, %v2832_v16  ;;  %v7261_v31 = vcombine.high %v2845_v21, %v2861_v22  ;;  %v2893_v36 = vld [vmem:[%s9884_s5 + $0xcc8] sm:$0xff]  ;;  %v2896_v41 = vld [vmem:[%s9884_s5 + $0xce0] sm:$0xff]  ;;  %v7266_v44 = vcombine.low %v2848_v24, %v2864_v9  ;;  %v2495_v15 = vld [vmem:[%s9884_s5 + $0x58] sm:$0xff] }
 0x438   :  { %v6427_v62 = vrot.slane %v6413_v50, %v8048_v49  ;;  %6106 = vmatpush1.bf16.msra.mxu1 %v7100_v26  ;;  %v7260_v26 = vcombine.low %v2845_v21, %v2861_v22  ;;  %v7293_v45 = vcombine.high %v2877_v35, %v2893_v36  ;;  %v2925_v50 = vld [vmem:[%s9884_s5 + $0xdc8] sm:$0xff]  ;;  %v7292_v54 = vcombine.low %v2877_v35, %v2893_v36  ;;  %v2511_v16 = vld [vmem:[%s9884_s5 + $0xd8] sm:$0xff] }
 0x439   :  { %6229 = vmatpush1.bf16.msra.mxu0 %v7106_v46  ;;  %6107 = vmatprep.subr.bf16.mxu1 %v7133_v48  ;;  %v7299_v46 = vcombine.high %v2880_v40, %v2896_v41  ;;  %v2909_v48 = vld [vmem:[%s9884_s5 + $0xd48] sm:$0xff]  ;;  %v7298_v55 = vcombine.low %v2880_v40, %v2896_v41  ;;  %v6913_v21 = vcombine.high %v2495_v15, %v2511_v16  ;;  %v2527_v24 = vld [vmem:[%s9884_s5 + $0x158] sm:$0xff] }
 0x43a   :  { %v6428_v5 = vcombine.low %v6420_v61, %v6427_v62  ;;  %6230 = vmatprep.subr.bf16.mxu0 %v7139_v52  ;;  %v2912_v52 = vld [vmem:[%s9884_s5 + $0xd60] sm:$0xff]  ;;  %v7325_v57 = vcombine.high %v2909_v48, %v2925_v50  ;;  %v2941_v62 = vld [vmem:[%s9884_s5 + $0xe48] sm:$0xff]  ;;  %v2543_v9 = vld [vmem:[%s9884_s5 + $0x1d8] sm:$0xff] }
 0x43b   :  { %v7331_v61 = vcombine.high %v2912_v52, %v2928_v53  ;;  %v2989_v25 = vld [vmem:[%s9884_s5 + $0xfc8] sm:$0xff]  ;;  %v6945_v35 = vcombine.high %v2527_v24, %v2543_v9  ;;  %v2559_v36 = vld [vmem:[%s9884_s5 + $0x258] sm:$0xff] }
 0x43c   :  { %6556 = vst [vmem:[%s9886_s7] sm:$0xff] %v6428_v5  ;;  %6108 = vmatpush1.bf16.msra.mxu1 %v7132_v63  ;;  %v2957_v63 = vld [vmem:[%s9884_s5 + $0xec8] sm:$0xff]  ;;  %v7324_v5 = vcombine.low %v2909_v48, %v2925_v50  ;;  %v7389_v13 = vcombine.high %v2973_v32, %v2989_v25  ;;  %v2575_v40 = vld [vmem:[%s9884_s5 + $0x2d8] sm:$0xff] }
 0x43d   :  { %6231 = vmatpush1.bf16.msra.mxu0 %v7138_v0  ;;  %6109 = vmatprep.subr.bf16.mxu1 %v7165_v1  ;;  %v2944_v0 = vld [vmem:[%s9884_s5 + $0xe60] sm:$0xff]  ;;  %v7357_v7 = vcombine.high %v2941_v62, %v2957_v63  ;;  %v6977_v48 = vcombine.high %v2559_v36, %v2575_v40 }
 0x43e   :  { %6232 = vmatprep.subr.bf16.mxu0 %v7171_v6  ;;  %v2960_v1 = vld [vmem:[%s9884_s5 + $0xee0] sm:$0xff]  ;;  %v7330_v6 = vcombine.low %v2912_v52, %v2928_v53  ;;  %v2591_v52 = vld [vmem:[%s9884_s5 + $0x358] sm:$0xff] }
 0x43f   :  { %v7363_v27 = vcombine.high %v2944_v0, %v2960_v1  ;;  %v2607_v53 = vld [vmem:[%s9884_s5 + $0x3d8] sm:$0xff] }
 0x440   :  { %6110 = vmatpush1.bf16.msra.mxu1 %v7164_v8  ;;  %v2976_v8 = vld [vmem:[%s9884_s5 + $0xf60] sm:$0xff] }
 0x441   :  { %6233 = vmatpush1.bf16.msra.mxu0 %v7170_v10  ;;  %6111 = vmatprep.subr.bf16.mxu1 %v7197_v11  ;;  %v2992_v10 = vld [vmem:[%s9884_s5 + $0xfe0] sm:$0xff]  ;;  %v7356_v11 = vcombine.low %v2941_v62, %v2957_v63  ;;  %v7009_v62 = vcombine.high %v2591_v52, %v2607_v53 }
 0x442   :  { %6234 = vmatprep.subr.bf16.mxu0 %v7203_v12  ;;  %v7362_v12 = vcombine.low %v2944_v0, %v2960_v1  ;;  %v7395_v14 = vcombine.high %v2976_v8, %v2992_v10  ;;  %v2623_v0 = vld [vmem:[%s9884_s5 + $0x458] sm:$0xff] }
 0x443   :  { %v2639_v1 = vld [vmem:[%s9884_s5 + $0x4d8] sm:$0xff] }
 0x444   :  { %6112 = vmatpush1.bf16.msra.mxu1 %v7196_v17  ;;  %v2498_v17 = vld [vmem:[%s9884_s5 + $0x70] sm:$0xff] }
 0x445   :  { %6235 = vmatpush1.bf16.msra.mxu0 %v7202_v18  ;;  %6113 = vmatprep.subr.bf16.mxu1 %v7229_v19  ;;  %v2514_v18 = vld [vmem:[%s9884_s5 + $0xf0] sm:$0xff]  ;;  %v7388_v19 = vcombine.low %v2973_v32, %v2989_v25  ;;  %v7041_v32 = vcombine.high %v2623_v0, %v2639_v1 }
 0x446   :  { %6236 = vmatprep.subr.bf16.mxu0 %v7235_v20  ;;  %v7394_v20 = vcombine.low %v2976_v8, %v2992_v10  ;;  %v6919_v22 = vcombine.high %v2498_v17, %v2514_v18  ;;  %v2655_v8 = vld [vmem:[%s9884_s5 + $0x558] sm:$0xff] }
 0x447   :  { %v2671_v10 = vld [vmem:[%s9884_s5 + $0x5d8] sm:$0xff] }
 0x448   :  { %6114 = vmatpush1.bf16.msra.mxu1 %v7228_v29  ;;  %v6912_v29 = vcombine.low %v2495_v15, %v2511_v16  ;;  %v9432_v15 = vsub.s32 7, %v8045_v43 }
 0x449   :  { %6237 = vmatpush1.bf16.msra.mxu0 %v7234_v30  ;;  %6115 = vmatprep.subr.bf16.mxu1 %v7261_v31  ;;  %v2530_v30 = vld [vmem:[%s9884_s5 + $0x170] sm:$0xff] }
 0x44a   :  { %6238 = vmatprep.subr.bf16.mxu0 %v7267_v34  ;;  %v2546_v31 = vld [vmem:[%s9884_s5 + $0x1f0] sm:$0xff]  ;;  %v6918_v34 = vcombine.low %v2498_v17, %v2514_v18  ;;  %v7073_v17 = vcombine.high %v2655_v8, %v2671_v10 }
 0x44b   :  { %v6951_v41 = vcombine.high %v2530_v30, %v2546_v31 }
 0x44c   :  { %6116 = vmatpush1.bf16.msra.mxu1 %v7260_v26  ;;  %v2562_v26 = vld [vmem:[%s9884_s5 + $0x270] sm:$0xff] }
 0x44d   :  { %6239 = vmatpush1.bf16.msra.mxu0 %v7266_v44  ;;  %6117 = vmatprep.subr.bf16.mxu1 %v7293_v45  ;;  %v2578_v44 = vld [vmem:[%s9884_s5 + $0x2f0] sm:$0xff]  ;;  %v6944_v45 = vcombine.low %v2527_v24, %v2543_v9  ;;  %v3055_v24 = vrot.slane %v9208_v2, %v8973_v58  ;;  %v3035_v9 = vrot.slane %v8984_v3, %v9432_v15 }
 0x44e   :  { %6240 = vmatprep.subr.bf16.mxu0 %v7299_v46  ;;  %v6950_v46 = vcombine.low %v2530_v30, %v2546_v31  ;;  %v6983_v50 = vcombine.high %v2562_v26, %v2578_v44  ;;  %v3059_v30 = vrot.slane %v9208_v2, %v8987_v4 }
 0x450   :  { %6118 = vmatpush1.bf16.msra.mxu1 %v7292_v54  ;;  %v2594_v54 = vld [vmem:[%s9884_s5 + $0x370] sm:$0xff] }
 0x451   :  { %6241 = vmatpush1.bf16.msra.mxu0 %v7298_v55  ;;  %6119 = vmatprep.subr.bf16.mxu1 %v7325_v57  ;;  %v2610_v55 = vld [vmem:[%s9884_s5 + $0x3f0] sm:$0xff]  ;;  %v6976_v57 = vcombine.low %v2559_v36, %v2575_v40  ;;  %v2719_v40 = vld [vmem:[%s9884_s5 + $0x758] sm:$0xff] }
 0x452   :  { %6242 = vmatprep.subr.bf16.mxu0 %v7331_v61  ;;  %v6982_v61 = vcombine.low %v2562_v26, %v2578_v44  ;;  %v7015_v63 = vcombine.high %v2594_v54, %v2610_v55 }
 0x454   :  { %6120 = vmatpush1.bf16.msra.mxu1 %v7324_v5  ;;  %v2626_v5 = vld [vmem:[%s9884_s5 + $0x470] sm:$0xff] }
 0x455   :  { %6243 = vmatpush1.bf16.msra.mxu0 %v7330_v6  ;;  %6121 = vmatprep.subr.bf16.mxu1 %v7357_v7  ;;  %v2642_v6 = vld [vmem:[%s9884_s5 + $0x4f0] sm:$0xff]  ;;  %v7008_v7 = vcombine.low %v2591_v52, %v2607_v53 }
 0x456   :  { %6244 = vmatprep.subr.bf16.mxu0 %v7363_v27  ;;  %v7014_v27 = vcombine.low %v2594_v54, %v2610_v55  ;;  %v7047_v25 = vcombine.high %v2626_v5, %v2642_v6  ;;  %v7046_v16 = vcombine.low %v2626_v5, %v2642_v6  ;;  %v2751_v6 = vld [vmem:[%s9884_s5 + $0x858] sm:$0xff] }
 0x458   :  { %6122 = vmatpush1.bf16.msra.mxu1 %v7356_v11  ;;  %v9423_v11 = vsub.s32 6, %v8045_v43  ;;  %v2690_v43 = vld [vmem:[%s9884_s5 + $0x670] sm:$0xff] }
 0x459   :  { %6245 = vmatpush1.bf16.msra.mxu0 %v7362_v12  ;;  %6123 = vmatprep.subr.bf16.mxu1 %v7389_v13  ;;  %v2658_v12 = vld [vmem:[%s9884_s5 + $0x570] sm:$0xff] }
 0x45a   :  { %6246 = vmatprep.subr.bf16.mxu0 %v7395_v14  ;;  %v2674_v13 = vld [vmem:[%s9884_s5 + $0x5f0] sm:$0xff]  ;;  %v7040_v14 = vcombine.low %v2623_v0, %v2639_v1 }
 0x45b   :  { %v7079_v18 = vcombine.high %v2658_v12, %v2674_v13  ;;  %v7078_v31 = vcombine.low %v2658_v12, %v2674_v13 }
 0x45c   :  { %6124 = vmatpush1.bf16.msra.mxu1 %v7388_v19  ;;  %v2687_v19 = vld [vmem:[%s9884_s5 + $0x658] sm:$0xff] }
 0x45d   :  { %6247 = vmatpush1.bf16.msra.mxu0 %v7394_v20  ;;  %6175 = vmatprep.subr.bf16.mxu1 %v6913_v21  ;;  %v2703_v20 = vld [vmem:[%s9884_s5 + $0x6d8] sm:$0xff]  ;;  %v3031_v21 = vrot.slane %v8984_v3, %v9423_v11 }
 0x45e   :  { %6298 = vmatprep.subr.bf16.mxu0 %v6919_v22  ;;  %v2706_v22 = vld [vmem:[%s9884_s5 + $0x6f0] sm:$0xff]  ;;  %v7104_v54 = vcombine.low %v2687_v19, %v2703_v20 }
 0x45f   :  { %6126 = vmatmul.mubr.bf16.vlgmr.msra.gmra.mrb[24].mxu1 %v8334_v38  ;;  %v7111_v36 = vcombine.high %v2690_v43, %v2706_v22 }
 0x460   :  { %6249 = vmatmul.mubr.bf16.vlgmr.msra.gmra.mrb[28].mxu0 %v8334_v38  ;;  %6176 = vmatpush1.bf16.msra.mxu1 %v6912_v29  ;;  %v7072_v29 = vcombine.low %v2655_v8, %v2671_v10  ;;  %v6437_v8 = vrot.slane %v6429_v42, %v8048_v49  ;;  %v2802_v42 = vld [vmem:[%s9884_s5 + $0x9f0] sm:$0xff] }
 0x461   :  { %6207 = vmatprep.mubr.bf16.mxu1 %v8332_v37  ;;  %6299 = vmatpush1.bf16.msra.mxu0 %v6918_v34  ;;  %v7105_v34 = vcombine.high %v2687_v19, %v2703_v20 }
 0x462   :  { %6330 = vmatprep.mubr.bf16.mxu0 %v8332_v37  ;;  %6177 = vmatprep.subr.bf16.mxu1 %v6945_v35 }
 0x463   :  { %6300 = vmatprep.subr.bf16.mxu0 %v6951_v41  ;;  %v2735_v41 = vld [vmem:[%s9884_s5 + $0x7d8] sm:$0xff] }
 0x464   :  { %6178 = vmatpush1.bf16.msra.mxu1 %v6944_v45  ;;  %v2722_v45 = vld [vmem:[%s9884_s5 + $0x770] sm:$0xff]  ;;  %v7136_v12 = vcombine.low %v2719_v40, %v2735_v41 }
 0x465   :  { %6301 = vmatpush1.bf16.msra.mxu0 %v6950_v46  ;;  %6179 = vmatprep.subr.bf16.mxu1 %v6977_v48  ;;  %v2738_v46 = vld [vmem:[%s9884_s5 + $0x7f0] sm:$0xff] }
 0x466   :  { %6302 = vmatprep.subr.bf16.mxu0 %v6983_v50  ;;  %v7143_v5 = vcombine.high %v2722_v45, %v2738_v46  ;;  %v7142_v13 = vcombine.low %v2722_v45, %v2738_v46 }
 0x468   :  { %6180 = vmatpush1.bf16.msra.mxu1 %v6976_v57 }
 0x469   :  { %6303 = vmatpush1.bf16.msra.mxu0 %v6982_v61  ;;  %6181 = vmatprep.subr.bf16.mxu1 %v7009_v62  ;;  %v7110_v62 = vcombine.low %v2690_v43, %v2706_v22  ;;  %v7207_v43 = vcombine.high %v2786_v33, %v2802_v42  ;;  %v2815_v22 = vld [vmem:[%s9884_s5 + $0xa58] sm:$0xff] }
 0x46a   :  { %6304 = vmatprep.subr.bf16.mxu0 %v7015_v63  ;;  %v7137_v63 = vcombine.high %v2719_v40, %v2735_v41  ;;  %v2863_v40 = vld [vmem:[%s9884_s5 + $0xbd8] sm:$0xff]  ;;  %v2850_v41 = vld [vmem:[%s9884_s5 + $0xb70] sm:$0xff] }
 0x46c   :  { %6182 = vmatpush1.bf16.msra.mxu1 %v7008_v7  ;;  %v2767_v7 = vld [vmem:[%s9884_s5 + $0x8d8] sm:$0xff] }
 0x46d   :  { %6305 = vmatpush1.bf16.msra.mxu0 %v7014_v27  ;;  %6183 = vmatprep.subr.bf16.mxu1 %v7041_v32  ;;  %v2754_v32 = vld [vmem:[%s9884_s5 + $0x870] sm:$0xff]  ;;  %v7168_v19 = vcombine.low %v2751_v6, %v2767_v7 }
 0x46e   :  { %6306 = vmatprep.subr.bf16.mxu0 %v7047_v25  ;;  %v2770_v25 = vld [vmem:[%s9884_s5 + $0x8f0] sm:$0xff] }
 0x46f   :  { %v7174_v20 = vcombine.low %v2754_v32, %v2770_v25 }
 0x470   :  { %6184 = vmatpush1.bf16.msra.mxu1 %v7040_v14  ;;  %v7169_v14 = vcombine.high %v2751_v6, %v2767_v7  ;;  %v2930_v6 = vld [vmem:[%s9884_s5 + $0xdf0] sm:$0xff] }
 0x471   :  { %6307 = vmatpush1.bf16.msra.mxu0 %v7046_v16  ;;  %6185 = vmatprep.subr.bf16.mxu1 %v7073_v17  ;;  %v7175_v17 = vcombine.high %v2754_v32, %v2770_v25 }
 0x472   :  { %v5881_v35 = vpop.f32.mrb[12].mxu1  ;;  %6308 = vmatprep.subr.bf16.mxu0 %v7079_v18  ;;  %v2783_v18 = vld [vmem:[%s9884_s5 + $0x958] sm:$0xff] }
 0x473   :  { %v5882_v3 = vadd.f32 %v5881_v35, %v3031_v21  ;;  %v6004_v26 = vpop.f32.mrb[16].mxu0  ;;  %v5883_v44 = vpop.f32.mrb[13].mxu1  ;;  %v7201_v21 = vcombine.high %v2783_v18, %v2799_v28 }
 0x474   :  { %v9466_v48 = vadd.f32 %v6004_v26, %v3055_v24  ;;  %v5884_v50 = vadd.f32 %v5883_v44, %v3035_v9  ;;  %v6006_v52 = vpop.f32.mrb[17].mxu0  ;;  %v5885_v53 = vpop.f32.mrb[14].mxu1  ;;  %6186 = vmatpush1.bf16.msra.mxu1 %v7072_v29  ;;  %v2831_v24 = vld [vmem:[%s9884_s5 + $0xad8] sm:$0xff]  ;;  %v2818_v9 = vld [vmem:[%s9884_s5 + $0xa70] sm:$0xff] }
 0x475   :  { %v9468_v55 = vadd.f32 %v6006_v52, %v3059_v30  ;;  %v6008_v57 = vpop.f32.mrb[18].mxu0  ;;  %6309 = vmatpush1.bf16.msra.mxu0 %v7078_v31  ;;  %v5886_v61 = vpop.f32.mrb[15].mxu1  ;;  %6187 = vmatprep.subr.bf16.mxu1 %v7105_v34  ;;  %v2834_v29 = vld [vmem:[%s9884_s5 + $0xaf0] sm:$0xff]  ;;  %v7200_v30 = vcombine.low %v2783_v18, %v2799_v28  ;;  %v7206_v31 = vcombine.low %v2786_v33, %v2802_v42  ;;  %v2895_v52 = vld [vmem:[%s9884_s5 + $0xcd8] sm:$0xff] }
 0x476   :  { %v6430_v0 = vcombine.low %v5882_v3, %v5884_v50  ;;  %v6009_v1 = vpop.f32.mrb[19].mxu0  ;;  %6310 = vmatprep.subr.bf16.mxu0 %v7111_v36  ;;  %v7233_v34 = vcombine.high %v2815_v22, %v2831_v24  ;;  %v7239_v35 = vcombine.high %v2818_v9, %v2834_v29  ;;  %v2847_v36 = vld [vmem:[%s9884_s5 + $0xb58] sm:$0xff]  ;;  %v2866_v3 = vld [vmem:[%s9884_s5 + $0xbf0] sm:$0xff]  ;;  %v7232_v26 = vcombine.low %v2815_v22, %v2831_v24 }
 0x477   :  { %v6463_v27 = vcombine.low %v9466_v48, %v9468_v55  ;;  %v7238_v44 = vcombine.low %v2818_v9, %v2834_v29  ;;  %v7265_v45 = vcombine.high %v2847_v36, %v2863_v40  ;;  %v7271_v46 = vcombine.high %v2850_v41, %v2866_v3  ;;  %v2879_v50 = vld [vmem:[%s9884_s5 + $0xc58] sm:$0xff]  ;;  %v2882_v53 = vld [vmem:[%s9884_s5 + $0xc70] sm:$0xff]  ;;  %v2497_v9 = vld [vmem:[%s9884_s5 + $0x68] sm:$0xff] }
 0x478   :  { %v6444_v10 = vrot.slane %v6430_v0, %v8048_v49  ;;  %6188 = vmatpush1.bf16.msra.mxu1 %v7104_v54  ;;  %v2898_v54 = vld [vmem:[%s9884_s5 + $0xcf0] sm:$0xff]  ;;  %v7264_v57 = vcombine.low %v2847_v36, %v2863_v40  ;;  %v7270_v61 = vcombine.low %v2850_v41, %v2866_v3  ;;  %v2911_v0 = vld [vmem:[%s9884_s5 + $0xd58] sm:$0xff]  ;;  %v7296_v7 = vcombine.low %v2879_v50, %v2895_v52  ;;  %v2513_v29 = vld [vmem:[%s9884_s5 + $0xe8] sm:$0xff] }
 0x479   :  { %6311 = vmatpush1.bf16.msra.mxu0 %v7110_v62  ;;  %6189 = vmatprep.subr.bf16.mxu1 %v7137_v63  ;;  %v7297_v62 = vcombine.high %v2879_v50, %v2895_v52  ;;  %v7303_v63 = vcombine.high %v2882_v53, %v2898_v54  ;;  %v2927_v1 = vld [vmem:[%s9884_s5 + $0xdd8] sm:$0xff]  ;;  %v7302_v32 = vcombine.low %v2882_v53, %v2898_v54  ;;  %v2545_v36 = vld [vmem:[%s9884_s5 + $0x1e8] sm:$0xff] }
 0x47a   :  { %v6445_v16 = vcombine.low %v6437_v8, %v6444_v10  ;;  %6312 = vmatprep.subr.bf16.mxu0 %v7143_v5  ;;  %v2914_v5 = vld [vmem:[%s9884_s5 + $0xd70] sm:$0xff]  ;;  %v7329_v25 = vcombine.high %v2911_v0, %v2927_v1  ;;  %v2943_v10 = vld [vmem:[%s9884_s5 + $0xe58] sm:$0xff]  ;;  %v6916_v40 = vcombine.low %v2497_v9, %v2513_v29  ;;  %v2561_v3 = vld [vmem:[%s9884_s5 + $0x268] sm:$0xff] }
 0x47b   :  { %v7335_v8 = vcombine.high %v2914_v5, %v2930_v6  ;;  %v2975_v33 = vld [vmem:[%s9884_s5 + $0xf58] sm:$0xff]  ;;  %v2609_v50 = vld [vmem:[%s9884_s5 + $0x3e8] sm:$0xff] }
 0x47c   :  { %6557 = vst [vmem:[%s9886_s7 + $0x8] sm:$0xff] %v6445_v16  ;;  %6190 = vmatpush1.bf16.msra.mxu1 %v7136_v12  ;;  %v2959_v12 = vld [vmem:[%s9884_s5 + $0xed8] sm:$0xff]  ;;  %v7328_v16 = vcombine.low %v2911_v0, %v2927_v1  ;;  %v2625_v54 = vld [vmem:[%s9884_s5 + $0x468] sm:$0xff] }
 0x47d   :  { %6313 = vmatpush1.bf16.msra.mxu0 %v7142_v13  ;;  %6191 = vmatprep.subr.bf16.mxu1 %v7169_v14  ;;  %v2946_v13 = vld [vmem:[%s9884_s5 + $0xe70] sm:$0xff]  ;;  %v7361_v18 = vcombine.high %v2943_v10, %v2959_v12  ;;  %v2991_v42 = vld [vmem:[%s9884_s5 + $0xfd8] sm:$0xff]  ;;  %v2673_v0 = vld [vmem:[%s9884_s5 + $0x5e8] sm:$0xff] }
 0x47e   :  { %6314 = vmatprep.subr.bf16.mxu0 %v7175_v17  ;;  %v2962_v14 = vld [vmem:[%s9884_s5 + $0xef0] sm:$0xff]  ;;  %v7334_v17 = vcombine.low %v2914_v5, %v2930_v6  ;;  %v7393_v22 = vcombine.high %v2975_v33, %v2991_v42 }
 0x47f   :  { %v7367_v28 = vcombine.high %v2946_v13, %v2962_v14  ;;  %v9618_v5 = vld [vmem:[%s9885_s6 + $0x10] sm:$0xff] }
 0x480   :  { %6192 = vmatpush1.bf16.msra.mxu1 %v7168_v19  ;;  %v2978_v19 = vld [vmem:[%s9884_s5 + $0xf70] sm:$0xff] }
 0x481   :  { %6315 = vmatpush1.bf16.msra.mxu0 %v7174_v20  ;;  %6193 = vmatprep.subr.bf16.mxu1 %v7201_v21  ;;  %v2994_v20 = vld [vmem:[%s9884_s5 + $0xff0] sm:$0xff]  ;;  %v7360_v21 = vcombine.low %v2943_v10, %v2959_v12  ;;  %v3051_v10 = vrot.slane %v9208_v2, %v8173_v60 }
 0x482   :  { %6316 = vmatprep.subr.bf16.mxu0 %v7207_v43  ;;  %v7366_v43 = vcombine.low %v2946_v13, %v2962_v14  ;;  %v7399_v24 = vcombine.high %v2978_v19, %v2994_v20  ;;  %v3075_v13 = vrot.slane %v9618_v5, %v8170_v59 }
 0x484   :  { %6194 = vmatpush1.bf16.msra.mxu1 %v7200_v30  ;;  %v7392_v30 = vcombine.low %v2975_v33, %v2991_v42 }
 0x485   :  { %6317 = vmatpush1.bf16.msra.mxu0 %v7206_v31  ;;  %6195 = vmatprep.subr.bf16.mxu1 %v7233_v34  ;;  %v7398_v31 = vcombine.low %v2978_v19, %v2994_v20  ;;  %v6917_v34 = vcombine.high %v2497_v9, %v2513_v29 }
 0x486   :  { %6318 = vmatprep.subr.bf16.mxu0 %v7239_v35  ;;  %v2529_v35 = vld [vmem:[%s9884_s5 + $0x168] sm:$0xff] }
 0x487   :  { %v6949_v41 = vcombine.high %v2529_v35, %v2545_v36 }
 0x488   :  { %6196 = vmatpush1.bf16.msra.mxu1 %v7232_v26  ;;  %v2577_v26 = vld [vmem:[%s9884_s5 + $0x2e8] sm:$0xff] }
 0x489   :  { %6319 = vmatpush1.bf16.msra.mxu0 %v7238_v44  ;;  %6197 = vmatprep.subr.bf16.mxu1 %v7265_v45  ;;  %v6948_v44 = vcombine.low %v2529_v35, %v2545_v36  ;;  %v6981_v45 = vcombine.high %v2561_v3, %v2577_v26  ;;  %v6980_v52 = vcombine.low %v2561_v3, %v2577_v26  ;;  %v2769_v35 = vld [vmem:[%s9884_s5 + $0x8e8] sm:$0xff] }
 0x48a   :  { %6320 = vmatprep.subr.bf16.mxu0 %v7271_v46  ;;  %v2593_v46 = vld [vmem:[%s9884_s5 + $0x368] sm:$0xff] }
 0x48b   :  { %v7013_v53 = vcombine.high %v2593_v46, %v2609_v50 }
 0x48c   :  { %6198 = vmatpush1.bf16.msra.mxu1 %v7264_v57  ;;  %v2641_v57 = vld [vmem:[%s9884_s5 + $0x4e8] sm:$0xff] }
 0x48d   :  { %6321 = vmatpush1.bf16.msra.mxu0 %v7270_v61  ;;  %6199 = vmatprep.subr.bf16.mxu1 %v7297_v62  ;;  %v7012_v61 = vcombine.low %v2593_v46, %v2609_v50  ;;  %v7045_v62 = vcombine.high %v2625_v54, %v2641_v57  ;;  %v7044_v1 = vcombine.low %v2625_v54, %v2641_v57  ;;  %v2801_v46 = vld [vmem:[%s9884_s5 + $0x9e8] sm:$0xff] }
 0x48e   :  { %6322 = vmatprep.subr.bf16.mxu0 %v7303_v63  ;;  %v2657_v63 = vld [vmem:[%s9884_s5 + $0x568] sm:$0xff] }
 0x48f   :  { %v7077_v6 = vcombine.high %v2657_v63, %v2673_v0  ;;  %v7076_v12 = vcombine.low %v2657_v63, %v2673_v0  ;;  %v2833_v50 = vld [vmem:[%s9884_s5 + $0xae8] sm:$0xff] }
 0x490   :  { %6200 = vmatpush1.bf16.msra.mxu1 %v7296_v7  ;;  %v2689_v7 = vld [vmem:[%s9884_s5 + $0x668] sm:$0xff] }
 0x491   :  { %6323 = vmatpush1.bf16.msra.mxu0 %v7302_v32  ;;  %6201 = vmatprep.subr.bf16.mxu1 %v7329_v25  ;;  %v2705_v32 = vld [vmem:[%s9884_s5 + $0x6e8] sm:$0xff]  ;;  %v3047_v25 = vrot.slane %v9208_v2, %v8190_v47 }
 0x492   :  { %6324 = vmatprep.subr.bf16.mxu0 %v7335_v8  ;;  %v3071_v8 = vrot.slane %v9618_v5, %v8162_v56  ;;  %v7109_v14 = vcombine.high %v2689_v7, %v2705_v32  ;;  %v2849_v54 = vld [vmem:[%s9884_s5 + $0xb68] sm:$0xff] }
 0x493   :  { %v2865_v57 = vld [vmem:[%s9884_s5 + $0xbe8] sm:$0xff] }
 0x494   :  { %6202 = vmatpush1.bf16.msra.mxu1 %v7328_v16  ;;  %v2881_v63 = vld [vmem:[%s9884_s5 + $0xc68] sm:$0xff] }
 0x495   :  { %6325 = vmatpush1.bf16.msra.mxu0 %v7334_v17  ;;  %6203 = vmatprep.subr.bf16.mxu1 %v7361_v18  ;;  %v2721_v17 = vld [vmem:[%s9884_s5 + $0x768] sm:$0xff] }
 0x496   :  { %6326 = vmatprep.subr.bf16.mxu0 %v7367_v28  ;;  %v2737_v18 = vld [vmem:[%s9884_s5 + $0x7e8] sm:$0xff] }
 0x497   :  { %v7141_v29 = vcombine.high %v2721_v17, %v2737_v18  ;;  %v7140_v3 = vcombine.low %v2721_v17, %v2737_v18  ;;  %v2897_v0 = vld [vmem:[%s9884_s5 + $0xce8] sm:$0xff] }
 0x498   :  { %6204 = vmatpush1.bf16.msra.mxu1 %v7360_v21  ;;  %v2993_v17 = vld [vmem:[%s9884_s5 + $0xfe8] sm:$0xff] }
 0x499   :  { %6327 = vmatpush1.bf16.msra.mxu0 %v7366_v43  ;;  %6205 = vmatprep.subr.bf16.mxu1 %v7393_v22  ;;  %v7108_v43 = vcombine.low %v2689_v7, %v2705_v32  ;;  %v2913_v7 = vld [vmem:[%s9884_s5 + $0xd68] sm:$0xff] }
 0x49a   :  { %6328 = vmatprep.subr.bf16.mxu0 %v7399_v24  ;;  %v2929_v32 = vld [vmem:[%s9884_s5 + $0xde8] sm:$0xff] }
 0x49c   :  { %6206 = vmatpush1.bf16.msra.mxu1 %v7392_v30 }
 0x49d   :  { %6329 = vmatpush1.bf16.msra.mxu0 %v7398_v31  ;;  %6257 = vmatprep.subr.bf16.mxu1 %v6917_v34  ;;  %v2753_v34 = vld [vmem:[%s9884_s5 + $0x868] sm:$0xff] }
 0x49e   :  { %v7173_v26 = vcombine.high %v2753_v34, %v2769_v35  ;;  %v7172_v23 = vcombine.low %v2753_v34, %v2769_v35  ;;  %v2595_v35 = vld [vmem:[%s9884_s5 + $0x378] sm:$0xff] }
 0x49f   :  { %6208 = vmatmul.mubr.bf16.vlgmr.msra.gmra.mrb[28].mxu1 %v8334_v38 }
 0x4a0   :  { %6331 = vmatmul.mubr.bf16.vlgmr.msra.gmra.mrb[32].mxu0 %v8334_v38  ;;  %6258 = vmatpush1.bf16.msra.mxu1 %v6916_v40  ;;  %v6454_v40 = vrot.slane %v6446_v51, %v8048_v49  ;;  %v2817_v51 = vld [vmem:[%s9884_s5 + $0xa68] sm:$0xff] }
 0x4a1   :  { %6289 = vmatprep.mubr.bf16.mxu1 %v8332_v37  ;;  %6259 = vmatprep.subr.bf16.mxu1 %v6949_v41 }
 0x4a4   :  { %6260 = vmatpush1.bf16.msra.mxu1 %v6948_v44 }
 0x4a5   :  { %6261 = vmatprep.subr.bf16.mxu1 %v6981_v45  ;;  %v2785_v45 = vld [vmem:[%s9884_s5 + $0x968] sm:$0xff] }
 0x4a6   :  { %v7205_v39 = vcombine.high %v2785_v45, %v2801_v46 }
 0x4a8   :  { %6262 = vmatpush1.bf16.msra.mxu1 %v6980_v52  ;;  %v7204_v52 = vcombine.low %v2785_v45, %v2801_v46  ;;  %v2659_v46 = vld [vmem:[%s9884_s5 + $0x578] sm:$0xff] }
 0x4a9   :  { %6263 = vmatprep.subr.bf16.mxu1 %v7013_v53  ;;  %v7237_v53 = vcombine.high %v2817_v51, %v2833_v50 }
 0x4ac   :  { %6264 = vmatpush1.bf16.msra.mxu1 %v7012_v61  ;;  %v7236_v61 = vcombine.low %v2817_v51, %v2833_v50  ;;  %v2691_v50 = vld [vmem:[%s9884_s5 + $0x678] sm:$0xff] }
 0x4ad   :  { %6265 = vmatprep.subr.bf16.mxu1 %v7045_v62  ;;  %v7269_v62 = vcombine.high %v2849_v54, %v2865_v57 }
 0x4b0   :  { %6266 = vmatpush1.bf16.msra.mxu1 %v7044_v1  ;;  %v7268_v1 = vcombine.low %v2849_v54, %v2865_v57  ;;  %v3087_v57 = vrot.slane %v9618_v5, %v8973_v58 }
 0x4b1   :  { %6267 = vmatprep.subr.bf16.mxu1 %v7077_v6  ;;  %v7301_v6 = vcombine.high %v2881_v63, %v2897_v0 }
 0x4b2   :  { %v5963_v16 = vpop.f32.mrb[16].mxu1 }
 0x4b3   :  { %v5964_v28 = vadd.f32 %v5963_v16, %v3047_v25  ;;  %v6086_v33 = vpop.f32.mrb[20].mxu0  ;;  %v5965_v42 = vpop.f32.mrb[17].mxu1  ;;  %v7300_v25 = vcombine.low %v2881_v63, %v2897_v0  ;;  %v2977_v16 = vld [vmem:[%s9884_s5 + $0xf68] sm:$0xff]  ;;  %v3091_v63 = vrot.slane %v9618_v5, %v8987_v4 }
 0x4b4   :  { %v9640_v19 = vadd.f32 %v6086_v33, %v3071_v8  ;;  %v5966_v2 = vadd.f32 %v5965_v42, %v3051_v10  ;;  %v6088_v20 = vpop.f32.mrb[21].mxu0  ;;  %v5967_v21 = vpop.f32.mrb[18].mxu1  ;;  %6268 = vmatpush1.bf16.msra.mxu1 %v7076_v12  ;;  %v7333_v8 = vcombine.high %v2913_v7, %v2929_v32  ;;  %v2945_v10 = vld [vmem:[%s9884_s5 + $0xe68] sm:$0xff]  ;;  %v2499_v33 = vld [vmem:[%s9884_s5 + $0x78] sm:$0xff] }
 0x4b5   :  { %v9642_v22 = vadd.f32 %v6088_v20, %v3075_v13  ;;  %v6090_v24 = vpop.f32.mrb[22].mxu0  ;;  %v5968_v9 = vpop.f32.mrb[19].mxu1  ;;  %6269 = vmatprep.subr.bf16.mxu1 %v7109_v14  ;;  %v2961_v12 = vld [vmem:[%s9884_s5 + $0xee8] sm:$0xff]  ;;  %v7332_v13 = vcombine.low %v2913_v7, %v2929_v32  ;;  %v2515_v42 = vld [vmem:[%s9884_s5 + $0xf8] sm:$0xff] }
 0x4b6   :  { %v6447_v30 = vcombine.low %v5964_v28, %v5966_v2  ;;  %v6091_v31 = vpop.f32.mrb[23].mxu0  ;;  %v7365_v14 = vcombine.high %v2945_v10, %v2961_v12  ;;  %v7364_v18 = vcombine.low %v2945_v10, %v2961_v12  ;;  %v7397_v28 = vcombine.high %v2977_v16, %v2993_v17  ;;  %v2531_v21 = vld [vmem:[%s9884_s5 + $0x178] sm:$0xff] }
 0x4b7   :  { %v6480_v36 = vcombine.low %v9640_v19, %v9642_v22  ;;  %v7396_v2 = vcombine.low %v2977_v16, %v2993_v17  ;;  %v6921_v20 = vcombine.high %v2499_v33, %v2515_v42  ;;  %v6920_v24 = vcombine.low %v2499_v33, %v2515_v42  ;;  %v2739_v7 = vld [vmem:[%s9884_s5 + $0x7f8] sm:$0xff] }
 0x4b8   :  { %v6461_v41 = vrot.slane %v6447_v30, %v8048_v49  ;;  %6270 = vmatpush1.bf16.msra.mxu1 %v7108_v43  ;;  %v2547_v43 = vld [vmem:[%s9884_s5 + $0x1f8] sm:$0xff] }
 0x4b9   :  { %6271 = vmatprep.subr.bf16.mxu1 %v7141_v29  ;;  %v6953_v9 = vcombine.high %v2531_v21, %v2547_v43  ;;  %v2563_v29 = vld [vmem:[%s9884_s5 + $0x278] sm:$0xff]  ;;  %v6952_v31 = vcombine.low %v2531_v21, %v2547_v43 }
 0x4ba   :  { %v6462_v44 = vcombine.low %v6454_v40, %v6461_v41  ;;  %v2579_v30 = vld [vmem:[%s9884_s5 + $0x2f8] sm:$0xff] }
 0x4bb   :  { %v6985_v34 = vcombine.high %v2563_v29, %v2579_v30  ;;  %v2611_v40 = vld [vmem:[%s9884_s5 + $0x3f8] sm:$0xff]  ;;  %v6984_v41 = vcombine.low %v2563_v29, %v2579_v30 }
 0x4bc   :  { %6558 = vst [vmem:[%s9886_s7 + $0x10] sm:$0xff] %v6462_v44  ;;  %6272 = vmatpush1.bf16.msra.mxu1 %v7140_v3  ;;  %v7017_v3 = vcombine.high %v2595_v35, %v2611_v40  ;;  %v7016_v44 = vcombine.low %v2595_v35, %v2611_v40  ;;  %v2771_v21 = vld [vmem:[%s9884_s5 + $0x8f8] sm:$0xff] }
 0x4bd   :  { %6273 = vmatprep.subr.bf16.mxu1 %v7173_v26  ;;  %v2627_v26 = vld [vmem:[%s9884_s5 + $0x478] sm:$0xff] }
 0x4be   :  { %v2803_v35 = vld [vmem:[%s9884_s5 + $0x9f8] sm:$0xff] }
 0x4bf   :  { %v2835_v40 = vld [vmem:[%s9884_s5 + $0xaf8] sm:$0xff] }
 0x4c0   :  { %6274 = vmatpush1.bf16.msra.mxu1 %v7172_v23  ;;  %v2675_v23 = vld [vmem:[%s9884_s5 + $0x5f8] sm:$0xff] }
 0x4c1   :  { %6275 = vmatprep.subr.bf16.mxu1 %v7205_v39  ;;  %v7081_v51 = vcombine.high %v2659_v46, %v2675_v23 }
 0x4c4   :  { %6276 = vmatpush1.bf16.msra.mxu1 %v7204_v52  ;;  %v2707_v52 = vld [vmem:[%s9884_s5 + $0x6f8] sm:$0xff] }
 0x4c5   :  { %6277 = vmatprep.subr.bf16.mxu1 %v7237_v53  ;;  %v7925_v53 = vld [vmem:[%s9885_s6 + $0x8] sm:$0xff]  ;;  %v7113_v0 = vcombine.high %v2691_v50, %v2707_v52  ;;  %v7112_v16 = vcombine.low %v2691_v50, %v2707_v52  ;;  %v2915_v50 = vld [vmem:[%s9884_s5 + $0xd78] sm:$0xff] }
 0x4c6   :  { %v3063_v54 = vrot.slane %v7925_v53, %v9423_v11  ;;  %v2931_v52 = vld [vmem:[%s9884_s5 + $0xdf8] sm:$0xff] }
 0x4c8   :  { %6278 = vmatpush1.bf16.msra.mxu1 %v7236_v61  ;;  %v3067_v61 = vrot.slane %v7925_v53, %v9432_v15 }
 0x4c9   :  { %6279 = vmatprep.subr.bf16.mxu1 %v7269_v62  ;;  %v7080_v62 = vcombine.low %v2659_v46, %v2675_v23  ;;  %v2883_v46 = vld [vmem:[%s9884_s5 + $0xc78] sm:$0xff] }
 0x4ca   :  { %v2899_v23 = vld [vmem:[%s9884_s5 + $0xcf8] sm:$0xff] }
 0x4cb   :  { %v7304_v53 = vcombine.low %v2883_v46, %v2899_v23 }
 0x4cc   :  { %6280 = vmatpush1.bf16.msra.mxu1 %v7268_v1 }
 0x4cd   :  { %6281 = vmatprep.subr.bf16.mxu1 %v7301_v6  ;;  %v2723_v6 = vld [vmem:[%s9884_s5 + $0x778] sm:$0xff] }
 0x4ce   :  { %v7145_v33 = vcombine.high %v2723_v6, %v2739_v7  ;;  %v7144_v29 = vcombine.low %v2723_v6, %v2739_v7 }
 0x4d0   :  { %6282 = vmatpush1.bf16.msra.mxu1 %v7300_v25 }
 0x4d1   :  { %6283 = vmatprep.subr.bf16.mxu1 %v7333_v8 }
 0x4d4   :  { %6284 = vmatpush1.bf16.msra.mxu1 %v7332_v13 }
 0x4d5   :  { %6285 = vmatprep.subr.bf16.mxu1 %v7365_v14 }
 0x4d8   :  { %6286 = vmatpush1.bf16.msra.mxu1 %v7364_v18 }
 0x4d9   :  { %6287 = vmatprep.subr.bf16.mxu1 %v7397_v28 }
 0x4dc   :  { %6288 = vmatpush1.bf16.msra.mxu1 %v7396_v2 }
 0x4dd   :  { %6339 = vmatprep.subr.bf16.mxu1 %v6921_v20  ;;  %v2755_v20 = vld [vmem:[%s9884_s5 + $0x878] sm:$0xff] }
 0x4de   :  { %v7177_v30 = vcombine.high %v2755_v20, %v2771_v21  ;;  %v7176_v48 = vcombine.low %v2755_v20, %v2771_v21 }
 0x4df   :  { %6290 = vmatmul.mubr.bf16.vlgmr.msra.gmra.mrb[32].mxu1 %v8334_v38 }
 0x4e0   :  { %6340 = vmatpush1.bf16.msra.mxu1 %v6920_v24  ;;  %6371 = vmatprep.mubr.bf16.mxu1 %v8332_v37  ;;  %v2643_v37 = vld [vmem:[%s9884_s5 + $0x4f8] sm:$0xff]  ;;  %v6471_v24 = vrot.slane %v6463_v27, %v8048_v49 }
 0x4e1   :  { %6341 = vmatprep.subr.bf16.mxu1 %v6953_v9  ;;  %v7049_v45 = vcombine.high %v2627_v26, %v2643_v37  ;;  %v7048_v39 = vcombine.low %v2627_v26, %v2643_v37  ;;  %v2819_v27 = vld [vmem:[%s9884_s5 + $0xa78] sm:$0xff] }
 0x4e2   :  { %v2851_v26 = vld [vmem:[%s9884_s5 + $0xb78] sm:$0xff] }
 0x4e3   :  { %v2867_v37 = vld [vmem:[%s9884_s5 + $0xbf8] sm:$0xff] }
 0x4e4   :  { %6342 = vmatpush1.bf16.msra.mxu1 %v6952_v31 }
 0x4e5   :  { %6343 = vmatprep.subr.bf16.mxu1 %v6985_v34  ;;  %v2787_v34 = vld [vmem:[%s9884_s5 + $0x978] sm:$0xff] }
 0x4e6   :  { %v7209_v55 = vcombine.high %v2787_v34, %v2803_v35 }
 0x4e8   :  { %6344 = vmatpush1.bf16.msra.mxu1 %v6984_v41  ;;  %v7208_v41 = vcombine.low %v2787_v34, %v2803_v35  ;;  %v3095_v35 = vrot.slane %v9618_v5, %v9423_v11 }
 0x4e9   :  { %6345 = vmatprep.subr.bf16.mxu1 %v7017_v3  ;;  %v7241_v3 = vcombine.high %v2819_v27, %v2835_v40 }
 0x4ec   :  { %6346 = vmatpush1.bf16.msra.mxu1 %v7016_v44  ;;  %v7240_v44 = vcombine.low %v2819_v27, %v2835_v40 }
 0x4ed   :  { %6347 = vmatprep.subr.bf16.mxu1 %v7049_v45  ;;  %v7273_v45 = vcombine.high %v2851_v26, %v2867_v37 }
 0x4f0   :  { %6348 = vmatpush1.bf16.msra.mxu1 %v7048_v39  ;;  %v7272_v39 = vcombine.low %v2851_v26, %v2867_v37 }
 0x4f1   :  { %6349 = vmatprep.subr.bf16.mxu1 %v7081_v51  ;;  %v7305_v51 = vcombine.high %v2883_v46, %v2899_v23 }
 0x4f2   :  { %v6045_v1 = vpop.f32.mrb[20].mxu1 }
 0x4f3   :  { %v6046_v32 = vadd.f32 %v6045_v1, %v3063_v54  ;;  %v6168_v25 = vpop.f32.mrb[24].mxu0  ;;  %v6047_v8 = vpop.f32.mrb[21].mxu1  ;;  %v7337_v54 = vcombine.high %v2915_v50, %v2931_v52  ;;  %v2995_v1 = vld [vmem:[%s9884_s5 + $0xff8] sm:$0xff] }
 0x4f4   :  { %v9761_v10 = vadd.f32 %v6168_v25, %v3087_v57  ;;  %v6048_v12 = vadd.f32 %v6047_v8, %v3067_v61  ;;  %v6170_v13 = vpop.f32.mrb[25].mxu0  ;;  %v6049_v14 = vpop.f32.mrb[22].mxu1  ;;  %6350 = vmatpush1.bf16.msra.mxu1 %v7080_v62  ;;  %v2947_v57 = vld [vmem:[%s9884_s5 + $0xe78] sm:$0xff]  ;;  %v7336_v62 = vcombine.low %v2915_v50, %v2931_v52  ;;  %v3079_v8 = vrot.slane %v9618_v5, %v8190_v47 }
 0x4f5   :  { %v9763_v17 = vadd.f32 %v6170_v13, %v3091_v63  ;;  %v6172_v18 = vpop.f32.mrb[26].mxu0  ;;  %v6050_v28 = vpop.f32.mrb[23].mxu1  ;;  %6351 = vmatprep.subr.bf16.mxu1 %v7113_v0  ;;  %v2963_v61 = vld [vmem:[%s9884_s5 + $0xef8] sm:$0xff]  ;;  %v3083_v13 = vrot.slane %v9618_v5, %v8173_v60 }
 0x4f6   :  { %v6464_v42 = vcombine.low %v6046_v32, %v6048_v12  ;;  %v6173_v2 = vpop.f32.mrb[27].mxu0  ;;  %v7369_v63 = vcombine.high %v2947_v57, %v2963_v61  ;;  %v2979_v0 = vld [vmem:[%s9884_s5 + $0xf78] sm:$0xff]  ;;  %v7368_v6 = vcombine.low %v2947_v57, %v2963_v61 }
 0x4f7   :  { %v6497_v43 = vcombine.low %v9761_v10, %v9763_v17  ;;  %v7401_v7 = vcombine.high %v2979_v0, %v2995_v1  ;;  %v7400_v32 = vcombine.low %v2979_v0, %v2995_v1  ;;  %v9827_v25 = vld [vmem:[%s9885_s6 + $0x18] sm:$0xff] }
 0x4f8   :  { %v6478_v9 = vrot.slane %v6464_v42, %v8048_v49  ;;  %6352 = vmatpush1.bf16.msra.mxu1 %v7112_v16  ;;  %v3103_v12 = vrot.slane %v9827_v25, %v8162_v56  ;;  %v3107_v14 = vrot.slane %v9827_v25, %v8170_v59  ;;  %v3123_v19 = vrot.slane %v9827_v25, %v8987_v4 }
 0x4f9   :  { %6353 = vmatprep.subr.bf16.mxu1 %v7145_v33  ;;  %v3111_v50 = vrot.slane %v9827_v25, %v8190_v47  ;;  %v3115_v52 = vrot.slane %v9827_v25, %v8173_v60  ;;  %v3127_v47 = vrot.slane %v9827_v25, %v9423_v11  ;;  %v3131_v60 = vrot.slane %v9827_v25, %v9432_v15 }
 0x4fa   :  { %v6479_v31 = vcombine.low %v6471_v24, %v6478_v9 }
 0x4fc   :  { %6559 = vst [vmem:[%s9886_s7 + $0x18] sm:$0xff] %v6479_v31  ;;  %6354 = vmatpush1.bf16.msra.mxu1 %v7144_v29  ;;  %v6488_v31 = vrot.slane %v6480_v36, %v8048_v49 }
 0x4fd   :  { %6355 = vmatprep.subr.bf16.mxu1 %v7177_v30 }
 0x500   :  { %6356 = vmatpush1.bf16.msra.mxu1 %v7176_v48  ;;  %v3119_v48 = vrot.slane %v9827_v25, %v8973_v58 }
 0x501   :  { %6357 = vmatprep.subr.bf16.mxu1 %v7209_v55  ;;  %v3099_v55 = vrot.slane %v9618_v5, %v9432_v15  ;;  %v6505_v5 = vrot.slane %v6497_v43, %v8048_v49 }
 0x504   :  { %6358 = vmatpush1.bf16.msra.mxu1 %v7208_v41 }
 0x505   :  { %6359 = vmatprep.subr.bf16.mxu1 %v7241_v3 }
 0x508   :  { %6360 = vmatpush1.bf16.msra.mxu1 %v7240_v44 }
 0x509   :  { %6361 = vmatprep.subr.bf16.mxu1 %v7273_v45 }
 0x50c   :  { %6362 = vmatpush1.bf16.msra.mxu1 %v7272_v39 }
 0x50d   :  { %6363 = vmatprep.subr.bf16.mxu1 %v7305_v51 }
 0x510   :  { %6364 = vmatpush1.bf16.msra.mxu1 %v7304_v53 }
 0x511   :  { %6365 = vmatprep.subr.bf16.mxu1 %v7337_v54 }
 0x514   :  { %6366 = vmatpush1.bf16.msra.mxu1 %v7336_v62 }
 0x515   :  { %6367 = vmatprep.subr.bf16.mxu1 %v7369_v63 }
 0x518   :  { %6368 = vmatpush1.bf16.msra.mxu1 %v7368_v6 }
 0x519   :  { %6369 = vmatprep.subr.bf16.mxu1 %v7401_v7 }
 0x51c   :  { %6370 = vmatpush1.bf16.msra.mxu1 %v7400_v32 }
 0x51f   :  { %6372 = vmatmul.mubr.bf16.vlgmr.msra.gmra.mrb[36].mxu1 %v8334_v38 }
 0x532   :  { %v6127_v16 = vpop.f32.mrb[24].mxu1 }
 0x533   :  { %v6128_v18 = vadd.f32 %v6127_v16, %v3079_v8  ;;  %v6250_v38 = vpop.f32.mrb[28].mxu0  ;;  %v6129_v28 = vpop.f32.mrb[25].mxu1 }
 0x534   :  { %v6251_v33 = vadd.f32 %v6250_v38, %v3103_v12  ;;  %v6130_v42 = vadd.f32 %v6129_v28, %v3083_v13  ;;  %v6252_v2 = vpop.f32.mrb[29].mxu0  ;;  %v6131_v20 = vpop.f32.mrb[26].mxu1 }
 0x535   :  { %v6253_v21 = vadd.f32 %v6252_v2, %v3107_v14  ;;  %v6254_v24 = vpop.f32.mrb[30].mxu0  ;;  %v6132_v9 = vpop.f32.mrb[27].mxu1 }
 0x536   :  { %v6481_v29 = vcombine.low %v6128_v18, %v6130_v42  ;;  %v6255_v30 = vpop.f32.mrb[31].mxu0 }
 0x537   :  { %v6514_v56 = vcombine.low %v6251_v33, %v6253_v21 }
 0x538   :  { %v6495_v59 = vrot.slane %v6481_v29, %v8048_v49 }
 0x539   :  { %v6522_v43 = vrot.slane %v6514_v56, %v8048_v49 }
 0x53a   :  { %v6496_v34 = vcombine.low %v6488_v31, %v6495_v59 }
 0x53c   :  { %6560 = vst [vmem:[%s9886_s7 + $0x20] sm:$0xff] %v6496_v34 }
 0x572   :  { %v6209_v22 = vpop.f32.mrb[28].mxu1 }
 0x573   :  { %v6210_v36 = vadd.f32 %v6209_v22, %v3095_v35  ;;  %v6332_v27 = vpop.f32.mrb[32].mxu0  ;;  %v6211_v40 = vpop.f32.mrb[29].mxu1 }
 0x574   :  { %v6333_v41 = vadd.f32 %v6332_v27, %v3119_v48  ;;  %v6212_v3 = vadd.f32 %v6211_v40, %v3099_v55  ;;  %v6334_v26 = vpop.f32.mrb[33].mxu0  ;;  %v6213_v37 = vpop.f32.mrb[30].mxu1 }
 0x575   :  { %v6335_v44 = vadd.f32 %v6334_v26, %v3123_v19  ;;  %v6336_v45 = vpop.f32.mrb[34].mxu0  ;;  %v6214_v46 = vpop.f32.mrb[31].mxu1 }
 0x576   :  { %v6498_v23 = vcombine.low %v6210_v36, %v6212_v3  ;;  %v6337_v39 = vpop.f32.mrb[35].mxu0 }
 0x577   :  { %v6531_v58 = vcombine.low %v6333_v41, %v6335_v44 }
 0x578   :  { %v6512_v4 = vrot.slane %v6498_v23, %v8048_v49 }
 0x579   :  { %v6539_v14 = vrot.slane %v6531_v58, %v8048_v49 }
 0x57a   :  { %v6513_v51 = vcombine.low %v6505_v5, %v6512_v4 }
 0x57c   :  { %6561 = vst [vmem:[%s9886_s7 + $0x28] sm:$0xff] %v6513_v51 }
 0x5b2   :  { %v6291_v53 = vpop.f32.mrb[32].mxu1 }
 0x5b3   :  { %v6292_v54 = vadd.f32 %v6291_v53, %v3111_v50  ;;  %v6293_v57 = vpop.f32.mrb[33].mxu1 }
 0x5b4   :  { %v6294_v61 = vadd.f32 %v6293_v57, %v3115_v52  ;;  %v6295_v62 = vpop.f32.mrb[34].mxu1 }
 0x5b5   :  { %v6296_v10 = vpop.f32.mrb[35].mxu1 }
 0x5b6   :  { %v6515_v17 = vcombine.low %v6292_v54, %v6294_v61 }
 0x5b8   :  { %v6529_v63 = vrot.slane %v6515_v17, %v8048_v49 }
 0x5ba   :  { %v6530_v0 = vcombine.low %v6522_v43, %v6529_v63 }
 0x5bc   :  { %6562 = vst [vmem:[%s9886_s7 + $0x30] sm:$0xff] %v6530_v0 }
 0x5f2   :  { %v6373_v1 = vpop.f32.mrb[36].mxu1 }
 0x5f3   :  { %v6374_v6 = vadd.f32 %v6373_v1, %v3127_v47  ;;  %v6375_v7 = vpop.f32.mrb[37].mxu1 }
 0x5f4   :  { %v6376_v32 = vadd.f32 %v6375_v7, %v3131_v60  ;;  %v6377_v8 = vpop.f32.mrb[38].mxu1 }
 0x5f5   :  { %v6378_v12 = vpop.f32.mrb[39].mxu1 }
 0x5f6   :  { %v6532_v13 = vcombine.low %v6374_v6, %v6376_v32 }
 0x5f8   :  { %v6546_v16 = vrot.slane %v6532_v13, %v8048_v49 }
 0x5fa   :  { %v6547_v18 = vcombine.low %v6539_v14, %v6546_v16 }
 0x5fc   :  { %6563 = vst [vmem:[%s9886_s7 + $0x38] sm:$0xff] %v6547_v18 }
 0x5fd   :  { %6568 = vsyncpa [#allocation3], 1 }
 0x5fe   :  { %6569 = vsyncpa [#allocation5], 1 }

</bundles_post_ra>
